<compile_context>
chip_gen: v5e
topology: v5e:2x2
jax: 0.10.0
libtpu: 0.0.40
codegen_flags: <defaults>
</compile_context>

<pallas_src>
import functools
import math

import jax
import jax.numpy as jnp
from jax.experimental import pallas as pl
from jax.experimental.pallas import tpu as pltpu

BN_EPS = 1e-5
ACT_DTYPE = jnp.bfloat16          # inter-kernel activation dtype (halves HBM traffic)
VMEM_LIMIT = 32 * 1024 * 1024     # explicit per-kernel VMEM budget


def _make_divisible(v, divisor, min_value=None):
    if min_value is None:
        min_value = divisor
    new_v = max(min_value, int(v + divisor / 2) // divisor * divisor)
    if new_v < 0.9 * v:
        new_v += divisor
    return new_v


def _apply_act(y, act):
    if act == "relu":
        return jnp.maximum(y, 0.0)
    if act == "hswish":
        return y * jnp.clip(y + 3.0, 0.0, 6.0) * (1.0 / 6.0)
    if act == "hsigmoid":
        return jnp.clip(y + 3.0, 0.0, 6.0) * (1.0 / 6.0)
    return y


def _pick_tile(total, target=512):
    """Largest divisor of `total` that is <= target and a multiple of 8."""
    if total <= target:
        return total
    for t in range(target, 7, -1):
        if t % 8 == 0 and total % t == 0:
            return t
    return total


# ----------------------------- Pallas kernels ------------------------------ #

def _pw_fused_kernel(*refs, act, pre_act, has_se, has_res):
    """x(1,thw,K) @ w(K,N), fused [SE scale + pre_act] / BN / act / residual."""
    x_ref, w_ref, scale_ref, bias_ref = refs[:4]
    idx = 4
    se_ref = res_ref = None
    if has_se:
        se_ref = refs[idx]; idx += 1
    if has_res:
        res_ref = refs[idx]; idx += 1
    o_ref = refs[idx]

    x = x_ref[0]                                           # (thw, K) bf16
    if has_se:
        xf = x.astype(jnp.float32) * se_ref[0]             # per-image channel scale
        xf = _apply_act(xf, pre_act)                       # activation after the plug
        x = xf.astype(ACT_DTYPE)
    y = jnp.dot(x, w_ref[...], preferred_element_type=jnp.float32)
    y = y * scale_ref[...] + bias_ref[...]                 # folded BN (f32 epilogue)
    y = _apply_act(y, act)
    if has_res:
        y = y + res_ref[0].astype(jnp.float32)             # fused residual add
    o_ref[0] = y.astype(o_ref.dtype)


def _dw_kernel(x_ref, w_ref, scale_ref, bias_ref, o_ref, *, k, s, Ho, Wo, Hph, act):
    """Depthwise kxk conv on one (phase-split, padded) image; taps are static
    in-kernel slices of the VMEM tile, no HBM tap replication."""
    acc = None
    t = 0
    for di in range(k):
        for dj in range(k):
            phase = (di % s) * s + (dj % s)
            qi, qj = di // s, dj // s
            r0 = phase * Hph + qi
            tap = x_ref[0, r0:r0 + Ho, qj:qj + Wo, :].astype(jnp.float32)
            term = tap * w_ref[t]                          # (Ho,Wo,C) * (1,C)
            acc = term if acc is None else acc + term
            t += 1
    y = acc * scale_ref[...] + bias_ref[...]
    y = _apply_act(y, act)
    o_ref[0] = y.astype(o_ref.dtype)


def _se_scale_kernel(x_ref, w1_ref, b1_ref, w2_ref, b2_ref, o_ref, *, inv_hw):
    """SELayer scale only: GAP -> fc -> relu -> fc -> h_sigmoid -> (1, C)."""
    x = x_ref[0].astype(jnp.float32)                       # (HW, C)
    pooled = jnp.sum(x, axis=0, keepdims=True) * inv_hw    # (1, C)
    h = jnp.dot(pooled, w1_ref[...], preferred_element_type=jnp.float32) + b1_ref[...]
    h = jnp.maximum(h, 0.0)
    sc = jnp.dot(h, w2_ref[...], preferred_element_type=jnp.float32) + b2_ref[...]
    o_ref[0] = jnp.clip(sc + 3.0, 0.0, 6.0) * (1.0 / 6.0)


def _gap_hswish_kernel(x_ref, o_ref, *, inv_hw):
    p = jnp.sum(x_ref[0].astype(jnp.float32), axis=0, keepdims=True) * inv_hw
    o_ref[0] = _apply_act(p, "hswish").astype(o_ref.dtype)


# ------------------------------ Pallas wrappers ----------------------------- #

def pointwise_conv(x3, w, scale, bias, act="none", *, sescale=None, pre_act="none",
                   res3=None, out_dtype=None, tile_target=512):
    """x3: (N, HW, K).  Gridded matmul with resident weights + fused epilogue."""
    N, HW, K = x3.shape
    Cout = w.shape[1]
    out_dtype = out_dtype if out_dtype is not None else ACT_DTYPE
    thw = _pick_tile(HW, tile_target)
    grid = (N, HW // thw)

    in_specs = [
        pl.BlockSpec((1, thw, K), lambda n, i: (n, i, 0)),
        pl.BlockSpec((K, Cout), lambda n, i: (0, 0)),
        pl.BlockSpec((1, Cout), lambda n, i: (0, 0)),
        pl.BlockSpec((1, Cout), lambda n, i: (0, 0)),
    ]
    args = [x3.astype(ACT_DTYPE), w.astype(ACT_DTYPE),
            scale.reshape(1, Cout).astype(jnp.float32),
            bias.reshape(1, Cout).astype(jnp.float32)]
    if sescale is not None:                                 # (N, 1, K) f32
        in_specs.append(pl.BlockSpec((1, 1, K), lambda n, i: (n, 0, 0)))
        args.append(sescale.astype(jnp.float32))
    if res3 is not None:                                    # (N, HW, Cout)
        in_specs.append(pl.BlockSpec((1, thw, Cout), lambda n, i: (n, i, 0)))
        args.append(res3.astype(ACT_DTYPE))

    kern = functools.partial(_pw_fused_kernel, act=act, pre_act=pre_act,
                             has_se=sescale is not None, has_res=res3 is not None)
    return pl.pallas_call(
        kern,
        out_shape=jax.ShapeDtypeStruct((N, HW, Cout), out_dtype),
        grid=grid,
        in_specs=in_specs,
        out_specs=pl.BlockSpec((1, thw, Cout), lambda n, i: (n, i, 0)),
        compiler_params=pltpu.CompilerParams(
            dimension_semantics=("parallel", "parallel"),
            vmem_limit_bytes=VMEM_LIMIT),
    )(*args)


def depthwise_conv(x4, w_kkc, scale, bias, k, s, act):
    """x4: (N, H, W, C) -> (N, Ho, Wo, C).  Stride handled via a zero-cost
    phase decomposition in the wrapper so the kernel only does stride-1 slices."""
    N, H, W, C = x4.shape
    p = (k - 1) // 2
    Ho = (H + 2 * p - k) // s + 1
    Wo = (W + 2 * p - k) // s + 1
    Hp, Wp = H + 2 * p, W + 2 * p
    Hp2 = ((Hp + s - 1) // s) * s
    Wp2 = ((Wp + s - 1) // s) * s
    xp = jnp.pad(x4.astype(ACT_DTYPE),
                 ((0, 0), (p, p + Hp2 - Hp), (p, p + Wp2 - Wp), (0, 0)))
    if s == 1:
        P, Hph, Wph = 1, Hp2, Wp2
        xph = xp
    else:
        P, Hph, Wph = s * s, Hp2 // s, Wp2 // s
        xph = xp.reshape(N, Hph, s, Wph, s, C)
        xph = jnp.transpose(xph, (0, 2, 4, 1, 3, 5)).reshape(N, P * Hph, Wph, C)

    kern = functools.partial(_dw_kernel, k=k, s=s, Ho=Ho, Wo=Wo, Hph=Hph, act=act)
    return pl.pallas_call(
        kern,
        out_shape=jax.ShapeDtypeStruct((N, Ho, Wo, C), ACT_DTYPE),
        grid=(N,),
        in_specs=[pl.BlockSpec((1, P * Hph, Wph, C), lambda n: (n, 0, 0, 0)),
                  pl.BlockSpec((k * k, 1, C), lambda n: (0, 0, 0)),
                  pl.BlockSpec((1, 1, C), lambda n: (0, 0, 0)),
                  pl.BlockSpec((1, 1, C), lambda n: (0, 0, 0))],
        out_specs=pl.BlockSpec((1, Ho, Wo, C), lambda n: (n, 0, 0, 0)),
        compiler_params=pltpu.CompilerParams(
            dimension_semantics=("parallel",),
            vmem_limit_bytes=VMEM_LIMIT),
    )(xph,
      w_kkc.reshape(k * k, 1, C).astype(jnp.float32),
      scale.reshape(1, 1, C).astype(jnp.float32),
      bias.reshape(1, 1, C).astype(jnp.float32))


def se_scale(x3, w1, b1, w2, b2):
    """x3: (N, HW, C) -> per-image channel scale (N, 1, C) f32."""
    N, HW, C = x3.shape
    Cred = w1.shape[1]
    kern = functools.partial(_se_scale_kernel, inv_hw=1.0 / HW)
    return pl.pallas_call(
        kern,
        out_shape=jax.ShapeDtypeStruct((N, 1, C), jnp.float32),
        grid=(N,),
        in_specs=[pl.BlockSpec((1, HW, C), lambda n: (n, 0, 0)),
                  pl.BlockSpec((C, Cred), lambda n: (0, 0)),
                  pl.BlockSpec((1, Cred), lambda n: (0, 0)),
                  pl.BlockSpec((Cred, C), lambda n: (0, 0)),
                  pl.BlockSpec((1, C), lambda n: (0, 0))],
        out_specs=pl.BlockSpec((1, 1, C), lambda n: (n, 0, 0)),
        compiler_params=pltpu.CompilerParams(
            dimension_semantics=("parallel",),
            vmem_limit_bytes=VMEM_LIMIT),
    )(x3.astype(ACT_DTYPE),
      w1.astype(jnp.float32), b1.reshape(1, Cred).astype(jnp.float32),
      w2.astype(jnp.float32), b2.reshape(1, C).astype(jnp.float32))


def gap_hswish(x3):
    """x3: (N, HW, C) -> (N, 1, C): AdaptiveAvgPool2d((1,1)) + h_swish."""
    N, HW, C = x3.shape
    kern = functools.partial(_gap_hswish_kernel, inv_hw=1.0 / HW)
    return pl.pallas_call(
        kern,
        out_shape=jax.ShapeDtypeStruct((N, 1, C), ACT_DTYPE),
        grid=(N,),
        in_specs=[pl.BlockSpec((1, HW, C), lambda n: (n, 0, 0))],
        out_specs=pl.BlockSpec((1, 1, C), lambda n: (n, 0, 0)),
        compiler_params=pltpu.CompilerParams(
            dimension_semantics=("parallel",),
            vmem_limit_bytes=VMEM_LIMIT),
    )(x3.astype(ACT_DTYPE))


# ------------------------------ glue (JAX) --------------------------------- #

def _im2col_taps(x, k, s):
    """Pad and return the k*k shifted/strided views: (k*k, N, Ho, Wo, C)."""
    N, H, W, C = x.shape
    p = (k - 1) // 2
    Ho = (H + 2 * p - k) // s + 1
    Wo = (W + 2 * p - k) // s + 1
    xp = jnp.pad(x, ((0, 0), (p, p), (p, p), (0, 0)))
    taps = [xp[:, di:di + s * Ho:s, dj:dj + s * Wo:s, :]
            for di in range(k) for dj in range(k)]
    return jnp.stack(taps, axis=0), Ho, Wo


def stem_conv(x4, w2, scale, bias):
    """3x3/s2 stem: im2col (Cin=3, single layer) + gridded MXU matmul kernel."""
    # TODO(synk): fold the stem tap generation into the kernel like the
    # depthwise path to avoid the (small, 2.25x) im2col patch materialization.
    N, _, _, Cin = x4.shape
    taps, Ho, Wo = _im2col_taps(x4, 3, 2)                  # (9, N, Ho, Wo, Cin)
    patches = jnp.transpose(taps, (1, 2, 3, 0, 4)).reshape(N, Ho * Wo, 9 * Cin)
    y3 = pointwise_conv(patches, w2, scale, bias, act="hswish")
    return y3, Ho, Wo


# --------------------------- parameter creation ----------------------------- #

def init_params(key, cfgs, in_ch=3, width_mult=1.0, fc1=64, fc2=64, num_attr=5):
    keys = iter(jax.random.split(key, 256))
    bn_scale = lambda c: jnp.full((c,), 1.0 / math.sqrt(1.0 + BN_EPS), jnp.float32)
    bn_bias = lambda c: jnp.zeros((c,), jnp.float32)

    def conv_w(k, cin, cout):            # Conv2d init: N(0, sqrt(2/(k*k*cout)))
        std = math.sqrt(2.0 / (k * k * cout))
        return std * jax.random.normal(next(keys), (k, k, cin, cout), jnp.float32)

    def dw_w(k, c):                      # depthwise: out_channels == c
        std = math.sqrt(2.0 / (k * k * c))
        return std * jax.random.normal(next(keys), (k, k, c), jnp.float32)

    def lin(cin, cout):                  # Linear init: N(0, 0.01), bias = 0
        w = 0.01 * jax.random.normal(next(keys), (cin, cout), jnp.float32)
        return w, jnp.zeros((cout,), jnp.float32)

    params = {}
    input_channel = _make_divisible(16 * width_mult, 8)
    params["stem"] = dict(w=conv_w(3, in_ch, input_channel).reshape(9 * in_ch, input_channel),
                          scale=bn_scale(input_channel), bias=bn_bias(input_channel))

    blocks = []
    for k, exp_size, c, plug_in, use_hs, s in cfgs:
        if k == -1:                      # empty nn.Sequential() entry -> identity
            blocks.append(None)
            continue
        oup = _make_divisible(c * width_mult, 8)
        hidden = exp_size
        blk = dict(k=k, s=s, inp=input_channel, hidden=hidden, oup=oup,
                   plug=plug_in, use_hs=use_hs,
                   identity=(s == 1 and input_channel == oup))
        if input_channel != hidden:
            blk["pw"] = dict(w=conv_w(1, input_channel, hidden).reshape(input_channel, hidden),
                             scale=bn_scale(hidden), bias=bn_bias(hidden))
        blk["dw"] = dict(w=dw_w(k, hidden), scale=bn_scale(hidden), bias=bn_bias(hidden))
        if plug_in == 1:                 # SELayer(hidden_dim), reduction=4
            c_red = _make_divisible(hidden // 4, 8)
            w1, b1 = lin(hidden, c_red)
            w2, b2 = lin(c_red, hidden)
            blk["se"] = dict(w1=w1, b1=b1, w2=w2, b2=b2)
        # TODO(synk): plug_in 2/3 (ATLayer/ATSELayer) sources are unavailable; not exercised.
        blk["pw_linear"] = dict(w=conv_w(1, hidden, oup).reshape(hidden, oup),
                                scale=bn_scale(oup), bias=bn_bias(oup))
        blocks.append(blk)
        input_channel = oup
    params["blocks"] = blocks

    params["head"] = dict(w=conv_w(1, input_channel, fc1).reshape(input_channel, fc1),
                          scale=bn_scale(fc1), bias=bn_bias(fc1))

    # TODO(synk): model_utils.Classifier source is unavailable; synthetic head =
    # Linear(fc1->fc2) + ReLU + Linear(fc2->num_attr) (dropout is a no-op at inference).
    w1, b1 = lin(fc1, fc2)
    w2, b2 = lin(fc2, num_attr)
    params["cls"] = dict(w1=w1, b1=b1, w2=w2, b2=b2)
    return params


# ------------------------------- forward ----------------------------------- #

def inverted_residual(x3, H, W, blk):
    """x3: (N, H*W, inp) -> (y3, Ho, Wo)."""
    N = x3.shape[0]
    act = "hswish" if blk["use_hs"] else "relu"
    k, s = blk["k"], blk["s"]
    res3 = x3 if blk["identity"] else None
    pwl = blk["pw_linear"]

    if blk["inp"] == blk["hidden"]:
        # dw -> BN -> act -> plug -> pw(linear) -> BN [+ residual]
        y4 = depthwise_conv(x3.reshape(N, H, W, blk["inp"]),
                            blk["dw"]["w"], blk["dw"]["scale"], blk["dw"]["bias"],
                            k, s, act)
        Ho, Wo = y4.shape[1], y4.shape[2]
        y3 = y4.reshape(N, Ho * Wo, blk["hidden"])
        sescale = None
        if blk["plug"] == 1:
            se = blk["se"]
            sescale = se_scale(y3, se["w1"], se["b1"], se["w2"], se["b2"])
        y3 = pointwise_conv(y3, pwl["w"], pwl["scale"], pwl["bias"], act="none",
                            sescale=sescale, pre_act="none", res3=res3)
    else:
        # pw -> BN -> act -> dw -> BN -> plug -> act -> pw(linear) -> BN [+ residual]
        y3 = pointwise_conv(x3, blk["pw"]["w"], blk["pw"]["scale"], blk["pw"]["bias"], act=act)
        dw_act = "none" if blk["plug"] == 1 else act
        y4 = depthwise_conv(y3.reshape(N, H, W, blk["hidden"]),
                            blk["dw"]["w"], blk["dw"]["scale"], blk["dw"]["bias"],
                            k, s, dw_act)
        Ho, Wo = y4.shape[1], y4.shape[2]
        y3 = y4.reshape(N, Ho * Wo, blk["hidden"])
        sescale, pre_act = None, "none"
        if blk["plug"] == 1:
            se = blk["se"]
            sescale = se_scale(y3, se["w1"], se["b1"], se["w2"], se["b2"])
            pre_act = act                      # activation AFTER the plug (matches PyTorch)
        y3 = pointwise_conv(y3, pwl["w"], pwl["scale"], pwl["bias"], act="none",
                            sescale=sescale, pre_act=pre_act, res3=res3)
    return y3, Ho, Wo


def mobilenetv3_forward(x_nchw, params):
    x = jnp.transpose(x_nchw, (0, 2, 3, 1)).astype(ACT_DTYPE)     # NCHW -> NHWC
    N = x.shape[0]
    st = params["stem"]
    x3, H, W = stem_conv(x, st["w"], st["scale"], st["bias"])     # (N, H*W, C)

    for blk in params["blocks"]:
        if blk is None:                  # empty Sequential entry
            continue
        x3, H, W = inverted_residual(x3, H, W, blk)

    hd = params["head"]
    x3 = pointwise_conv(x3, hd["w"], hd["scale"], hd["bias"], act="hswish")
    feat3 = gap_hswish(x3)                                        # (N, 1, fc1)

    cls = params["cls"]
    ones_h = jnp.ones((cls["w1"].shape[1],), jnp.float32)
    h3 = pointwise_conv(feat3, cls["w1"], ones_h, cls["b1"], act="relu")
    ones_o = jnp.ones((cls["w2"].shape[1],), jnp.float32)
    out3 = pointwise_conv(h3, cls["w2"], ones_o, cls["b2"], act="none",
                          out_dtype=jnp.float32)
    return out3.reshape(N, -1)


if __name__ == "__main__":
    # small synthetic MobileNetV3 config: [k, exp_size, c, plug_in, use_hs, s]
    cfgs = [
        [3, 16, 16, 0, 0, 1],    # inp == hidden branch, identity residual
        [-1, 0, 0, 0, 0, 1],     # k == -1 -> empty Sequential (identity)
        [3, 64, 24, 0, 0, 2],    # expand branch, ReLU
        [5, 96, 40, 1, 1, 2],    # expand branch, SE plug-in, h-swish
    ]
    key = jax.random.PRNGKey(0)
    pkey, xkey = jax.random.split(key)
    params = init_params(pkey, cfgs, fc1=64, fc2=64, num_attr=5)

    x = jax.random.normal(xkey, (2, 3, 32, 32), jnp.float32)       # NCHW like PyTorch

    fwd = jax.jit(lambda inp: mobilenetv3_forward(inp, params))
    out = fwd(x)
    jax.block_until_ready(out)
    assert out.shape == (2, 5) and out.dtype == jnp.float32
    print("KERNEL_OK")
</pallas_src>

<mosaic_0001>
module attributes {stable_mosaic.version = 11 : i64} {
  func.func @_pw_fused_kernel(%arg0: i32, %arg1: i32, %arg2: memref<1x256x27xbf16, #tpu.memory_space<vmem>>, %arg3: memref<27x16xbf16, #tpu.memory_space<vmem>>, %arg4: memref<1x16xf32, #tpu.memory_space<vmem>>, %arg5: memref<1x16xf32, #tpu.memory_space<vmem>>, %arg6: memref<1x256x16xbf16, #tpu.memory_space<vmem>>) attributes {dimension_semantics = [#tpu.dimension_semantics<parallel>, #tpu.dimension_semantics<parallel>], iteration_bounds = array<i64: 2, 1>, scalar_prefetch = 0 : i64, scratch_operands = 0 : i64, tpu.core_type = #tpu.core_type<tc>, window_params = [{transform_indices = @transform_0, window_bounds = array<i64: 1, 256, 27>}, {pipeline_mode = #tpu.pipeline_mode<synchronous>, transform_indices = @transform_1, window_bounds = array<i64: 27, 16>}, {pipeline_mode = #tpu.pipeline_mode<synchronous>, transform_indices = @transform_2, window_bounds = array<i64: 1, 16>}, {pipeline_mode = #tpu.pipeline_mode<synchronous>, transform_indices = @transform_3, window_bounds = array<i64: 1, 16>}, {transform_indices = @transform_4, window_bounds = array<i64: 1, 256, 16>}]} {
    %c0 = arith.constant 0 : index
    %c0_0 = arith.constant 0 : index
    %c0_1 = arith.constant 0 : index
    %0 = vector.load %arg2[%c0, %c0_0, %c0_1] : memref<1x256x27xbf16, #tpu.memory_space<vmem>>, vector<1x256x27xbf16>
    %1 = vector.shape_cast %0 : vector<1x256x27xbf16> to vector<256x27xbf16>
    %c0_2 = arith.constant 0 : index
    %c0_3 = arith.constant 0 : index
    %2 = vector.load %arg3[%c0_2, %c0_3] : memref<27x16xbf16, #tpu.memory_space<vmem>>, vector<27x16xbf16>
    %cst = arith.constant dense<0.000000e+00> : vector<256x16xf32>
    %3 = tpu.matmul %1, %2, %cst {dimension_numbers = #tpu.dot_dimension_numbers<[1], [0], [0], [1], [0, 0, 1, 1], [], []>} : vector<256x27xbf16>, vector<27x16xbf16>, vector<256x16xf32> -> vector<256x16xf32>
    %c0_4 = arith.constant 0 : index
    %c0_5 = arith.constant 0 : index
    %4 = vector.load %arg4[%c0_4, %c0_5] : memref<1x16xf32, #tpu.memory_space<vmem>>, vector<1x16xf32>
    %5 = vector.broadcast %4 : vector<1x16xf32> to vector<256x16xf32>
    %6 = arith.mulf %3, %5 : vector<256x16xf32>
    %c0_6 = arith.constant 0 : index
    %c0_7 = arith.constant 0 : index
    %7 = vector.load %arg5[%c0_6, %c0_7] : memref<1x16xf32, #tpu.memory_space<vmem>>, vector<1x16xf32>
    %8 = vector.broadcast %7 : vector<1x16xf32> to vector<256x16xf32>
    %9 = arith.addf %6, %8 : vector<256x16xf32>
    %cst_8 = arith.constant 3.000000e+00 : f32
    %10 = vector.broadcast %cst_8 : f32 to vector<256x16xf32>
    %11 = arith.addf %9, %10 : vector<256x16xf32>
    %cst_9 = arith.constant 0.000000e+00 : f32
    %cst_10 = arith.constant 6.000000e+00 : f32
    %12 = vector.broadcast %cst_9 : f32 to vector<256x16xf32>
    %13 = arith.maximumf %12, %11 : vector<256x16xf32>
    %14 = vector.broadcast %cst_10 : f32 to vector<256x16xf32>
    %15 = arith.minimumf %14, %13 : vector<256x16xf32>
    %16 = arith.mulf %9, %15 : vector<256x16xf32>
    %cst_11 = arith.constant 0.166666672 : f32
    %17 = vector.broadcast %cst_11 : f32 to vector<256x16xf32>
    %18 = arith.mulf %16, %17 : vector<256x16xf32>
    %19 = arith.truncf %18 : vector<256x16xf32> to vector<256x16xbf16>
    %c0_12 = arith.constant 0 : index
    %c0_13 = arith.constant 0 : index
    %c0_14 = arith.constant 0 : index
    %20 = vector.load %arg6[%c0_12, %c0_13, %c0_14] : memref<1x256x16xbf16, #tpu.memory_space<vmem>>, vector<1x256x16xbf16>
    %21 = vector.shape_cast %20 : vector<1x256x16xbf16> to vector<256x16xbf16>
    %22 = vector.shape_cast %19 : vector<256x16xbf16> to vector<1x256x16xbf16>
    tpu.vector_store %arg6[%c0_12, %c0_13, %c0_14], %22 {strides = array<i32>} : memref<1x256x16xbf16, #tpu.memory_space<vmem>>, vector<1x256x16xbf16>,
    return
  }
  func.func @transform_0(%arg0: i32, %arg1: i32) -> (i32, i32, i32) {
    %c0_i32 = arith.constant 0 : i32
    %c0_i32_0 = arith.constant 0 : i32
    return %arg0, %arg1, %c0_i32 : i32, i32, i32
  }
  func.func @transform_1(%arg0: i32, %arg1: i32) -> (i32, i32) {
    %c0_i32 = arith.constant 0 : i32
    %c0_i32_0 = arith.constant 0 : i32
    %c0_i32_1 = arith.constant 0 : i32
    return %c0_i32, %c0_i32_0 : i32, i32
  }
  func.func @transform_2(%arg0: i32, %arg1: i32) -> (i32, i32) {
    %c0_i32 = arith.constant 0 : i32
    %c0_i32_0 = arith.constant 0 : i32
    %c0_i32_1 = arith.constant 0 : i32
    return %c0_i32, %c0_i32_0 : i32, i32
  }
  func.func @transform_3(%arg0: i32, %arg1: i32) -> (i32, i32) {
    %c0_i32 = arith.constant 0 : i32
    %c0_i32_0 = arith.constant 0 : i32
    %c0_i32_1 = arith.constant 0 : i32
    return %c0_i32, %c0_i32_0 : i32, i32
  }
  func.func @transform_4(%arg0: i32, %arg1: i32) -> (i32, i32, i32) {
    %c0_i32 = arith.constant 0 : i32
    %c0_i32_0 = arith.constant 0 : i32
    return %arg0, %arg1, %c0_i32 : i32, i32, i32
  }
}

module attributes {stable_mosaic.version = 11 : i64} {
  func.func @_dw_kernel(%arg0: i32, %arg1: memref<1x18x18x16xbf16, #tpu.memory_space<vmem>>, %arg2: memref<9x1x16xf32, #tpu.memory_space<vmem>>, %arg3: memref<1x1x16xf32, #tpu.memory_space<vmem>>, %arg4: memref<1x1x16xf32, #tpu.memory_space<vmem>>, %arg5: memref<1x16x16x16xbf16, #tpu.memory_space<vmem>>) attributes {dimension_semantics = [#tpu.dimension_semantics<parallel>], iteration_bounds = array<i64: 2>, scalar_prefetch = 0 : i64, scratch_operands = 0 : i64, tpu.core_type = #tpu.core_type<tc>, window_params = [{transform_indices = @transform_0, window_bounds = array<i64: 1, 18, 18, 16>}, {pipeline_mode = #tpu.pipeline_mode<synchronous>, transform_indices = @transform_1, window_bounds = array<i64: 9, 1, 16>}, {pipeline_mode = #tpu.pipeline_mode<synchronous>, transform_indices = @transform_2, window_bounds = array<i64: 1, 1, 16>}, {pipeline_mode = #tpu.pipeline_mode<synchronous>, transform_indices = @transform_3, window_bounds = array<i64: 1, 1, 16>}, {transform_indices = @transform_4, window_bounds = array<i64: 1, 16, 16, 16>}]} {
    %c0 = arith.constant 0 : index
    %c0_0 = arith.constant 0 : index
    %c0_1 = arith.constant 0 : index
    %c0_2 = arith.constant 0 : index
    %0 = vector.load %arg1[%c0, %c0_0, %c0_1, %c0_2] : memref<1x18x18x16xbf16, #tpu.memory_space<vmem>>, vector<1x16x16x16xbf16>
    %1 = vector.shape_cast %0 : vector<1x16x16x16xbf16> to vector<16x16x16xbf16>
    %2 = arith.extf %1 : vector<16x16x16xbf16> to vector<16x16x16xf32>
    %c0_3 = arith.constant 0 : index
    %c0_4 = arith.constant 0 : index
    %c0_5 = arith.constant 0 : index
    %3 = vector.load %arg2[%c0_3, %c0_4, %c0_5] : memref<9x1x16xf32, #tpu.memory_space<vmem>>, vector<1x1x16xf32>
    %4 = vector.shape_cast %3 : vector<1x1x16xf32> to vector<1x16xf32>
    %5 = vector.shape_cast %4 : vector<1x16xf32> to vector<1x1x16xf32>
    %6 = vector.broadcast %5 : vector<1x1x16xf32> to vector<16x16x16xf32>
    %7 = arith.mulf %2, %6 : vector<16x16x16xf32>
    %c0_6 = arith.constant 0 : index
    %c0_7 = arith.constant 0 : index
    %c1 = arith.constant 1 : index
    %c0_8 = arith.constant 0 : index
    %8 = vector.load %arg1[%c0_6, %c0_7, %c1, %c0_8] : memref<1x18x18x16xbf16, #tpu.memory_space<vmem>>, vector<1x16x16x16xbf16>
    %9 = vector.shape_cast %8 : vector<1x16x16x16xbf16> to vector<16x16x16xbf16>
    %10 = arith.extf %9 : vector<16x16x16xbf16> to vector<16x16x16xf32>
    %c1_9 = arith.constant 1 : index
    %c0_10 = arith.constant 0 : index
    %c0_11 = arith.constant 0 : index
    %11 = vector.load %arg2[%c1_9, %c0_10, %c0_11] : memref<9x1x16xf32, #tpu.memory_space<vmem>>, vector<1x1x16xf32>
    %12 = vector.shape_cast %11 : vector<1x1x16xf32> to vector<1x16xf32>
    %13 = vector.shape_cast %12 : vector<1x16xf32> to vector<1x1x16xf32>
    %14 = vector.broadcast %13 : vector<1x1x16xf32> to vector<16x16x16xf32>
    %15 = arith.mulf %10, %14 : vector<16x16x16xf32>
    %16 = arith.addf %7, %15 : vector<16x16x16xf32>
    %c0_12 = arith.constant 0 : index
    %c0_13 = arith.constant 0 : index
    %c2 = arith.constant 2 : index
    %c0_14 = arith.constant 0 : index
    %17 = vector.load %arg1[%c0_12, %c0_13, %c2, %c0_14] : memref<1x18x18x16xbf16, #tpu.memory_space<vmem>>, vector<1x16x16x16xbf16>
    %18 = vector.shape_cast %17 : vector<1x16x16x16xbf16> to vector<16x16x16xbf16>
    %19 = arith.extf %18 : vector<16x16x16xbf16> to vector<16x16x16xf32>
    %c2_15 = arith.constant 2 : index
    %c0_16 = arith.constant 0 : index
    %c0_17 = arith.constant 0 : index
    %20 = vector.load %arg2[%c2_15, %c0_16, %c0_17] : memref<9x1x16xf32, #tpu.memory_space<vmem>>, vector<1x1x16xf32>
    %21 = vector.shape_cast %20 : vector<1x1x16xf32> to vector<1x16xf32>
    %22 = vector.shape_cast %21 : vector<1x16xf32> to vector<1x1x16xf32>
    %23 = vector.broadcast %22 : vector<1x1x16xf32> to vector<16x16x16xf32>
    %24 = arith.mulf %19, %23 : vector<16x16x16xf32>
    %25 = arith.addf %16, %24 : vector<16x16x16xf32>
    %c0_18 = arith.constant 0 : index
    %c1_19 = arith.constant 1 : index
    %c0_20 = arith.constant 0 : index
    %c0_21 = arith.constant 0 : index
    %26 = vector.load %arg1[%c0_18, %c1_19, %c0_20, %c0_21] : memref<1x18x18x16xbf16, #tpu.memory_space<vmem>>, vector<1x16x16x16xbf16>
    %27 = vector.shape_cast %26 : vector<1x16x16x16xbf16> to vector<16x16x16xbf16>
    %28 = arith.extf %27 : vector<16x16x16xbf16> to vector<16x16x16xf32>
    %c3 = arith.constant 3 : index
    %c0_22 = arith.constant 0 : index
    %c0_23 = arith.constant 0 : index
    %29 = vector.load %arg2[%c3, %c0_22, %c0_23] : memref<9x1x16xf32, #tpu.memory_space<vmem>>, vector<1x1x16xf32>
    %30 = vector.shape_cast %29 : vector<1x1x16xf32> to vector<1x16xf32>
    %31 = vector.shape_cast %30 : vector<1x16xf32> to vector<1x1x16xf32>
    %32 = vector.broadcast %31 : vector<1x1x16xf32> to vector<16x16x16xf32>
    %33 = arith.mulf %28, %32 : vector<16x16x16xf32>
    %34 = arith.addf %25, %33 : vector<16x16x16xf32>
    %c0_24 = arith.constant 0 : index
    %c1_25 = arith.constant 1 : index
    %c1_26 = arith.constant 1 : index
    %c0_27 = arith.constant 0 : index
    %35 = vector.load %arg1[%c0_24, %c1_25, %c1_26, %c0_27] : memref<1x18x18x16xbf16, #tpu.memory_space<vmem>>, vector<1x16x16x16xbf16>
    %36 = vector.shape_cast %35 : vector<1x16x16x16xbf16> to vector<16x16x16xbf16>
    %37 = arith.extf %36 : vector<16x16x16xbf16> to vector<16x16x16xf32>
    %c4 = arith.constant 4 : index
    %c0_28 = arith.constant 0 : index
    %c0_29 = arith.constant 0 : index
    %38 = vector.load %arg2[%c4, %c0_28, %c0_29] : memref<9x1x16xf32, #tpu.memory_space<vmem>>, vector<1x1x16xf32>
    %39 = vector.shape_cast %38 : vector<1x1x16xf32> to vector<1x16xf32>
    %40 = vector.shape_cast %39 : vector<1x16xf32> to vector<1x1x16xf32>
    %41 = vector.broadcast %40 : vector<1x1x16xf32> to vector<16x16x16xf32>
    %42 = arith.mulf %37, %41 : vector<16x16x16xf32>
    %43 = arith.addf %34, %42 : vector<16x16x16xf32>
    %c0_30 = arith.constant 0 : index
    %c1_31 = arith.constant 1 : index
    %c2_32 = arith.constant 2 : index
    %c0_33 = arith.constant 0 : index
    %44 = vector.load %arg1[%c0_30, %c1_31, %c2_32, %c0_33] : memref<1x18x18x16xbf16, #tpu.memory_space<vmem>>, vector<1x16x16x16xbf16>
    %45 = vector.shape_cast %44 : vector<1x16x16x16xbf16> to vector<16x16x16xbf16>
    %46 = arith.extf %45 : vector<16x16x16xbf16> to vector<16x16x16xf32>
    %c5 = arith.constant 5 : index
    %c0_34 = arith.constant 0 : index
    %c0_35 = arith.constant 0 : index
    %47 = vector.load %arg2[%c5, %c0_34, %c0_35] : memref<9x1x16xf32, #tpu.memory_space<vmem>>, vector<1x1x16xf32>
    %48 = vector.shape_cast %47 : vector<1x1x16xf32> to vector<1x16xf32>
    %49 = vector.shape_cast %48 : vector<1x16xf32> to vector<1x1x16xf32>
    %50 = vector.broadcast %49 : vector<1x1x16xf32> to vector<16x16x16xf32>
    %51 = arith.mulf %46, %50 : vector<16x16x16xf32>
    %52 = arith.addf %43, %51 : vector<16x16x16xf32>
    %c0_36 = arith.constant 0 : index
    %c2_37 = arith.constant 2 : index
    %c0_38 = arith.constant 0 : index
    %c0_39 = arith.constant 0 : index
    %53 = vector.load %arg1[%c0_36, %c2_37, %c0_38, %c0_39] : memref<1x18x18x16xbf16, #tpu.memory_space<vmem>>, vector<1x16x16x16xbf16>
    %54 = vector.shape_cast %53 : vector<1x16x16x16xbf16> to vector<16x16x16xbf16>
    %55 = arith.extf %54 : vector<16x16x16xbf16> to vector<16x16x16xf32>
    %c6 = arith.constant 6 : index
    %c0_40 = arith.constant 0 : index
    %c0_41 = arith.constant 0 : index
    %56 = vector.load %arg2[%c6, %c0_40, %c0_41] : memref<9x1x16xf32, #tpu.memory_space<vmem>>, vector<1x1x16xf32>
    %57 = vector.shape_cast %56 : vector<1x1x16xf32> to vector<1x16xf32>
    %58 = vector.shape_cast %57 : vector<1x16xf32> to vector<1x1x16xf32>
    %59 = vector.broadcast %58 : vector<1x1x16xf32> to vector<16x16x16xf32>
    %60 = arith.mulf %55, %59 : vector<16x16x16xf32>
    %61 = arith.addf %52, %60 : vector<16x16x16xf32>
    %c0_42 = arith.constant 0 : index
    %c2_43 = arith.constant 2 : index
    %c1_44 = arith.constant 1 : index
    %c0_45 = arith.constant 0 : index
    %62 = vector.load %arg1[%c0_42, %c2_43, %c1_44, %c0_45] : memref<1x18x18x16xbf16, #tpu.memory_space<vmem>>, vector<1x16x16x16xbf16>
    %63 = vector.shape_cast %62 : vector<1x16x16x16xbf16> to vector<16x16x16xbf16>
    %64 = arith.extf %63 : vector<16x16x16xbf16> to vector<16x16x16xf32>
    %c7 = arith.constant 7 : index
    %c0_46 = arith.constant 0 : index
    %c0_47 = arith.constant 0 : index
    %65 = vector.load %arg2[%c7, %c0_46, %c0_47] : memref<9x1x16xf32, #tpu.memory_space<vmem>>, vector<1x1x16xf32>
    %66 = vector.shape_cast %65 : vector<1x1x16xf32> to vector<1x16xf32>
    %67 = vector.shape_cast %66 : vector<1x16xf32> to vector<1x1x16xf32>
    %68 = vector.broadcast %67 : vector<1x1x16xf32> to vector<16x16x16xf32>
    %69 = arith.mulf %64, %68 : vector<16x16x16xf32>
    %70 = arith.addf %61, %69 : vector<16x16x16xf32>
    %c0_48 = arith.constant 0 : index
    %c2_49 = arith.constant 2 : index
    %c2_50 = arith.constant 2 : index
    %c0_51 = arith.constant 0 : index
    %71 = vector.load %arg1[%c0_48, %c2_49, %c2_50, %c0_51] : memref<1x18x18x16xbf16, #tpu.memory_space<vmem>>, vector<1x16x16x16xbf16>
    %72 = vector.shape_cast %71 : vector<1x16x16x16xbf16> to vector<16x16x16xbf16>
    %73 = arith.extf %72 : vector<16x16x16xbf16> to vector<16x16x16xf32>
    %c8 = arith.constant 8 : index
    %c0_52 = arith.constant 0 : index
    %c0_53 = arith.constant 0 : index
    %74 = vector.load %arg2[%c8, %c0_52, %c0_53] : memref<9x1x16xf32, #tpu.memory_space<vmem>>, vector<1x1x16xf32>
    %75 = vector.shape_cast %74 : vector<1x1x16xf32> to vector<1x16xf32>
    %76 = vector.shape_cast %75 : vector<1x16xf32> to vector<1x1x16xf32>
    %77 = vector.broadcast %76 : vector<1x1x16xf32> to vector<16x16x16xf32>
    %78 = arith.mulf %73, %77 : vector<16x16x16xf32>
    %79 = arith.addf %70, %78 : vector<16x16x16xf32>
    %c0_54 = arith.constant 0 : index
    %c0_55 = arith.constant 0 : index
    %c0_56 = arith.constant 0 : index
    %80 = vector.load %arg3[%c0_54, %c0_55, %c0_56] : memref<1x1x16xf32, #tpu.memory_space<vmem>>, vector<1x1x16xf32>
    %81 = vector.broadcast %80 : vector<1x1x16xf32> to vector<16x16x16xf32>
    %82 = arith.mulf %79, %81 : vector<16x16x16xf32>
    %c0_57 = arith.constant 0 : index
    %c0_58 = arith.constant 0 : index
    %c0_59 = arith.constant 0 : index
    %83 = vector.load %arg4[%c0_57, %c0_58, %c0_59] : memref<1x1x16xf32, #tpu.memory_space<vmem>>, vector<1x1x16xf32>
    %84 = vector.broadcast %83 : vector<1x1x16xf32> to vector<16x16x16xf32>
    %85 = arith.addf %82, %84 : vector<16x16x16xf32>
    %cst = arith.constant 0.000000e+00 : f32
    %86 = vector.broadcast %cst : f32 to vector<16x16x16xf32>
    %87 = arith.maximumf %85, %86 : vector<16x16x16xf32>
    %88 = arith.truncf %87 : vector<16x16x16xf32> to vector<16x16x16xbf16>
    %c0_60 = arith.constant 0 : index
    %c0_61 = arith.constant 0 : index
    %c0_62 = arith.constant 0 : index
    %c0_63 = arith.constant 0 : index
    %89 = vector.load %arg5[%c0_60, %c0_61, %c0_62, %c0_63] : memref<1x16x16x16xbf16, #tpu.memory_space<vmem>>, vector<1x16x16x16xbf16>
    %90 = vector.shape_cast %89 : vector<1x16x16x16xbf16> to vector<16x16x16xbf16>
    %91 = vector.shape_cast %88 : vector<16x16x16xbf16> to vector<1x16x16x16xbf16>
    tpu.vector_store %arg5[%c0_60, %c0_61, %c0_62, %c0_63], %91 {strides = array<i32>} : memref<1x16x16x16xbf16, #tpu.memory_space<vmem>>, vector<1x16x16x16xbf16>,
    return
  }
  func.func @transform_0(%arg0: i32) -> (i32, i32, i32, i32) {
    %c0_i32 = arith.constant 0 : i32
    %c0_i32_0 = arith.constant 0 : i32
    %c0_i32_1 = arith.constant 0 : i32
    %c0_i32_2 = arith.constant 0 : i32
    return %arg0, %c0_i32, %c0_i32_0, %c0_i32_1 : i32, i32, i32, i32
  }
  func.func @transform_1(%arg0: i32) -> (i32, i32, i32) {
    %c0_i32 = arith.constant 0 : i32
    %c0_i32_0 = arith.constant 0 : i32
    %c0_i32_1 = arith.constant 0 : i32
    %c0_i32_2 = arith.constant 0 : i32
    return %c0_i32, %c0_i32_0, %c0_i32_1 : i32, i32, i32
  }
  func.func @transform_2(%arg0: i32) -> (i32, i32, i32) {
    %c0_i32 = arith.constant 0 : i32
    %c0_i32_0 = arith.constant 0 : i32
    %c0_i32_1 = arith.constant 0 : i32
    %c0_i32_2 = arith.constant 0 : i32
    return %c0_i32, %c0_i32_0, %c0_i32_1 : i32, i32, i32
  }
  func.func @transform_3(%arg0: i32) -> (i32, i32, i32) {
    %c0_i32 = arith.constant 0 : i32
    %c0_i32_0 = arith.constant 0 : i32
    %c0_i32_1 = arith.constant 0 : i32
    %c0_i32_2 = arith.constant 0 : i32
    return %c0_i32, %c0_i32_0, %c0_i32_1 : i32, i32, i32
  }
  func.func @transform_4(%arg0: i32) -> (i32, i32, i32, i32) {
    %c0_i32 = arith.constant 0 : i32
    %c0_i32_0 = arith.constant 0 : i32
    %c0_i32_1 = arith.constant 0 : i32
    %c0_i32_2 = arith.constant 0 : i32
    return %arg0, %c0_i32, %c0_i32_0, %c0_i32_1 : i32, i32, i32, i32
  }
}

module attributes {stable_mosaic.version = 11 : i64} {
  func.func @_pw_fused_kernel(%arg0: i32, %arg1: i32, %arg2: memref<1x256x16xbf16, #tpu.memory_space<vmem>>, %arg3: memref<16x16xbf16, #tpu.memory_space<vmem>>, %arg4: memref<1x16xf32, #tpu.memory_space<vmem>>, %arg5: memref<1x16xf32, #tpu.memory_space<vmem>>, %arg6: memref<1x256x16xbf16, #tpu.memory_space<vmem>>, %arg7: memref<1x256x16xbf16, #tpu.memory_space<vmem>>) attributes {dimension_semantics = [#tpu.dimension_semantics<parallel>, #tpu.dimension_semantics<parallel>], iteration_bounds = array<i64: 2, 1>, scalar_prefetch = 0 : i64, scratch_operands = 0 : i64, tpu.core_type = #tpu.core_type<tc>, window_params = [{transform_indices = @transform_0, window_bounds = array<i64: 1, 256, 16>}, {pipeline_mode = #tpu.pipeline_mode<synchronous>, transform_indices = @transform_1, window_bounds = array<i64: 16, 16>}, {pipeline_mode = #tpu.pipeline_mode<synchronous>, transform_indices = @transform_2, window_bounds = array<i64: 1, 16>}, {pipeline_mode = #tpu.pipeline_mode<synchronous>, transform_indices = @transform_3, window_bounds = array<i64: 1, 16>}, {transform_indices = @transform_4, window_bounds = array<i64: 1, 256, 16>}, {transform_indices = @transform_5, window_bounds = array<i64: 1, 256, 16>}]} {
    %c0 = arith.constant 0 : index
    %c0_0 = arith.constant 0 : index
    %c0_1 = arith.constant 0 : index
    %0 = vector.load %arg2[%c0, %c0_0, %c0_1] : memref<1x256x16xbf16, #tpu.memory_space<vmem>>, vector<1x256x16xbf16>
    %1 = vector.shape_cast %0 : vector<1x256x16xbf16> to vector<256x16xbf16>
    %c0_2 = arith.constant 0 : index
    %c0_3 = arith.constant 0 : index
    %2 = vector.load %arg3[%c0_2, %c0_3] : memref<16x16xbf16, #tpu.memory_space<vmem>>, vector<16x16xbf16>
    %cst = arith.constant dense<0.000000e+00> : vector<256x16xf32>
    %3 = tpu.matmul %1, %2, %cst {dimension_numbers = #tpu.dot_dimension_numbers<[1], [0], [0], [1], [0, 0, 1, 1], [], []>} : vector<256x16xbf16>, vector<16x16xbf16>, vector<256x16xf32> -> vector<256x16xf32>
    %c0_4 = arith.constant 0 : index
    %c0_5 = arith.constant 0 : index
    %4 = vector.load %arg4[%c0_4, %c0_5] : memref<1x16xf32, #tpu.memory_space<vmem>>, vector<1x16xf32>
    %5 = vector.broadcast %4 : vector<1x16xf32> to vector<256x16xf32>
    %6 = arith.mulf %3, %5 : vector<256x16xf32>
    %c0_6 = arith.constant 0 : index
    %c0_7 = arith.constant 0 : index
    %7 = vector.load %arg5[%c0_6, %c0_7] : memref<1x16xf32, #tpu.memory_space<vmem>>, vector<1x16xf32>
    %8 = vector.broadcast %7 : vector<1x16xf32> to vector<256x16xf32>
    %9 = arith.addf %6, %8 : vector<256x16xf32>
    %c0_8 = arith.constant 0 : index
    %c0_9 = arith.constant 0 : index
    %c0_10 = arith.constant 0 : index
    %10 = vector.load %arg6[%c0_8, %c0_9, %c0_10] : memref<1x256x16xbf16, #tpu.memory_space<vmem>>, vector<1x256x16xbf16>
    %11 = vector.shape_cast %10 : vector<1x256x16xbf16> to vector<256x16xbf16>
    %12 = arith.extf %11 : vector<256x16xbf16> to vector<256x16xf32>
    %13 = arith.addf %9, %12 : vector<256x16xf32>
    %14 = arith.truncf %13 : vector<256x16xf32> to vector<256x16xbf16>
    %c0_11 = arith.constant 0 : index
    %c0_12 = arith.constant 0 : index
    %c0_13 = arith.constant 0 : index
    %15 = vector.load %arg7[%c0_11, %c0_12, %c0_13] : memref<1x256x16xbf16, #tpu.memory_space<vmem>>, vector<1x256x16xbf16>
    %16 = vector.shape_cast %15 : vector<1x256x16xbf16> to vector<256x16xbf16>
    %17 = vector.shape_cast %14 : vector<256x16xbf16> to vector<1x256x16xbf16>
    tpu.vector_store %arg7[%c0_11, %c0_12, %c0_13], %17 {strides = array<i32>} : memref<1x256x16xbf16, #tpu.memory_space<vmem>>, vector<1x256x16xbf16>,
    return
  }
  func.func @transform_0(%arg0: i32, %arg1: i32) -> (i32, i32, i32) {
    %c0_i32 = arith.constant 0 : i32
    %c0_i32_0 = arith.constant 0 : i32
    return %arg0, %arg1, %c0_i32 : i32, i32, i32
  }
  func.func @transform_1(%arg0: i32, %arg1: i32) -> (i32, i32) {
    %c0_i32 = arith.constant 0 : i32
    %c0_i32_0 = arith.constant 0 : i32
    %c0_i32_1 = arith.constant 0 : i32
    return %c0_i32, %c0_i32_0 : i32, i32
  }
  func.func @transform_2(%arg0: i32, %arg1: i32) -> (i32, i32) {
    %c0_i32 = arith.constant 0 : i32
    %c0_i32_0 = arith.constant 0 : i32
    %c0_i32_1 = arith.constant 0 : i32
    return %c0_i32, %c0_i32_0 : i32, i32
  }
  func.func @transform_3(%arg0: i32, %arg1: i32) -> (i32, i32) {
    %c0_i32 = arith.constant 0 : i32
    %c0_i32_0 = arith.constant 0 : i32
    %c0_i32_1 = arith.constant 0 : i32
    return %c0_i32, %c0_i32_0 : i32, i32
  }
  func.func @transform_4(%arg0: i32, %arg1: i32) -> (i32, i32, i32) {
    %c0_i32 = arith.constant 0 : i32
    %c0_i32_0 = arith.constant 0 : i32
    return %arg0, %arg1, %c0_i32 : i32, i32, i32
  }
  func.func @transform_5(%arg0: i32, %arg1: i32) -> (i32, i32, i32) {
    %c0_i32 = arith.constant 0 : i32
    %c0_i32_0 = arith.constant 0 : i32
    return %arg0, %arg1, %c0_i32 : i32, i32, i32
  }
}

module attributes {stable_mosaic.version = 11 : i64} {
  func.func @_pw_fused_kernel(%arg0: i32, %arg1: i32, %arg2: memref<1x256x16xbf16, #tpu.memory_space<vmem>>, %arg3: memref<16x64xbf16, #tpu.memory_space<vmem>>, %arg4: memref<1x64xf32, #tpu.memory_space<vmem>>, %arg5: memref<1x64xf32, #tpu.memory_space<vmem>>, %arg6: memref<1x256x64xbf16, #tpu.memory_space<vmem>>) attributes {dimension_semantics = [#tpu.dimension_semantics<parallel>, #tpu.dimension_semantics<parallel>], iteration_bounds = array<i64: 2, 1>, scalar_prefetch = 0 : i64, scratch_operands = 0 : i64, tpu.core_type = #tpu.core_type<tc>, window_params = [{transform_indices = @transform_0, window_bounds = array<i64: 1, 256, 16>}, {pipeline_mode = #tpu.pipeline_mode<synchronous>, transform_indices = @transform_1, window_bounds = array<i64: 16, 64>}, {pipeline_mode = #tpu.pipeline_mode<synchronous>, transform_indices = @transform_2, window_bounds = array<i64: 1, 64>}, {pipeline_mode = #tpu.pipeline_mode<synchronous>, transform_indices = @transform_3, window_bounds = array<i64: 1, 64>}, {transform_indices = @transform_4, window_bounds = array<i64: 1, 256, 64>}]} {
    %c0 = arith.constant 0 : index
    %c0_0 = arith.constant 0 : index
    %c0_1 = arith.constant 0 : index
    %0 = vector.load %arg2[%c0, %c0_0, %c0_1] : memref<1x256x16xbf16, #tpu.memory_space<vmem>>, vector<1x256x16xbf16>
    %1 = vector.shape_cast %0 : vector<1x256x16xbf16> to vector<256x16xbf16>
    %c0_2 = arith.constant 0 : index
    %c0_3 = arith.constant 0 : index
    %2 = vector.load %arg3[%c0_2, %c0_3] : memref<16x64xbf16, #tpu.memory_space<vmem>>, vector<16x64xbf16>
    %cst = arith.constant dense<0.000000e+00> : vector<256x64xf32>
    %3 = tpu.matmul %1, %2, %cst {dimension_numbers = #tpu.dot_dimension_numbers<[1], [0], [0], [1], [0, 0, 1, 1], [], []>} : vector<256x16xbf16>, vector<16x64xbf16>, vector<256x64xf32> -> vector<256x64xf32>
    %c0_4 = arith.constant 0 : index
    %c0_5 = arith.constant 0 : index
    %4 = vector.load %arg4[%c0_4, %c0_5] : memref<1x64xf32, #tpu.memory_space<vmem>>, vector<1x64xf32>
    %5 = vector.broadcast %4 : vector<1x64xf32> to vector<256x64xf32>
    %6 = arith.mulf %3, %5 : vector<256x64xf32>
    %c0_6 = arith.constant 0 : index
    %c0_7 = arith.constant 0 : index
    %7 = vector.load %arg5[%c0_6, %c0_7] : memref<1x64xf32, #tpu.memory_space<vmem>>, vector<1x64xf32>
    %8 = vector.broadcast %7 : vector<1x64xf32> to vector<256x64xf32>
    %9 = arith.addf %6, %8 : vector<256x64xf32>
    %cst_8 = arith.constant 0.000000e+00 : f32
    %10 = vector.broadcast %cst_8 : f32 to vector<256x64xf32>
    %11 = arith.maximumf %9, %10 : vector<256x64xf32>
    %12 = arith.truncf %11 : vector<256x64xf32> to vector<256x64xbf16>
    %c0_9 = arith.constant 0 : index
    %c0_10 = arith.constant 0 : index
    %c0_11 = arith.constant 0 : index
    %13 = vector.load %arg6[%c0_9, %c0_10, %c0_11] : memref<1x256x64xbf16, #tpu.memory_space<vmem>>, vector<1x256x64xbf16>
    %14 = vector.shape_cast %13 : vector<1x256x64xbf16> to vector<256x64xbf16>
    %15 = vector.shape_cast %12 : vector<256x64xbf16> to vector<1x256x64xbf16>
    tpu.vector_store %arg6[%c0_9, %c0_10, %c0_11], %15 {strides = array<i32>} : memref<1x256x64xbf16, #tpu.memory_space<vmem>>, vector<1x256x64xbf16>,
    return
  }
  func.func @transform_0(%arg0: i32, %arg1: i32) -> (i32, i32, i32) {
    %c0_i32 = arith.constant 0 : i32
    %c0_i32_0 = arith.constant 0 : i32
    return %arg0, %arg1, %c0_i32 : i32, i32, i32
  }
  func.func @transform_1(%arg0: i32, %arg1: i32) -> (i32, i32) {
    %c0_i32 = arith.constant 0 : i32
    %c0_i32_0 = arith.constant 0 : i32
    %c0_i32_1 = arith.constant 0 : i32
    return %c0_i32, %c0_i32_0 : i32, i32
  }
  func.func @transform_2(%arg0: i32, %arg1: i32) -> (i32, i32) {
    %c0_i32 = arith.constant 0 : i32
    %c0_i32_0 = arith.constant 0 : i32
    %c0_i32_1 = arith.constant 0 : i32
    return %c0_i32, %c0_i32_0 : i32, i32
  }
  func.func @transform_3(%arg0: i32, %arg1: i32) -> (i32, i32) {
    %c0_i32 = arith.constant 0 : i32
    %c0_i32_0 = arith.constant 0 : i32
    %c0_i32_1 = arith.constant 0 : i32
    return %c0_i32, %c0_i32_0 : i32, i32
  }
  func.func @transform_4(%arg0: i32, %arg1: i32) -> (i32, i32, i32) {
    %c0_i32 = arith.constant 0 : i32
    %c0_i32_0 = arith.constant 0 : i32
    return %arg0, %arg1, %c0_i32 : i32, i32, i32
  }
}

module attributes {stable_mosaic.version = 11 : i64} {
  func.func @_dw_kernel(%arg0: i32, %arg1: memref<1x36x9x64xbf16, #tpu.memory_space<vmem>>, %arg2: memref<9x1x64xf32, #tpu.memory_space<vmem>>, %arg3: memref<1x1x64xf32, #tpu.memory_space<vmem>>, %arg4: memref<1x1x64xf32, #tpu.memory_space<vmem>>, %arg5: memref<1x8x8x64xbf16, #tpu.memory_space<vmem>>) attributes {dimension_semantics = [#tpu.dimension_semantics<parallel>], iteration_bounds = array<i64: 2>, scalar_prefetch = 0 : i64, scratch_operands = 0 : i64, tpu.core_type = #tpu.core_type<tc>, window_params = [{transform_indices = @transform_0, window_bounds = array<i64: 1, 36, 9, 64>}, {pipeline_mode = #tpu.pipeline_mode<synchronous>, transform_indices = @transform_1, window_bounds = array<i64: 9, 1, 64>}, {pipeline_mode = #tpu.pipeline_mode<synchronous>, transform_indices = @transform_2, window_bounds = array<i64: 1, 1, 64>}, {pipeline_mode = #tpu.pipeline_mode<synchronous>, transform_indices = @transform_3, window_bounds = array<i64: 1, 1, 64>}, {transform_indices = @transform_4, window_bounds = array<i64: 1, 8, 8, 64>}]} {
    %c0 = arith.constant 0 : index
    %c0_0 = arith.constant 0 : index
    %c0_1 = arith.constant 0 : index
    %c0_2 = arith.constant 0 : index
    %0 = vector.load %arg1[%c0, %c0_0, %c0_1, %c0_2] : memref<1x36x9x64xbf16, #tpu.memory_space<vmem>>, vector<1x8x8x64xbf16>
    %1 = vector.shape_cast %0 : vector<1x8x8x64xbf16> to vector<8x8x64xbf16>
    %2 = arith.extf %1 : vector<8x8x64xbf16> to vector<8x8x64xf32>
    %c0_3 = arith.constant 0 : index
    %c0_4 = arith.constant 0 : index
    %c0_5 = arith.constant 0 : index
    %3 = vector.load %arg2[%c0_3, %c0_4, %c0_5] : memref<9x1x64xf32, #tpu.memory_space<vmem>>, vector<1x1x64xf32>
    %4 = vector.shape_cast %3 : vector<1x1x64xf32> to vector<1x64xf32>
    %5 = vector.shape_cast %4 : vector<1x64xf32> to vector<1x1x64xf32>
    %6 = vector.broadcast %5 : vector<1x1x64xf32> to vector<8x8x64xf32>
    %7 = arith.mulf %2, %6 : vector<8x8x64xf32>
    %c0_6 = arith.constant 0 : index
    %c9 = arith.constant 9 : index
    %c0_7 = arith.constant 0 : index
    %c0_8 = arith.constant 0 : index
    %8 = vector.load %arg1[%c0_6, %c9, %c0_7, %c0_8] : memref<1x36x9x64xbf16, #tpu.memory_space<vmem>>, vector<1x8x8x64xbf16>
    %9 = vector.shape_cast %8 : vector<1x8x8x64xbf16> to vector<8x8x64xbf16>
    %10 = arith.extf %9 : vector<8x8x64xbf16> to vector<8x8x64xf32>
    %c1 = arith.constant 1 : index
    %c0_9 = arith.constant 0 : index
    %c0_10 = arith.constant 0 : index
    %11 = vector.load %arg2[%c1, %c0_9, %c0_10] : memref<9x1x64xf32, #tpu.memory_space<vmem>>, vector<1x1x64xf32>
    %12 = vector.shape_cast %11 : vector<1x1x64xf32> to vector<1x64xf32>
    %13 = vector.shape_cast %12 : vector<1x64xf32> to vector<1x1x64xf32>
    %14 = vector.broadcast %13 : vector<1x1x64xf32> to vector<8x8x64xf32>
    %15 = arith.mulf %10, %14 : vector<8x8x64xf32>
    %16 = arith.addf %7, %15 : vector<8x8x64xf32>
    %c0_11 = arith.constant 0 : index
    %c0_12 = arith.constant 0 : index
    %c1_13 = arith.constant 1 : index
    %c0_14 = arith.constant 0 : index
    %17 = vector.load %arg1[%c0_11, %c0_12, %c1_13, %c0_14] : memref<1x36x9x64xbf16, #tpu.memory_space<vmem>>, vector<1x8x8x64xbf16>
    %18 = vector.shape_cast %17 : vector<1x8x8x64xbf16> to vector<8x8x64xbf16>
    %19 = arith.extf %18 : vector<8x8x64xbf16> to vector<8x8x64xf32>
    %c2 = arith.constant 2 : index
    %c0_15 = arith.constant 0 : index
    %c0_16 = arith.constant 0 : index
    %20 = vector.load %arg2[%c2, %c0_15, %c0_16] : memref<9x1x64xf32, #tpu.memory_space<vmem>>, vector<1x1x64xf32>
    %21 = vector.shape_cast %20 : vector<1x1x64xf32> to vector<1x64xf32>
    %22 = vector.shape_cast %21 : vector<1x64xf32> to vector<1x1x64xf32>
    %23 = vector.broadcast %22 : vector<1x1x64xf32> to vector<8x8x64xf32>
    %24 = arith.mulf %19, %23 : vector<8x8x64xf32>
    %25 = arith.addf %16, %24 : vector<8x8x64xf32>
    %c0_17 = arith.constant 0 : index
    %c18 = arith.constant 18 : index
    %c0_18 = arith.constant 0 : index
    %c0_19 = arith.constant 0 : index
    %26 = vector.load %arg1[%c0_17, %c18, %c0_18, %c0_19] : memref<1x36x9x64xbf16, #tpu.memory_space<vmem>>, vector<1x8x8x64xbf16>
    %27 = vector.shape_cast %26 : vector<1x8x8x64xbf16> to vector<8x8x64xbf16>
    %28 = arith.extf %27 : vector<8x8x64xbf16> to vector<8x8x64xf32>
    %c3 = arith.constant 3 : index
    %c0_20 = arith.constant 0 : index
    %c0_21 = arith.constant 0 : index
    %29 = vector.load %arg2[%c3, %c0_20, %c0_21] : memref<9x1x64xf32, #tpu.memory_space<vmem>>, vector<1x1x64xf32>
    %30 = vector.shape_cast %29 : vector<1x1x64xf32> to vector<1x64xf32>
    %31 = vector.shape_cast %30 : vector<1x64xf32> to vector<1x1x64xf32>
    %32 = vector.broadcast %31 : vector<1x1x64xf32> to vector<8x8x64xf32>
    %33 = arith.mulf %28, %32 : vector<8x8x64xf32>
    %34 = arith.addf %25, %33 : vector<8x8x64xf32>
    %c0_22 = arith.constant 0 : index
    %c27 = arith.constant 27 : index
    %c0_23 = arith.constant 0 : index
    %c0_24 = arith.constant 0 : index
    %35 = vector.load %arg1[%c0_22, %c27, %c0_23, %c0_24] : memref<1x36x9x64xbf16, #tpu.memory_space<vmem>>, vector<1x8x8x64xbf16>
    %36 = vector.shape_cast %35 : vector<1x8x8x64xbf16> to vector<8x8x64xbf16>
    %37 = arith.extf %36 : vector<8x8x64xbf16> to vector<8x8x64xf32>
    %c4 = arith.constant 4 : index
    %c0_25 = arith.constant 0 : index
    %c0_26 = arith.constant 0 : index
    %38 = vector.load %arg2[%c4, %c0_25, %c0_26] : memref<9x1x64xf32, #tpu.memory_space<vmem>>, vector<1x1x64xf32>
    %39 = vector.shape_cast %38 : vector<1x1x64xf32> to vector<1x64xf32>
    %40 = vector.shape_cast %39 : vector<1x64xf32> to vector<1x1x64xf32>
    %41 = vector.broadcast %40 : vector<1x1x64xf32> to vector<8x8x64xf32>
    %42 = arith.mulf %37, %41 : vector<8x8x64xf32>
    %43 = arith.addf %34, %42 : vector<8x8x64xf32>
    %c0_27 = arith.constant 0 : index
    %c18_28 = arith.constant 18 : index
    %c1_29 = arith.constant 1 : index
    %c0_30 = arith.constant 0 : index
    %44 = vector.load %arg1[%c0_27, %c18_28, %c1_29, %c0_30] : memref<1x36x9x64xbf16, #tpu.memory_space<vmem>>, vector<1x8x8x64xbf16>
    %45 = vector.shape_cast %44 : vector<1x8x8x64xbf16> to vector<8x8x64xbf16>
    %46 = arith.extf %45 : vector<8x8x64xbf16> to vector<8x8x64xf32>
    %c5 = arith.constant 5 : index
    %c0_31 = arith.constant 0 : index
    %c0_32 = arith.constant 0 : index
    %47 = vector.load %arg2[%c5, %c0_31, %c0_32] : memref<9x1x64xf32, #tpu.memory_space<vmem>>, vector<1x1x64xf32>
    %48 = vector.shape_cast %47 : vector<1x1x64xf32> to vector<1x64xf32>
    %49 = vector.shape_cast %48 : vector<1x64xf32> to vector<1x1x64xf32>
    %50 = vector.broadcast %49 : vector<1x1x64xf32> to vector<8x8x64xf32>
    %51 = arith.mulf %46, %50 : vector<8x8x64xf32>
    %52 = arith.addf %43, %51 : vector<8x8x64xf32>
    %c0_33 = arith.constant 0 : index
    %c1_34 = arith.constant 1 : index
    %c0_35 = arith.constant 0 : index
    %c0_36 = arith.constant 0 : index
    %53 = vector.load %arg1[%c0_33, %c1_34, %c0_35, %c0_36] : memref<1x36x9x64xbf16, #tpu.memory_space<vmem>>, vector<1x8x8x64xbf16>
    %54 = vector.shape_cast %53 : vector<1x8x8x64xbf16> to vector<8x8x64xbf16>
    %55 = arith.extf %54 : vector<8x8x64xbf16> to vector<8x8x64xf32>
    %c6 = arith.constant 6 : index
    %c0_37 = arith.constant 0 : index
    %c0_38 = arith.constant 0 : index
    %56 = vector.load %arg2[%c6, %c0_37, %c0_38] : memref<9x1x64xf32, #tpu.memory_space<vmem>>, vector<1x1x64xf32>
    %57 = vector.shape_cast %56 : vector<1x1x64xf32> to vector<1x64xf32>
    %58 = vector.shape_cast %57 : vector<1x64xf32> to vector<1x1x64xf32>
    %59 = vector.broadcast %58 : vector<1x1x64xf32> to vector<8x8x64xf32>
    %60 = arith.mulf %55, %59 : vector<8x8x64xf32>
    %61 = arith.addf %52, %60 : vector<8x8x64xf32>
    %c0_39 = arith.constant 0 : index
    %c10 = arith.constant 10 : index
    %c0_40 = arith.constant 0 : index
    %c0_41 = arith.constant 0 : index
    %62 = vector.load %arg1[%c0_39, %c10, %c0_40, %c0_41] : memref<1x36x9x64xbf16, #tpu.memory_space<vmem>>, vector<1x8x8x64xbf16>
    %63 = vector.shape_cast %62 : vector<1x8x8x64xbf16> to vector<8x8x64xbf16>
    %64 = arith.extf %63 : vector<8x8x64xbf16> to vector<8x8x64xf32>
    %c7 = arith.constant 7 : index
    %c0_42 = arith.constant 0 : index
    %c0_43 = arith.constant 0 : index
    %65 = vector.load %arg2[%c7, %c0_42, %c0_43] : memref<9x1x64xf32, #tpu.memory_space<vmem>>, vector<1x1x64xf32>
    %66 = vector.shape_cast %65 : vector<1x1x64xf32> to vector<1x64xf32>
    %67 = vector.shape_cast %66 : vector<1x64xf32> to vector<1x1x64xf32>
    %68 = vector.broadcast %67 : vector<1x1x64xf32> to vector<8x8x64xf32>
    %69 = arith.mulf %64, %68 : vector<8x8x64xf32>
    %70 = arith.addf %61, %69 : vector<8x8x64xf32>
    %c0_44 = arith.constant 0 : index
    %c1_45 = arith.constant 1 : index
    %c1_46 = arith.constant 1 : index
    %c0_47 = arith.constant 0 : index
    %71 = vector.load %arg1[%c0_44, %c1_45, %c1_46, %c0_47] : memref<1x36x9x64xbf16, #tpu.memory_space<vmem>>, vector<1x8x8x64xbf16>
    %72 = vector.shape_cast %71 : vector<1x8x8x64xbf16> to vector<8x8x64xbf16>
    %73 = arith.extf %72 : vector<8x8x64xbf16> to vector<8x8x64xf32>
    %c8 = arith.constant 8 : index
    %c0_48 = arith.constant 0 : index
    %c0_49 = arith.constant 0 : index
    %74 = vector.load %arg2[%c8, %c0_48, %c0_49] : memref<9x1x64xf32, #tpu.memory_space<vmem>>, vector<1x1x64xf32>
    %75 = vector.shape_cast %74 : vector<1x1x64xf32> to vector<1x64xf32>
    %76 = vector.shape_cast %75 : vector<1x64xf32> to vector<1x1x64xf32>
    %77 = vector.broadcast %76 : vector<1x1x64xf32> to vector<8x8x64xf32>
    %78 = arith.mulf %73, %77 : vector<8x8x64xf32>
    %79 = arith.addf %70, %78 : vector<8x8x64xf32>
    %c0_50 = arith.constant 0 : index
    %c0_51 = arith.constant 0 : index
    %c0_52 = arith.constant 0 : index
    %80 = vector.load %arg3[%c0_50, %c0_51, %c0_52] : memref<1x1x64xf32, #tpu.memory_space<vmem>>, vector<1x1x64xf32>
    %81 = vector.broadcast %80 : vector<1x1x64xf32> to vector<8x8x64xf32>
    %82 = arith.mulf %79, %81 : vector<8x8x64xf32>
    %c0_53 = arith.constant 0 : index
    %c0_54 = arith.constant 0 : index
    %c0_55 = arith.constant 0 : index
    %83 = vector.load %arg4[%c0_53, %c0_54, %c0_55] : memref<1x1x64xf32, #tpu.memory_space<vmem>>, vector<1x1x64xf32>
    %84 = vector.broadcast %83 : vector<1x1x64xf32> to vector<8x8x64xf32>
    %85 = arith.addf %82, %84 : vector<8x8x64xf32>
    %cst = arith.constant 0.000000e+00 : f32
    %86 = vector.broadcast %cst : f32 to vector<8x8x64xf32>
    %87 = arith.maximumf %85, %86 : vector<8x8x64xf32>
    %88 = arith.truncf %87 : vector<8x8x64xf32> to vector<8x8x64xbf16>
    %c0_56 = arith.constant 0 : index
    %c0_57 = arith.constant 0 : index
    %c0_58 = arith.constant 0 : index
    %c0_59 = arith.constant 0 : index
    %89 = vector.load %arg5[%c0_56, %c0_57, %c0_58, %c0_59] : memref<1x8x8x64xbf16, #tpu.memory_space<vmem>>, vector<1x8x8x64xbf16>
    %90 = vector.shape_cast %89 : vector<1x8x8x64xbf16> to vector<8x8x64xbf16>
    %91 = vector.shape_cast %88 : vector<8x8x64xbf16> to vector<1x8x8x64xbf16>
    tpu.vector_store %arg5[%c0_56, %c0_57, %c0_58, %c0_59], %91 {strides = array<i32>} : memref<1x8x8x64xbf16, #tpu.memory_space<vmem>>, vector<1x8x8x64xbf16>,
    return
  }
  func.func @transform_0(%arg0: i32) -> (i32, i32, i32, i32) {
    %c0_i32 = arith.constant 0 : i32
    %c0_i32_0 = arith.constant 0 : i32
    %c0_i32_1 = arith.constant 0 : i32
    %c0_i32_2 = arith.constant 0 : i32
    return %arg0, %c0_i32, %c0_i32_0, %c0_i32_1 : i32, i32, i32, i32
  }
  func.func @transform_1(%arg0: i32) -> (i32, i32, i32) {
    %c0_i32 = arith.constant 0 : i32
    %c0_i32_0 = arith.constant 0 : i32
    %c0_i32_1 = arith.constant 0 : i32
    %c0_i32_2 = arith.constant 0 : i32
    return %c0_i32, %c0_i32_0, %c0_i32_1 : i32, i32, i32
  }
  func.func @transform_2(%arg0: i32) -> (i32, i32, i32) {
    %c0_i32 = arith.constant 0 : i32
    %c0_i32_0 = arith.constant 0 : i32
    %c0_i32_1 = arith.constant 0 : i32
    %c0_i32_2 = arith.constant 0 : i32
    return %c0_i32, %c0_i32_0, %c0_i32_1 : i32, i32, i32
  }
  func.func @transform_3(%arg0: i32) -> (i32, i32, i32) {
    %c0_i32 = arith.constant 0 : i32
    %c0_i32_0 = arith.constant 0 : i32
    %c0_i32_1 = arith.constant 0 : i32
    %c0_i32_2 = arith.constant 0 : i32
    return %c0_i32, %c0_i32_0, %c0_i32_1 : i32, i32, i32
  }
  func.func @transform_4(%arg0: i32) -> (i32, i32, i32, i32) {
    %c0_i32 = arith.constant 0 : i32
    %c0_i32_0 = arith.constant 0 : i32
    %c0_i32_1 = arith.constant 0 : i32
    %c0_i32_2 = arith.constant 0 : i32
    return %arg0, %c0_i32, %c0_i32_0, %c0_i32_1 : i32, i32, i32, i32
  }
}

module attributes {stable_mosaic.version = 11 : i64} {
  func.func @_pw_fused_kernel(%arg0: i32, %arg1: i32, %arg2: memref<1x64x64xbf16, #tpu.memory_space<vmem>>, %arg3: memref<64x24xbf16, #tpu.memory_space<vmem>>, %arg4: memref<1x24xf32, #tpu.memory_space<vmem>>, %arg5: memref<1x24xf32, #tpu.memory_space<vmem>>, %arg6: memref<1x64x24xbf16, #tpu.memory_space<vmem>>) attributes {dimension_semantics = [#tpu.dimension_semantics<parallel>, #tpu.dimension_semantics<parallel>], iteration_bounds = array<i64: 2, 1>, scalar_prefetch = 0 : i64, scratch_operands = 0 : i64, tpu.core_type = #tpu.core_type<tc>, window_params = [{transform_indices = @transform_0, window_bounds = array<i64: 1, 64, 64>}, {pipeline_mode = #tpu.pipeline_mode<synchronous>, transform_indices = @transform_1, window_bounds = array<i64: 64, 24>}, {pipeline_mode = #tpu.pipeline_mode<synchronous>, transform_indices = @transform_2, window_bounds = array<i64: 1, 24>}, {pipeline_mode = #tpu.pipeline_mode<synchronous>, transform_indices = @transform_3, window_bounds = array<i64: 1, 24>}, {transform_indices = @transform_4, window_bounds = array<i64: 1, 64, 24>}]} {
    %c0 = arith.constant 0 : index
    %c0_0 = arith.constant 0 : index
    %c0_1 = arith.constant 0 : index
    %0 = vector.load %arg2[%c0, %c0_0, %c0_1] : memref<1x64x64xbf16, #tpu.memory_space<vmem>>, vector<1x64x64xbf16>
    %1 = vector.shape_cast %0 : vector<1x64x64xbf16> to vector<64x64xbf16>
    %c0_2 = arith.constant 0 : index
    %c0_3 = arith.constant 0 : index
    %2 = vector.load %arg3[%c0_2, %c0_3] : memref<64x24xbf16, #tpu.memory_space<vmem>>, vector<64x24xbf16>
    %cst = arith.constant dense<0.000000e+00> : vector<64x24xf32>
    %3 = tpu.matmul %1, %2, %cst {dimension_numbers = #tpu.dot_dimension_numbers<[1], [0], [0], [1], [0, 0, 1, 1], [], []>} : vector<64x64xbf16>, vector<64x24xbf16>, vector<64x24xf32> -> vector<64x24xf32>
    %c0_4 = arith.constant 0 : index
    %c0_5 = arith.constant 0 : index
    %4 = vector.load %arg4[%c0_4, %c0_5] : memref<1x24xf32, #tpu.memory_space<vmem>>, vector<1x24xf32>
    %5 = vector.broadcast %4 : vector<1x24xf32> to vector<64x24xf32>
    %6 = arith.mulf %3, %5 : vector<64x24xf32>
    %c0_6 = arith.constant 0 : index
    %c0_7 = arith.constant 0 : index
    %7 = vector.load %arg5[%c0_6, %c0_7] : memref<1x24xf32, #tpu.memory_space<vmem>>, vector<1x24xf32>
    %8 = vector.broadcast %7 : vector<1x24xf32> to vector<64x24xf32>
    %9 = arith.addf %6, %8 : vector<64x24xf32>
    %10 = arith.truncf %9 : vector<64x24xf32> to vector<64x24xbf16>
    %c0_8 = arith.constant 0 : index
    %c0_9 = arith.constant 0 : index
    %c0_10 = arith.constant 0 : index
    %11 = vector.load %arg6[%c0_8, %c0_9, %c0_10] : memref<1x64x24xbf16, #tpu.memory_space<vmem>>, vector<1x64x24xbf16>
    %12 = vector.shape_cast %11 : vector<1x64x24xbf16> to vector<64x24xbf16>
    %13 = vector.shape_cast %10 : vector<64x24xbf16> to vector<1x64x24xbf16>
    tpu.vector_store %arg6[%c0_8, %c0_9, %c0_10], %13 {strides = array<i32>} : memref<1x64x24xbf16, #tpu.memory_space<vmem>>, vector<1x64x24xbf16>,
    return
  }
  func.func @transform_0(%arg0: i32, %arg1: i32) -> (i32, i32, i32) {
    %c0_i32 = arith.constant 0 : i32
    %c0_i32_0 = arith.constant 0 : i32
    return %arg0, %arg1, %c0_i32 : i32, i32, i32
  }
  func.func @transform_1(%arg0: i32, %arg1: i32) -> (i32, i32) {
    %c0_i32 = arith.constant 0 : i32
    %c0_i32_0 = arith.constant 0 : i32
    %c0_i32_1 = arith.constant 0 : i32
    return %c0_i32, %c0_i32_0 : i32, i32
  }
  func.func @transform_2(%arg0: i32, %arg1: i32) -> (i32, i32) {
    %c0_i32 = arith.constant 0 : i32
    %c0_i32_0 = arith.constant 0 : i32
    %c0_i32_1 = arith.constant 0 : i32
    return %c0_i32, %c0_i32_0 : i32, i32
  }
  func.func @transform_3(%arg0: i32, %arg1: i32) -> (i32, i32) {
    %c0_i32 = arith.constant 0 : i32
    %c0_i32_0 = arith.constant 0 : i32
    %c0_i32_1 = arith.constant 0 : i32
    return %c0_i32, %c0_i32_0 : i32, i32
  }
  func.func @transform_4(%arg0: i32, %arg1: i32) -> (i32, i32, i32) {
    %c0_i32 = arith.constant 0 : i32
    %c0_i32_0 = arith.constant 0 : i32
    return %arg0, %arg1, %c0_i32 : i32, i32, i32
  }
}

module attributes {stable_mosaic.version = 11 : i64} {
  func.func @_pw_fused_kernel(%arg0: i32, %arg1: i32, %arg2: memref<1x64x24xbf16, #tpu.memory_space<vmem>>, %arg3: memref<24x96xbf16, #tpu.memory_space<vmem>>, %arg4: memref<1x96xf32, #tpu.memory_space<vmem>>, %arg5: memref<1x96xf32, #tpu.memory_space<vmem>>, %arg6: memref<1x64x96xbf16, #tpu.memory_space<vmem>>) attributes {dimension_semantics = [#tpu.dimension_semantics<parallel>, #tpu.dimension_semantics<parallel>], iteration_bounds = array<i64: 2, 1>, scalar_prefetch = 0 : i64, scratch_operands = 0 : i64, tpu.core_type = #tpu.core_type<tc>, window_params = [{transform_indices = @transform_0, window_bounds = array<i64: 1, 64, 24>}, {pipeline_mode = #tpu.pipeline_mode<synchronous>, transform_indices = @transform_1, window_bounds = array<i64: 24, 96>}, {pipeline_mode = #tpu.pipeline_mode<synchronous>, transform_indices = @transform_2, window_bounds = array<i64: 1, 96>}, {pipeline_mode = #tpu.pipeline_mode<synchronous>, transform_indices = @transform_3, window_bounds = array<i64: 1, 96>}, {transform_indices = @transform_4, window_bounds = array<i64: 1, 64, 96>}]} {
    %c0 = arith.constant 0 : index
    %c0_0 = arith.constant 0 : index
    %c0_1 = arith.constant 0 : index
    %0 = vector.load %arg2[%c0, %c0_0, %c0_1] : memref<1x64x24xbf16, #tpu.memory_space<vmem>>, vector<1x64x24xbf16>
    %1 = vector.shape_cast %0 : vector<1x64x24xbf16> to vector<64x24xbf16>
    %c0_2 = arith.constant 0 : index
    %c0_3 = arith.constant 0 : index
    %2 = vector.load %arg3[%c0_2, %c0_3] : memref<24x96xbf16, #tpu.memory_space<vmem>>, vector<24x96xbf16>
    %cst = arith.constant dense<0.000000e+00> : vector<64x96xf32>
    %3 = tpu.matmul %1, %2, %cst {dimension_numbers = #tpu.dot_dimension_numbers<[1], [0], [0], [1], [0, 0, 1, 1], [], []>} : vector<64x24xbf16>, vector<24x96xbf16>, vector<64x96xf32> -> vector<64x96xf32>
    %c0_4 = arith.constant 0 : index
    %c0_5 = arith.constant 0 : index
    %4 = vector.load %arg4[%c0_4, %c0_5] : memref<1x96xf32, #tpu.memory_space<vmem>>, vector<1x96xf32>
    %5 = vector.broadcast %4 : vector<1x96xf32> to vector<64x96xf32>
    %6 = arith.mulf %3, %5 : vector<64x96xf32>
    %c0_6 = arith.constant 0 : index
    %c0_7 = arith.constant 0 : index
    %7 = vector.load %arg5[%c0_6, %c0_7] : memref<1x96xf32, #tpu.memory_space<vmem>>, vector<1x96xf32>
    %8 = vector.broadcast %7 : vector<1x96xf32> to vector<64x96xf32>
    %9 = arith.addf %6, %8 : vector<64x96xf32>
    %cst_8 = arith.constant 3.000000e+00 : f32
    %10 = vector.broadcast %cst_8 : f32 to vector<64x96xf32>
    %11 = arith.addf %9, %10 : vector<64x96xf32>
    %cst_9 = arith.constant 0.000000e+00 : f32
    %cst_10 = arith.constant 6.000000e+00 : f32
    %12 = vector.broadcast %cst_9 : f32 to vector<64x96xf32>
    %13 = arith.maximumf %12, %11 : vector<64x96xf32>
    %14 = vector.broadcast %cst_10 : f32 to vector<64x96xf32>
    %15 = arith.minimumf %14, %13 : vector<64x96xf32>
    %16 = arith.mulf %9, %15 : vector<64x96xf32>
    %cst_11 = arith.constant 0.166666672 : f32
    %17 = vector.broadcast %cst_11 : f32 to vector<64x96xf32>
    %18 = arith.mulf %16, %17 : vector<64x96xf32>
    %19 = arith.truncf %18 : vector<64x96xf32> to vector<64x96xbf16>
    %c0_12 = arith.constant 0 : index
    %c0_13 = arith.constant 0 : index
    %c0_14 = arith.constant 0 : index
    %20 = vector.load %arg6[%c0_12, %c0_13, %c0_14] : memref<1x64x96xbf16, #tpu.memory_space<vmem>>, vector<1x64x96xbf16>
    %21 = vector.shape_cast %20 : vector<1x64x96xbf16> to vector<64x96xbf16>
    %22 = vector.shape_cast %19 : vector<64x96xbf16> to vector<1x64x96xbf16>
    tpu.vector_store %arg6[%c0_12, %c0_13, %c0_14], %22 {strides = array<i32>} : memref<1x64x96xbf16, #tpu.memory_space<vmem>>, vector<1x64x96xbf16>,
    return
  }
  func.func @transform_0(%arg0: i32, %arg1: i32) -> (i32, i32, i32) {
    %c0_i32 = arith.constant 0 : i32
    %c0_i32_0 = arith.constant 0 : i32
    return %arg0, %arg1, %c0_i32 : i32, i32, i32
  }
  func.func @transform_1(%arg0: i32, %arg1: i32) -> (i32, i32) {
    %c0_i32 = arith.constant 0 : i32
    %c0_i32_0 = arith.constant 0 : i32
    %c0_i32_1 = arith.constant 0 : i32
    return %c0_i32, %c0_i32_0 : i32, i32
  }
  func.func @transform_2(%arg0: i32, %arg1: i32) -> (i32, i32) {
    %c0_i32 = arith.constant 0 : i32
    %c0_i32_0 = arith.constant 0 : i32
    %c0_i32_1 = arith.constant 0 : i32
    return %c0_i32, %c0_i32_0 : i32, i32
  }
  func.func @transform_3(%arg0: i32, %arg1: i32) -> (i32, i32) {
    %c0_i32 = arith.constant 0 : i32
    %c0_i32_0 = arith.constant 0 : i32
    %c0_i32_1 = arith.constant 0 : i32
    return %c0_i32, %c0_i32_0 : i32, i32
  }
  func.func @transform_4(%arg0: i32, %arg1: i32) -> (i32, i32, i32) {
    %c0_i32 = arith.constant 0 : i32
    %c0_i32_0 = arith.constant 0 : i32
    return %arg0, %arg1, %c0_i32 : i32, i32, i32
  }
}

module attributes {stable_mosaic.version = 11 : i64} {
  func.func @_se_scale_kernel(%arg0: i32, %arg1: memref<1x16x96xbf16, #tpu.memory_space<vmem>>, %arg2: memref<96x24xf32, #tpu.memory_space<vmem>>, %arg3: memref<1x24xf32, #tpu.memory_space<vmem>>, %arg4: memref<24x96xf32, #tpu.memory_space<vmem>>, %arg5: memref<1x96xf32, #tpu.memory_space<vmem>>, %arg6: memref<1x1x96xf32, #tpu.memory_space<vmem>>) attributes {dimension_semantics = [#tpu.dimension_semantics<parallel>], iteration_bounds = array<i64: 2>, scalar_prefetch = 0 : i64, scratch_operands = 0 : i64, tpu.core_type = #tpu.core_type<tc>, window_params = [{transform_indices = @transform_0, window_bounds = array<i64: 1, 16, 96>}, {pipeline_mode = #tpu.pipeline_mode<synchronous>, transform_indices = @transform_1, window_bounds = array<i64: 96, 24>}, {pipeline_mode = #tpu.pipeline_mode<synchronous>, transform_indices = @transform_2, window_bounds = array<i64: 1, 24>}, {pipeline_mode = #tpu.pipeline_mode<synchronous>, transform_indices = @transform_3, window_bounds = array<i64: 24, 96>}, {pipeline_mode = #tpu.pipeline_mode<synchronous>, transform_indices = @transform_4, window_bounds = array<i64: 1, 96>}, {transform_indices = @transform_5, window_bounds = array<i64: 1, 1, 96>}]} {
    %c0 = arith.constant 0 : index
    %c0_0 = arith.constant 0 : index
    %c0_1 = arith.constant 0 : index
    %0 = vector.load %arg1[%c0, %c0_0, %c0_1] : memref<1x16x96xbf16, #tpu.memory_space<vmem>>, vector<1x16x96xbf16>
    %1 = vector.shape_cast %0 : vector<1x16x96xbf16> to vector<16x96xbf16>
    %2 = arith.extf %1 : vector<16x96xbf16> to vector<16x96xf32>
    %cst = arith.constant dense<0.000000e+00> : vector<96xf32>
    %3 = vector.multi_reduction <add>, %2, %cst [0] : vector<16x96xf32> to vector<96xf32>
    %4 = vector.shape_cast %3 : vector<96xf32> to vector<1x96xf32>
    %cst_2 = arith.constant 6.250000e-02 : f32
    %5 = vector.broadcast %cst_2 : f32 to vector<1x96xf32>
    %6 = arith.mulf %4, %5 : vector<1x96xf32>
    %c0_3 = arith.constant 0 : index
    %c0_4 = arith.constant 0 : index
    %7 = vector.load %arg2[%c0_3, %c0_4] : memref<96x24xf32, #tpu.memory_space<vmem>>, vector<96x24xf32>
    %cst_5 = arith.constant dense<0.000000e+00> : vector<1x24xf32>
    %8 = tpu.matmul %6, %7, %cst_5 {dimension_numbers = #tpu.dot_dimension_numbers<[1], [0], [0], [1], [0, 0, 1, 1], [], []>} : vector<1x96xf32>, vector<96x24xf32>, vector<1x24xf32> -> vector<1x24xf32>
    %c0_6 = arith.constant 0 : index
    %c0_7 = arith.constant 0 : index
    %9 = vector.load %arg3[%c0_6, %c0_7] : memref<1x24xf32, #tpu.memory_space<vmem>>, vector<1x24xf32>
    %10 = arith.addf %8, %9 : vector<1x24xf32>
    %cst_8 = arith.constant 0.000000e+00 : f32
    %11 = vector.broadcast %cst_8 : f32 to vector<1x24xf32>
    %12 = arith.maximumf %10, %11 : vector<1x24xf32>
    %c0_9 = arith.constant 0 : index
    %c0_10 = arith.constant 0 : index
    %13 = vector.load %arg4[%c0_9, %c0_10] : memref<24x96xf32, #tpu.memory_space<vmem>>, vector<24x96xf32>
    %cst_11 = arith.constant dense<0.000000e+00> : vector<1x96xf32>
    %14 = tpu.matmul %12, %13, %cst_11 {dimension_numbers = #tpu.dot_dimension_numbers<[1], [0], [0], [1], [0, 0, 1, 1], [], []>} : vector<1x24xf32>, vector<24x96xf32>, vector<1x96xf32> -> vector<1x96xf32>
    %c0_12 = arith.constant 0 : index
    %c0_13 = arith.constant 0 : index
    %15 = vector.load %arg5[%c0_12, %c0_13] : memref<1x96xf32, #tpu.memory_space<vmem>>, vector<1x96xf32>
    %16 = arith.addf %14, %15 : vector<1x96xf32>
    %cst_14 = arith.constant 3.000000e+00 : f32
    %17 = vector.broadcast %cst_14 : f32 to vector<1x96xf32>
    %18 = arith.addf %16, %17 : vector<1x96xf32>
    %cst_15 = arith.constant 0.000000e+00 : f32
    %cst_16 = arith.constant 6.000000e+00 : f32
    %19 = vector.broadcast %cst_15 : f32 to vector<1x96xf32>
    %20 = arith.maximumf %19, %18 : vector<1x96xf32>
    %21 = vector.broadcast %cst_16 : f32 to vector<1x96xf32>
    %22 = arith.minimumf %21, %20 : vector<1x96xf32>
    %cst_17 = arith.constant 0.166666672 : f32
    %23 = vector.broadcast %cst_17 : f32 to vector<1x96xf32>
    %24 = arith.mulf %22, %23 : vector<1x96xf32>
    %c0_18 = arith.constant 0 : index
    %c0_19 = arith.constant 0 : index
    %c0_20 = arith.constant 0 : index
    %25 = vector.load %arg6[%c0_18, %c0_19, %c0_20] : memref<1x1x96xf32, #tpu.memory_space<vmem>>, vector<1x1x96xf32>
    %26 = vector.shape_cast %25 : vector<1x1x96xf32> to vector<1x96xf32>
    %27 = vector.shape_cast %24 : vector<1x96xf32> to vector<1x1x96xf32>
    tpu.vector_store %arg6[%c0_18, %c0_19, %c0_20], %27 {strides = array<i32>} : memref<1x1x96xf32, #tpu.memory_space<vmem>>, vector<1x1x96xf32>,
    return
  }
  func.func @transform_0(%arg0: i32) -> (i32, i32, i32) {
    %c0_i32 = arith.constant 0 : i32
    %c0_i32_0 = arith.constant 0 : i32
    %c0_i32_1 = arith.constant 0 : i32
    return %arg0, %c0_i32, %c0_i32_0 : i32, i32, i32
  }
  func.func @transform_1(%arg0: i32) -> (i32, i32) {
    %c0_i32 = arith.constant 0 : i32
    %c0_i32_0 = arith.constant 0 : i32
    %c0_i32_1 = arith.constant 0 : i32
    return %c0_i32, %c0_i32_0 : i32, i32
  }
  func.func @transform_2(%arg0: i32) -> (i32, i32) {
    %c0_i32 = arith.constant 0 : i32
    %c0_i32_0 = arith.constant 0 : i32
    %c0_i32_1 = arith.constant 0 : i32
    return %c0_i32, %c0_i32_0 : i32, i32
  }
  func.func @transform_3(%arg0: i32) -> (i32, i32) {
    %c0_i32 = arith.constant 0 : i32
    %c0_i32_0 = arith.constant 0 : i32
    %c0_i32_1 = arith.constant 0 : i32
    return %c0_i32, %c0_i32_0 : i32, i32
  }
  func.func @transform_4(%arg0: i32) -> (i32, i32) {
    %c0_i32 = arith.constant 0 : i32
    %c0_i32_0 = arith.constant 0 : i32
    %c0_i32_1 = arith.constant 0 : i32
    return %c0_i32, %c0_i32_0 : i32, i32
  }
  func.func @transform_5(%arg0: i32) -> (i32, i32, i32) {
    %c0_i32 = arith.constant 0 : i32
    %c0_i32_0 = arith.constant 0 : i32
    %c0_i32_1 = arith.constant 0 : i32
    return %arg0, %c0_i32, %c0_i32_0 : i32, i32, i32
  }
}

module attributes {stable_mosaic.version = 11 : i64} {
  func.func @_dw_kernel(%arg0: i32, %arg1: memref<1x24x6x96xbf16, #tpu.memory_space<vmem>>, %arg2: memref<25x1x96xf32, #tpu.memory_space<vmem>>, %arg3: memref<1x1x96xf32, #tpu.memory_space<vmem>>, %arg4: memref<1x1x96xf32, #tpu.memory_space<vmem>>, %arg5: memref<1x4x4x96xbf16, #tpu.memory_space<vmem>>) attributes {dimension_semantics = [#tpu.dimension_semantics<parallel>], iteration_bounds = array<i64: 2>, scalar_prefetch = 0 : i64, scratch_operands = 0 : i64, tpu.core_type = #tpu.core_type<tc>, window_params = [{transform_indices = @transform_0, window_bounds = array<i64: 1, 24, 6, 96>}, {pipeline_mode = #tpu.pipeline_mode<synchronous>, transform_indices = @transform_1, window_bounds = array<i64: 25, 1, 96>}, {pipeline_mode = #tpu.pipeline_mode<synchronous>, transform_indices = @transform_2, window_bounds = array<i64: 1, 1, 96>}, {pipeline_mode = #tpu.pipeline_mode<synchronous>, transform_indices = @transform_3, window_bounds = array<i64: 1, 1, 96>}, {transform_indices = @transform_4, window_bounds = array<i64: 1, 4, 4, 96>}]} {
    %c0 = arith.constant 0 : index
    %c0_0 = arith.constant 0 : index
    %c0_1 = arith.constant 0 : index
    %c0_2 = arith.constant 0 : index
    %0 = vector.load %arg1[%c0, %c0_0, %c0_1, %c0_2] : memref<1x24x6x96xbf16, #tpu.memory_space<vmem>>, vector<1x4x4x96xbf16>
    %1 = vector.shape_cast %0 : vector<1x4x4x96xbf16> to vector<4x4x96xbf16>
    %2 = arith.extf %1 : vector<4x4x96xbf16> to vector<4x4x96xf32>
    %c0_3 = arith.constant 0 : index
    %c0_4 = arith.constant 0 : index
    %c0_5 = arith.constant 0 : index
    %3 = vector.load %arg2[%c0_3, %c0_4, %c0_5] : memref<25x1x96xf32, #tpu.memory_space<vmem>>, vector<1x1x96xf32>
    %4 = vector.shape_cast %3 : vector<1x1x96xf32> to vector<1x96xf32>
    %5 = vector.shape_cast %4 : vector<1x96xf32> to vector<1x1x96xf32>
    %6 = vector.broadcast %5 : vector<1x1x96xf32> to vector<4x4x96xf32>
    %7 = arith.mulf %2, %6 : vector<4x4x96xf32>
    %c0_6 = arith.constant 0 : index
    %c6 = arith.constant 6 : index
    %c0_7 = arith.constant 0 : index
    %c0_8 = arith.constant 0 : index
    %8 = vector.load %arg1[%c0_6, %c6, %c0_7, %c0_8] : memref<1x24x6x96xbf16, #tpu.memory_space<vmem>>, vector<1x4x4x96xbf16>
    %9 = vector.shape_cast %8 : vector<1x4x4x96xbf16> to vector<4x4x96xbf16>
    %10 = arith.extf %9 : vector<4x4x96xbf16> to vector<4x4x96xf32>
    %c1 = arith.constant 1 : index
    %c0_9 = arith.constant 0 : index
    %c0_10 = arith.constant 0 : index
    %11 = vector.load %arg2[%c1, %c0_9, %c0_10] : memref<25x1x96xf32, #tpu.memory_space<vmem>>, vector<1x1x96xf32>
    %12 = vector.shape_cast %11 : vector<1x1x96xf32> to vector<1x96xf32>
    %13 = vector.shape_cast %12 : vector<1x96xf32> to vector<1x1x96xf32>
    %14 = vector.broadcast %13 : vector<1x1x96xf32> to vector<4x4x96xf32>
    %15 = arith.mulf %10, %14 : vector<4x4x96xf32>
    %16 = arith.addf %7, %15 : vector<4x4x96xf32>
    %c0_11 = arith.constant 0 : index
    %c0_12 = arith.constant 0 : index
    %c1_13 = arith.constant 1 : index
    %c0_14 = arith.constant 0 : index
    %17 = vector.load %arg1[%c0_11, %c0_12, %c1_13, %c0_14] : memref<1x24x6x96xbf16, #tpu.memory_space<vmem>>, vector<1x4x4x96xbf16>
    %18 = vector.shape_cast %17 : vector<1x4x4x96xbf16> to vector<4x4x96xbf16>
    %19 = arith.extf %18 : vector<4x4x96xbf16> to vector<4x4x96xf32>
    %c2 = arith.constant 2 : index
    %c0_15 = arith.constant 0 : index
    %c0_16 = arith.constant 0 : index
    %20 = vector.load %arg2[%c2, %c0_15, %c0_16] : memref<25x1x96xf32, #tpu.memory_space<vmem>>, vector<1x1x96xf32>
    %21 = vector.shape_cast %20 : vector<1x1x96xf32> to vector<1x96xf32>
    %22 = vector.shape_cast %21 : vector<1x96xf32> to vector<1x1x96xf32>
    %23 = vector.broadcast %22 : vector<1x1x96xf32> to vector<4x4x96xf32>
    %24 = arith.mulf %19, %23 : vector<4x4x96xf32>
    %25 = arith.addf %16, %24 : vector<4x4x96xf32>
    %c0_17 = arith.constant 0 : index
    %c6_18 = arith.constant 6 : index
    %c1_19 = arith.constant 1 : index
    %c0_20 = arith.constant 0 : index
    %26 = vector.load %arg1[%c0_17, %c6_18, %c1_19, %c0_20] : memref<1x24x6x96xbf16, #tpu.memory_space<vmem>>, vector<1x4x4x96xbf16>
    %27 = vector.shape_cast %26 : vector<1x4x4x96xbf16> to vector<4x4x96xbf16>
    %28 = arith.extf %27 : vector<4x4x96xbf16> to vector<4x4x96xf32>
    %c3 = arith.constant 3 : index
    %c0_21 = arith.constant 0 : index
    %c0_22 = arith.constant 0 : index
    %29 = vector.load %arg2[%c3, %c0_21, %c0_22] : memref<25x1x96xf32, #tpu.memory_space<vmem>>, vector<1x1x96xf32>
    %30 = vector.shape_cast %29 : vector<1x1x96xf32> to vector<1x96xf32>
    %31 = vector.shape_cast %30 : vector<1x96xf32> to vector<1x1x96xf32>
    %32 = vector.broadcast %31 : vector<1x1x96xf32> to vector<4x4x96xf32>
    %33 = arith.mulf %28, %32 : vector<4x4x96xf32>
    %34 = arith.addf %25, %33 : vector<4x4x96xf32>
    %c0_23 = arith.constant 0 : index
    %c0_24 = arith.constant 0 : index
    %c2_25 = arith.constant 2 : index
    %c0_26 = arith.constant 0 : index
    %35 = vector.load %arg1[%c0_23, %c0_24, %c2_25, %c0_26] : memref<1x24x6x96xbf16, #tpu.memory_space<vmem>>, vector<1x4x4x96xbf16>
    %36 = vector.shape_cast %35 : vector<1x4x4x96xbf16> to vector<4x4x96xbf16>
    %37 = arith.extf %36 : vector<4x4x96xbf16> to vector<4x4x96xf32>
    %c4 = arith.constant 4 : index
    %c0_27 = arith.constant 0 : index
    %c0_28 = arith.constant 0 : index
    %38 = vector.load %arg2[%c4, %c0_27, %c0_28] : memref<25x1x96xf32, #tpu.memory_space<vmem>>, vector<1x1x96xf32>
    %39 = vector.shape_cast %38 : vector<1x1x96xf32> to vector<1x96xf32>
    %40 = vector.shape_cast %39 : vector<1x96xf32> to vector<1x1x96xf32>
    %41 = vector.broadcast %40 : vector<1x1x96xf32> to vector<4x4x96xf32>
    %42 = arith.mulf %37, %41 : vector<4x4x96xf32>
    %43 = arith.addf %34, %42 : vector<4x4x96xf32>
    %c0_29 = arith.constant 0 : index
    %c12 = arith.constant 12 : index
    %c0_30 = arith.constant 0 : index
    %c0_31 = arith.constant 0 : index
    %44 = vector.load %arg1[%c0_29, %c12, %c0_30, %c0_31] : memref<1x24x6x96xbf16, #tpu.memory_space<vmem>>, vector<1x4x4x96xbf16>
    %45 = vector.shape_cast %44 : vector<1x4x4x96xbf16> to vector<4x4x96xbf16>
    %46 = arith.extf %45 : vector<4x4x96xbf16> to vector<4x4x96xf32>
    %c5 = arith.constant 5 : index
    %c0_32 = arith.constant 0 : index
    %c0_33 = arith.constant 0 : index
    %47 = vector.load %arg2[%c5, %c0_32, %c0_33] : memref<25x1x96xf32, #tpu.memory_space<vmem>>, vector<1x1x96xf32>
    %48 = vector.shape_cast %47 : vector<1x1x96xf32> to vector<1x96xf32>
    %49 = vector.shape_cast %48 : vector<1x96xf32> to vector<1x1x96xf32>
    %50 = vector.broadcast %49 : vector<1x1x96xf32> to vector<4x4x96xf32>
    %51 = arith.mulf %46, %50 : vector<4x4x96xf32>
    %52 = arith.addf %43, %51 : vector<4x4x96xf32>
    %c0_34 = arith.constant 0 : index
    %c18 = arith.constant 18 : index
    %c0_35 = arith.constant 0 : index
    %c0_36 = arith.constant 0 : index
    %53 = vector.load %arg1[%c0_34, %c18, %c0_35, %c0_36] : memref<1x24x6x96xbf16, #tpu.memory_space<vmem>>, vector<1x4x4x96xbf16>
    %54 = vector.shape_cast %53 : vector<1x4x4x96xbf16> to vector<4x4x96xbf16>
    %55 = arith.extf %54 : vector<4x4x96xbf16> to vector<4x4x96xf32>
    %c6_37 = arith.constant 6 : index
    %c0_38 = arith.constant 0 : index
    %c0_39 = arith.constant 0 : index
    %56 = vector.load %arg2[%c6_37, %c0_38, %c0_39] : memref<25x1x96xf32, #tpu.memory_space<vmem>>, vector<1x1x96xf32>
    %57 = vector.shape_cast %56 : vector<1x1x96xf32> to vector<1x96xf32>
    %58 = vector.shape_cast %57 : vector<1x96xf32> to vector<1x1x96xf32>
    %59 = vector.broadcast %58 : vector<1x1x96xf32> to vector<4x4x96xf32>
    %60 = arith.mulf %55, %59 : vector<4x4x96xf32>
    %61 = arith.addf %52, %60 : vector<4x4x96xf32>
    %c0_40 = arith.constant 0 : index
    %c12_41 = arith.constant 12 : index
    %c1_42 = arith.constant 1 : index
    %c0_43 = arith.constant 0 : index
    %62 = vector.load %arg1[%c0_40, %c12_41, %c1_42, %c0_43] : memref<1x24x6x96xbf16, #tpu.memory_space<vmem>>, vector<1x4x4x96xbf16>
    %63 = vector.shape_cast %62 : vector<1x4x4x96xbf16> to vector<4x4x96xbf16>
    %64 = arith.extf %63 : vector<4x4x96xbf16> to vector<4x4x96xf32>
    %c7 = arith.constant 7 : index
    %c0_44 = arith.constant 0 : index
    %c0_45 = arith.constant 0 : index
    %65 = vector.load %arg2[%c7, %c0_44, %c0_45] : memref<25x1x96xf32, #tpu.memory_space<vmem>>, vector<1x1x96xf32>
    %66 = vector.shape_cast %65 : vector<1x1x96xf32> to vector<1x96xf32>
    %67 = vector.shape_cast %66 : vector<1x96xf32> to vector<1x1x96xf32>
    %68 = vector.broadcast %67 : vector<1x1x96xf32> to vector<4x4x96xf32>
    %69 = arith.mulf %64, %68 : vector<4x4x96xf32>
    %70 = arith.addf %61, %69 : vector<4x4x96xf32>
    %c0_46 = arith.constant 0 : index
    %c18_47 = arith.constant 18 : index
    %c1_48 = arith.constant 1 : index
    %c0_49 = arith.constant 0 : index
    %71 = vector.load %arg1[%c0_46, %c18_47, %c1_48, %c0_49] : memref<1x24x6x96xbf16, #tpu.memory_space<vmem>>, vector<1x4x4x96xbf16>
    %72 = vector.shape_cast %71 : vector<1x4x4x96xbf16> to vector<4x4x96xbf16>
    %73 = arith.extf %72 : vector<4x4x96xbf16> to vector<4x4x96xf32>
    %c8 = arith.constant 8 : index
    %c0_50 = arith.constant 0 : index
    %c0_51 = arith.constant 0 : index
    %74 = vector.load %arg2[%c8, %c0_50, %c0_51] : memref<25x1x96xf32, #tpu.memory_space<vmem>>, vector<1x1x96xf32>
    %75 = vector.shape_cast %74 : vector<1x1x96xf32> to vector<1x96xf32>
    %76 = vector.shape_cast %75 : vector<1x96xf32> to vector<1x1x96xf32>
    %77 = vector.broadcast %76 : vector<1x1x96xf32> to vector<4x4x96xf32>
    %78 = arith.mulf %73, %77 : vector<4x4x96xf32>
    %79 = arith.addf %70, %78 : vector<4x4x96xf32>
    %c0_52 = arith.constant 0 : index
    %c12_53 = arith.constant 12 : index
    %c2_54 = arith.constant 2 : index
    %c0_55 = arith.constant 0 : index
    %80 = vector.load %arg1[%c0_52, %c12_53, %c2_54, %c0_55] : memref<1x24x6x96xbf16, #tpu.memory_space<vmem>>, vector<1x4x4x96xbf16>
    %81 = vector.shape_cast %80 : vector<1x4x4x96xbf16> to vector<4x4x96xbf16>
    %82 = arith.extf %81 : vector<4x4x96xbf16> to vector<4x4x96xf32>
    %c9 = arith.constant 9 : index
    %c0_56 = arith.constant 0 : index
    %c0_57 = arith.constant 0 : index
    %83 = vector.load %arg2[%c9, %c0_56, %c0_57] : memref<25x1x96xf32, #tpu.memory_space<vmem>>, vector<1x1x96xf32>
    %84 = vector.shape_cast %83 : vector<1x1x96xf32> to vector<1x96xf32>
    %85 = vector.shape_cast %84 : vector<1x96xf32> to vector<1x1x96xf32>
    %86 = vector.broadcast %85 : vector<1x1x96xf32> to vector<4x4x96xf32>
    %87 = arith.mulf %82, %86 : vector<4x4x96xf32>
    %88 = arith.addf %79, %87 : vector<4x4x96xf32>
    %c0_58 = arith.constant 0 : index
    %c1_59 = arith.constant 1 : index
    %c0_60 = arith.constant 0 : index
    %c0_61 = arith.constant 0 : index
    %89 = vector.load %arg1[%c0_58, %c1_59, %c0_60, %c0_61] : memref<1x24x6x96xbf16, #tpu.memory_space<vmem>>, vector<1x4x4x96xbf16>
    %90 = vector.shape_cast %89 : vector<1x4x4x96xbf16> to vector<4x4x96xbf16>
    %91 = arith.extf %90 : vector<4x4x96xbf16> to vector<4x4x96xf32>
    %c10 = arith.constant 10 : index
    %c0_62 = arith.constant 0 : index
    %c0_63 = arith.constant 0 : index
    %92 = vector.load %arg2[%c10, %c0_62, %c0_63] : memref<25x1x96xf32, #tpu.memory_space<vmem>>, vector<1x1x96xf32>
    %93 = vector.shape_cast %92 : vector<1x1x96xf32> to vector<1x96xf32>
    %94 = vector.shape_cast %93 : vector<1x96xf32> to vector<1x1x96xf32>
    %95 = vector.broadcast %94 : vector<1x1x96xf32> to vector<4x4x96xf32>
    %96 = arith.mulf %91, %95 : vector<4x4x96xf32>
    %97 = arith.addf %88, %96 : vector<4x4x96xf32>
    %c0_64 = arith.constant 0 : index
    %c7_65 = arith.constant 7 : index
    %c0_66 = arith.constant 0 : index
    %c0_67 = arith.constant 0 : index
    %98 = vector.load %arg1[%c0_64, %c7_65, %c0_66, %c0_67] : memref<1x24x6x96xbf16, #tpu.memory_space<vmem>>, vector<1x4x4x96xbf16>
    %99 = vector.shape_cast %98 : vector<1x4x4x96xbf16> to vector<4x4x96xbf16>
    %100 = arith.extf %99 : vector<4x4x96xbf16> to vector<4x4x96xf32>
    %c11 = arith.constant 11 : index
    %c0_68 = arith.constant 0 : index
    %c0_69 = arith.constant 0 : index
    %101 = vector.load %arg2[%c11, %c0_68, %c0_69] : memref<25x1x96xf32, #tpu.memory_space<vmem>>, vector<1x1x96xf32>
    %102 = vector.shape_cast %101 : vector<1x1x96xf32> to vector<1x96xf32>
    %103 = vector.shape_cast %102 : vector<1x96xf32> to vector<1x1x96xf32>
    %104 = vector.broadcast %103 : vector<1x1x96xf32> to vector<4x4x96xf32>
    %105 = arith.mulf %100, %104 : vector<4x4x96xf32>
    %106 = arith.addf %97, %105 : vector<4x4x96xf32>
    %c0_70 = arith.constant 0 : index
    %c1_71 = arith.constant 1 : index
    %c1_72 = arith.constant 1 : index
    %c0_73 = arith.constant 0 : index
    %107 = vector.load %arg1[%c0_70, %c1_71, %c1_72, %c0_73] : memref<1x24x6x96xbf16, #tpu.memory_space<vmem>>, vector<1x4x4x96xbf16>
    %108 = vector.shape_cast %107 : vector<1x4x4x96xbf16> to vector<4x4x96xbf16>
    %109 = arith.extf %108 : vector<4x4x96xbf16> to vector<4x4x96xf32>
    %c12_74 = arith.constant 12 : index
    %c0_75 = arith.constant 0 : index
    %c0_76 = arith.constant 0 : index
    %110 = vector.load %arg2[%c12_74, %c0_75, %c0_76] : memref<25x1x96xf32, #tpu.memory_space<vmem>>, vector<1x1x96xf32>
    %111 = vector.shape_cast %110 : vector<1x1x96xf32> to vector<1x96xf32>
    %112 = vector.shape_cast %111 : vector<1x96xf32> to vector<1x1x96xf32>
    %113 = vector.broadcast %112 : vector<1x1x96xf32> to vector<4x4x96xf32>
    %114 = arith.mulf %109, %113 : vector<4x4x96xf32>
    %115 = arith.addf %106, %114 : vector<4x4x96xf32>
    %c0_77 = arith.constant 0 : index
    %c7_78 = arith.constant 7 : index
    %c1_79 = arith.constant 1 : index
    %c0_80 = arith.constant 0 : index
    %116 = vector.load %arg1[%c0_77, %c7_78, %c1_79, %c0_80] : memref<1x24x6x96xbf16, #tpu.memory_space<vmem>>, vector<1x4x4x96xbf16>
    %117 = vector.shape_cast %116 : vector<1x4x4x96xbf16> to vector<4x4x96xbf16>
    %118 = arith.extf %117 : vector<4x4x96xbf16> to vector<4x4x96xf32>
    %c13 = arith.constant 13 : index
    %c0_81 = arith.constant 0 : index
    %c0_82 = arith.constant 0 : index
    %119 = vector.load %arg2[%c13, %c0_81, %c0_82] : memref<25x1x96xf32, #tpu.memory_space<vmem>>, vector<1x1x96xf32>
    %120 = vector.shape_cast %119 : vector<1x1x96xf32> to vector<1x96xf32>
    %121 = vector.shape_cast %120 : vector<1x96xf32> to vector<1x1x96xf32>
    %122 = vector.broadcast %121 : vector<1x1x96xf32> to vector<4x4x96xf32>
    %123 = arith.mulf %118, %122 : vector<4x4x96xf32>
    %124 = arith.addf %115, %123 : vector<4x4x96xf32>
    %c0_83 = arith.constant 0 : index
    %c1_84 = arith.constant 1 : index
    %c2_85 = arith.constant 2 : index
    %c0_86 = arith.constant 0 : index
    %125 = vector.load %arg1[%c0_83, %c1_84, %c2_85, %c0_86] : memref<1x24x6x96xbf16, #tpu.memory_space<vmem>>, vector<1x4x4x96xbf16>
    %126 = vector.shape_cast %125 : vector<1x4x4x96xbf16> to vector<4x4x96xbf16>
    %127 = arith.extf %126 : vector<4x4x96xbf16> to vector<4x4x96xf32>
    %c14 = arith.constant 14 : index
    %c0_87 = arith.constant 0 : index
    %c0_88 = arith.constant 0 : index
    %128 = vector.load %arg2[%c14, %c0_87, %c0_88] : memref<25x1x96xf32, #tpu.memory_space<vmem>>, vector<1x1x96xf32>
    %129 = vector.shape_cast %128 : vector<1x1x96xf32> to vector<1x96xf32>
    %130 = vector.shape_cast %129 : vector<1x96xf32> to vector<1x1x96xf32>
    %131 = vector.broadcast %130 : vector<1x1x96xf32> to vector<4x4x96xf32>
    %132 = arith.mulf %127, %131 : vector<4x4x96xf32>
    %133 = arith.addf %124, %132 : vector<4x4x96xf32>
    %c0_89 = arith.constant 0 : index
    %c13_90 = arith.constant 13 : index
    %c0_91 = arith.constant 0 : index
    %c0_92 = arith.constant 0 : index
    %134 = vector.load %arg1[%c0_89, %c13_90, %c0_91, %c0_92] : memref<1x24x6x96xbf16, #tpu.memory_space<vmem>>, vector<1x4x4x96xbf16>
    %135 = vector.shape_cast %134 : vector<1x4x4x96xbf16> to vector<4x4x96xbf16>
    %136 = arith.extf %135 : vector<4x4x96xbf16> to vector<4x4x96xf32>
    %c15 = arith.constant 15 : index
    %c0_93 = arith.constant 0 : index
    %c0_94 = arith.constant 0 : index
    %137 = vector.load %arg2[%c15, %c0_93, %c0_94] : memref<25x1x96xf32, #tpu.memory_space<vmem>>, vector<1x1x96xf32>
    %138 = vector.shape_cast %137 : vector<1x1x96xf32> to vector<1x96xf32>
    %139 = vector.shape_cast %138 : vector<1x96xf32> to vector<1x1x96xf32>
    %140 = vector.broadcast %139 : vector<1x1x96xf32> to vector<4x4x96xf32>
    %141 = arith.mulf %136, %140 : vector<4x4x96xf32>
    %142 = arith.addf %133, %141 : vector<4x4x96xf32>
    %c0_95 = arith.constant 0 : index
    %c19 = arith.constant 19 : index
    %c0_96 = arith.constant 0 : index
    %c0_97 = arith.constant 0 : index
    %143 = vector.load %arg1[%c0_95, %c19, %c0_96, %c0_97] : memref<1x24x6x96xbf16, #tpu.memory_space<vmem>>, vector<1x4x4x96xbf16>
    %144 = vector.shape_cast %143 : vector<1x4x4x96xbf16> to vector<4x4x96xbf16>
    %145 = arith.extf %144 : vector<4x4x96xbf16> to vector<4x4x96xf32>
    %c16 = arith.constant 16 : index
    %c0_98 = arith.constant 0 : index
    %c0_99 = arith.constant 0 : index
    %146 = vector.load %arg2[%c16, %c0_98, %c0_99] : memref<25x1x96xf32, #tpu.memory_space<vmem>>, vector<1x1x96xf32>
    %147 = vector.shape_cast %146 : vector<1x1x96xf32> to vector<1x96xf32>
    %148 = vector.shape_cast %147 : vector<1x96xf32> to vector<1x1x96xf32>
    %149 = vector.broadcast %148 : vector<1x1x96xf32> to vector<4x4x96xf32>
    %150 = arith.mulf %145, %149 : vector<4x4x96xf32>
    %151 = arith.addf %142, %150 : vector<4x4x96xf32>
    %c0_100 = arith.constant 0 : index
    %c13_101 = arith.constant 13 : index
    %c1_102 = arith.constant 1 : index
    %c0_103 = arith.constant 0 : index
    %152 = vector.load %arg1[%c0_100, %c13_101, %c1_102, %c0_103] : memref<1x24x6x96xbf16, #tpu.memory_space<vmem>>, vector<1x4x4x96xbf16>
    %153 = vector.shape_cast %152 : vector<1x4x4x96xbf16> to vector<4x4x96xbf16>
    %154 = arith.extf %153 : vector<4x4x96xbf16> to vector<4x4x96xf32>
    %c17 = arith.constant 17 : index
    %c0_104 = arith.constant 0 : index
    %c0_105 = arith.constant 0 : index
    %155 = vector.load %arg2[%c17, %c0_104, %c0_105] : memref<25x1x96xf32, #tpu.memory_space<vmem>>, vector<1x1x96xf32>
    %156 = vector.shape_cast %155 : vector<1x1x96xf32> to vector<1x96xf32>
    %157 = vector.shape_cast %156 : vector<1x96xf32> to vector<1x1x96xf32>
    %158 = vector.broadcast %157 : vector<1x1x96xf32> to vector<4x4x96xf32>
    %159 = arith.mulf %154, %158 : vector<4x4x96xf32>
    %160 = arith.addf %151, %159 : vector<4x4x96xf32>
    %c0_106 = arith.constant 0 : index
    %c19_107 = arith.constant 19 : index
    %c1_108 = arith.constant 1 : index
    %c0_109 = arith.constant 0 : index
    %161 = vector.load %arg1[%c0_106, %c19_107, %c1_108, %c0_109] : memref<1x24x6x96xbf16, #tpu.memory_space<vmem>>, vector<1x4x4x96xbf16>
    %162 = vector.shape_cast %161 : vector<1x4x4x96xbf16> to vector<4x4x96xbf16>
    %163 = arith.extf %162 : vector<4x4x96xbf16> to vector<4x4x96xf32>
    %c18_110 = arith.constant 18 : index
    %c0_111 = arith.constant 0 : index
    %c0_112 = arith.constant 0 : index
    %164 = vector.load %arg2[%c18_110, %c0_111, %c0_112] : memref<25x1x96xf32, #tpu.memory_space<vmem>>, vector<1x1x96xf32>
    %165 = vector.shape_cast %164 : vector<1x1x96xf32> to vector<1x96xf32>
    %166 = vector.shape_cast %165 : vector<1x96xf32> to vector<1x1x96xf32>
    %167 = vector.broadcast %166 : vector<1x1x96xf32> to vector<4x4x96xf32>
    %168 = arith.mulf %163, %167 : vector<4x4x96xf32>
    %169 = arith.addf %160, %168 : vector<4x4x96xf32>
    %c0_113 = arith.constant 0 : index
    %c13_114 = arith.constant 13 : index
    %c2_115 = arith.constant 2 : index
    %c0_116 = arith.constant 0 : index
    %170 = vector.load %arg1[%c0_113, %c13_114, %c2_115, %c0_116] : memref<1x24x6x96xbf16, #tpu.memory_space<vmem>>, vector<1x4x4x96xbf16>
    %171 = vector.shape_cast %170 : vector<1x4x4x96xbf16> to vector<4x4x96xbf16>
    %172 = arith.extf %171 : vector<4x4x96xbf16> to vector<4x4x96xf32>
    %c19_117 = arith.constant 19 : index
    %c0_118 = arith.constant 0 : index
    %c0_119 = arith.constant 0 : index
    %173 = vector.load %arg2[%c19_117, %c0_118, %c0_119] : memref<25x1x96xf32, #tpu.memory_space<vmem>>, vector<1x1x96xf32>
    %174 = vector.shape_cast %173 : vector<1x1x96xf32> to vector<1x96xf32>
    %175 = vector.shape_cast %174 : vector<1x96xf32> to vector<1x1x96xf32>
    %176 = vector.broadcast %175 : vector<1x1x96xf32> to vector<4x4x96xf32>
    %177 = arith.mulf %172, %176 : vector<4x4x96xf32>
    %178 = arith.addf %169, %177 : vector<4x4x96xf32>
    %c0_120 = arith.constant 0 : index
    %c2_121 = arith.constant 2 : index
    %c0_122 = arith.constant 0 : index
    %c0_123 = arith.constant 0 : index
    %179 = vector.load %arg1[%c0_120, %c2_121, %c0_122, %c0_123] : memref<1x24x6x96xbf16, #tpu.memory_space<vmem>>, vector<1x4x4x96xbf16>
    %180 = vector.shape_cast %179 : vector<1x4x4x96xbf16> to vector<4x4x96xbf16>
    %181 = arith.extf %180 : vector<4x4x96xbf16> to vector<4x4x96xf32>
    %c20 = arith.constant 20 : index
    %c0_124 = arith.constant 0 : index
    %c0_125 = arith.constant 0 : index
    %182 = vector.load %arg2[%c20, %c0_124, %c0_125] : memref<25x1x96xf32, #tpu.memory_space<vmem>>, vector<1x1x96xf32>
    %183 = vector.shape_cast %182 : vector<1x1x96xf32> to vector<1x96xf32>
    %184 = vector.shape_cast %183 : vector<1x96xf32> to vector<1x1x96xf32>
    %185 = vector.broadcast %184 : vector<1x1x96xf32> to vector<4x4x96xf32>
    %186 = arith.mulf %181, %185 : vector<4x4x96xf32>
    %187 = arith.addf %178, %186 : vector<4x4x96xf32>
    %c0_126 = arith.constant 0 : index
    %c8_127 = arith.constant 8 : index
    %c0_128 = arith.constant 0 : index
    %c0_129 = arith.constant 0 : index
    %188 = vector.load %arg1[%c0_126, %c8_127, %c0_128, %c0_129] : memref<1x24x6x96xbf16, #tpu.memory_space<vmem>>, vector<1x4x4x96xbf16>
    %189 = vector.shape_cast %188 : vector<1x4x4x96xbf16> to vector<4x4x96xbf16>
    %190 = arith.extf %189 : vector<4x4x96xbf16> to vector<4x4x96xf32>
    %c21 = arith.constant 21 : index
    %c0_130 = arith.constant 0 : index
    %c0_131 = arith.constant 0 : index
    %191 = vector.load %arg2[%c21, %c0_130, %c0_131] : memref<25x1x96xf32, #tpu.memory_space<vmem>>, vector<1x1x96xf32>
    %192 = vector.shape_cast %191 : vector<1x1x96xf32> to vector<1x96xf32>
    %193 = vector.shape_cast %192 : vector<1x96xf32> to vector<1x1x96xf32>
    %194 = vector.broadcast %193 : vector<1x1x96xf32> to vector<4x4x96xf32>
    %195 = arith.mulf %190, %194 : vector<4x4x96xf32>
    %196 = arith.addf %187, %195 : vector<4x4x96xf32>
    %c0_132 = arith.constant 0 : index
    %c2_133 = arith.constant 2 : index
    %c1_134 = arith.constant 1 : index
    %c0_135 = arith.constant 0 : index
    %197 = vector.load %arg1[%c0_132, %c2_133, %c1_134, %c0_135] : memref<1x24x6x96xbf16, #tpu.memory_space<vmem>>, vector<1x4x4x96xbf16>
    %198 = vector.shape_cast %197 : vector<1x4x4x96xbf16> to vector<4x4x96xbf16>
    %199 = arith.extf %198 : vector<4x4x96xbf16> to vector<4x4x96xf32>
    %c22 = arith.constant 22 : index
    %c0_136 = arith.constant 0 : index
    %c0_137 = arith.constant 0 : index
    %200 = vector.load %arg2[%c22, %c0_136, %c0_137] : memref<25x1x96xf32, #tpu.memory_space<vmem>>, vector<1x1x96xf32>
    %201 = vector.shape_cast %200 : vector<1x1x96xf32> to vector<1x96xf32>
    %202 = vector.shape_cast %201 : vector<1x96xf32> to vector<1x1x96xf32>
    %203 = vector.broadcast %202 : vector<1x1x96xf32> to vector<4x4x96xf32>
    %204 = arith.mulf %199, %203 : vector<4x4x96xf32>
    %205 = arith.addf %196, %204 : vector<4x4x96xf32>
    %c0_138 = arith.constant 0 : index
    %c8_139 = arith.constant 8 : index
    %c1_140 = arith.constant 1 : index
    %c0_141 = arith.constant 0 : index
    %206 = vector.load %arg1[%c0_138, %c8_139, %c1_140, %c0_141] : memref<1x24x6x96xbf16, #tpu.memory_space<vmem>>, vector<1x4x4x96xbf16>
    %207 = vector.shape_cast %206 : vector<1x4x4x96xbf16> to vector<4x4x96xbf16>
    %208 = arith.extf %207 : vector<4x4x96xbf16> to vector<4x4x96xf32>
    %c23 = arith.constant 23 : index
    %c0_142 = arith.constant 0 : index
    %c0_143 = arith.constant 0 : index
    %209 = vector.load %arg2[%c23, %c0_142, %c0_143] : memref<25x1x96xf32, #tpu.memory_space<vmem>>, vector<1x1x96xf32>
    %210 = vector.shape_cast %209 : vector<1x1x96xf32> to vector<1x96xf32>
    %211 = vector.shape_cast %210 : vector<1x96xf32> to vector<1x1x96xf32>
    %212 = vector.broadcast %211 : vector<1x1x96xf32> to vector<4x4x96xf32>
    %213 = arith.mulf %208, %212 : vector<4x4x96xf32>
    %214 = arith.addf %205, %213 : vector<4x4x96xf32>
    %c0_144 = arith.constant 0 : index
    %c2_145 = arith.constant 2 : index
    %c2_146 = arith.constant 2 : index
    %c0_147 = arith.constant 0 : index
    %215 = vector.load %arg1[%c0_144, %c2_145, %c2_146, %c0_147] : memref<1x24x6x96xbf16, #tpu.memory_space<vmem>>, vector<1x4x4x96xbf16>
    %216 = vector.shape_cast %215 : vector<1x4x4x96xbf16> to vector<4x4x96xbf16>
    %217 = arith.extf %216 : vector<4x4x96xbf16> to vector<4x4x96xf32>
    %c24 = arith.constant 24 : index
    %c0_148 = arith.constant 0 : index
    %c0_149 = arith.constant 0 : index
    %218 = vector.load %arg2[%c24, %c0_148, %c0_149] : memref<25x1x96xf32, #tpu.memory_space<vmem>>, vector<1x1x96xf32>
    %219 = vector.shape_cast %218 : vector<1x1x96xf32> to vector<1x96xf32>
    %220 = vector.shape_cast %219 : vector<1x96xf32> to vector<1x1x96xf32>
    %221 = vector.broadcast %220 : vector<1x1x96xf32> to vector<4x4x96xf32>
    %222 = arith.mulf %217, %221 : vector<4x4x96xf32>
    %223 = arith.addf %214, %222 : vector<4x4x96xf32>
    %c0_150 = arith.constant 0 : index
    %c0_151 = arith.constant 0 : index
    %c0_152 = arith.constant 0 : index
    %224 = vector.load %arg3[%c0_150, %c0_151, %c0_152] : memref<1x1x96xf32, #tpu.memory_space<vmem>>, vector<1x1x96xf32>
    %225 = vector.broadcast %224 : vector<1x1x96xf32> to vector<4x4x96xf32>
    %226 = arith.mulf %223, %225 : vector<4x4x96xf32>
    %c0_153 = arith.constant 0 : index
    %c0_154 = arith.constant 0 : index
    %c0_155 = arith.constant 0 : index
    %227 = vector.load %arg4[%c0_153, %c0_154, %c0_155] : memref<1x1x96xf32, #tpu.memory_space<vmem>>, vector<1x1x96xf32>
    %228 = vector.broadcast %227 : vector<1x1x96xf32> to vector<4x4x96xf32>
    %229 = arith.addf %226, %228 : vector<4x4x96xf32>
    %230 = arith.truncf %229 : vector<4x4x96xf32> to vector<4x4x96xbf16>
    %c0_156 = arith.constant 0 : index
    %c0_157 = arith.constant 0 : index
    %c0_158 = arith.constant 0 : index
    %c0_159 = arith.constant 0 : index
    %231 = vector.load %arg5[%c0_156, %c0_157, %c0_158, %c0_159] : memref<1x4x4x96xbf16, #tpu.memory_space<vmem>>, vector<1x4x4x96xbf16>
    %232 = vector.shape_cast %231 : vector<1x4x4x96xbf16> to vector<4x4x96xbf16>
    %233 = vector.shape_cast %230 : vector<4x4x96xbf16> to vector<1x4x4x96xbf16>
    tpu.vector_store %arg5[%c0_156, %c0_157, %c0_158, %c0_159], %233 {strides = array<i32>} : memref<1x4x4x96xbf16, #tpu.memory_space<vmem>>, vector<1x4x4x96xbf16>,
    return
  }
  func.func @transform_0(%arg0: i32) -> (i32, i32, i32, i32) {
    %c0_i32 = arith.constant 0 : i32
    %c0_i32_0 = arith.constant 0 : i32
    %c0_i32_1 = arith.constant 0 : i32
    %c0_i32_2 = arith.constant 0 : i32
    return %arg0, %c0_i32, %c0_i32_0, %c0_i32_1 : i32, i32, i32, i32
  }
  func.func @transform_1(%arg0: i32) -> (i32, i32, i32) {
    %c0_i32 = arith.constant 0 : i32
    %c0_i32_0 = arith.constant 0 : i32
    %c0_i32_1 = arith.constant 0 : i32
    %c0_i32_2 = arith.constant 0 : i32
    return %c0_i32, %c0_i32_0, %c0_i32_1 : i32, i32, i32
  }
  func.func @transform_2(%arg0: i32) -> (i32, i32, i32) {
    %c0_i32 = arith.constant 0 : i32
    %c0_i32_0 = arith.constant 0 : i32
    %c0_i32_1 = arith.constant 0 : i32
    %c0_i32_2 = arith.constant 0 : i32
    return %c0_i32, %c0_i32_0, %c0_i32_1 : i32, i32, i32
  }
  func.func @transform_3(%arg0: i32) -> (i32, i32, i32) {
    %c0_i32 = arith.constant 0 : i32
    %c0_i32_0 = arith.constant 0 : i32
    %c0_i32_1 = arith.constant 0 : i32
    %c0_i32_2 = arith.constant 0 : i32
    return %c0_i32, %c0_i32_0, %c0_i32_1 : i32, i32, i32
  }
  func.func @transform_4(%arg0: i32) -> (i32, i32, i32, i32) {
    %c0_i32 = arith.constant 0 : i32
    %c0_i32_0 = arith.constant 0 : i32
    %c0_i32_1 = arith.constant 0 : i32
    %c0_i32_2 = arith.constant 0 : i32
    return %arg0, %c0_i32, %c0_i32_0, %c0_i32_1 : i32, i32, i32, i32
  }
}

module attributes {stable_mosaic.version = 11 : i64} {
  func.func @_pw_fused_kernel(%arg0: i32, %arg1: i32, %arg2: memref<1x16x96xbf16, #tpu.memory_space<vmem>>, %arg3: memref<96x40xbf16, #tpu.memory_space<vmem>>, %arg4: memref<1x40xf32, #tpu.memory_space<vmem>>, %arg5: memref<1x40xf32, #tpu.memory_space<vmem>>, %arg6: memref<1x1x96xf32, #tpu.memory_space<vmem>>, %arg7: memref<1x16x40xbf16, #tpu.memory_space<vmem>>) attributes {dimension_semantics = [#tpu.dimension_semantics<parallel>, #tpu.dimension_semantics<parallel>], iteration_bounds = array<i64: 2, 1>, scalar_prefetch = 0 : i64, scratch_operands = 0 : i64, tpu.core_type = #tpu.core_type<tc>, window_params = [{transform_indices = @transform_0, window_bounds = array<i64: 1, 16, 96>}, {pipeline_mode = #tpu.pipeline_mode<synchronous>, transform_indices = @transform_1, window_bounds = array<i64: 96, 40>}, {pipeline_mode = #tpu.pipeline_mode<synchronous>, transform_indices = @transform_2, window_bounds = array<i64: 1, 40>}, {pipeline_mode = #tpu.pipeline_mode<synchronous>, transform_indices = @transform_3, window_bounds = array<i64: 1, 40>}, {transform_indices = @transform_4, window_bounds = array<i64: 1, 1, 96>}, {transform_indices = @transform_5, window_bounds = array<i64: 1, 16, 40>}]} {
    %c0 = arith.constant 0 : index
    %c0_0 = arith.constant 0 : index
    %c0_1 = arith.constant 0 : index
    %0 = vector.load %arg2[%c0, %c0_0, %c0_1] : memref<1x16x96xbf16, #tpu.memory_space<vmem>>, vector<1x16x96xbf16>
    %1 = vector.shape_cast %0 : vector<1x16x96xbf16> to vector<16x96xbf16>
    %2 = arith.extf %1 : vector<16x96xbf16> to vector<16x96xf32>
    %c0_2 = arith.constant 0 : index
    %c0_3 = arith.constant 0 : index
    %c0_4 = arith.constant 0 : index
    %3 = vector.load %arg6[%c0_2, %c0_3, %c0_4] : memref<1x1x96xf32, #tpu.memory_space<vmem>>, vector<1x1x96xf32>
    %4 = vector.shape_cast %3 : vector<1x1x96xf32> to vector<1x96xf32>
    %5 = vector.broadcast %4 : vector<1x96xf32> to vector<16x96xf32>
    %6 = arith.mulf %2, %5 : vector<16x96xf32>
    %cst = arith.constant 3.000000e+00 : f32
    %7 = vector.broadcast %cst : f32 to vector<16x96xf32>
    %8 = arith.addf %6, %7 : vector<16x96xf32>
    %cst_5 = arith.constant 0.000000e+00 : f32
    %cst_6 = arith.constant 6.000000e+00 : f32
    %9 = vector.broadcast %cst_5 : f32 to vector<16x96xf32>
    %10 = arith.maximumf %9, %8 : vector<16x96xf32>
    %11 = vector.broadcast %cst_6 : f32 to vector<16x96xf32>
    %12 = arith.minimumf %11, %10 : vector<16x96xf32>
    %13 = arith.mulf %6, %12 : vector<16x96xf32>
    %cst_7 = arith.constant 0.166666672 : f32
    %14 = vector.broadcast %cst_7 : f32 to vector<16x96xf32>
    %15 = arith.mulf %13, %14 : vector<16x96xf32>
    %16 = arith.truncf %15 : vector<16x96xf32> to vector<16x96xbf16>
    %c0_8 = arith.constant 0 : index
    %c0_9 = arith.constant 0 : index
    %17 = vector.load %arg3[%c0_8, %c0_9] : memref<96x40xbf16, #tpu.memory_space<vmem>>, vector<96x40xbf16>
    %cst_10 = arith.constant dense<0.000000e+00> : vector<16x40xf32>
    %18 = tpu.matmul %16, %17, %cst_10 {dimension_numbers = #tpu.dot_dimension_numbers<[1], [0], [0], [1], [0, 0, 1, 1], [], []>} : vector<16x96xbf16>, vector<96x40xbf16>, vector<16x40xf32> -> vector<16x40xf32>
    %c0_11 = arith.constant 0 : index
    %c0_12 = arith.constant 0 : index
    %19 = vector.load %arg4[%c0_11, %c0_12] : memref<1x40xf32, #tpu.memory_space<vmem>>, vector<1x40xf32>
    %20 = vector.broadcast %19 : vector<1x40xf32> to vector<16x40xf32>
    %21 = arith.mulf %18, %20 : vector<16x40xf32>
    %c0_13 = arith.constant 0 : index
    %c0_14 = arith.constant 0 : index
    %22 = vector.load %arg5[%c0_13, %c0_14] : memref<1x40xf32, #tpu.memory_space<vmem>>, vector<1x40xf32>
    %23 = vector.broadcast %22 : vector<1x40xf32> to vector<16x40xf32>
    %24 = arith.addf %21, %23 : vector<16x40xf32>
    %25 = arith.truncf %24 : vector<16x40xf32> to vector<16x40xbf16>
    %c0_15 = arith.constant 0 : index
    %c0_16 = arith.constant 0 : index
    %c0_17 = arith.constant 0 : index
    %26 = vector.load %arg7[%c0_15, %c0_16, %c0_17] : memref<1x16x40xbf16, #tpu.memory_space<vmem>>, vector<1x16x40xbf16>
    %27 = vector.shape_cast %26 : vector<1x16x40xbf16> to vector<16x40xbf16>
    %28 = vector.shape_cast %25 : vector<16x40xbf16> to vector<1x16x40xbf16>
    tpu.vector_store %arg7[%c0_15, %c0_16, %c0_17], %28 {strides = array<i32>} : memref<1x16x40xbf16, #tpu.memory_space<vmem>>, vector<1x16x40xbf16>,
    return
  }
  func.func @transform_0(%arg0: i32, %arg1: i32) -> (i32, i32, i32) {
    %c0_i32 = arith.constant 0 : i32
    %c0_i32_0 = arith.constant 0 : i32
    return %arg0, %arg1, %c0_i32 : i32, i32, i32
  }
  func.func @transform_1(%arg0: i32, %arg1: i32) -> (i32, i32) {
    %c0_i32 = arith.constant 0 : i32
    %c0_i32_0 = arith.constant 0 : i32
    %c0_i32_1 = arith.constant 0 : i32
    return %c0_i32, %c0_i32_0 : i32, i32
  }
  func.func @transform_2(%arg0: i32, %arg1: i32) -> (i32, i32) {
    %c0_i32 = arith.constant 0 : i32
    %c0_i32_0 = arith.constant 0 : i32
    %c0_i32_1 = arith.constant 0 : i32
    return %c0_i32, %c0_i32_0 : i32, i32
  }
  func.func @transform_3(%arg0: i32, %arg1: i32) -> (i32, i32) {
    %c0_i32 = arith.constant 0 : i32
    %c0_i32_0 = arith.constant 0 : i32
    %c0_i32_1 = arith.constant 0 : i32
    return %c0_i32, %c0_i32_0 : i32, i32
  }
  func.func @transform_4(%arg0: i32, %arg1: i32) -> (i32, i32, i32) {
    %c0_i32 = arith.constant 0 : i32
    %c0_i32_0 = arith.constant 0 : i32
    %c0_i32_1 = arith.constant 0 : i32
    return %arg0, %c0_i32, %c0_i32_0 : i32, i32, i32
  }
  func.func @transform_5(%arg0: i32, %arg1: i32) -> (i32, i32, i32) {
    %c0_i32 = arith.constant 0 : i32
    %c0_i32_0 = arith.constant 0 : i32
    return %arg0, %arg1, %c0_i32 : i32, i32, i32
  }
}

module attributes {stable_mosaic.version = 11 : i64} {
  func.func @_pw_fused_kernel(%arg0: i32, %arg1: i32, %arg2: memref<1x16x40xbf16, #tpu.memory_space<vmem>>, %arg3: memref<40x64xbf16, #tpu.memory_space<vmem>>, %arg4: memref<1x64xf32, #tpu.memory_space<vmem>>, %arg5: memref<1x64xf32, #tpu.memory_space<vmem>>, %arg6: memref<1x16x64xbf16, #tpu.memory_space<vmem>>) attributes {dimension_semantics = [#tpu.dimension_semantics<parallel>, #tpu.dimension_semantics<parallel>], iteration_bounds = array<i64: 2, 1>, scalar_prefetch = 0 : i64, scratch_operands = 0 : i64, tpu.core_type = #tpu.core_type<tc>, window_params = [{transform_indices = @transform_0, window_bounds = array<i64: 1, 16, 40>}, {pipeline_mode = #tpu.pipeline_mode<synchronous>, transform_indices = @transform_1, window_bounds = array<i64: 40, 64>}, {pipeline_mode = #tpu.pipeline_mode<synchronous>, transform_indices = @transform_2, window_bounds = array<i64: 1, 64>}, {pipeline_mode = #tpu.pipeline_mode<synchronous>, transform_indices = @transform_3, window_bounds = array<i64: 1, 64>}, {transform_indices = @transform_4, window_bounds = array<i64: 1, 16, 64>}]} {
    %c0 = arith.constant 0 : index
    %c0_0 = arith.constant 0 : index
    %c0_1 = arith.constant 0 : index
    %0 = vector.load %arg2[%c0, %c0_0, %c0_1] : memref<1x16x40xbf16, #tpu.memory_space<vmem>>, vector<1x16x40xbf16>
    %1 = vector.shape_cast %0 : vector<1x16x40xbf16> to vector<16x40xbf16>
    %c0_2 = arith.constant 0 : index
    %c0_3 = arith.constant 0 : index
    %2 = vector.load %arg3[%c0_2, %c0_3] : memref<40x64xbf16, #tpu.memory_space<vmem>>, vector<40x64xbf16>
    %cst = arith.constant dense<0.000000e+00> : vector<16x64xf32>
    %3 = tpu.matmul %1, %2, %cst {dimension_numbers = #tpu.dot_dimension_numbers<[1], [0], [0], [1], [0, 0, 1, 1], [], []>} : vector<16x40xbf16>, vector<40x64xbf16>, vector<16x64xf32> -> vector<16x64xf32>
    %c0_4 = arith.constant 0 : index
    %c0_5 = arith.constant 0 : index
    %4 = vector.load %arg4[%c0_4, %c0_5] : memref<1x64xf32, #tpu.memory_space<vmem>>, vector<1x64xf32>
    %5 = vector.broadcast %4 : vector<1x64xf32> to vector<16x64xf32>
    %6 = arith.mulf %3, %5 : vector<16x64xf32>
    %c0_6 = arith.constant 0 : index
    %c0_7 = arith.constant 0 : index
    %7 = vector.load %arg5[%c0_6, %c0_7] : memref<1x64xf32, #tpu.memory_space<vmem>>, vector<1x64xf32>
    %8 = vector.broadcast %7 : vector<1x64xf32> to vector<16x64xf32>
    %9 = arith.addf %6, %8 : vector<16x64xf32>
    %cst_8 = arith.constant 3.000000e+00 : f32
    %10 = vector.broadcast %cst_8 : f32 to vector<16x64xf32>
    %11 = arith.addf %9, %10 : vector<16x64xf32>
    %cst_9 = arith.constant 0.000000e+00 : f32
    %cst_10 = arith.constant 6.000000e+00 : f32
    %12 = vector.broadcast %cst_9 : f32 to vector<16x64xf32>
    %13 = arith.maximumf %12, %11 : vector<16x64xf32>
    %14 = vector.broadcast %cst_10 : f32 to vector<16x64xf32>
    %15 = arith.minimumf %14, %13 : vector<16x64xf32>
    %16 = arith.mulf %9, %15 : vector<16x64xf32>
    %cst_11 = arith.constant 0.166666672 : f32
    %17 = vector.broadcast %cst_11 : f32 to vector<16x64xf32>
    %18 = arith.mulf %16, %17 : vector<16x64xf32>
    %19 = arith.truncf %18 : vector<16x64xf32> to vector<16x64xbf16>
    %c0_12 = arith.constant 0 : index
    %c0_13 = arith.constant 0 : index
    %c0_14 = arith.constant 0 : index
    %20 = vector.load %arg6[%c0_12, %c0_13, %c0_14] : memref<1x16x64xbf16, #tpu.memory_space<vmem>>, vector<1x16x64xbf16>
    %21 = vector.shape_cast %20 : vector<1x16x64xbf16> to vector<16x64xbf16>
    %22 = vector.shape_cast %19 : vector<16x64xbf16> to vector<1x16x64xbf16>
    tpu.vector_store %arg6[%c0_12, %c0_13, %c0_14], %22 {strides = array<i32>} : memref<1x16x64xbf16, #tpu.memory_space<vmem>>, vector<1x16x64xbf16>,
    return
  }
  func.func @transform_0(%arg0: i32, %arg1: i32) -> (i32, i32, i32) {
    %c0_i32 = arith.constant 0 : i32
    %c0_i32_0 = arith.constant 0 : i32
    return %arg0, %arg1, %c0_i32 : i32, i32, i32
  }
  func.func @transform_1(%arg0: i32, %arg1: i32) -> (i32, i32) {
    %c0_i32 = arith.constant 0 : i32
    %c0_i32_0 = arith.constant 0 : i32
    %c0_i32_1 = arith.constant 0 : i32
    return %c0_i32, %c0_i32_0 : i32, i32
  }
  func.func @transform_2(%arg0: i32, %arg1: i32) -> (i32, i32) {
    %c0_i32 = arith.constant 0 : i32
    %c0_i32_0 = arith.constant 0 : i32
    %c0_i32_1 = arith.constant 0 : i32
    return %c0_i32, %c0_i32_0 : i32, i32
  }
  func.func @transform_3(%arg0: i32, %arg1: i32) -> (i32, i32) {
    %c0_i32 = arith.constant 0 : i32
    %c0_i32_0 = arith.constant 0 : i32
    %c0_i32_1 = arith.constant 0 : i32
    return %c0_i32, %c0_i32_0 : i32, i32
  }
  func.func @transform_4(%arg0: i32, %arg1: i32) -> (i32, i32, i32) {
    %c0_i32 = arith.constant 0 : i32
    %c0_i32_0 = arith.constant 0 : i32
    return %arg0, %arg1, %c0_i32 : i32, i32, i32
  }
}

module attributes {stable_mosaic.version = 11 : i64} {
  func.func @_gap_hswish_kernel(%arg0: i32, %arg1: memref<1x16x64xbf16, #tpu.memory_space<vmem>>, %arg2: memref<1x1x64xbf16, #tpu.memory_space<vmem>>) attributes {dimension_semantics = [#tpu.dimension_semantics<parallel>], iteration_bounds = array<i64: 2>, scalar_prefetch = 0 : i64, scratch_operands = 0 : i64, tpu.core_type = #tpu.core_type<tc>, window_params = [{transform_indices = @transform_0, window_bounds = array<i64: 1, 16, 64>}, {transform_indices = @transform_1, window_bounds = array<i64: 1, 1, 64>}]} {
    %c0 = arith.constant 0 : index
    %c0_0 = arith.constant 0 : index
    %c0_1 = arith.constant 0 : index
    %0 = vector.load %arg1[%c0, %c0_0, %c0_1] : memref<1x16x64xbf16, #tpu.memory_space<vmem>>, vector<1x16x64xbf16>
    %1 = vector.shape_cast %0 : vector<1x16x64xbf16> to vector<16x64xbf16>
    %2 = arith.extf %1 : vector<16x64xbf16> to vector<16x64xf32>
    %cst = arith.constant dense<0.000000e+00> : vector<64xf32>
    %3 = vector.multi_reduction <add>, %2, %cst [0] : vector<16x64xf32> to vector<64xf32>
    %4 = vector.shape_cast %3 : vector<64xf32> to vector<1x64xf32>
    %cst_2 = arith.constant 6.250000e-02 : f32
    %5 = vector.broadcast %cst_2 : f32 to vector<1x64xf32>
    %6 = arith.mulf %4, %5 : vector<1x64xf32>
    %cst_3 = arith.constant 3.000000e+00 : f32
    %7 = vector.broadcast %cst_3 : f32 to vector<1x64xf32>
    %8 = arith.addf %6, %7 : vector<1x64xf32>
    %cst_4 = arith.constant 0.000000e+00 : f32
    %cst_5 = arith.constant 6.000000e+00 : f32
    %9 = vector.broadcast %cst_4 : f32 to vector<1x64xf32>
    %10 = arith.maximumf %9, %8 : vector<1x64xf32>
    %11 = vector.broadcast %cst_5 : f32 to vector<1x64xf32>
    %12 = arith.minimumf %11, %10 : vector<1x64xf32>
    %13 = arith.mulf %6, %12 : vector<1x64xf32>
    %cst_6 = arith.constant 0.166666672 : f32
    %14 = vector.broadcast %cst_6 : f32 to vector<1x64xf32>
    %15 = arith.mulf %13, %14 : vector<1x64xf32>
    %16 = arith.truncf %15 : vector<1x64xf32> to vector<1x64xbf16>
    %c0_7 = arith.constant 0 : index
    %c0_8 = arith.constant 0 : index
    %c0_9 = arith.constant 0 : index
    %17 = vector.load %arg2[%c0_7, %c0_8, %c0_9] : memref<1x1x64xbf16, #tpu.memory_space<vmem>>, vector<1x1x64xbf16>
    %18 = vector.shape_cast %17 : vector<1x1x64xbf16> to vector<1x64xbf16>
    %19 = vector.shape_cast %16 : vector<1x64xbf16> to vector<1x1x64xbf16>
    tpu.vector_store %arg2[%c0_7, %c0_8, %c0_9], %19 {strides = array<i32>} : memref<1x1x64xbf16, #tpu.memory_space<vmem>>, vector<1x1x64xbf16>,
    return
  }
  func.func @transform_0(%arg0: i32) -> (i32, i32, i32) {
    %c0_i32 = arith.constant 0 : i32
    %c0_i32_0 = arith.constant 0 : i32
    %c0_i32_1 = arith.constant 0 : i32
    return %arg0, %c0_i32, %c0_i32_0 : i32, i32, i32
  }
  func.func @transform_1(%arg0: i32) -> (i32, i32, i32) {
    %c0_i32 = arith.constant 0 : i32
    %c0_i32_0 = arith.constant 0 : i32
    %c0_i32_1 = arith.constant 0 : i32
    return %arg0, %c0_i32, %c0_i32_0 : i32, i32, i32
  }
}

module attributes {stable_mosaic.version = 11 : i64} {
  func.func @_pw_fused_kernel(%arg0: i32, %arg1: i32, %arg2: memref<1x1x64xbf16, #tpu.memory_space<vmem>>, %arg3: memref<64x64xbf16, #tpu.memory_space<vmem>>, %arg4: memref<1x64xf32, #tpu.memory_space<vmem>>, %arg5: memref<1x64xf32, #tpu.memory_space<vmem>>, %arg6: memref<1x1x64xbf16, #tpu.memory_space<vmem>>) attributes {dimension_semantics = [#tpu.dimension_semantics<parallel>, #tpu.dimension_semantics<parallel>], iteration_bounds = array<i64: 2, 1>, scalar_prefetch = 0 : i64, scratch_operands = 0 : i64, tpu.core_type = #tpu.core_type<tc>, window_params = [{transform_indices = @transform_0, window_bounds = array<i64: 1, 1, 64>}, {pipeline_mode = #tpu.pipeline_mode<synchronous>, transform_indices = @transform_1, window_bounds = array<i64: 64, 64>}, {pipeline_mode = #tpu.pipeline_mode<synchronous>, transform_indices = @transform_2, window_bounds = array<i64: 1, 64>}, {pipeline_mode = #tpu.pipeline_mode<synchronous>, transform_indices = @transform_3, window_bounds = array<i64: 1, 64>}, {transform_indices = @transform_4, window_bounds = array<i64: 1, 1, 64>}]} {
    %c0 = arith.constant 0 : index
    %c0_0 = arith.constant 0 : index
    %c0_1 = arith.constant 0 : index
    %0 = vector.load %arg2[%c0, %c0_0, %c0_1] : memref<1x1x64xbf16, #tpu.memory_space<vmem>>, vector<1x1x64xbf16>
    %1 = vector.shape_cast %0 : vector<1x1x64xbf16> to vector<1x64xbf16>
    %c0_2 = arith.constant 0 : index
    %c0_3 = arith.constant 0 : index
    %2 = vector.load %arg3[%c0_2, %c0_3] : memref<64x64xbf16, #tpu.memory_space<vmem>>, vector<64x64xbf16>
    %cst = arith.constant dense<0.000000e+00> : vector<1x64xf32>
    %3 = tpu.matmul %1, %2, %cst {dimension_numbers = #tpu.dot_dimension_numbers<[1], [0], [0], [1], [0, 0, 1, 1], [], []>} : vector<1x64xbf16>, vector<64x64xbf16>, vector<1x64xf32> -> vector<1x64xf32>
    %c0_4 = arith.constant 0 : index
    %c0_5 = arith.constant 0 : index
    %4 = vector.load %arg4[%c0_4, %c0_5] : memref<1x64xf32, #tpu.memory_space<vmem>>, vector<1x64xf32>
    %5 = arith.mulf %3, %4 : vector<1x64xf32>
    %c0_6 = arith.constant 0 : index
    %c0_7 = arith.constant 0 : index
    %6 = vector.load %arg5[%c0_6, %c0_7] : memref<1x64xf32, #tpu.memory_space<vmem>>, vector<1x64xf32>
    %7 = arith.addf %5, %6 : vector<1x64xf32>
    %cst_8 = arith.constant 0.000000e+00 : f32
    %8 = vector.broadcast %cst_8 : f32 to vector<1x64xf32>
    %9 = arith.maximumf %7, %8 : vector<1x64xf32>
    %10 = arith.truncf %9 : vector<1x64xf32> to vector<1x64xbf16>
    %c0_9 = arith.constant 0 : index
    %c0_10 = arith.constant 0 : index
    %c0_11 = arith.constant 0 : index
    %11 = vector.load %arg6[%c0_9, %c0_10, %c0_11] : memref<1x1x64xbf16, #tpu.memory_space<vmem>>, vector<1x1x64xbf16>
    %12 = vector.shape_cast %11 : vector<1x1x64xbf16> to vector<1x64xbf16>
    %13 = vector.shape_cast %10 : vector<1x64xbf16> to vector<1x1x64xbf16>
    tpu.vector_store %arg6[%c0_9, %c0_10, %c0_11], %13 {strides = array<i32>} : memref<1x1x64xbf16, #tpu.memory_space<vmem>>, vector<1x1x64xbf16>,
    return
  }
  func.func @transform_0(%arg0: i32, %arg1: i32) -> (i32, i32, i32) {
    %c0_i32 = arith.constant 0 : i32
    %c0_i32_0 = arith.constant 0 : i32
    return %arg0, %arg1, %c0_i32 : i32, i32, i32
  }
  func.func @transform_1(%arg0: i32, %arg1: i32) -> (i32, i32) {
    %c0_i32 = arith.constant 0 : i32
    %c0_i32_0 = arith.constant 0 : i32
    %c0_i32_1 = arith.constant 0 : i32
    return %c0_i32, %c0_i32_0 : i32, i32
  }
  func.func @transform_2(%arg0: i32, %arg1: i32) -> (i32, i32) {
    %c0_i32 = arith.constant 0 : i32
    %c0_i32_0 = arith.constant 0 : i32
    %c0_i32_1 = arith.constant 0 : i32
    return %c0_i32, %c0_i32_0 : i32, i32
  }
  func.func @transform_3(%arg0: i32, %arg1: i32) -> (i32, i32) {
    %c0_i32 = arith.constant 0 : i32
    %c0_i32_0 = arith.constant 0 : i32
    %c0_i32_1 = arith.constant 0 : i32
    return %c0_i32, %c0_i32_0 : i32, i32
  }
  func.func @transform_4(%arg0: i32, %arg1: i32) -> (i32, i32, i32) {
    %c0_i32 = arith.constant 0 : i32
    %c0_i32_0 = arith.constant 0 : i32
    return %arg0, %arg1, %c0_i32 : i32, i32, i32
  }
}

module attributes {stable_mosaic.version = 11 : i64} {
  func.func @_pw_fused_kernel(%arg0: i32, %arg1: i32, %arg2: memref<1x1x64xbf16, #tpu.memory_space<vmem>>, %arg3: memref<64x5xbf16, #tpu.memory_space<vmem>>, %arg4: memref<1x5xf32, #tpu.memory_space<vmem>>, %arg5: memref<1x5xf32, #tpu.memory_space<vmem>>, %arg6: memref<1x1x5xf32, #tpu.memory_space<vmem>>) attributes {dimension_semantics = [#tpu.dimension_semantics<parallel>, #tpu.dimension_semantics<parallel>], iteration_bounds = array<i64: 2, 1>, scalar_prefetch = 0 : i64, scratch_operands = 0 : i64, tpu.core_type = #tpu.core_type<tc>, window_params = [{transform_indices = @transform_0, window_bounds = array<i64: 1, 1, 64>}, {pipeline_mode = #tpu.pipeline_mode<synchronous>, transform_indices = @transform_1, window_bounds = array<i64: 64, 5>}, {pipeline_mode = #tpu.pipeline_mode<synchronous>, transform_indices = @transform_2, window_bounds = array<i64: 1, 5>}, {pipeline_mode = #tpu.pipeline_mode<synchronous>, transform_indices = @transform_3, window_bounds = array<i64: 1, 5>}, {transform_indices = @transform_4, window_bounds = array<i64: 1, 1, 5>}]} {
    %c0 = arith.constant 0 : index
    %c0_0 = arith.constant 0 : index
    %c0_1 = arith.constant 0 : index
    %0 = vector.load %arg2[%c0, %c0_0, %c0_1] : memref<1x1x64xbf16, #tpu.memory_space<vmem>>, vector<1x1x64xbf16>
    %1 = vector.shape_cast %0 : vector<1x1x64xbf16> to vector<1x64xbf16>
    %c0_2 = arith.constant 0 : index
    %c0_3 = arith.constant 0 : index
    %2 = vector.load %arg3[%c0_2, %c0_3] : memref<64x5xbf16, #tpu.memory_space<vmem>>, vector<64x5xbf16>
    %cst = arith.constant dense<0.000000e+00> : vector<1x5xf32>
    %3 = tpu.matmul %1, %2, %cst {dimension_numbers = #tpu.dot_dimension_numbers<[1], [0], [0], [1], [0, 0, 1, 1], [], []>} : vector<1x64xbf16>, vector<64x5xbf16>, vector<1x5xf32> -> vector<1x5xf32>
    %c0_4 = arith.constant 0 : index
    %c0_5 = arith.constant 0 : index
    %4 = vector.load %arg4[%c0_4, %c0_5] : memref<1x5xf32, #tpu.memory_space<vmem>>, vector<1x5xf32>
    %5 = arith.mulf %3, %4 : vector<1x5xf32>
    %c0_6 = arith.constant 0 : index
    %c0_7 = arith.constant 0 : index
    %6 = vector.load %arg5[%c0_6, %c0_7] : memref<1x5xf32, #tpu.memory_space<vmem>>, vector<1x5xf32>
    %7 = arith.addf %5, %6 : vector<1x5xf32>
    %c0_8 = arith.constant 0 : index
    %c0_9 = arith.constant 0 : index
    %c0_10 = arith.constant 0 : index
    %8 = vector.load %arg6[%c0_8, %c0_9, %c0_10] : memref<1x1x5xf32, #tpu.memory_space<vmem>>, vector<1x1x5xf32>
    %9 = vector.shape_cast %8 : vector<1x1x5xf32> to vector<1x5xf32>
    %10 = vector.shape_cast %7 : vector<1x5xf32> to vector<1x1x5xf32>
    tpu.vector_store %arg6[%c0_8, %c0_9, %c0_10], %10 {strides = array<i32>} : memref<1x1x5xf32, #tpu.memory_space<vmem>>, vector<1x1x5xf32>,
    return
  }
  func.func @transform_0(%arg0: i32, %arg1: i32) -> (i32, i32, i32) {
    %c0_i32 = arith.constant 0 : i32
    %c0_i32_0 = arith.constant 0 : i32
    return %arg0, %arg1, %c0_i32 : i32, i32, i32
  }
  func.func @transform_1(%arg0: i32, %arg1: i32) -> (i32, i32) {
    %c0_i32 = arith.constant 0 : i32
    %c0_i32_0 = arith.constant 0 : i32
    %c0_i32_1 = arith.constant 0 : i32
    return %c0_i32, %c0_i32_0 : i32, i32
  }
  func.func @transform_2(%arg0: i32, %arg1: i32) -> (i32, i32) {
    %c0_i32 = arith.constant 0 : i32
    %c0_i32_0 = arith.constant 0 : i32
    %c0_i32_1 = arith.constant 0 : i32
    return %c0_i32, %c0_i32_0 : i32, i32
  }
  func.func @transform_3(%arg0: i32, %arg1: i32) -> (i32, i32) {
    %c0_i32 = arith.constant 0 : i32
    %c0_i32_0 = arith.constant 0 : i32
    %c0_i32_1 = arith.constant 0 : i32
    return %c0_i32, %c0_i32_0 : i32, i32
  }
  func.func @transform_4(%arg0: i32, %arg1: i32) -> (i32, i32, i32) {
    %c0_i32 = arith.constant 0 : i32
    %c0_i32_0 = arith.constant 0 : i32
    return %arg0, %arg1, %c0_i32 : i32, i32, i32
  }
}

</mosaic_0001>

<bundles_post_ra>
// kernel: _lambda_.14
= control target key start
LH: loop header
LB: loop body
LE: loop exit
PB: predicated region body
PF: predicated region fallthrough
CT: control target
= control target key end

     0   :  { %s1096_s15 = smov 0   ;;  %s1098_s16 = smov 0   ;;  %s1319_s0 = inlined_call_operand.vmem [shape: bf16[2,256,27], index: 0, kind: input, shape index: {}]   ;;  %s1320_s1 = inlined_call_operand.vmem [shape: bf16[27,16], index: 1, kind: input, shape index: {}]   ;;  %s1321_s2 = inlined_call_operand.vmem [shape: f32[1,16], index: 2, kind: input, shape index: {}]   ;;  %s1322_s3 = inlined_call_operand.vmem [shape: f32[1,16], index: 3, kind: input, shape index: {}]   ;;  %s1323_s4 = inlined_call_operand.vmem [shape: bf16[2,256,16], index: 4, kind: output, shape index: {}]  }
   0x1   :  { %s1100_s17 = smov 0  }
   0x2 LB: > { %s26_s18 = sadd.s32 1, %s1064_s16  ;;  %p898_p0 = scmp.ge.s32.totalorder %s1068_s17, 1  ;;  %s1068_s17 = sphi %s1100_s17, %s14_s17   ;;  %s1064_s16 = sphi %s1098_s16, %s1325_s16   ;;  %s1060_s15 = sphi %s1096_s15, %s1324_s15  }
   0x3   : > { %p28_p1 = scmp.ge.s32.totalorder %s26_s18, 2  ;;  %p183_p2 = scmp.lt.s32.totalorder %s1068_s17, 3 }
   0x5   : > { %s1327_s18 = smov (%p28_p1, %s26_s18), 0  ;;  %p184_p3 = pnand %p898_p0, %p183_p2 }
   0x6   : > { %p218_p4 = scmp.lt.s32.totalorder (!%p184_p3), %s1060_s15, 1 }
   0x7   : > { %187 = sbr.rel (%p184_p3) target bundleno = 232 (0xe8), region = 36 }
   0xc   : > { %v973_v0 = vld [vmem:[%s1320_s1 + $0x8] sm:$0xf]  ;;  %v1012_v1 = vld [vmem:[%s1320_s1 + $0x8] sm:$0x30]  ;;  %vm414_vm0 = vcmask 1044480   ;;  %vm415_vm1 = vcmask 1045504  }
   0xd   : > { %v974_v2 = vor.u32 %v1012_v1, %v973_v0  ;;  %v1070_v3 = vmov 65535   ;;  %s1329_s15 = smov (!%p218_p4, %s1060_s15), 1  ;;  %v1011_v7 = vld [vmem:[%s1320_s1] sm:$0xff]  ;;  %vm365_vm2 = vcmask 220160   ;;  %vm774_vm3 = vcmask 125952  }
   0xe   : > { %v416_v4 = vsel %vm414_vm0, 4294967295, %v1070_v3  ;;  %s993_s23 = sshll.u32 %s1329_s15, 7  ;;  %v1168_v24 = vld [vmem:[%s1321_s2] ss:$0 sm:$0xff] }
   0xf   : > { %v417_v5 = vsel %vm415_vm1, %v416_v4, 0  ;;  %s1131_s28 = scalar_lea.vmem %s1319_s0, %s993_s23  ;;  %v1173_v25 = vld [vmem:[%s1322_s3] ss:$0 sm:$0xff]  ;;  %s1192_s9 = scalar_lea.vmem %s1323_s4, %s993_s23 }
  0x10   : > { %v419_v6 = vand.u32 %v974_v2, %v417_v5  ;;  %v995_v8 = vld [vmem:[%s1131_s28] sm:$0xff]  ;;  %v996_v12 = vld [vmem:[%s1131_s28 + $0x8] sm:$0xff]  ;;  %v997_v16 = vld [vmem:[%s1131_s28 + $0x10] sm:$0xff] }
  0x11   : > { %v999_v9 = vld [vmem:[%s1131_s28 + $0x20] sm:$0xff]  ;;  %v1000_v13 = vld [vmem:[%s1131_s28 + $0x28] sm:$0xff]  ;;  %v1001_v17 = vld [vmem:[%s1131_s28 + $0x30] sm:$0xff] }
  0x12   : > { %427 = vmatpush.bf16.msra.mxu0 %v419_v6  ;;  %1013 = vmatpush.bf16.msra.mxu1 %v419_v6  ;;  %v1003_v10 = vld [vmem:[%s1131_s28 + $0x40] sm:$0xff]  ;;  %v1004_v14 = vld [vmem:[%s1131_s28 + $0x48] sm:$0xff]  ;;  %v1005_v18 = vld [vmem:[%s1131_s28 + $0x50] sm:$0xff] }
  0x13   : > { %1014 = vmatpush.bf16.msra.mxu2 %v419_v6  ;;  %1015 = vmatpush.bf16.msra.mxu3 %v419_v6  ;;  %v1007_v11 = vld [vmem:[%s1131_s28 + $0x60] sm:$0xff]  ;;  %v1008_v15 = vld [vmem:[%s1131_s28 + $0x68] sm:$0xff]  ;;  %v1009_v19 = vld [vmem:[%s1131_s28 + $0x70] sm:$0xff] }
  0x14   : > { %v998_v20 = vld [vmem:[%s1131_s28 + $0x18] sm:$0xff] }
  0x15   : > { %v1002_v21 = vld [vmem:[%s1131_s28 + $0x38] sm:$0xff] }
  0x16   : > { %428 = vmatpush.bf16.msra.mxu0 %v1011_v7  ;;  %1016 = vmatpush.bf16.msra.mxu1 %v1011_v7  ;;  %v1006_v22 = vld [vmem:[%s1131_s28 + $0x58] sm:$0xff] }
  0x17   : > { %1017 = vmatpush.bf16.msra.mxu2 %v1011_v7  ;;  %1018 = vmatpush.bf16.msra.mxu3 %v1011_v7  ;;  %v1010_v23 = vld [vmem:[%s1131_s28 + $0x78] sm:$0xff] }
  0x19   : > { %975 = vmatmul.msk.bf16.vlgmr.msra.gmra.mxu0 %vm365_vm2, %v995_v8  ;;  %979 = vmatmul.msk.bf16.vlgmr.msra.gmra.mxu1 %vm365_vm2, %v999_v9 }
  0x1a   : > { %983 = vmatmul.msk.bf16.vlgmr.msra.gmra.mxu2 %vm365_vm2, %v1003_v10  ;;  %987 = vmatmul.msk.bf16.vlgmr.msra.gmra.mxu3 %vm365_vm2, %v1007_v11 }
  0x29   : > { %976 = vmatmul.msk.bf16.gmra.mxu0 %vm365_vm2, %v996_v12  ;;  %980 = vmatmul.msk.bf16.gmra.mxu1 %vm365_vm2, %v1000_v13 }
  0x2a   : > { %984 = vmatmul.msk.bf16.gmra.mxu2 %vm365_vm2, %v1004_v14  ;;  %988 = vmatmul.msk.bf16.gmra.mxu3 %vm365_vm2, %v1008_v15 }
  0x39   : > { %977 = vmatmul.msk.bf16.gmra.mxu0 %vm365_vm2, %v997_v16  ;;  %981 = vmatmul.msk.bf16.gmra.mxu1 %vm365_vm2, %v1001_v17 }
  0x3a   : > { %985 = vmatmul.msk.bf16.gmra.mxu2 %vm365_vm2, %v1005_v18  ;;  %989 = vmatmul.msk.bf16.gmra.mxu3 %vm365_vm2, %v1009_v19 }
  0x49   : > { %978 = vmatmul.msk.bf16.gmra.mxu0 %vm365_vm2, %v998_v20  ;;  %982 = vmatmul.msk.bf16.gmra.mxu1 %vm365_vm2, %v1002_v21 }
  0x4a   : > { %986 = vmatmul.msk.bf16.gmra.mxu2 %vm365_vm2, %v1006_v22  ;;  %990 = vmatmul.msk.bf16.gmra.mxu3 %vm365_vm2, %v1010_v23 }
  0x96   : > { %v430_v26 = vpop.f32.mrf.mxu0  ;;  %v450_v27 = vpop.f32.mrf.mxu1 }
  0x97   : > { %v514_v28 = vmul.f32 %v1168_v24, %v430_v26  ;;  %v522_v29 = vmul.f32 %v1168_v24, %v450_v27 }
  0x99   : > { %v550_v30 = vadd.f32 %v1173_v25, %v514_v28  ;;  %v558_v31 = vadd.f32 %v1173_v25, %v522_v29 }
  0x9b   : > { %v582_v32 = vadd.f32 3.0, %v550_v30  ;;  %v590_v33 = vadd.f32 3.0, %v558_v31 }
  0x9d   : > { %v614_v34 = vmax.f32 %v582_v32, 0.0  ;;  %v622_v35 = vmax.f32 %v590_v33, 0.0  ;;  %v470_v36 = vpop.f32.mrf.mxu2  ;;  %v490_v37 = vpop.f32.mrf.mxu3 }
  0x9e   : > { %v530_v38 = vmul.f32 %v1168_v24, %v470_v36  ;;  %v538_v39 = vmul.f32 %v1168_v24, %v490_v37  ;;  %v432_v40 = vpop.f32.mrf.mxu0  ;;  %v452_v41 = vpop.f32.mrf.mxu1 }
  0x9f   : > { %v646_v42 = vmin.f32 %v614_v34, 6.0  ;;  %v654_v43 = vmin.f32 %v622_v35, 6.0  ;;  %v515_v44 = vmul.f32 %v1168_v24, %v432_v40  ;;  %v523_v45 = vmul.f32 %v1168_v24, %v452_v41 }
  0xa0   : > { %v566_v46 = vadd.f32 %v1173_v25, %v530_v38  ;;  %v574_v47 = vadd.f32 %v1173_v25, %v538_v39 }
  0xa1   : > { %v678_v48 = vmul.f32 %v646_v42, %v550_v30  ;;  %v686_v49 = vmul.f32 %v654_v43, %v558_v31  ;;  %v551_v50 = vadd.f32 %v1173_v25, %v515_v44  ;;  %v559_v51 = vadd.f32 %v1173_v25, %v523_v45 }
  0xa2   : > { %v598_v52 = vadd.f32 3.0, %v566_v46  ;;  %v606_v53 = vadd.f32 3.0, %v574_v47 }
  0xa3   : > { %v710_v54 = vmul.f32 0.16666667, %v678_v48  ;;  %v718_v55 = vmul.f32 0.16666667, %v686_v49  ;;  %v583_v56 = vadd.f32 3.0, %v551_v50  ;;  %v591_v57 = vadd.f32 3.0, %v559_v51 }
  0xa4   : > { %v630_v58 = vmax.f32 %v598_v52, 0.0  ;;  %v638_v59 = vmax.f32 %v606_v53, 0.0 }
  0xa5   : > { %v742_v60 = vpack.c.bf16 %v710_v54, %v710_v54  ;;  %v750_v61 = vpack.c.bf16 %v718_v55, %v718_v55  ;;  %v615_v62 = vmax.f32 %v583_v56, 0.0  ;;  %v623_v63 = vmax.f32 %v591_v57, 0.0  ;;  %v472_v0 = vpop.f32.mrf.mxu2  ;;  %v492_v1 = vpop.f32.mrf.mxu3 }
  0xa6   : > { %v662_v2 = vmin.f32 %v630_v58, 6.0  ;;  %v670_v3 = vmin.f32 %v638_v59, 6.0  ;;  %v531_v4 = vmul.f32 %v1168_v24, %v472_v0  ;;  %v539_v5 = vmul.f32 %v1168_v24, %v492_v1  ;;  %v435_v6 = vpop.f32.mrf.mxu0  ;;  %v455_v7 = vpop.f32.mrf.mxu1 }
  0xa7   : > { %775 = vst.msk [vmem:[%s1192_s9] sm:$0xf] %vm774_vm3, %v742_v60  ;;  %v647_v8 = vmin.f32 %v615_v62, 6.0  ;;  %v655_v9 = vmin.f32 %v623_v63, 6.0  ;;  %v516_v10 = vmul.f32 %v1168_v24, %v435_v6  ;;  %v524_v11 = vmul.f32 %v1168_v24, %v455_v7 }
  0xa8   : > { %783 = vst.msk [vmem:[%s1192_s9 + $0x20] sm:$0xf] %vm774_vm3, %v750_v61  ;;  %v694_v12 = vmul.f32 %v662_v2, %v566_v46  ;;  %v702_v13 = vmul.f32 %v670_v3, %v574_v47  ;;  %v567_v14 = vadd.f32 %v1173_v25, %v531_v4  ;;  %v575_v15 = vadd.f32 %v1173_v25, %v539_v5 }
  0xa9   : > { %v679_v16 = vmul.f32 %v647_v8, %v551_v50  ;;  %v687_v17 = vmul.f32 %v655_v9, %v559_v51  ;;  %v552_v18 = vadd.f32 %v1173_v25, %v516_v10  ;;  %v560_v19 = vadd.f32 %v1173_v25, %v524_v11 }
  0xaa   : > { %v726_v20 = vmul.f32 0.16666667, %v694_v12  ;;  %v734_v21 = vmul.f32 0.16666667, %v702_v13  ;;  %v599_v22 = vadd.f32 3.0, %v567_v14  ;;  %v607_v23 = vadd.f32 3.0, %v575_v15 }
  0xab   : > { %v711_v26 = vmul.f32 0.16666667, %v679_v16  ;;  %v719_v27 = vmul.f32 0.16666667, %v687_v17  ;;  %v584_v28 = vadd.f32 3.0, %v552_v18  ;;  %v592_v29 = vadd.f32 3.0, %v560_v19 }
  0xac   : > { %v758_v30 = vpack.c.bf16 %v726_v20, %v726_v20  ;;  %v766_v31 = vpack.c.bf16 %v734_v21, %v734_v21  ;;  %v631_v32 = vmax.f32 %v599_v22, 0.0  ;;  %v639_v33 = vmax.f32 %v607_v23, 0.0 }
  0xad   : > { %v743_v34 = vpack.c.bf16 %v711_v26, %v711_v26  ;;  %v751_v35 = vpack.c.bf16 %v719_v27, %v719_v27  ;;  %v616_v36 = vmax.f32 %v584_v28, 0.0  ;;  %v624_v37 = vmax.f32 %v592_v29, 0.0  ;;  %v475_v38 = vpop.f32.mrf.mxu2  ;;  %v495_v39 = vpop.f32.mrf.mxu3 }
  0xae   : > { %791 = vst.msk [vmem:[%s1192_s9 + $0x40] sm:$0xf] %vm774_vm3, %v758_v30  ;;  %v663_v40 = vmin.f32 %v631_v32, 6.0  ;;  %v671_v41 = vmin.f32 %v639_v33, 6.0  ;;  %v532_v42 = vmul.f32 %v1168_v24, %v475_v38  ;;  %v540_v43 = vmul.f32 %v1168_v24, %v495_v39  ;;  %v437_v44 = vpop.f32.mrf.mxu0  ;;  %v457_v45 = vpop.f32.mrf.mxu1 }
  0xaf   : > { %799 = vst.msk [vmem:[%s1192_s9 + $0x60] sm:$0xf] %vm774_vm3, %v766_v31  ;;  %v648_v46 = vmin.f32 %v616_v36, 6.0  ;;  %v656_v47 = vmin.f32 %v624_v37, 6.0  ;;  %v517_v48 = vmul.f32 %v1168_v24, %v437_v44  ;;  %v525_v49 = vmul.f32 %v1168_v24, %v457_v45 }
  0xb0   : > { %776 = vst.msk [vmem:[%s1192_s9 + $0x4] sm:$0xf] %vm774_vm3, %v743_v34  ;;  %v695_v50 = vmul.f32 %v663_v40, %v567_v14  ;;  %v703_v51 = vmul.f32 %v671_v41, %v575_v15  ;;  %v568_v52 = vadd.f32 %v1173_v25, %v532_v42  ;;  %v576_v53 = vadd.f32 %v1173_v25, %v540_v43 }
  0xb1   : > { %784 = vst.msk [vmem:[%s1192_s9 + $0x24] sm:$0xf] %vm774_vm3, %v751_v35  ;;  %v680_v54 = vmul.f32 %v648_v46, %v552_v18  ;;  %v688_v55 = vmul.f32 %v656_v47, %v560_v19  ;;  %v553_v56 = vadd.f32 %v1173_v25, %v517_v48  ;;  %v561_v57 = vadd.f32 %v1173_v25, %v525_v49 }
  0xb2   : > { %v727_v58 = vmul.f32 0.16666667, %v695_v50  ;;  %v735_v59 = vmul.f32 0.16666667, %v703_v51  ;;  %v600_v60 = vadd.f32 3.0, %v568_v52  ;;  %v608_v61 = vadd.f32 3.0, %v576_v53 }
  0xb3   : > { %v712_v62 = vmul.f32 0.16666667, %v680_v54  ;;  %v720_v63 = vmul.f32 0.16666667, %v688_v55  ;;  %v585_v0 = vadd.f32 3.0, %v553_v56  ;;  %v593_v1 = vadd.f32 3.0, %v561_v57 }
  0xb4   : > { %v759_v2 = vpack.c.bf16 %v727_v58, %v727_v58  ;;  %v767_v3 = vpack.c.bf16 %v735_v59, %v735_v59  ;;  %v632_v4 = vmax.f32 %v600_v60, 0.0  ;;  %v640_v5 = vmax.f32 %v608_v61, 0.0 }
  0xb5   : > { %v744_v6 = vpack.c.bf16 %v712_v62, %v712_v62  ;;  %v752_v7 = vpack.c.bf16 %v720_v63, %v720_v63  ;;  %v617_v8 = vmax.f32 %v585_v0, 0.0  ;;  %v625_v9 = vmax.f32 %v593_v1, 0.0  ;;  %v477_v10 = vpop.f32.mrf.mxu2  ;;  %v497_v11 = vpop.f32.mrf.mxu3 }
  0xb6   : > { %792 = vst.msk [vmem:[%s1192_s9 + $0x44] sm:$0xf] %vm774_vm3, %v759_v2  ;;  %v664_v12 = vmin.f32 %v632_v4, 6.0  ;;  %v672_v13 = vmin.f32 %v640_v5, 6.0  ;;  %v533_v14 = vmul.f32 %v1168_v24, %v477_v10  ;;  %v541_v15 = vmul.f32 %v1168_v24, %v497_v11  ;;  %v440_v16 = vpop.f32.mrf.mxu0  ;;  %v460_v17 = vpop.f32.mrf.mxu1 }
  0xb7   : > { %800 = vst.msk [vmem:[%s1192_s9 + $0x64] sm:$0xf] %vm774_vm3, %v767_v3  ;;  %v649_v18 = vmin.f32 %v617_v8, 6.0  ;;  %v657_v19 = vmin.f32 %v625_v9, 6.0  ;;  %v518_v20 = vmul.f32 %v1168_v24, %v440_v16  ;;  %v526_v21 = vmul.f32 %v1168_v24, %v460_v17 }
  0xb8   : > { %777 = vst.msk [vmem:[%s1192_s9 + $0x8] sm:$0xf] %vm774_vm3, %v744_v6  ;;  %v696_v22 = vmul.f32 %v664_v12, %v568_v52  ;;  %v704_v23 = vmul.f32 %v672_v13, %v576_v53  ;;  %v569_v26 = vadd.f32 %v1173_v25, %v533_v14  ;;  %v577_v27 = vadd.f32 %v1173_v25, %v541_v15 }
  0xb9   : > { %785 = vst.msk [vmem:[%s1192_s9 + $0x28] sm:$0xf] %vm774_vm3, %v752_v7  ;;  %v681_v28 = vmul.f32 %v649_v18, %v553_v56  ;;  %v689_v29 = vmul.f32 %v657_v19, %v561_v57  ;;  %v554_v30 = vadd.f32 %v1173_v25, %v518_v20  ;;  %v562_v31 = vadd.f32 %v1173_v25, %v526_v21 }
  0xba   : > { %v728_v32 = vmul.f32 0.16666667, %v696_v22  ;;  %v736_v33 = vmul.f32 0.16666667, %v704_v23  ;;  %v601_v34 = vadd.f32 3.0, %v569_v26  ;;  %v609_v35 = vadd.f32 3.0, %v577_v27 }
  0xbb   : > { %v713_v36 = vmul.f32 0.16666667, %v681_v28  ;;  %v721_v37 = vmul.f32 0.16666667, %v689_v29  ;;  %v586_v38 = vadd.f32 3.0, %v554_v30  ;;  %v594_v39 = vadd.f32 3.0, %v562_v31 }
  0xbc   : > { %v760_v40 = vpack.c.bf16 %v728_v32, %v728_v32  ;;  %v768_v41 = vpack.c.bf16 %v736_v33, %v736_v33  ;;  %v633_v42 = vmax.f32 %v601_v34, 0.0  ;;  %v641_v43 = vmax.f32 %v609_v35, 0.0 }
  0xbd   : > { %v745_v44 = vpack.c.bf16 %v713_v36, %v713_v36  ;;  %v753_v45 = vpack.c.bf16 %v721_v37, %v721_v37  ;;  %v618_v46 = vmax.f32 %v586_v38, 0.0  ;;  %v626_v47 = vmax.f32 %v594_v39, 0.0  ;;  %v480_v48 = vpop.f32.mrf.mxu2  ;;  %v500_v49 = vpop.f32.mrf.mxu3 }
  0xbe   : > { %793 = vst.msk [vmem:[%s1192_s9 + $0x48] sm:$0xf] %vm774_vm3, %v760_v40  ;;  %v665_v50 = vmin.f32 %v633_v42, 6.0  ;;  %v673_v51 = vmin.f32 %v641_v43, 6.0  ;;  %v534_v52 = vmul.f32 %v1168_v24, %v480_v48  ;;  %v542_v53 = vmul.f32 %v1168_v24, %v500_v49  ;;  %v442_v54 = vpop.f32.mrf.mxu0  ;;  %v462_v55 = vpop.f32.mrf.mxu1 }
  0xbf   : > { %801 = vst.msk [vmem:[%s1192_s9 + $0x68] sm:$0xf] %vm774_vm3, %v768_v41  ;;  %v650_v56 = vmin.f32 %v618_v46, 6.0  ;;  %v658_v57 = vmin.f32 %v626_v47, 6.0  ;;  %v519_v58 = vmul.f32 %v1168_v24, %v442_v54  ;;  %v527_v59 = vmul.f32 %v1168_v24, %v462_v55 }
  0xc0   : > { %778 = vst.msk [vmem:[%s1192_s9 + $0xc] sm:$0xf] %vm774_vm3, %v745_v44  ;;  %v697_v60 = vmul.f32 %v665_v50, %v569_v26  ;;  %v705_v61 = vmul.f32 %v673_v51, %v577_v27  ;;  %v570_v62 = vadd.f32 %v1173_v25, %v534_v52  ;;  %v578_v63 = vadd.f32 %v1173_v25, %v542_v53 }
  0xc1   : > { %786 = vst.msk [vmem:[%s1192_s9 + $0x2c] sm:$0xf] %vm774_vm3, %v753_v45  ;;  %v682_v0 = vmul.f32 %v650_v56, %v554_v30  ;;  %v690_v1 = vmul.f32 %v658_v57, %v562_v31  ;;  %v555_v2 = vadd.f32 %v1173_v25, %v519_v58  ;;  %v563_v3 = vadd.f32 %v1173_v25, %v527_v59 }
  0xc2   : > { %v729_v4 = vmul.f32 0.16666667, %v697_v60  ;;  %v737_v5 = vmul.f32 0.16666667, %v705_v61  ;;  %v602_v6 = vadd.f32 3.0, %v570_v62  ;;  %v610_v7 = vadd.f32 3.0, %v578_v63 }
  0xc3   : > { %v714_v8 = vmul.f32 0.16666667, %v682_v0  ;;  %v722_v9 = vmul.f32 0.16666667, %v690_v1  ;;  %v587_v10 = vadd.f32 3.0, %v555_v2  ;;  %v595_v11 = vadd.f32 3.0, %v563_v3 }
  0xc4   : > { %v761_v12 = vpack.c.bf16 %v729_v4, %v729_v4  ;;  %v769_v13 = vpack.c.bf16 %v737_v5, %v737_v5  ;;  %v634_v14 = vmax.f32 %v602_v6, 0.0  ;;  %v642_v15 = vmax.f32 %v610_v7, 0.0 }
  0xc5   : > { %v746_v16 = vpack.c.bf16 %v714_v8, %v714_v8  ;;  %v754_v17 = vpack.c.bf16 %v722_v9, %v722_v9  ;;  %v619_v18 = vmax.f32 %v587_v10, 0.0  ;;  %v627_v19 = vmax.f32 %v595_v11, 0.0  ;;  %v482_v20 = vpop.f32.mrf.mxu2  ;;  %v502_v21 = vpop.f32.mrf.mxu3 }
  0xc6   : > { %794 = vst.msk [vmem:[%s1192_s9 + $0x4c] sm:$0xf] %vm774_vm3, %v761_v12  ;;  %v666_v22 = vmin.f32 %v634_v14, 6.0  ;;  %v674_v23 = vmin.f32 %v642_v15, 6.0  ;;  %v535_v26 = vmul.f32 %v1168_v24, %v482_v20  ;;  %v543_v27 = vmul.f32 %v1168_v24, %v502_v21  ;;  %v445_v28 = vpop.f32.mrf.mxu0  ;;  %v465_v29 = vpop.f32.mrf.mxu1 }
  0xc7   : > { %802 = vst.msk [vmem:[%s1192_s9 + $0x6c] sm:$0xf] %vm774_vm3, %v769_v13  ;;  %v651_v30 = vmin.f32 %v619_v18, 6.0  ;;  %v659_v31 = vmin.f32 %v627_v19, 6.0  ;;  %v520_v32 = vmul.f32 %v1168_v24, %v445_v28  ;;  %v528_v33 = vmul.f32 %v1168_v24, %v465_v29 }
  0xc8   : > { %779 = vst.msk [vmem:[%s1192_s9 + $0x10] sm:$0xf] %vm774_vm3, %v746_v16  ;;  %v698_v34 = vmul.f32 %v666_v22, %v570_v62  ;;  %v706_v35 = vmul.f32 %v674_v23, %v578_v63  ;;  %v571_v36 = vadd.f32 %v1173_v25, %v535_v26  ;;  %v579_v37 = vadd.f32 %v1173_v25, %v543_v27 }
  0xc9   : > { %787 = vst.msk [vmem:[%s1192_s9 + $0x30] sm:$0xf] %vm774_vm3, %v754_v17  ;;  %v683_v38 = vmul.f32 %v651_v30, %v555_v2  ;;  %v691_v39 = vmul.f32 %v659_v31, %v563_v3  ;;  %v556_v40 = vadd.f32 %v1173_v25, %v520_v32  ;;  %v564_v41 = vadd.f32 %v1173_v25, %v528_v33 }
  0xca   : > { %v730_v42 = vmul.f32 0.16666667, %v698_v34  ;;  %v738_v43 = vmul.f32 0.16666667, %v706_v35  ;;  %v603_v44 = vadd.f32 3.0, %v571_v36  ;;  %v611_v45 = vadd.f32 3.0, %v579_v37 }
  0xcb   : > { %v715_v46 = vmul.f32 0.16666667, %v683_v38  ;;  %v723_v47 = vmul.f32 0.16666667, %v691_v39  ;;  %v588_v48 = vadd.f32 3.0, %v556_v40  ;;  %v596_v49 = vadd.f32 3.0, %v564_v41 }
  0xcc   : > { %v762_v50 = vpack.c.bf16 %v730_v42, %v730_v42  ;;  %v770_v51 = vpack.c.bf16 %v738_v43, %v738_v43  ;;  %v635_v52 = vmax.f32 %v603_v44, 0.0  ;;  %v643_v53 = vmax.f32 %v611_v45, 0.0 }
  0xcd   : > { %v747_v54 = vpack.c.bf16 %v715_v46, %v715_v46  ;;  %v755_v55 = vpack.c.bf16 %v723_v47, %v723_v47  ;;  %v620_v56 = vmax.f32 %v588_v48, 0.0  ;;  %v628_v57 = vmax.f32 %v596_v49, 0.0  ;;  %v485_v58 = vpop.f32.mrf.mxu2  ;;  %v505_v59 = vpop.f32.mrf.mxu3 }
  0xce   : > { %795 = vst.msk [vmem:[%s1192_s9 + $0x50] sm:$0xf] %vm774_vm3, %v762_v50  ;;  %v667_v60 = vmin.f32 %v635_v52, 6.0  ;;  %v675_v61 = vmin.f32 %v643_v53, 6.0  ;;  %v536_v62 = vmul.f32 %v1168_v24, %v485_v58  ;;  %v544_v63 = vmul.f32 %v1168_v24, %v505_v59  ;;  %v447_v0 = vpop.f32.mrf.mxu0  ;;  %v467_v1 = vpop.f32.mrf.mxu1 }
  0xcf   : > { %803 = vst.msk [vmem:[%s1192_s9 + $0x70] sm:$0xf] %vm774_vm3, %v770_v51  ;;  %v652_v2 = vmin.f32 %v620_v56, 6.0  ;;  %v660_v3 = vmin.f32 %v628_v57, 6.0  ;;  %v521_v4 = vmul.f32 %v1168_v24, %v447_v0  ;;  %v529_v5 = vmul.f32 %v1168_v24, %v467_v1 }
  0xd0   : > { %780 = vst.msk [vmem:[%s1192_s9 + $0x14] sm:$0xf] %vm774_vm3, %v747_v54  ;;  %v699_v6 = vmul.f32 %v667_v60, %v571_v36  ;;  %v707_v7 = vmul.f32 %v675_v61, %v579_v37  ;;  %v572_v8 = vadd.f32 %v1173_v25, %v536_v62  ;;  %v580_v9 = vadd.f32 %v1173_v25, %v544_v63 }
  0xd1   : > { %788 = vst.msk [vmem:[%s1192_s9 + $0x34] sm:$0xf] %vm774_vm3, %v755_v55  ;;  %v684_v10 = vmul.f32 %v652_v2, %v556_v40  ;;  %v692_v11 = vmul.f32 %v660_v3, %v564_v41  ;;  %v557_v12 = vadd.f32 %v1173_v25, %v521_v4  ;;  %v565_v13 = vadd.f32 %v1173_v25, %v529_v5 }
  0xd2   : > { %v731_v14 = vmul.f32 0.16666667, %v699_v6  ;;  %v739_v15 = vmul.f32 0.16666667, %v707_v7  ;;  %v604_v16 = vadd.f32 3.0, %v572_v8  ;;  %v612_v17 = vadd.f32 3.0, %v580_v9 }
  0xd3   : > { %v716_v18 = vmul.f32 0.16666667, %v684_v10  ;;  %v724_v19 = vmul.f32 0.16666667, %v692_v11  ;;  %v589_v20 = vadd.f32 3.0, %v557_v12  ;;  %v597_v21 = vadd.f32 3.0, %v565_v13 }
  0xd4   : > { %v763_v22 = vpack.c.bf16 %v731_v14, %v731_v14  ;;  %v771_v23 = vpack.c.bf16 %v739_v15, %v739_v15  ;;  %v636_v26 = vmax.f32 %v604_v16, 0.0  ;;  %v644_v27 = vmax.f32 %v612_v17, 0.0 }
  0xd5   : > { %v748_v28 = vpack.c.bf16 %v716_v18, %v716_v18  ;;  %v756_v29 = vpack.c.bf16 %v724_v19, %v724_v19  ;;  %v621_v30 = vmax.f32 %v589_v20, 0.0  ;;  %v629_v31 = vmax.f32 %v597_v21, 0.0  ;;  %v487_v32 = vpop.f32.mrf.mxu2  ;;  %v507_v33 = vpop.f32.mrf.mxu3 }
  0xd6   : > { %796 = vst.msk [vmem:[%s1192_s9 + $0x54] sm:$0xf] %vm774_vm3, %v763_v22  ;;  %v668_v34 = vmin.f32 %v636_v26, 6.0  ;;  %v676_v35 = vmin.f32 %v644_v27, 6.0  ;;  %v537_v36 = vmul.f32 %v1168_v24, %v487_v32  ;;  %v545_v37 = vmul.f32 %v1168_v24, %v507_v33 }
  0xd7   : > { %804 = vst.msk [vmem:[%s1192_s9 + $0x74] sm:$0xf] %vm774_vm3, %v771_v23  ;;  %v653_v38 = vmin.f32 %v621_v30, 6.0  ;;  %v661_v39 = vmin.f32 %v629_v31, 6.0 }
  0xd8   : > { %781 = vst.msk [vmem:[%s1192_s9 + $0x18] sm:$0xf] %vm774_vm3, %v748_v28  ;;  %v700_v40 = vmul.f32 %v668_v34, %v572_v8  ;;  %v708_v41 = vmul.f32 %v676_v35, %v580_v9  ;;  %v573_v42 = vadd.f32 %v1173_v25, %v537_v36  ;;  %v581_v43 = vadd.f32 %v1173_v25, %v545_v37 }
  0xd9   : > { %789 = vst.msk [vmem:[%s1192_s9 + $0x38] sm:$0xf] %vm774_vm3, %v756_v29  ;;  %v685_v44 = vmul.f32 %v653_v38, %v557_v12  ;;  %v693_v45 = vmul.f32 %v661_v39, %v565_v13 }
  0xda   : > { %v732_v46 = vmul.f32 0.16666667, %v700_v40  ;;  %v740_v24 = vmul.f32 0.16666667, %v708_v41  ;;  %v605_v47 = vadd.f32 3.0, %v573_v42  ;;  %v613_v48 = vadd.f32 3.0, %v581_v43 }
  0xdb   : > { %v717_v49 = vmul.f32 0.16666667, %v685_v44  ;;  %v725_v50 = vmul.f32 0.16666667, %v693_v45 }
  0xdc   : > { %v764_v51 = vpack.c.bf16 %v732_v46, %v732_v46  ;;  %v772_v52 = vpack.c.bf16 %v740_v24, %v740_v24  ;;  %v637_v53 = vmax.f32 %v605_v47, 0.0  ;;  %v645_v54 = vmax.f32 %v613_v48, 0.0 }
  0xdd   : > { %v749_v25 = vpack.c.bf16 %v717_v49, %v717_v49  ;;  %v757_v55 = vpack.c.bf16 %v725_v50, %v725_v50 }
  0xde   : > { %797 = vst.msk [vmem:[%s1192_s9 + $0x58] sm:$0xf] %vm774_vm3, %v764_v51  ;;  %v669_v56 = vmin.f32 %v637_v53, 6.0  ;;  %v677_v57 = vmin.f32 %v645_v54, 6.0 }
  0xdf   : > { %805 = vst.msk [vmem:[%s1192_s9 + $0x78] sm:$0xf] %vm774_vm3, %v772_v52 }
  0xe0   : > { %782 = vst.msk [vmem:[%s1192_s9 + $0x1c] sm:$0xf] %vm774_vm3, %v749_v25  ;;  %v701_v58 = vmul.f32 %v669_v56, %v573_v42  ;;  %v709_v59 = vmul.f32 %v677_v57, %v581_v43 }
  0xe1   : > { %790 = vst.msk [vmem:[%s1192_s9 + $0x3c] sm:$0xf] %vm774_vm3, %v757_v55 }
  0xe2   : > { %v733_v60 = vmul.f32 0.16666667, %v701_v58  ;;  %v741_v61 = vmul.f32 0.16666667, %v709_v59 }
  0xe4   : > { %v765_v62 = vpack.c.bf16 %v733_v60, %v733_v60  ;;  %v773_v63 = vpack.c.bf16 %v741_v61, %v741_v61 }
  0xe6   : > { %798 = vst.msk [vmem:[%s1192_s9 + $0x5c] sm:$0xf] %vm774_vm3, %v765_v62 }
  0xe7   : > { %806 = vst.msk [vmem:[%s1192_s9 + $0x7c] sm:$0xf] %vm774_vm3, %v773_v63 }
  0xe8 PF: > { %s14_s17 = sadd.s32 1, %s1068_s17   ;;  %s1324_s15 = smov %s1064_s16 }
  0xe9   : > { %p11_p5 = scmp.ge.s32.totalorder %s14_s17, 4   ;;  %s1325_s16 = smov %s1327_s18 }
  0xeb   :  { %13 = sbr.rel (!%p11_p5) target bundleno = 2 (0x2), region = 66 }

// kernel: _lambda_.16
= control target key start
LH: loop header
LB: loop body
LE: loop exit
PB: predicated region body
PF: predicated region fallthrough
CT: control target
= control target key end

     0   :  { %s1176_s18 = smov 0   ;;  %s1178_s19 = smov 0   ;;  %s1394_s0 = inlined_call_operand.vmem [shape: bf16[2,256,16], index: 0, kind: input, shape index: {}]   ;;  %s1395_s1 = inlined_call_operand.vmem [shape: bf16[16,16], index: 1, kind: input, shape index: {}]   ;;  %s1396_s2 = inlined_call_operand.vmem [shape: f32[1,16], index: 2, kind: input, shape index: {}]   ;;  %s1397_s3 = inlined_call_operand.vmem [shape: f32[1,16], index: 3, kind: input, shape index: {}]   ;;  %s1398_s4 = inlined_call_operand.vmem [shape: bf16[2,256,16], index: 4, kind: input, shape index: {}]   ;;  %s1399_s5 = inlined_call_operand.vmem [shape: bf16[2,256,16], index: 5, kind: output, shape index: {}]  }
   0x1   :  { %s1180_s20 = smov 0  }
   0x2 LB: > { %s27_s21 = sadd.s32 1, %s1140_s19  ;;  %p901_p0 = scmp.ge.s32.totalorder %s1144_s20, 1  ;;  %s1144_s20 = sphi %s1180_s20, %s15_s20   ;;  %s1140_s19 = sphi %s1178_s19, %s1401_s19   ;;  %s1136_s18 = sphi %s1176_s18, %s1400_s18  }
   0x3   : > { %p29_p1 = scmp.ge.s32.totalorder %s27_s21, 2  ;;  %p225_p2 = scmp.lt.s32.totalorder %s1144_s20, 3 }
   0x5   : > { %s1403_s21 = smov (%p29_p1, %s27_s21), 0  ;;  %p226_p3 = pnand %p901_p0, %p225_p2 }
   0x6   : > { %p271_p4 = scmp.lt.s32.totalorder (!%p226_p3), %s1136_s18, 1 }
   0x7   : > { %229 = sbr.rel (%p226_p3) target bundleno = 216 (0xd8), region = 40 }
   0xc   : > { %v1013_v0 = vld [vmem:[%s1395_s1] sm:$0xff]  ;;  %s1405_s18 = smov (!%p271_p4, %s1136_s18), 1  ;;  %vm421_vm0 = vcmask 130048   ;;  %vm759_vm1 = vcmask 125952  }
   0xd   : > { %477 = vmatpush.bf16.msra.mxu0 %v1013_v0  ;;  %1093 = vmatpush.bf16.msra.mxu1 %v1013_v0  ;;  %s1197_s24 = sshll.u32 %s1405_s18, 7  ;;  %v1228_v17 = vld [vmem:[%s1396_s2] ss:$0 sm:$0xff] }
   0xe   : > { %1094 = vmatpush.bf16.msra.mxu2 %v1013_v0  ;;  %1095 = vmatpush.bf16.msra.mxu3 %v1013_v0  ;;  %s278_s27 = scalar_lea.vmem %s1394_s0, %s1197_s24  ;;  %s1223_s30 = scalar_lea.vmem %s1398_s4, %s1197_s24  ;;  %v1235_v20 = vld [vmem:[%s1397_s3] ss:$0 sm:$0xff] }
   0xf   : > { %v997_v1 = vld [vmem:[%s278_s27] sm:$0xff]  ;;  %v998_v5 = vld [vmem:[%s278_s27 + $0x8] sm:$0xff]  ;;  %v999_v9 = vld [vmem:[%s278_s27 + $0x10] sm:$0xff]  ;;  %s1247_s12 = scalar_lea.vmem %s1399_s5, %s1197_s24 }
  0x10   : > { %v1001_v2 = vld [vmem:[%s278_s27 + $0x20] sm:$0xff]  ;;  %976 = vmatmul.msk.bf16.vlgmr.msra.gmra.mxu0 %vm421_vm0, %v997_v1  ;;  %v1002_v6 = vld [vmem:[%s278_s27 + $0x28] sm:$0xff]  ;;  %v1003_v10 = vld [vmem:[%s278_s27 + $0x30] sm:$0xff] }
  0x11   : > { %v1005_v3 = vld [vmem:[%s278_s27 + $0x40] sm:$0xff]  ;;  %980 = vmatmul.msk.bf16.vlgmr.msra.gmra.mxu1 %vm421_vm0, %v1001_v2  ;;  %v1006_v7 = vld [vmem:[%s278_s27 + $0x48] sm:$0xff]  ;;  %v1007_v11 = vld [vmem:[%s278_s27 + $0x50] sm:$0xff] }
  0x12   : > { %v1009_v4 = vld [vmem:[%s278_s27 + $0x60] sm:$0xff]  ;;  %984 = vmatmul.msk.bf16.vlgmr.msra.gmra.mxu2 %vm421_vm0, %v1005_v3  ;;  %v1010_v8 = vld [vmem:[%s278_s27 + $0x68] sm:$0xff]  ;;  %v1011_v12 = vld [vmem:[%s278_s27 + $0x70] sm:$0xff] }
  0x13   : > { %988 = vmatmul.msk.bf16.vlgmr.msra.gmra.mxu3 %vm421_vm0, %v1009_v4  ;;  %v1000_v13 = vld [vmem:[%s278_s27 + $0x18] sm:$0xff]  ;;  %v1015_v18 = vld [vmem:[%s1223_s30] sm:$0xff]   ;;  %v1078_v57 = vld [vmem:[%s1223_s30 + $0x8] sm:$0xff]  }
  0x14   : > { %v1004_v14 = vld [vmem:[%s278_s27 + $0x38] sm:$0xff]  ;;  %v1081_v19 = vld [vmem:[%s1223_s30 + $0x20] sm:$0xff]   ;;  %v1016_v24 = vunpack.c.l.bf16 %v1015_v18  ;;  %v1017_v44 = vunpack.c.h.bf16 %v1015_v18  ;;  %v1082_v58 = vld [vmem:[%s1223_s30 + $0x28] sm:$0xff]  }
  0x15   : > { %v1008_v15 = vld [vmem:[%s278_s27 + $0x58] sm:$0xff]  ;;  %v1032_v26 = vunpack.c.l.bf16 %v1081_v19  ;;  %v1085_v31 = vld [vmem:[%s1223_s30 + $0x40] sm:$0xff]   ;;  %v1033_v46 = vunpack.c.h.bf16 %v1081_v19  ;;  %v1086_v18 = vld [vmem:[%s1223_s30 + $0x48] sm:$0xff]  }
  0x16   : > { %v1012_v16 = vld [vmem:[%s278_s27 + $0x78] sm:$0xff]  ;;  %v1089_v32 = vld [vmem:[%s1223_s30 + $0x60] sm:$0xff]   ;;  %v1048_v38 = vunpack.c.l.bf16 %v1085_v31  ;;  %v1049_v0 = vunpack.c.h.bf16 %v1085_v31  ;;  %v1090_v19 = vld [vmem:[%s1223_s30 + $0x68] sm:$0xff]  }
  0x17   : > { %v1064_v40 = vunpack.c.l.bf16 %v1089_v32  ;;  %v1065_v2 = vunpack.c.h.bf16 %v1089_v32 }
  0x20   : > { %977 = vmatmul.msk.bf16.gmra.mxu0 %vm421_vm0, %v998_v5 }
  0x21   : > { %981 = vmatmul.msk.bf16.gmra.mxu1 %vm421_vm0, %v1002_v6  ;;  %v1020_v6 = vunpack.c.l.bf16 %v1078_v57 }
  0x22   : > { %985 = vmatmul.msk.bf16.gmra.mxu2 %vm421_vm0, %v1006_v7 }
  0x23   : > { %989 = vmatmul.msk.bf16.gmra.mxu3 %vm421_vm0, %v1010_v8  ;;  %v1036_v8 = vunpack.c.l.bf16 %v1082_v58 }
  0x30   : > { %978 = vmatmul.msk.bf16.gmra.mxu0 %vm421_vm0, %v999_v9 }
  0x31   : > { %982 = vmatmul.msk.bf16.gmra.mxu1 %vm421_vm0, %v1003_v10 }
  0x32   : > { %986 = vmatmul.msk.bf16.gmra.mxu2 %vm421_vm0, %v1007_v11 }
  0x33   : > { %990 = vmatmul.msk.bf16.gmra.mxu3 %vm421_vm0, %v1011_v12 }
  0x40   : > { %979 = vmatmul.msk.bf16.gmra.mxu0 %vm421_vm0, %v1000_v13 }
  0x41   : > { %983 = vmatmul.msk.bf16.gmra.mxu1 %vm421_vm0, %v1004_v14 }
  0x42   : > { %987 = vmatmul.msk.bf16.gmra.mxu2 %vm421_vm0, %v1008_v15 }
  0x43   : > { %991 = vmatmul.msk.bf16.gmra.mxu3 %vm421_vm0, %v1012_v16 }
  0x8d   : > { %v479_v21 = vpop.f32.mrf.mxu0 }
  0x8e   : > { %v499_v22 = vpop.f32.mrf.mxu1  ;;  %v563_v23 = vmul.f32 %v1228_v17, %v479_v21 }
  0x8f   : > { %v571_v25 = vmul.f32 %v1228_v17, %v499_v22 }
  0x90   : > { %v599_v27 = vadd.f32 %v1235_v20, %v563_v23 }
  0x91   : > { %v607_v28 = vadd.f32 %v1235_v20, %v571_v25 }
  0x92   : > { %v695_v29 = vadd.f32 %v1016_v24, %v599_v27 }
  0x93   : > { %v703_v30 = vadd.f32 %v1032_v26, %v607_v28  ;;  %v1052_v28 = vunpack.c.l.bf16 %v1086_v18 }
  0x94   : > { %v727_v33 = vpack.c.bf16 %v695_v29, %v695_v29 }
  0x95   : > { %v735_v34 = vpack.c.bf16 %v703_v30, %v703_v30  ;;  %v519_v35 = vpop.f32.mrf.mxu2  ;;  %v481_v41 = vpop.f32.mrf.mxu0  ;;  %v1068_v30 = vunpack.c.l.bf16 %v1090_v19 }
  0x96   : > { %v539_v36 = vpop.f32.mrf.mxu3  ;;  %v579_v37 = vmul.f32 %v1228_v17, %v519_v35  ;;  %v501_v42 = vpop.f32.mrf.mxu1  ;;  %760 = vst.msk [vmem:[%s1247_s12] sm:$0xf] %vm759_vm1, %v727_v33  ;;  %v564_v43 = vmul.f32 %v1228_v17, %v481_v41 }
  0x97   : > { %v587_v39 = vmul.f32 %v1228_v17, %v539_v36  ;;  %v572_v45 = vmul.f32 %v1228_v17, %v501_v42  ;;  %768 = vst.msk [vmem:[%s1247_s12 + $0x20] sm:$0xf] %vm759_vm1, %v735_v34  ;;  %v1021_v34 = vunpack.c.h.bf16 %v1078_v57  ;;  %v1037_v36 = vunpack.c.h.bf16 %v1082_v58 }
  0x98   : > { %v615_v47 = vadd.f32 %v1235_v20, %v579_v37  ;;  %v600_v49 = vadd.f32 %v1235_v20, %v564_v43 }
  0x99   : > { %v623_v48 = vadd.f32 %v1235_v20, %v587_v39  ;;  %v608_v50 = vadd.f32 %v1235_v20, %v572_v45 }
  0x9a   : > { %v711_v51 = vadd.f32 %v1048_v38, %v615_v47  ;;  %v696_v53 = vadd.f32 %v1017_v44, %v600_v49  ;;  %v1079_v47 = vld [vmem:[%s1223_s30 + $0x10] sm:$0xff]  }
  0x9b   : > { %v719_v52 = vadd.f32 %v1064_v40, %v623_v48  ;;  %v704_v54 = vadd.f32 %v1033_v46, %v608_v50  ;;  %v1083_v48 = vld [vmem:[%s1223_s30 + $0x30] sm:$0xff]  }
  0x9c   : > { %v743_v55 = vpack.c.bf16 %v711_v51, %v711_v51  ;;  %v728_v59 = vpack.c.bf16 %v696_v53, %v696_v53 }
  0x9d   : > { %v751_v56 = vpack.c.bf16 %v719_v52, %v719_v52  ;;  %v736_v60 = vpack.c.bf16 %v704_v54, %v704_v54  ;;  %v521_v61 = vpop.f32.mrf.mxu2  ;;  %v484_v3 = vpop.f32.mrf.mxu0  ;;  %v1053_v54 = vunpack.c.h.bf16 %v1086_v18 }
  0x9e   : > { %v541_v62 = vpop.f32.mrf.mxu3  ;;  %776 = vst.msk [vmem:[%s1247_s12 + $0x40] sm:$0xf] %vm759_vm1, %v743_v55  ;;  %v580_v63 = vmul.f32 %v1228_v17, %v521_v61  ;;  %v504_v4 = vpop.f32.mrf.mxu1  ;;  %v565_v5 = vmul.f32 %v1228_v17, %v484_v3 }
  0x9f   : > { %v588_v1 = vmul.f32 %v1228_v17, %v541_v62  ;;  %784 = vst.msk [vmem:[%s1247_s12 + $0x60] sm:$0xf] %vm759_vm1, %v751_v56  ;;  %v573_v7 = vmul.f32 %v1228_v17, %v504_v4  ;;  %v1069_v56 = vunpack.c.h.bf16 %v1090_v19  ;;  %v1040_v62 = vunpack.c.l.bf16 %v1083_v48 }
  0xa0   : > { %761 = vst.msk [vmem:[%s1247_s12 + $0x4] sm:$0xf] %vm759_vm1, %v728_v59  ;;  %v616_v9 = vadd.f32 %v1235_v20, %v580_v63  ;;  %v601_v11 = vadd.f32 %v1235_v20, %v565_v5 }
  0xa1   : > { %v624_v10 = vadd.f32 %v1235_v20, %v588_v1  ;;  %769 = vst.msk [vmem:[%s1247_s12 + $0x24] sm:$0xf] %vm759_vm1, %v736_v60  ;;  %v609_v12 = vadd.f32 %v1235_v20, %v573_v7  ;;  %v1024_v60 = vunpack.c.l.bf16 %v1079_v47  ;;  %v1087_v7 = vld [vmem:[%s1223_s30 + $0x50] sm:$0xff]  }
  0xa2   : > { %v712_v13 = vadd.f32 %v1049_v0, %v616_v9  ;;  %v697_v15 = vadd.f32 %v1020_v6, %v601_v11 }
  0xa3   : > { %v720_v14 = vadd.f32 %v1065_v2, %v624_v10  ;;  %v705_v16 = vadd.f32 %v1036_v8, %v609_v12  ;;  %v1091_v8 = vld [vmem:[%s1223_s30 + $0x70] sm:$0xff]  }
  0xa4   : > { %v744_v21 = vpack.c.bf16 %v712_v13, %v712_v13  ;;  %v729_v23 = vpack.c.bf16 %v697_v15, %v697_v15  ;;  %v1072_v19 = vunpack.c.l.bf16 %v1091_v8 }
  0xa5   : > { %v752_v22 = vpack.c.bf16 %v720_v14, %v720_v14  ;;  %v737_v24 = vpack.c.bf16 %v705_v16, %v705_v16  ;;  %v524_v25 = vpop.f32.mrf.mxu2  ;;  %v486_v31 = vpop.f32.mrf.mxu0  ;;  %v1056_v16 = vunpack.c.l.bf16 %v1087_v7 }
  0xa6   : > { %v544_v26 = vpop.f32.mrf.mxu3  ;;  %777 = vst.msk [vmem:[%s1247_s12 + $0x44] sm:$0xf] %vm759_vm1, %v744_v21  ;;  %v581_v27 = vmul.f32 %v1228_v17, %v524_v25  ;;  %v506_v32 = vpop.f32.mrf.mxu1  ;;  %v566_v33 = vmul.f32 %v1228_v17, %v486_v31 }
  0xa7   : > { %v589_v29 = vmul.f32 %v1228_v17, %v544_v26  ;;  %785 = vst.msk [vmem:[%s1247_s12 + $0x64] sm:$0xf] %vm759_vm1, %v752_v22  ;;  %v574_v35 = vmul.f32 %v1228_v17, %v506_v32  ;;  %v1041_v26 = vunpack.c.h.bf16 %v1083_v48 }
  0xa8   : > { %762 = vst.msk [vmem:[%s1247_s12 + $0x8] sm:$0xf] %vm759_vm1, %v729_v23  ;;  %v617_v37 = vadd.f32 %v1235_v20, %v581_v27  ;;  %v602_v39 = vadd.f32 %v1235_v20, %v566_v33 }
  0xa9   : > { %v625_v38 = vadd.f32 %v1235_v20, %v589_v29  ;;  %770 = vst.msk [vmem:[%s1247_s12 + $0x28] sm:$0xf] %vm759_vm1, %v737_v24  ;;  %v610_v40 = vadd.f32 %v1235_v20, %v574_v35  ;;  %v1025_v24 = vunpack.c.h.bf16 %v1079_v47 }
  0xaa   : > { %v713_v41 = vadd.f32 %v1052_v28, %v617_v37  ;;  %v698_v43 = vadd.f32 %v1021_v34, %v602_v39  ;;  %v1080_v37 = vld [vmem:[%s1223_s30 + $0x18] sm:$0xff]  }
  0xab   : > { %v721_v42 = vadd.f32 %v1068_v30, %v625_v38  ;;  %v706_v44 = vadd.f32 %v1037_v36, %v610_v40  ;;  %v1084_v38 = vld [vmem:[%s1223_s30 + $0x38] sm:$0xff]  }
  0xac   : > { %v745_v45 = vpack.c.bf16 %v713_v41, %v713_v41  ;;  %v730_v49 = vpack.c.bf16 %v698_v43, %v698_v43 }
  0xad   : > { %v753_v46 = vpack.c.bf16 %v721_v42, %v721_v42  ;;  %v738_v50 = vpack.c.bf16 %v706_v44, %v706_v44  ;;  %v526_v51 = vpop.f32.mrf.mxu2  ;;  %v489_v57 = vpop.f32.mrf.mxu0  ;;  %v1057_v44 = vunpack.c.h.bf16 %v1087_v7 }
  0xae   : > { %v546_v52 = vpop.f32.mrf.mxu3  ;;  %778 = vst.msk [vmem:[%s1247_s12 + $0x48] sm:$0xf] %vm759_vm1, %v745_v45  ;;  %v582_v53 = vmul.f32 %v1228_v17, %v526_v51  ;;  %v509_v58 = vpop.f32.mrf.mxu1  ;;  %v567_v59 = vmul.f32 %v1228_v17, %v489_v57 }
  0xaf   : > { %v590_v55 = vmul.f32 %v1228_v17, %v546_v52  ;;  %786 = vst.msk [vmem:[%s1247_s12 + $0x68] sm:$0xf] %vm759_vm1, %v753_v46  ;;  %v575_v61 = vmul.f32 %v1228_v17, %v509_v58  ;;  %v1073_v46 = vunpack.c.h.bf16 %v1091_v8  ;;  %v1044_v52 = vunpack.c.l.bf16 %v1084_v38 }
  0xb0   : > { %763 = vst.msk [vmem:[%s1247_s12 + $0xc] sm:$0xf] %vm759_vm1, %v730_v49  ;;  %v618_v63 = vadd.f32 %v1235_v20, %v582_v53  ;;  %v603_v1 = vadd.f32 %v1235_v20, %v567_v59 }
  0xb1   : > { %v626_v0 = vadd.f32 %v1235_v20, %v590_v55  ;;  %771 = vst.msk [vmem:[%s1247_s12 + $0x2c] sm:$0xf] %vm759_vm1, %v738_v50  ;;  %v611_v2 = vadd.f32 %v1235_v20, %v575_v61  ;;  %v1028_v50 = vunpack.c.l.bf16 %v1080_v37  ;;  %v1088_v61 = vld [vmem:[%s1223_s30 + $0x58] sm:$0xff]  }
  0xb2   : > { %v714_v3 = vadd.f32 %v1053_v54, %v618_v63  ;;  %v699_v5 = vadd.f32 %v1024_v60, %v603_v1 }
  0xb3   : > { %v722_v4 = vadd.f32 %v1069_v56, %v626_v0  ;;  %v707_v6 = vadd.f32 %v1040_v62, %v611_v2  ;;  %v1092_v62 = vld [vmem:[%s1223_s30 + $0x78] sm:$0xff]  }
  0xb4   : > { %v746_v9 = vpack.c.bf16 %v714_v3, %v714_v3  ;;  %v731_v11 = vpack.c.bf16 %v699_v5, %v699_v5  ;;  %v1076_v8 = vunpack.c.l.bf16 %v1092_v62 }
  0xb5   : > { %v754_v10 = vpack.c.bf16 %v722_v4, %v722_v4  ;;  %v739_v12 = vpack.c.bf16 %v707_v6, %v707_v6  ;;  %v529_v13 = vpop.f32.mrf.mxu2  ;;  %v491_v21 = vpop.f32.mrf.mxu0  ;;  %v1060_v6 = vunpack.c.l.bf16 %v1088_v61 }
  0xb6   : > { %v549_v14 = vpop.f32.mrf.mxu3  ;;  %779 = vst.msk [vmem:[%s1247_s12 + $0x4c] sm:$0xf] %vm759_vm1, %v746_v9  ;;  %v583_v15 = vmul.f32 %v1228_v17, %v529_v13  ;;  %v511_v22 = vpop.f32.mrf.mxu1  ;;  %v568_v23 = vmul.f32 %v1228_v17, %v491_v21 }
  0xb7   : > { %v591_v18 = vmul.f32 %v1228_v17, %v549_v14  ;;  %787 = vst.msk [vmem:[%s1247_s12 + $0x6c] sm:$0xf] %vm759_vm1, %v754_v10  ;;  %v576_v25 = vmul.f32 %v1228_v17, %v511_v22  ;;  %v1045_v14 = vunpack.c.h.bf16 %v1084_v38 }
  0xb8   : > { %764 = vst.msk [vmem:[%s1247_s12 + $0x10] sm:$0xf] %vm759_vm1, %v731_v11  ;;  %v619_v27 = vadd.f32 %v1235_v20, %v583_v15  ;;  %v604_v29 = vadd.f32 %v1235_v20, %v568_v23 }
  0xb9   : > { %v627_v28 = vadd.f32 %v1235_v20, %v591_v18  ;;  %772 = vst.msk [vmem:[%s1247_s12 + $0x30] sm:$0xf] %vm759_vm1, %v739_v12  ;;  %v612_v30 = vadd.f32 %v1235_v20, %v576_v25  ;;  %v1029_v12 = vunpack.c.h.bf16 %v1080_v37 }
  0xba   : > { %v715_v31 = vadd.f32 %v1056_v16, %v619_v27  ;;  %v700_v33 = vadd.f32 %v1025_v24, %v604_v29 }
  0xbb   : > { %v723_v32 = vadd.f32 %v1072_v19, %v627_v28  ;;  %v708_v34 = vadd.f32 %v1041_v26, %v612_v30 }
  0xbc   : > { %v747_v35 = vpack.c.bf16 %v715_v31, %v715_v31  ;;  %v732_v39 = vpack.c.bf16 %v700_v33, %v700_v33 }
  0xbd   : > { %v755_v36 = vpack.c.bf16 %v723_v32, %v723_v32  ;;  %v740_v40 = vpack.c.bf16 %v708_v34, %v708_v34  ;;  %v531_v41 = vpop.f32.mrf.mxu2  ;;  %v494_v47 = vpop.f32.mrf.mxu0  ;;  %v1061_v32 = vunpack.c.h.bf16 %v1088_v61  ;;  %v1077_v34 = vunpack.c.h.bf16 %v1092_v62 }
  0xbe   : > { %v551_v42 = vpop.f32.mrf.mxu3  ;;  %780 = vst.msk [vmem:[%s1247_s12 + $0x50] sm:$0xf] %vm759_vm1, %v747_v35  ;;  %v584_v43 = vmul.f32 %v1228_v17, %v531_v41  ;;  %v514_v48 = vpop.f32.mrf.mxu1  ;;  %v569_v49 = vmul.f32 %v1228_v17, %v494_v47 }
  0xbf   : > { %v592_v45 = vmul.f32 %v1228_v17, %v551_v42  ;;  %788 = vst.msk [vmem:[%s1247_s12 + $0x70] sm:$0xf] %vm759_vm1, %v755_v36  ;;  %v577_v51 = vmul.f32 %v1228_v17, %v514_v48 }
  0xc0   : > { %765 = vst.msk [vmem:[%s1247_s12 + $0x14] sm:$0xf] %vm759_vm1, %v732_v39  ;;  %v620_v53 = vadd.f32 %v1235_v20, %v584_v43  ;;  %v605_v55 = vadd.f32 %v1235_v20, %v569_v49 }
  0xc1   : > { %v628_v54 = vadd.f32 %v1235_v20, %v592_v45  ;;  %773 = vst.msk [vmem:[%s1247_s12 + $0x34] sm:$0xf] %vm759_vm1, %v740_v40  ;;  %v613_v56 = vadd.f32 %v1235_v20, %v577_v51 }
  0xc2   : > { %v716_v57 = vadd.f32 %v1057_v44, %v620_v53  ;;  %v701_v59 = vadd.f32 %v1028_v50, %v605_v55 }
  0xc3   : > { %v724_v58 = vadd.f32 %v1073_v46, %v628_v54  ;;  %v709_v60 = vadd.f32 %v1044_v52, %v613_v56 }
  0xc4   : > { %v748_v63 = vpack.c.bf16 %v716_v57, %v716_v57  ;;  %v733_v1 = vpack.c.bf16 %v701_v59, %v701_v59 }
  0xc5   : > { %v756_v0 = vpack.c.bf16 %v724_v58, %v724_v58  ;;  %v741_v2 = vpack.c.bf16 %v709_v60, %v709_v60  ;;  %v534_v3 = vpop.f32.mrf.mxu2  ;;  %v496_v9 = vpop.f32.mrf.mxu0 }
  0xc6   : > { %v554_v4 = vpop.f32.mrf.mxu3  ;;  %781 = vst.msk [vmem:[%s1247_s12 + $0x54] sm:$0xf] %vm759_vm1, %v748_v63  ;;  %v585_v5 = vmul.f32 %v1228_v17, %v534_v3  ;;  %v516_v10 = vpop.f32.mrf.mxu1  ;;  %v570_v11 = vmul.f32 %v1228_v17, %v496_v9 }
  0xc7   : > { %v593_v7 = vmul.f32 %v1228_v17, %v554_v4  ;;  %789 = vst.msk [vmem:[%s1247_s12 + $0x74] sm:$0xf] %vm759_vm1, %v756_v0  ;;  %v578_v13 = vmul.f32 %v1228_v17, %v516_v10 }
  0xc8   : > { %766 = vst.msk [vmem:[%s1247_s12 + $0x18] sm:$0xf] %vm759_vm1, %v733_v1  ;;  %v621_v15 = vadd.f32 %v1235_v20, %v585_v5  ;;  %v606_v18 = vadd.f32 %v1235_v20, %v570_v11 }
  0xc9   : > { %v629_v16 = vadd.f32 %v1235_v20, %v593_v7  ;;  %774 = vst.msk [vmem:[%s1247_s12 + $0x38] sm:$0xf] %vm759_vm1, %v741_v2  ;;  %v614_v19 = vadd.f32 %v1235_v20, %v578_v13 }
  0xca   : > { %v717_v21 = vadd.f32 %v1060_v6, %v621_v15  ;;  %v702_v23 = vadd.f32 %v1029_v12, %v606_v18 }
  0xcb   : > { %v725_v22 = vadd.f32 %v1076_v8, %v629_v16  ;;  %v710_v24 = vadd.f32 %v1045_v14, %v614_v19 }
  0xcc   : > { %v749_v25 = vpack.c.bf16 %v717_v21, %v717_v21  ;;  %v734_v27 = vpack.c.bf16 %v702_v23, %v702_v23 }
  0xcd   : > { %v757_v26 = vpack.c.bf16 %v725_v22, %v725_v22  ;;  %v742_v28 = vpack.c.bf16 %v710_v24, %v710_v24  ;;  %v536_v29 = vpop.f32.mrf.mxu2 }
  0xce   : > { %v556_v30 = vpop.f32.mrf.mxu3  ;;  %782 = vst.msk [vmem:[%s1247_s12 + $0x58] sm:$0xf] %vm759_vm1, %v749_v25  ;;  %v586_v31 = vmul.f32 %v1228_v17, %v536_v29 }
  0xcf   : > { %v594_v33 = vmul.f32 %v1228_v17, %v556_v30  ;;  %790 = vst.msk [vmem:[%s1247_s12 + $0x78] sm:$0xf] %vm759_vm1, %v757_v26 }
  0xd0   : > { %767 = vst.msk [vmem:[%s1247_s12 + $0x1c] sm:$0xf] %vm759_vm1, %v734_v27  ;;  %v622_v35 = vadd.f32 %v1235_v20, %v586_v31 }
  0xd1   : > { %v630_v36 = vadd.f32 %v1235_v20, %v594_v33  ;;  %775 = vst.msk [vmem:[%s1247_s12 + $0x3c] sm:$0xf] %vm759_vm1, %v742_v28 }
  0xd2   : > { %v718_v37 = vadd.f32 %v1061_v32, %v622_v35 }
  0xd3   : > { %v726_v38 = vadd.f32 %v1077_v34, %v630_v36 }
  0xd4   : > { %v750_v39 = vpack.c.bf16 %v718_v37, %v718_v37 }
  0xd5   : > { %v758_v40 = vpack.c.bf16 %v726_v38, %v726_v38 }
  0xd6   : > { %783 = vst.msk [vmem:[%s1247_s12 + $0x5c] sm:$0xf] %vm759_vm1, %v750_v39 }
  0xd7   : > { %791 = vst.msk [vmem:[%s1247_s12 + $0x7c] sm:$0xf] %vm759_vm1, %v758_v40 }
  0xd8 PF: > { %s15_s20 = sadd.s32 1, %s1144_s20   ;;  %s1400_s18 = smov %s1140_s19 }
  0xd9   : > { %p12_p5 = scmp.ge.s32.totalorder %s15_s20, 4   ;;  %s1401_s19 = smov %s1403_s21 }
  0xdb   :  { %14 = sbr.rel (!%p12_p5) target bundleno = 2 (0x2), region = 73 }

// kernel: _lambda_.17
= control target key start
LH: loop header
LB: loop body
LE: loop exit
PB: predicated region body
PF: predicated region fallthrough
CT: control target
= control target key end

     0   :  { %s944_s15 = smov 0   ;;  %s946_s16 = smov 0   ;;  %s1143_s0 = inlined_call_operand.vmem [shape: bf16[2,256,16], index: 0, kind: input, shape index: {}]   ;;  %s1144_s1 = inlined_call_operand.vmem [shape: bf16[16,64], index: 1, kind: input, shape index: {}]   ;;  %s1145_s2 = inlined_call_operand.vmem [shape: f32[1,64], index: 2, kind: input, shape index: {}]   ;;  %s1146_s3 = inlined_call_operand.vmem [shape: f32[1,64], index: 3, kind: input, shape index: {}]   ;;  %s1147_s4 = inlined_call_operand.vmem [shape: bf16[2,256,64], index: 4, kind: output, shape index: {}]  }
   0x1   :  { %s948_s17 = smov 0  }
   0x2 LB: > { %s26_s18 = sadd.s32 1, %s913_s16  ;;  %p756_p0 = scmp.ge.s32.totalorder %s917_s17, 1  ;;  %s917_s17 = sphi %s948_s17, %s14_s17   ;;  %s913_s16 = sphi %s946_s16, %s1149_s16   ;;  %s909_s15 = sphi %s944_s15, %s1148_s15  }
   0x3   : > { %p28_p1 = scmp.ge.s32.totalorder %s26_s18, 2  ;;  %p183_p2 = scmp.lt.s32.totalorder %s917_s17, 3 }
   0x5   : > { %s1151_s18 = smov (%p28_p1, %s26_s18), 0  ;;  %p184_p3 = pnand %p756_p0, %p183_p2 }
   0x6   : > { %p218_p4 = scmp.lt.s32.totalorder (!%p184_p3), %s909_s15, 1 }
   0x7   : > { %187 = sbr.rel (%p184_p3) target bundleno = 216 (0xd8), region = 36 }
   0xc   : > { %v865_v0 = vld [vmem:[%s1144_s1] sm:$0xff]  ;;  %s1153_s15 = smov (!%p218_p4, %s909_s15), 1  ;;  %vm358_vm0 = vcmask 130048   ;;  %vm632_vm1 = vcmask 519168  }
   0xd   : > { %414 = vmatpush.bf16.msra.mxu0 %v865_v0  ;;  %866 = vmatpush.bf16.msra.mxu1 %v865_v0  ;;  %s847_s21 = sshll.u32 %s1153_s15, 7  ;;  %v992_v17 = vld [vmem:[%s1145_s2] ss:$0 sm:$0xff] }
   0xe   : > { %867 = vmatpush.bf16.msra.mxu2 %v865_v0  ;;  %868 = vmatpush.bf16.msra.mxu3 %v865_v0  ;;  %s225_s24 = scalar_lea.vmem %s1143_s0, %s847_s21  ;;  %v997_v18 = vld [vmem:[%s1146_s3] ss:$0 sm:$0xff]  ;;  %s1008_s5 = scalar_lea.vmem %s1147_s4, %s847_s21 }
   0xf   : > { %v849_v1 = vld [vmem:[%s225_s24] sm:$0xff]  ;;  %v850_v5 = vld [vmem:[%s225_s24 + $0x8] sm:$0xff]  ;;  %v851_v9 = vld [vmem:[%s225_s24 + $0x10] sm:$0xff] }
  0x10   : > { %v853_v2 = vld [vmem:[%s225_s24 + $0x20] sm:$0xff]  ;;  %829 = vmatmul.msk.bf16.vlgmr.msra.gmra.mxu0 %vm358_vm0, %v849_v1  ;;  %v854_v6 = vld [vmem:[%s225_s24 + $0x28] sm:$0xff]  ;;  %v855_v10 = vld [vmem:[%s225_s24 + $0x30] sm:$0xff] }
  0x11   : > { %v857_v3 = vld [vmem:[%s225_s24 + $0x40] sm:$0xff]  ;;  %833 = vmatmul.msk.bf16.vlgmr.msra.gmra.mxu1 %vm358_vm0, %v853_v2  ;;  %v858_v7 = vld [vmem:[%s225_s24 + $0x48] sm:$0xff]  ;;  %v859_v11 = vld [vmem:[%s225_s24 + $0x50] sm:$0xff] }
  0x12   : > { %v861_v4 = vld [vmem:[%s225_s24 + $0x60] sm:$0xff]  ;;  %837 = vmatmul.msk.bf16.vlgmr.msra.gmra.mxu2 %vm358_vm0, %v857_v3  ;;  %v862_v8 = vld [vmem:[%s225_s24 + $0x68] sm:$0xff]  ;;  %v863_v12 = vld [vmem:[%s225_s24 + $0x70] sm:$0xff] }
  0x13   : > { %841 = vmatmul.msk.bf16.vlgmr.msra.gmra.mxu3 %vm358_vm0, %v861_v4  ;;  %v852_v13 = vld [vmem:[%s225_s24 + $0x18] sm:$0xff] }
  0x14   : > { %v856_v14 = vld [vmem:[%s225_s24 + $0x38] sm:$0xff] }
  0x15   : > { %v860_v15 = vld [vmem:[%s225_s24 + $0x58] sm:$0xff] }
  0x16   : > { %v864_v16 = vld [vmem:[%s225_s24 + $0x78] sm:$0xff] }
  0x20   : > { %830 = vmatmul.msk.bf16.gmra.mxu0 %vm358_vm0, %v850_v5 }
  0x21   : > { %834 = vmatmul.msk.bf16.gmra.mxu1 %vm358_vm0, %v854_v6 }
  0x22   : > { %838 = vmatmul.msk.bf16.gmra.mxu2 %vm358_vm0, %v858_v7 }
  0x23   : > { %842 = vmatmul.msk.bf16.gmra.mxu3 %vm358_vm0, %v862_v8 }
  0x30   : > { %831 = vmatmul.msk.bf16.gmra.mxu0 %vm358_vm0, %v851_v9 }
  0x31   : > { %835 = vmatmul.msk.bf16.gmra.mxu1 %vm358_vm0, %v855_v10 }
  0x32   : > { %839 = vmatmul.msk.bf16.gmra.mxu2 %vm358_vm0, %v859_v11 }
  0x33   : > { %843 = vmatmul.msk.bf16.gmra.mxu3 %vm358_vm0, %v863_v12 }
  0x40   : > { %832 = vmatmul.msk.bf16.gmra.mxu0 %vm358_vm0, %v852_v13 }
  0x41   : > { %836 = vmatmul.msk.bf16.gmra.mxu1 %vm358_vm0, %v856_v14 }
  0x42   : > { %840 = vmatmul.msk.bf16.gmra.mxu2 %vm358_vm0, %v860_v15 }
  0x43   : > { %844 = vmatmul.msk.bf16.gmra.mxu3 %vm358_vm0, %v864_v16 }
  0x8d   : > { %v416_v19 = vpop.f32.mrf.mxu0 }
  0x8e   : > { %v436_v20 = vpop.f32.mrf.mxu1  ;;  %v500_v21 = vmul.f32 %v992_v17, %v416_v19 }
  0x8f   : > { %v508_v22 = vmul.f32 %v992_v17, %v436_v20 }
  0x90   : > { %v536_v23 = vadd.f32 %v997_v18, %v500_v21 }
  0x91   : > { %v544_v24 = vadd.f32 %v997_v18, %v508_v22 }
  0x92   : > { %v568_v25 = vmax.f32 %v536_v23, 0.0 }
  0x93   : > { %v576_v26 = vmax.f32 %v544_v24, 0.0 }
  0x94   : > { %v600_v27 = vpack.c.bf16 %v568_v25, %v568_v25 }
  0x95   : > { %v608_v28 = vpack.c.bf16 %v576_v26, %v576_v26  ;;  %v456_v29 = vpop.f32.mrf.mxu2  ;;  %v418_v33 = vpop.f32.mrf.mxu0 }
  0x96   : > { %v476_v30 = vpop.f32.mrf.mxu3  ;;  %v516_v31 = vmul.f32 %v992_v17, %v456_v29  ;;  %v438_v34 = vpop.f32.mrf.mxu1  ;;  %633 = vst.msk [vmem:[%s1008_s5] sm:$0xf] %vm632_vm1, %v600_v27  ;;  %v501_v35 = vmul.f32 %v992_v17, %v418_v33 }
  0x97   : > { %v524_v32 = vmul.f32 %v992_v17, %v476_v30  ;;  %v509_v36 = vmul.f32 %v992_v17, %v438_v34  ;;  %641 = vst.msk [vmem:[%s1008_s5 + $0x20] sm:$0xf] %vm632_vm1, %v608_v28 }
  0x98   : > { %v552_v37 = vadd.f32 %v997_v18, %v516_v31  ;;  %v537_v39 = vadd.f32 %v997_v18, %v501_v35 }
  0x99   : > { %v560_v38 = vadd.f32 %v997_v18, %v524_v32  ;;  %v545_v40 = vadd.f32 %v997_v18, %v509_v36 }
  0x9a   : > { %v584_v41 = vmax.f32 %v552_v37, 0.0  ;;  %v569_v43 = vmax.f32 %v537_v39, 0.0 }
  0x9b   : > { %v592_v42 = vmax.f32 %v560_v38, 0.0  ;;  %v577_v44 = vmax.f32 %v545_v40, 0.0 }
  0x9c   : > { %v616_v45 = vpack.c.bf16 %v584_v41, %v584_v41  ;;  %v601_v47 = vpack.c.bf16 %v569_v43, %v569_v43 }
  0x9d   : > { %v624_v46 = vpack.c.bf16 %v592_v42, %v592_v42  ;;  %v609_v48 = vpack.c.bf16 %v577_v44, %v577_v44  ;;  %v458_v49 = vpop.f32.mrf.mxu2  ;;  %v421_v53 = vpop.f32.mrf.mxu0 }
  0x9e   : > { %v478_v50 = vpop.f32.mrf.mxu3  ;;  %649 = vst.msk [vmem:[%s1008_s5 + $0x40] sm:$0xf] %vm632_vm1, %v616_v45  ;;  %v517_v51 = vmul.f32 %v992_v17, %v458_v49  ;;  %v441_v54 = vpop.f32.mrf.mxu1  ;;  %v502_v55 = vmul.f32 %v992_v17, %v421_v53 }
  0x9f   : > { %v525_v52 = vmul.f32 %v992_v17, %v478_v50  ;;  %657 = vst.msk [vmem:[%s1008_s5 + $0x60] sm:$0xf] %vm632_vm1, %v624_v46  ;;  %v510_v56 = vmul.f32 %v992_v17, %v441_v54 }
  0xa0   : > { %634 = vst.msk [vmem:[%s1008_s5 + $0x4] sm:$0xf] %vm632_vm1, %v601_v47  ;;  %v553_v57 = vadd.f32 %v997_v18, %v517_v51  ;;  %v538_v59 = vadd.f32 %v997_v18, %v502_v55 }
  0xa1   : > { %v561_v58 = vadd.f32 %v997_v18, %v525_v52  ;;  %642 = vst.msk [vmem:[%s1008_s5 + $0x24] sm:$0xf] %vm632_vm1, %v609_v48  ;;  %v546_v60 = vadd.f32 %v997_v18, %v510_v56 }
  0xa2   : > { %v585_v61 = vmax.f32 %v553_v57, 0.0  ;;  %v570_v63 = vmax.f32 %v538_v59, 0.0 }
  0xa3   : > { %v593_v62 = vmax.f32 %v561_v58, 0.0  ;;  %v578_v0 = vmax.f32 %v546_v60, 0.0 }
  0xa4   : > { %v617_v1 = vpack.c.bf16 %v585_v61, %v585_v61  ;;  %v602_v3 = vpack.c.bf16 %v570_v63, %v570_v63 }
  0xa5   : > { %v625_v2 = vpack.c.bf16 %v593_v62, %v593_v62  ;;  %v610_v4 = vpack.c.bf16 %v578_v0, %v578_v0  ;;  %v461_v5 = vpop.f32.mrf.mxu2  ;;  %v423_v9 = vpop.f32.mrf.mxu0 }
  0xa6   : > { %v481_v6 = vpop.f32.mrf.mxu3  ;;  %650 = vst.msk [vmem:[%s1008_s5 + $0x44] sm:$0xf] %vm632_vm1, %v617_v1  ;;  %v518_v7 = vmul.f32 %v992_v17, %v461_v5  ;;  %v443_v10 = vpop.f32.mrf.mxu1  ;;  %v503_v11 = vmul.f32 %v992_v17, %v423_v9 }
  0xa7   : > { %v526_v8 = vmul.f32 %v992_v17, %v481_v6  ;;  %658 = vst.msk [vmem:[%s1008_s5 + $0x64] sm:$0xf] %vm632_vm1, %v625_v2  ;;  %v511_v12 = vmul.f32 %v992_v17, %v443_v10 }
  0xa8   : > { %635 = vst.msk [vmem:[%s1008_s5 + $0x8] sm:$0xf] %vm632_vm1, %v602_v3  ;;  %v554_v13 = vadd.f32 %v997_v18, %v518_v7  ;;  %v539_v15 = vadd.f32 %v997_v18, %v503_v11 }
  0xa9   : > { %v562_v14 = vadd.f32 %v997_v18, %v526_v8  ;;  %643 = vst.msk [vmem:[%s1008_s5 + $0x28] sm:$0xf] %vm632_vm1, %v610_v4  ;;  %v547_v16 = vadd.f32 %v997_v18, %v511_v12 }
  0xaa   : > { %v586_v19 = vmax.f32 %v554_v13, 0.0  ;;  %v571_v21 = vmax.f32 %v539_v15, 0.0 }
  0xab   : > { %v594_v20 = vmax.f32 %v562_v14, 0.0  ;;  %v579_v22 = vmax.f32 %v547_v16, 0.0 }
  0xac   : > { %v618_v23 = vpack.c.bf16 %v586_v19, %v586_v19  ;;  %v603_v25 = vpack.c.bf16 %v571_v21, %v571_v21 }
  0xad   : > { %v626_v24 = vpack.c.bf16 %v594_v20, %v594_v20  ;;  %v611_v26 = vpack.c.bf16 %v579_v22, %v579_v22  ;;  %v463_v27 = vpop.f32.mrf.mxu2  ;;  %v426_v31 = vpop.f32.mrf.mxu0 }
  0xae   : > { %v483_v28 = vpop.f32.mrf.mxu3  ;;  %651 = vst.msk [vmem:[%s1008_s5 + $0x48] sm:$0xf] %vm632_vm1, %v618_v23  ;;  %v519_v29 = vmul.f32 %v992_v17, %v463_v27  ;;  %v446_v32 = vpop.f32.mrf.mxu1  ;;  %v504_v33 = vmul.f32 %v992_v17, %v426_v31 }
  0xaf   : > { %v527_v30 = vmul.f32 %v992_v17, %v483_v28  ;;  %659 = vst.msk [vmem:[%s1008_s5 + $0x68] sm:$0xf] %vm632_vm1, %v626_v24  ;;  %v512_v34 = vmul.f32 %v992_v17, %v446_v32 }
  0xb0   : > { %636 = vst.msk [vmem:[%s1008_s5 + $0xc] sm:$0xf] %vm632_vm1, %v603_v25  ;;  %v555_v35 = vadd.f32 %v997_v18, %v519_v29  ;;  %v540_v37 = vadd.f32 %v997_v18, %v504_v33 }
  0xb1   : > { %v563_v36 = vadd.f32 %v997_v18, %v527_v30  ;;  %644 = vst.msk [vmem:[%s1008_s5 + $0x2c] sm:$0xf] %vm632_vm1, %v611_v26  ;;  %v548_v38 = vadd.f32 %v997_v18, %v512_v34 }
  0xb2   : > { %v587_v39 = vmax.f32 %v555_v35, 0.0  ;;  %v572_v41 = vmax.f32 %v540_v37, 0.0 }
  0xb3   : > { %v595_v40 = vmax.f32 %v563_v36, 0.0  ;;  %v580_v42 = vmax.f32 %v548_v38, 0.0 }
  0xb4   : > { %v619_v43 = vpack.c.bf16 %v587_v39, %v587_v39  ;;  %v604_v45 = vpack.c.bf16 %v572_v41, %v572_v41 }
  0xb5   : > { %v627_v44 = vpack.c.bf16 %v595_v40, %v595_v40  ;;  %v612_v46 = vpack.c.bf16 %v580_v42, %v580_v42  ;;  %v466_v47 = vpop.f32.mrf.mxu2  ;;  %v428_v51 = vpop.f32.mrf.mxu0 }
  0xb6   : > { %v486_v48 = vpop.f32.mrf.mxu3  ;;  %652 = vst.msk [vmem:[%s1008_s5 + $0x4c] sm:$0xf] %vm632_vm1, %v619_v43  ;;  %v520_v49 = vmul.f32 %v992_v17, %v466_v47  ;;  %v448_v52 = vpop.f32.mrf.mxu1  ;;  %v505_v53 = vmul.f32 %v992_v17, %v428_v51 }
  0xb7   : > { %v528_v50 = vmul.f32 %v992_v17, %v486_v48  ;;  %660 = vst.msk [vmem:[%s1008_s5 + $0x6c] sm:$0xf] %vm632_vm1, %v627_v44  ;;  %v513_v54 = vmul.f32 %v992_v17, %v448_v52 }
  0xb8   : > { %637 = vst.msk [vmem:[%s1008_s5 + $0x10] sm:$0xf] %vm632_vm1, %v604_v45  ;;  %v556_v55 = vadd.f32 %v997_v18, %v520_v49  ;;  %v541_v57 = vadd.f32 %v997_v18, %v505_v53 }
  0xb9   : > { %v564_v56 = vadd.f32 %v997_v18, %v528_v50  ;;  %645 = vst.msk [vmem:[%s1008_s5 + $0x30] sm:$0xf] %vm632_vm1, %v612_v46  ;;  %v549_v58 = vadd.f32 %v997_v18, %v513_v54 }
  0xba   : > { %v588_v59 = vmax.f32 %v556_v55, 0.0  ;;  %v573_v61 = vmax.f32 %v541_v57, 0.0 }
  0xbb   : > { %v596_v60 = vmax.f32 %v564_v56, 0.0  ;;  %v581_v62 = vmax.f32 %v549_v58, 0.0 }
  0xbc   : > { %v620_v63 = vpack.c.bf16 %v588_v59, %v588_v59  ;;  %v605_v1 = vpack.c.bf16 %v573_v61, %v573_v61 }
  0xbd   : > { %v628_v0 = vpack.c.bf16 %v596_v60, %v596_v60  ;;  %v613_v2 = vpack.c.bf16 %v581_v62, %v581_v62  ;;  %v468_v3 = vpop.f32.mrf.mxu2  ;;  %v431_v7 = vpop.f32.mrf.mxu0 }
  0xbe   : > { %v488_v4 = vpop.f32.mrf.mxu3  ;;  %653 = vst.msk [vmem:[%s1008_s5 + $0x50] sm:$0xf] %vm632_vm1, %v620_v63  ;;  %v521_v5 = vmul.f32 %v992_v17, %v468_v3  ;;  %v451_v8 = vpop.f32.mrf.mxu1  ;;  %v506_v9 = vmul.f32 %v992_v17, %v431_v7 }
  0xbf   : > { %v529_v6 = vmul.f32 %v992_v17, %v488_v4  ;;  %661 = vst.msk [vmem:[%s1008_s5 + $0x70] sm:$0xf] %vm632_vm1, %v628_v0  ;;  %v514_v10 = vmul.f32 %v992_v17, %v451_v8 }
  0xc0   : > { %638 = vst.msk [vmem:[%s1008_s5 + $0x14] sm:$0xf] %vm632_vm1, %v605_v1  ;;  %v557_v11 = vadd.f32 %v997_v18, %v521_v5  ;;  %v542_v13 = vadd.f32 %v997_v18, %v506_v9 }
  0xc1   : > { %v565_v12 = vadd.f32 %v997_v18, %v529_v6  ;;  %646 = vst.msk [vmem:[%s1008_s5 + $0x34] sm:$0xf] %vm632_vm1, %v613_v2  ;;  %v550_v14 = vadd.f32 %v997_v18, %v514_v10 }
  0xc2   : > { %v589_v15 = vmax.f32 %v557_v11, 0.0  ;;  %v574_v19 = vmax.f32 %v542_v13, 0.0 }
  0xc3   : > { %v597_v16 = vmax.f32 %v565_v12, 0.0  ;;  %v582_v20 = vmax.f32 %v550_v14, 0.0 }
  0xc4   : > { %v621_v21 = vpack.c.bf16 %v589_v15, %v589_v15  ;;  %v606_v23 = vpack.c.bf16 %v574_v19, %v574_v19 }
  0xc5   : > { %v629_v22 = vpack.c.bf16 %v597_v16, %v597_v16  ;;  %v614_v24 = vpack.c.bf16 %v582_v20, %v582_v20  ;;  %v471_v25 = vpop.f32.mrf.mxu2  ;;  %v433_v29 = vpop.f32.mrf.mxu0 }
  0xc6   : > { %v491_v26 = vpop.f32.mrf.mxu3  ;;  %654 = vst.msk [vmem:[%s1008_s5 + $0x54] sm:$0xf] %vm632_vm1, %v621_v21  ;;  %v522_v27 = vmul.f32 %v992_v17, %v471_v25  ;;  %v453_v30 = vpop.f32.mrf.mxu1  ;;  %v507_v31 = vmul.f32 %v992_v17, %v433_v29 }
  0xc7   : > { %v530_v28 = vmul.f32 %v992_v17, %v491_v26  ;;  %662 = vst.msk [vmem:[%s1008_s5 + $0x74] sm:$0xf] %vm632_vm1, %v629_v22  ;;  %v515_v32 = vmul.f32 %v992_v17, %v453_v30 }
  0xc8   : > { %639 = vst.msk [vmem:[%s1008_s5 + $0x18] sm:$0xf] %vm632_vm1, %v606_v23  ;;  %v558_v33 = vadd.f32 %v997_v18, %v522_v27  ;;  %v543_v35 = vadd.f32 %v997_v18, %v507_v31 }
  0xc9   : > { %v566_v34 = vadd.f32 %v997_v18, %v530_v28  ;;  %647 = vst.msk [vmem:[%s1008_s5 + $0x38] sm:$0xf] %vm632_vm1, %v614_v24  ;;  %v551_v36 = vadd.f32 %v997_v18, %v515_v32 }
  0xca   : > { %v590_v37 = vmax.f32 %v558_v33, 0.0  ;;  %v575_v39 = vmax.f32 %v543_v35, 0.0 }
  0xcb   : > { %v598_v38 = vmax.f32 %v566_v34, 0.0  ;;  %v583_v40 = vmax.f32 %v551_v36, 0.0 }
  0xcc   : > { %v622_v41 = vpack.c.bf16 %v590_v37, %v590_v37  ;;  %v607_v43 = vpack.c.bf16 %v575_v39, %v575_v39 }
  0xcd   : > { %v630_v42 = vpack.c.bf16 %v598_v38, %v598_v38  ;;  %v615_v44 = vpack.c.bf16 %v583_v40, %v583_v40  ;;  %v473_v45 = vpop.f32.mrf.mxu2 }
  0xce   : > { %v493_v46 = vpop.f32.mrf.mxu3  ;;  %655 = vst.msk [vmem:[%s1008_s5 + $0x58] sm:$0xf] %vm632_vm1, %v622_v41  ;;  %v523_v47 = vmul.f32 %v992_v17, %v473_v45 }
  0xcf   : > { %v531_v48 = vmul.f32 %v992_v17, %v493_v46  ;;  %663 = vst.msk [vmem:[%s1008_s5 + $0x78] sm:$0xf] %vm632_vm1, %v630_v42 }
  0xd0   : > { %640 = vst.msk [vmem:[%s1008_s5 + $0x1c] sm:$0xf] %vm632_vm1, %v607_v43  ;;  %v559_v49 = vadd.f32 %v997_v18, %v523_v47 }
  0xd1   : > { %v567_v50 = vadd.f32 %v997_v18, %v531_v48  ;;  %648 = vst.msk [vmem:[%s1008_s5 + $0x3c] sm:$0xf] %vm632_vm1, %v615_v44 }
  0xd2   : > { %v591_v51 = vmax.f32 %v559_v49, 0.0 }
  0xd3   : > { %v599_v52 = vmax.f32 %v567_v50, 0.0 }
  0xd4   : > { %v623_v53 = vpack.c.bf16 %v591_v51, %v591_v51 }
  0xd5   : > { %v631_v54 = vpack.c.bf16 %v599_v52, %v599_v52 }
  0xd6   : > { %656 = vst.msk [vmem:[%s1008_s5 + $0x5c] sm:$0xf] %vm632_vm1, %v623_v53 }
  0xd7   : > { %664 = vst.msk [vmem:[%s1008_s5 + $0x7c] sm:$0xf] %vm632_vm1, %v631_v54 }
  0xd8 PF: > { %s14_s17 = sadd.s32 1, %s917_s17   ;;  %s1148_s15 = smov %s913_s16 }
  0xd9   : > { %p11_p5 = scmp.ge.s32.totalorder %s14_s17, 4   ;;  %s1149_s16 = smov %s1151_s18 }
  0xdb   :  { %13 = sbr.rel (!%p11_p5) target bundleno = 2 (0x2), region = 66 }

// kernel: _lambda_.15
= control target key start
LH: loop header
LB: loop body
LE: loop exit
PB: predicated region body
PF: predicated region fallthrough
CT: control target
= control target key end

     0   :  { %s2795_s15 = smov 0   ;;  %s4437_s0 = inlined_call_operand.vmem [shape: bf16[2,18,18,16], index: 0, kind: input, shape index: {}]   ;;  %s4438_s1 = inlined_call_operand.vmem [shape: f32[9,1,16], index: 1, kind: input, shape index: {}]   ;;  %s4439_s2 = inlined_call_operand.vmem [shape: f32[1,1,16], index: 2, kind: input, shape index: {}]   ;;  %s4440_s3 = inlined_call_operand.vmem [shape: f32[1,1,16], index: 3, kind: input, shape index: {}]   ;;  %s4441_s4 = inlined_call_operand.vmem [shape: bf16[2,16,16,16], index: 4, kind: output, shape index: {}]  }
   0x1 LB: > { %s2454_s16 = sadd.s32 4294967295, %s2768_s15   ;;  %p2458_p0 = scmp.ge.s32.totalorder %s2768_s15, 1  ;;  %s2768_s15 = sphi %s2795_s15, %s14_s15  }
   0x2   : > { %p162_p1 = scmp.lt.s32.totalorder %s2768_s15, 3 }
   0x4   : > { %p163_p2 = pnand %p2458_p0, %p162_p1 }
   0x5   : > { %p188_p3 = scmp.lt.s32.totalorder (!%p163_p2), %s2454_s16, 1 }
   0x6   : > { %166 = sbr.rel (%p163_p2) target bundleno = 388 (0x184), region = 36 }
   0xb   : > { %s4443_s16 = smov (!%p188_p3, %s2454_s16), 1  ;;  %v2809_v0 = vld [vmem:[%s4438_s1] ss:$0 sm:$0xff]  ;;  %v2814_v1 = vld [vmem:[%s4438_s1 + $0x1] ss:$0 sm:$0xff]  ;;  %vm431_vm0 = vcmask 1046528  }
   0xc   : > { %s2720_s17 = smul.u32 216, %s4443_s16  ;;  %v2819_v2 = vld [vmem:[%s4438_s1 + $0x2] ss:$0 sm:$0xff]  ;;  %v2829_v3 = vld [vmem:[%s4438_s1 + $0x3] ss:$0 sm:$0xff]  ;;  %vm709_vm1 = vcmask 1045504  }
   0xd   : > { %v2834_v4 = vld [vmem:[%s4438_s1 + $0x4] ss:$0 sm:$0xff]  ;;  %v2843_v13 = vld [vmem:[%s4438_s1 + $0x5] ss:$0 sm:$0xff]  ;;  %v2857_v23 = vld [vmem:[%s4438_s1 + $0x6] ss:$0 sm:$0xff] }
   0xe   : > { %s2824_s26 = scalar_lea.vmem %s4437_s0, %s2720_s17  ;;  %v2862_v24 = vld [vmem:[%s4438_s1 + $0x7] ss:$0 sm:$0xff]  ;;  %v2872_v33 = vld [vmem:[%s4438_s1 + $0x8] ss:$0 sm:$0xff]  ;;  %vm2366_vm2 = vcmask 125952   ;;  %s2600_s19 = sshll.u32 %s4443_s16, 7 }
   0xf   : > { %v2602_v5 = vld [vmem:[%s2824_s26] sm:$0xff]   ;;  %v2464_v7 = vld [vmem:[%s2824_s26 + $0xc] sm:$0xff]   ;;  %v2712_v14 = vld [vmem:[%s2824_s26 + $0x18] sm:$0xff]   ;;  %s2970_s21 = scalar_lea.vmem %s4441_s4, %s2600_s19 }
  0x10   : > { %v576_v6 = vld [vmem:[%s2824_s26] sm:$0xe]  ;;  %v2603_v8 = vunpack.c.l.bf16 %v2602_v5  ;;  %v2604_v9 = vunpack.c.h.bf16 %v2602_v5  ;;  %v887_v11 = vunpack.c.l.bf16 %v2464_v7  ;;  %v2514_v12 = vld [vmem:[%s2824_s26 + $0xc] sm:$0xe]  ;;  %v888_v15 = vunpack.c.h.bf16 %v2464_v7  ;;  %v2581_v38 = vld [vmem:[%s2824_s26 + $0x18] sm:$0xe] }
  0x11   : > { %v592_v10 = vunpack.c.l.bf16 %v576_v6  ;;  %v1281_v16 = vunpack.c.l.bf16 %v2514_v12  ;;  %v2846_v17 = vunpack.c.l.bf16 %v2712_v14  ;;  %v2848_v18 = vunpack.c.h.bf16 %v2712_v14  ;;  %v298_v43 = vld [vmem:[%s2824_s26 + $0x8] sm:$0x1]  ;;  %v2497_v52 = vld [vmem:[%s2824_s26 + $0x14] sm:$0x1]  ;;  %v2564_v57 = vld [vmem:[%s2824_s26 + $0x20] sm:$0x1] }
  0x12   : > { %v266_v19 = vmul.f32 %v2809_v0, %v2603_v8  ;;  %v335_v20 = vmul.f32 %v2814_v1, %v2603_v8  ;;  %v336_v21 = vmul.f32 %v2814_v1, %v2604_v9  ;;  %v614_v25 = vmul.f32 %v2819_v2, %v2604_v9 }
  0x13   : > { %v613_v22 = vmul.f32 %v2819_v2, %v592_v10  ;;  %v924_v26 = vmul.f32 %v2829_v3, %v887_v11  ;;  %v1025_v27 = vmul.f32 %v2834_v4, %v887_v11  ;;  %v1026_v28 = vmul.f32 %v2834_v4, %v888_v15 }
  0x14   : > { %v432_v29 = vrot.slane %v335_v20, 1  ;;  %v433_v30 = vrot.slane %v336_v21, 1  ;;  %v1302_v32 = vmul.f32 %v2843_v13, %v1281_v16  ;;  %v711_v34 = vrot.slane %v614_v25, 2 }
  0x15   : > { %v710_v31 = vrot.slane %v613_v22, 2  ;;  %v1121_v35 = vrot.slane %v1025_v27, 1  ;;  %v1122_v36 = vrot.slane %v1026_v28, 1  ;;  %v1303_v37 = vmul.f32 %v2843_v13, %v888_v15  ;;  %v200_v22 = vld [vmem:[%s2824_s26 + $0xc] sm:$0xff]  }
  0x16   : > { %v434_v39 = vsel %vm431_vm0, %v432_v29, %v433_v30  ;;  %v1398_v40 = vrot.slane %v1302_v32, 2  ;;  %v1612_v41 = vmul.f32 %v2857_v23, %v2846_v17  ;;  %v1713_v42 = vmul.f32 %v2862_v24, %v2846_v17 }
  0x17   : > { %v544_v44 = vadd.f32 %v434_v39, %v266_v19  ;;  %v712_v45 = vsel %vm709_vm1, %v710_v31, %v711_v34  ;;  %v1123_v46 = vsel %vm431_vm0, %v1121_v35, %v1122_v36  ;;  %v1399_v47 = vrot.slane %v1303_v37, 2 }
  0x18   : > { %v1714_v48 = vmul.f32 %v2862_v24, %v2848_v18  ;;  %v1809_v49 = vrot.slane %v1713_v42, 1  ;;  %v1969_v50 = vunpack.c.l.bf16 %v2581_v38  ;;  %v1991_v51 = vmul.f32 %v2872_v33, %v2848_v18  ;;  %v577_v42 = vld [vmem:[%s2824_s26 + $0xc] sm:$0xe] }
  0x19   : > { %v822_v53 = vadd.f32 %v712_v45, %v544_v44  ;;  %v1400_v54 = vsel %vm709_vm1, %v1398_v40, %v1399_v47  ;;  %v267_v55 = vmul.f32 %v2809_v0, %v2604_v9  ;;  %v314_v56 = vunpack.c.l.bf16 %v298_v43 }
  0x1a   : > { %v1810_v58 = vrot.slane %v1714_v48, 1  ;;  %v1990_v59 = vmul.f32 %v2872_v33, %v1969_v50  ;;  %v2087_v60 = vrot.slane %v1991_v51, 2  ;;  %v925_v61 = vmul.f32 %v2829_v3, %v888_v15 }
  0x1b   : > { %v956_v62 = vadd.f32 %v924_v26, %v822_v53  ;;  %v337_v63 = vmul.f32 %v2814_v1, %v314_v56  ;;  %v615_v5 = vmul.f32 %v2819_v2, %v314_v56  ;;  %v1004_v6 = vunpack.c.l.bf16 %v2497_v52  ;;  %v2515_v52 = vld [vmem:[%s2824_s26 + $0x18] sm:$0xe] }
  0x1c   : > { %v1811_v7 = vsel %vm431_vm0, %v1809_v49, %v1810_v58  ;;  %v2086_v8 = vrot.slane %v1990_v59, 2  ;;  %v1613_v9 = vmul.f32 %v2857_v23, %v2848_v18  ;;  %v1692_v10 = vunpack.c.l.bf16 %v2564_v57 }
  0x1d   : > { %v1233_v11 = vadd.f32 %v1123_v46, %v956_v62  ;;  %v435_v12 = vrot.slane %v337_v63, 1  ;;  %v713_v14 = vrot.slane %v615_v5, 2  ;;  %v1027_v16 = vmul.f32 %v2834_v4, %v1004_v6  ;;  %v2917_v46 = vld [vmem:[%s4439_s2] ss:$0 sm:$0xff]  ;;  %v2533_v62 = vld [vmem:[%s2824_s26 + $0x24] sm:$0xff]  }
  0x1e   : > { %v2088_v15 = vsel %vm709_vm1, %v2086_v8, %v2087_v60  ;;  %v1304_v19 = vmul.f32 %v2843_v13, %v1004_v6  ;;  %v1715_v20 = vmul.f32 %v2862_v24, %v1692_v10  ;;  %v1992_v21 = vmul.f32 %v2872_v33, %v1692_v10 }
  0x1f   : > { %v1510_v25 = vadd.f32 %v1400_v54, %v1233_v11  ;;  %v436_v26 = vsel %vm431_vm0, %v433_v30, %v435_v12  ;;  %v714_v27 = vsel %vm709_vm1, %v711_v34, %v713_v14  ;;  %v1124_v28 = vrot.slane %v1027_v16, 1  ;;  %v2935_v54 = vld [vmem:[%s4440_s3] ss:$0 sm:$0xff] }
  0x20   : > { %v545_v29 = vadd.f32 %v436_v26, %v267_v55  ;;  %v1401_v31 = vrot.slane %v1304_v19, 2  ;;  %v1812_v32 = vrot.slane %v1715_v20, 1  ;;  %v2089_v35 = vrot.slane %v1992_v21, 2  ;;  %v2582_v26 = vld [vmem:[%s2824_s26 + $0x24] sm:$0xe] }
  0x21   : > { %v1644_v37 = vadd.f32 %v1612_v41, %v1510_v25  ;;  %v1125_v38 = vsel %vm431_vm0, %v1122_v36, %v1124_v28  ;;  %v232_v39 = vunpack.c.l.bf16 %v200_v22  ;;  %v2908_v40 = vunpack.c.h.bf16 %v200_v22 }
  0x22   : > { %v823_v43 = vadd.f32 %v714_v27, %v545_v29  ;;  %v1402_v44 = vsel %vm709_vm1, %v1399_v47, %v1401_v31  ;;  %v1813_v30 = vsel %vm431_vm0, %v1810_v58, %v1812_v32  ;;  %v2090_v34 = vsel %vm709_vm1, %v2087_v60, %v2089_v35 }
  0x23   : > { %v1921_v45 = vadd.f32 %v1811_v7, %v1644_v37  ;;  %v268_v36 = vmul.f32 %v2809_v0, %v232_v39  ;;  %v338_v41 = vmul.f32 %v2814_v1, %v232_v39  ;;  %v2923_v48 = vmul.f32 %v2814_v1, %v2908_v40 }
  0x24   : > { %v957_v47 = vadd.f32 %v925_v61, %v823_v43  ;;  %v593_v49 = vunpack.c.l.bf16 %v577_v42  ;;  %v2927_v50 = vmul.f32 %v2819_v2, %v2908_v40  ;;  %v926_v51 = vmul.f32 %v2829_v3, %v2846_v17 }
  0x25   : > { %v2198_v53 = vadd.f32 %v2088_v15, %v1921_v45  ;;  %v437_v55 = vrot.slane %v338_v41, 1  ;;  %v438_v56 = vrot.slane %v2923_v48, 1  ;;  %v1028_v57 = vmul.f32 %v2834_v4, %v2846_v17 }
  0x26   : > { %v1234_v58 = vadd.f32 %v1125_v38, %v957_v47  ;;  %v616_v59 = vmul.f32 %v2819_v2, %v593_v49  ;;  %v716_v60 = vrot.slane %v2927_v50, 2  ;;  %v2944_v61 = vmul.f32 %v2834_v4, %v2848_v18  ;;  %v299_v38 = vld [vmem:[%s2824_s26 + $0x14] sm:$0x1] }
  0x27   : > { %v2234_v63 = vmul.f32 %v2917_v46, %v2198_v53  ;;  %v439_v5 = vsel %vm431_vm0, %v437_v55, %v438_v56  ;;  %v1126_v6 = vrot.slane %v1028_v57, 1  ;;  %v1282_v7 = vunpack.c.l.bf16 %v2515_v52  ;;  %v2498_v55 = vld [vmem:[%s2824_s26 + $0x20] sm:$0x1]  ;;  %v2565_v57 = vld [vmem:[%s2824_s26 + $0x2c] sm:$0x1] }
  0x28   : > { %v1511_v8 = vadd.f32 %v1402_v44, %v1234_v58  ;;  %v546_v10 = vadd.f32 %v439_v5, %v268_v36  ;;  %v715_v11 = vrot.slane %v616_v59, 2  ;;  %v1127_v12 = vrot.slane %v2944_v61, 1 }
  0x29   : > { %v2270_v14 = vadd.f32 %v2935_v54, %v2234_v63  ;;  %v1305_v16 = vmul.f32 %v2843_v13, %v1282_v7  ;;  %v2957_v15 = vmul.f32 %v2843_v13, %v2848_v18  ;;  %v1577_v19 = vunpack.c.l.bf16 %v2533_v62 }
  0x2a   : > { %v1645_v20 = vadd.f32 %v1613_v9, %v1511_v8  ;;  %v717_v21 = vsel %vm709_vm1, %v715_v11, %v716_v60  ;;  %v1128_v22 = vsel %vm431_vm0, %v1126_v6, %v1127_v12  ;;  %v1578_v25 = vunpack.c.h.bf16 %v2533_v62 }
  0x2b   : > { %v2302_v27 = vmax.f32 %v2270_v14, 0.0  ;;  %v824_v28 = vadd.f32 %v717_v21, %v546_v10  ;;  %v1403_v29 = vrot.slane %v1305_v16, 2  ;;  %v1404_v31 = vrot.slane %v2957_v15, 2 }
  0x2c   : > { %v1922_v9 = vadd.f32 %v1813_v30, %v1645_v20  ;;  %v1614_v32 = vmul.f32 %v2857_v23, %v1577_v19  ;;  %v1716_v35 = vmul.f32 %v2862_v24, %v1577_v19  ;;  %v1717_v37 = vmul.f32 %v2862_v24, %v1578_v25 }
  0x2d   : > { %v2334_v39 = vpack.c.bf16 %v2302_v27, %v2302_v27  ;;  %v958_v42 = vadd.f32 %v926_v51, %v824_v28  ;;  %v1405_v43 = vsel %vm709_vm1, %v1403_v29, %v1404_v31  ;;  %v1970_v44 = vunpack.c.l.bf16 %v2582_v26 }
  0x2e   : > { %v2199_v45 = vadd.f32 %v2090_v34, %v1922_v9  ;;  %v1814_v36 = vrot.slane %v1716_v35, 1  ;;  %v1815_v41 = vrot.slane %v1717_v37, 1  ;;  %v1994_v47 = vmul.f32 %v2872_v33, %v1578_v25 }
  0x2f   : > { %2367 = vst.msk [vmem:[%s2970_s21] sm:$0xf] %vm2366_vm2, %v2334_v39  ;;  %v1235_v30 = vadd.f32 %v1128_v22, %v958_v42  ;;  %v1993_v49 = vmul.f32 %v2872_v33, %v1970_v44  ;;  %v269_v52 = vmul.f32 %v2809_v0, %v2908_v40  ;;  %v315_v53 = vunpack.c.l.bf16 %v299_v38  ;;  %v578_v42 = vld [vmem:[%s2824_s26 + $0x18] sm:$0xe]  ;;  %v2468_v44 = vld [vmem:[%s2824_s26 + $0x24] sm:$0xff]  }
  0x30   : > { %v2235_v51 = vmul.f32 %v2917_v46, %v2199_v45  ;;  %v1816_v58 = vsel %vm431_vm0, %v1814_v36, %v1815_v41  ;;  %v2092_v34 = vrot.slane %v1994_v47, 2  ;;  %v927_v59 = vmul.f32 %v2829_v3, %v2848_v18 }
  0x31   : > { %v1512_v62 = vadd.f32 %v1405_v43, %v1235_v30  ;;  %v2091_v63 = vrot.slane %v1993_v49, 2  ;;  %v340_v5 = vmul.f32 %v2814_v1, %v315_v53  ;;  %v618_v6 = vmul.f32 %v2819_v2, %v315_v53  ;;  %v2516_v49 = vld [vmem:[%s2824_s26 + $0x24] sm:$0xe] }
  0x32   : > { %v2271_v7 = vadd.f32 %v2935_v54, %v2235_v51  ;;  %v1005_v40 = vunpack.c.l.bf16 %v2498_v55  ;;  %v1615_v8 = vmul.f32 %v2857_v23, %v1578_v25  ;;  %v1693_v10 = vunpack.c.l.bf16 %v2565_v57 }
  0x33   : > { %v1646_v11 = vadd.f32 %v1614_v32, %v1512_v62  ;;  %v2093_v14 = vsel %vm709_vm1, %v2091_v63, %v2092_v34  ;;  %v440_v16 = vrot.slane %v340_v5, 1  ;;  %v718_v15 = vrot.slane %v618_v6, 2  ;;  %v2713_v6 = vld [vmem:[%s2824_s26 + $0x30] sm:$0xff]  }
  0x34   : > { %v2303_v19 = vmax.f32 %v2271_v7, 0.0  ;;  %v1030_v20 = vmul.f32 %v2834_v4, %v1005_v40  ;;  %v1307_v21 = vmul.f32 %v2843_v13, %v1005_v40  ;;  %v1718_v22 = vmul.f32 %v2862_v24, %v1693_v10 }
  0x35   : > { %v1923_v26 = vadd.f32 %v1816_v58, %v1646_v11  ;;  %v441_v25 = vsel %vm431_vm0, %v438_v56, %v440_v16  ;;  %v719_v27 = vsel %vm709_vm1, %v716_v60, %v718_v15  ;;  %v1995_v28 = vmul.f32 %v2872_v33, %v1693_v10 }
  0x36   : > { %v2335_v29 = vpack.c.bf16 %v2303_v19, %v2303_v19  ;;  %v547_v9 = vadd.f32 %v441_v25, %v269_v52  ;;  %v1129_v32 = vrot.slane %v1030_v20, 1  ;;  %v1406_v35 = vrot.slane %v1307_v21, 2  ;;  %v2583_v25 = vld [vmem:[%s2824_s26 + $0x30] sm:$0xe] }
  0x37   : > { %v2200_v37 = vadd.f32 %v2093_v14, %v1923_v26  ;;  %v1817_v38 = vrot.slane %v1718_v22, 1  ;;  %v2094_v39 = vrot.slane %v1995_v28, 2  ;;  %v270_v48 = vmul.f32 %v2809_v0, %v2846_v17 }
  0x38   : > { %2368 = vst.msk [vmem:[%s2970_s21 + $0x4] sm:$0xf] %vm2366_vm2, %v2335_v29  ;;  %v825_v50 = vadd.f32 %v719_v27, %v547_v9  ;;  %v1130_v56 = vsel %vm431_vm0, %v1127_v12, %v1129_v32  ;;  %v1407_v60 = vsel %vm709_vm1, %v1404_v31, %v1406_v35  ;;  %v341_v43 = vmul.f32 %v2814_v1, %v2846_v17 }
  0x39   : > { %v2236_v45 = vmul.f32 %v2917_v46, %v2200_v37  ;;  %v1818_v36 = vsel %vm431_vm0, %v1815_v41, %v1817_v38  ;;  %v2095_v47 = vsel %vm709_vm1, %v2092_v34, %v2094_v39  ;;  %v3021_v30 = vmul.f32 %v2814_v1, %v2848_v18  ;;  %v300_v38 = vld [vmem:[%s2824_s26 + $0x20] sm:$0x1] }
  0x3a   : > { %v959_v61 = vadd.f32 %v927_v59, %v825_v50  ;;  %v442_v12 = vrot.slane %v341_v43, 1  ;;  %v594_v52 = vunpack.c.l.bf16 %v578_v42  ;;  %v3026_v31 = vmul.f32 %v2819_v2, %v2848_v18 }
  0x3b   : > { %v2272_v17 = vadd.f32 %v2935_v54, %v2236_v45  ;;  %v443_v53 = vrot.slane %v3021_v30, 1  ;;  %v891_v41 = vunpack.c.l.bf16 %v2468_v44  ;;  %v892_v55 = vunpack.c.h.bf16 %v2468_v44 }
  0x3c   : > { %v1236_v57 = vadd.f32 %v1130_v56, %v959_v61  ;;  %v619_v51 = vmul.f32 %v2819_v2, %v594_v52  ;;  %v721_v58 = vrot.slane %v3026_v31, 2  ;;  %v1283_v34 = vunpack.c.l.bf16 %v2516_v49  ;;  %v2499_v56 = vld [vmem:[%s2824_s26 + $0x2c] sm:$0x1] }
  0x3d   : > { %v2304_v59 = vmax.f32 %v2272_v17, 0.0  ;;  %v444_v62 = vsel %vm431_vm0, %v442_v12, %v443_v53  ;;  %v928_v63 = vmul.f32 %v2829_v3, %v891_v41  ;;  %v1031_v5 = vmul.f32 %v2834_v4, %v891_v41 }
  0x3e   : > { %v1513_v7 = vadd.f32 %v1407_v60, %v1236_v57  ;;  %v548_v40 = vadd.f32 %v444_v62, %v270_v48  ;;  %v720_v10 = vrot.slane %v619_v51, 2  ;;  %v3039_v11 = vmul.f32 %v2834_v4, %v892_v55 }
  0x3f   : > { %v2336_v14 = vpack.c.bf16 %v2304_v59, %v2304_v59  ;;  %v1131_v16 = vrot.slane %v1031_v5, 1  ;;  %v1308_v15 = vmul.f32 %v2843_v13, %v1283_v34  ;;  %v3043_v19 = vmul.f32 %v2843_v13, %v892_v55 }
  0x40   : > { %v1647_v20 = vadd.f32 %v1615_v8, %v1513_v7  ;;  %v722_v21 = vsel %vm709_vm1, %v720_v10, %v721_v58  ;;  %v1132_v22 = vrot.slane %v3039_v11, 1  ;;  %v3049_v26 = vunpack.c.l.bf16 %v2713_v6  ;;  %v204_v7 = vld [vmem:[%s2824_s26 + $0x24] sm:$0xff]  }
  0x41   : > { %2369 = vst.msk [vmem:[%s2970_s21 + $0x8] sm:$0xf] %vm2366_vm2, %v2336_v14  ;;  %v826_v27 = vadd.f32 %v722_v21, %v548_v40  ;;  %v1408_v28 = vrot.slane %v1308_v15, 2  ;;  %v1409_v29 = vrot.slane %v3043_v19, 2  ;;  %v3055_v9 = vunpack.c.h.bf16 %v2713_v6  ;;  %v2566_v6 = vld [vmem:[%s2824_s26 + $0x38] sm:$0x1] }
  0x42   : > { %v1924_v32 = vadd.f32 %v1818_v36, %v1647_v20  ;;  %v1133_v8 = vsel %vm431_vm0, %v1131_v16, %v1132_v22  ;;  %v1616_v35 = vmul.f32 %v2857_v23, %v3049_v26  ;;  %v1719_v37 = vmul.f32 %v2862_v24, %v3049_v26 }
  0x43   : > { %v960_v39 = vadd.f32 %v928_v63, %v826_v27  ;;  %v1410_v48 = vsel %vm709_vm1, %v1408_v28, %v1409_v29  ;;  %v1720_v42 = vmul.f32 %v2862_v24, %v3055_v9  ;;  %v1971_v50 = vunpack.c.l.bf16 %v2583_v25 }
  0x44   : > { %v2201_v60 = vadd.f32 %v2095_v47, %v1924_v32  ;;  %v1819_v43 = vrot.slane %v1719_v37, 1  ;;  %v1997_v44 = vmul.f32 %v2872_v33, %v3055_v9  ;;  %v271_v45 = vmul.f32 %v2809_v0, %v2848_v18  ;;  %v579_v37 = vld [vmem:[%s2824_s26 + $0x24] sm:$0xe] }
  0x45   : > { %v1237_v36 = vadd.f32 %v1133_v8, %v960_v39  ;;  %v1820_v49 = vrot.slane %v1720_v42, 1  ;;  %v1996_v61 = vmul.f32 %v2872_v33, %v1971_v50  ;;  %v316_v12 = vunpack.c.l.bf16 %v300_v38 }
  0x46   : > { %v2237_v52 = vmul.f32 %v2917_v46, %v2201_v60  ;;  %v2097_v17 = vrot.slane %v1997_v44, 2  ;;  %v929_v41 = vmul.f32 %v2829_v3, %v892_v55  ;;  %v1006_v47 = vunpack.c.l.bf16 %v2499_v56 }
  0x47   : > { %v1514_v57 = vadd.f32 %v1410_v48, %v1237_v36  ;;  %v1821_v51 = vsel %vm431_vm0, %v1819_v43, %v1820_v49  ;;  %v2096_v34 = vrot.slane %v1996_v61, 2  ;;  %v343_v59 = vmul.f32 %v2814_v1, %v316_v12 }
  0x48   : > { %v2273_v18 = vadd.f32 %v2935_v54, %v2237_v52  ;;  %v621_v62 = vmul.f32 %v2819_v2, %v316_v12  ;;  %v1033_v63 = vmul.f32 %v2834_v4, %v1006_v47  ;;  %v1310_v5 = vmul.f32 %v2843_v13, %v1006_v47 }
  0x49   : > { %v1648_v40 = vadd.f32 %v1616_v35, %v1514_v57  ;;  %v2098_v55 = vsel %vm709_vm1, %v2096_v34, %v2097_v17  ;;  %v445_v10 = vrot.slane %v343_v59, 1  ;;  %v1617_v11 = vmul.f32 %v2857_v23, %v3055_v9 }
  0x4a   : > { %v2305_v14 = vmax.f32 %v2273_v18, 0.0  ;;  %v723_v16 = vrot.slane %v621_v62, 2  ;;  %v1134_v15 = vrot.slane %v1033_v63, 1  ;;  %v1411_v19 = vrot.slane %v1310_v5, 2 }
  0x4b   : > { %v1925_v20 = vadd.f32 %v1821_v51, %v1648_v40  ;;  %v446_v21 = vsel %vm431_vm0, %v443_v53, %v445_v10  ;;  %v1694_v25 = vunpack.c.l.bf16 %v2566_v6  ;;  %v236_v27 = vunpack.c.l.bf16 %v204_v7  ;;  %v2584_v40 = vld [vmem:[%s2824_s26 + $0x3c] sm:$0xe] }
  0x4c   : > { %v2337_v28 = vpack.c.bf16 %v2305_v14, %v2305_v14  ;;  %v549_v32 = vadd.f32 %v446_v21, %v271_v45  ;;  %v724_v8 = vsel %vm709_vm1, %v721_v58, %v723_v16  ;;  %v1135_v35 = vsel %vm431_vm0, %v1132_v22, %v1134_v15 }
  0x4d   : > { %v2202_v38 = vadd.f32 %v2098_v55, %v1925_v20  ;;  %v1412_v39 = vsel %vm709_vm1, %v1409_v29, %v1411_v19  ;;  %v1721_v48 = vmul.f32 %v2862_v24, %v1694_v25  ;;  %v1998_v30 = vmul.f32 %v2872_v33, %v1694_v25 }
  0x4e   : > { %2370 = vst.msk [vmem:[%s2970_s21 + $0xc] sm:$0xf] %vm2366_vm2, %v2337_v28  ;;  %v827_v53 = vadd.f32 %v724_v8, %v549_v32  ;;  %v3098_v42 = vunpack.c.h.bf16 %v204_v7  ;;  %v272_v31 = vmul.f32 %v2809_v0, %v236_v27  ;;  %v344_v58 = vmul.f32 %v2814_v1, %v236_v27  ;;  %v2537_v7 = vld [vmem:[%s2824_s26 + $0x3c] sm:$0xff]  }
  0x4f   : > { %v2238_v22 = vmul.f32 %v2917_v46, %v2202_v38  ;;  %v1822_v50 = vrot.slane %v1721_v48, 1  ;;  %v2099_v56 = vrot.slane %v1998_v30, 2  ;;  %v595_v60 = vunpack.c.l.bf16 %v579_v37  ;;  %v301_v38 = vld [vmem:[%s2824_s26 + $0x2c] sm:$0x1] }
  0x50   : > { %v961_v29 = vadd.f32 %v929_v41, %v827_v53  ;;  %v3105_v43 = vmul.f32 %v2814_v1, %v3098_v42  ;;  %v447_v44 = vrot.slane %v344_v58, 1  ;;  %v3109_v45 = vmul.f32 %v2819_v2, %v3098_v42  ;;  %v2517_v41 = vld [vmem:[%s2824_s26 + $0x30] sm:$0xe] }
  0x51   : > { %v2274_v36 = vadd.f32 %v2935_v54, %v2238_v22  ;;  %v1823_v61 = vsel %vm431_vm0, %v1820_v49, %v1822_v50  ;;  %v2100_v12 = vsel %vm709_vm1, %v2097_v17, %v2099_v56  ;;  %v622_v52 = vmul.f32 %v2819_v2, %v595_v60 }
  0x52   : > { %v1238_v47 = vadd.f32 %v1135_v35, %v961_v29  ;;  %v448_v57 = vrot.slane %v3105_v43, 1  ;;  %v726_v51 = vrot.slane %v3109_v45, 2  ;;  %v930_v34 = vmul.f32 %v2829_v3, %v3049_v26 }
  0x53   : > { %v2306_v59 = vmax.f32 %v2274_v36, 0.0  ;;  %v725_v18 = vrot.slane %v622_v52, 2  ;;  %v1034_v49 = vmul.f32 %v2834_v4, %v3049_v26  ;;  %v3124_v17 = vmul.f32 %v2834_v4, %v3055_v9 }
  0x54   : > { %v1515_v62 = vadd.f32 %v1412_v39, %v1238_v47  ;;  %v449_v63 = vsel %vm431_vm0, %v447_v44, %v448_v57  ;;  %v1284_v5 = vunpack.c.l.bf16 %v2517_v41  ;;  %v3131_v6 = vmul.f32 %v2843_v13, %v3055_v9  ;;  %v2500_v44 = vld [vmem:[%s2824_s26 + $0x38] sm:$0x1]  ;;  %v2567_v41 = vld [vmem:[%s2824_s26 + $0x44] sm:$0x1] }
  0x55   : > { %v2338_v55 = vpack.c.bf16 %v2306_v59, %v2306_v59  ;;  %v550_v10 = vadd.f32 %v449_v63, %v272_v31  ;;  %v727_v14 = vsel %vm709_vm1, %v725_v18, %v726_v51  ;;  %v1136_v16 = vrot.slane %v1034_v49, 1 }
  0x56   : > { %v1649_v15 = vadd.f32 %v1617_v11, %v1515_v62  ;;  %v1137_v19 = vrot.slane %v3124_v17, 1  ;;  %v1311_v20 = vmul.f32 %v2843_v13, %v1284_v5  ;;  %v1414_v21 = vrot.slane %v3131_v6, 2  ;;  %v2518_v6 = vld [vmem:[%s2824_s26 + $0x3c] sm:$0xe] }
  0x57   : > { %2371 = vst.msk [vmem:[%s2970_s21 + $0x10] sm:$0xf] %vm2366_vm2, %v2338_v55  ;;  %v828_v25 = vadd.f32 %v727_v14, %v550_v10  ;;  %v1581_v27 = vunpack.c.l.bf16 %v2537_v7  ;;  %v1582_v28 = vunpack.c.h.bf16 %v2537_v7  ;;  %v1972_v32 = vunpack.c.l.bf16 %v2584_v40 }
  0x58   : > { %v1926_v8 = vadd.f32 %v1823_v61, %v1649_v15  ;;  %v1138_v35 = vsel %vm431_vm0, %v1136_v16, %v1137_v19  ;;  %v1413_v37 = vrot.slane %v1311_v20, 2  ;;  %v317_v29 = vunpack.c.l.bf16 %v301_v38 }
  0x59   : > { %v962_v39 = vadd.f32 %v930_v34, %v828_v25  ;;  %v1618_v11 = vmul.f32 %v2857_v23, %v1581_v27  ;;  %v1722_v48 = vmul.f32 %v2862_v24, %v1581_v27  ;;  %v1723_v30 = vmul.f32 %v2862_v24, %v1582_v28 }
  0x5a   : > { %v2203_v53 = vadd.f32 %v2100_v12, %v1926_v8  ;;  %v1415_v31 = vsel %vm709_vm1, %v1413_v37, %v1414_v21  ;;  %v1999_v58 = vmul.f32 %v2872_v33, %v1972_v32  ;;  %v3153_v22 = vmul.f32 %v2872_v33, %v1582_v28 }
  0x5b   : > { %v1239_v50 = vadd.f32 %v1138_v35, %v962_v39  ;;  %v1824_v56 = vrot.slane %v1722_v48, 1  ;;  %v1825_v60 = vrot.slane %v1723_v30, 1  ;;  %v273_v12 = vmul.f32 %v2809_v0, %v3098_v42  ;;  %v2472_v30 = vld [vmem:[%s2824_s26 + $0x3c] sm:$0xff]  }
  0x5c   : > { %v2239_v36 = vmul.f32 %v2917_v46, %v2203_v53  ;;  %v2101_v61 = vrot.slane %v1999_v58, 2  ;;  %v2102_v52 = vrot.slane %v3153_v22, 2  ;;  %v346_v34 = vmul.f32 %v2814_v1, %v317_v29 }
  0x5d   : > { %v1516_v47 = vadd.f32 %v1415_v31, %v1239_v50  ;;  %v624_v59 = vmul.f32 %v2819_v2, %v317_v29  ;;  %v931_v18 = vmul.f32 %v2829_v3, %v3055_v9  ;;  %v1826_v17 = vsel %vm431_vm0, %v1824_v56, %v1825_v60 }
  0x5e   : > { %v2275_v49 = vadd.f32 %v2935_v54, %v2239_v36  ;;  %v2103_v62 = vsel %vm709_vm1, %v2101_v61, %v2102_v52  ;;  %v1007_v63 = vunpack.c.l.bf16 %v2500_v44  ;;  %v450_v42 = vrot.slane %v346_v34, 1  ;;  %v2714_v34 = vld [vmem:[%s2824_s26 + $0x48] sm:$0xff]  }
  0x5f   : > { %v1650_v5 = vadd.f32 %v1618_v11, %v1516_v47  ;;  %v728_v7 = vrot.slane %v624_v59, 2  ;;  %v1695_v40 = vunpack.c.l.bf16 %v2567_v41  ;;  %v1619_v16 = vmul.f32 %v2857_v23, %v1582_v28  ;;  %v580_v11 = vld [vmem:[%s2824_s26 + $0x30] sm:$0xe] }
  0x60   : > { %v2307_v55 = vmax.f32 %v2275_v49, 0.0  ;;  %v1036_v10 = vmul.f32 %v2834_v4, %v1007_v63  ;;  %v1313_v14 = vmul.f32 %v2843_v13, %v1007_v63  ;;  %v451_v20 = vsel %vm431_vm0, %v448_v57, %v450_v42 }
  0x61   : > { %v1927_v15 = vadd.f32 %v1826_v17, %v1650_v5  ;;  %v729_v25 = vsel %vm709_vm1, %v726_v51, %v728_v7  ;;  %v1724_v27 = vmul.f32 %v2862_v24, %v1695_v40  ;;  %v551_v8 = vadd.f32 %v451_v20, %v273_v12 }
  0x62   : > { %v2339_v32 = vpack.c.bf16 %v2307_v55, %v2307_v55  ;;  %v1139_v35 = vrot.slane %v1036_v10, 1  ;;  %v1416_v37 = vrot.slane %v1313_v14, 2  ;;  %v2001_v28 = vmul.f32 %v2872_v33, %v1695_v40 }
  0x63   : > { %v2204_v38 = vadd.f32 %v2103_v62, %v1927_v15  ;;  %v1827_v39 = vrot.slane %v1724_v27, 1  ;;  %v347_v43 = vmul.f32 %v2814_v1, %v3049_v26  ;;  %v829_v45 = vadd.f32 %v729_v25, %v551_v8  ;;  %v2585_v27 = vld [vmem:[%s2824_s26 + $0x48] sm:$0xe] }
  0x64   : > { %2372 = vst.msk [vmem:[%s2970_s21 + $0x14] sm:$0xf] %vm2366_vm2, %v2339_v32  ;;  %v1140_v57 = vsel %vm431_vm0, %v1137_v19, %v1139_v35  ;;  %v274_v51 = vmul.f32 %v2809_v0, %v3049_v26  ;;  %v3191_v48 = vmul.f32 %v2814_v1, %v3055_v9  ;;  %v1417_v31 = vsel %vm709_vm1, %v1414_v21, %v1416_v37 }
  0x65   : > { %v2240_v53 = vmul.f32 %v2917_v46, %v2204_v38  ;;  %v1828_v58 = vsel %vm431_vm0, %v1825_v60, %v1827_v39  ;;  %v452_v50 = vrot.slane %v347_v43, 1  ;;  %v963_v19 = vadd.f32 %v931_v18, %v829_v45 }
  0x66   : > { %v453_v56 = vrot.slane %v3191_v48, 1  ;;  %v596_v29 = vunpack.c.l.bf16 %v580_v11  ;;  %v3202_v26 = vmul.f32 %v2819_v2, %v3055_v9  ;;  %v2104_v36 = vrot.slane %v2001_v28, 2 }
  0x67   : > { %v2276_v44 = vadd.f32 %v2935_v54, %v2240_v53  ;;  %v895_v61 = vunpack.c.l.bf16 %v2472_v30  ;;  %v896_v12 = vunpack.c.h.bf16 %v2472_v30  ;;  %v1240_v41 = vadd.f32 %v1140_v57, %v963_v19  ;;  %v2501_v57 = vld [vmem:[%s2824_s26 + $0x44] sm:$0x1] }
  0x68   : > { %v454_v21 = vsel %vm431_vm0, %v452_v50, %v453_v56  ;;  %v625_v60 = vmul.f32 %v2819_v2, %v596_v29  ;;  %v731_v47 = vrot.slane %v3202_v26, 2  ;;  %v1285_v42 = vunpack.c.l.bf16 %v2518_v6 }
  0x69   : > { %v2308_v59 = vmax.f32 %v2276_v44, 0.0  ;;  %v552_v18 = vadd.f32 %v454_v21, %v274_v51  ;;  %v932_v49 = vmul.f32 %v2829_v3, %v895_v61  ;;  %v1037_v17 = vmul.f32 %v2834_v4, %v895_v61 }
  0x6a   : > { %v1517_v62 = vadd.f32 %v1417_v31, %v1240_v41  ;;  %v730_v63 = vrot.slane %v625_v60, 2  ;;  %v3215_v5 = vmul.f32 %v2834_v4, %v896_v12  ;;  %v3218_v55 = vmul.f32 %v2843_v13, %v896_v12  ;;  %v2568_v41 = vld [vmem:[%s2824_s26 + $0x50] sm:$0x1] }
  0x6b   : > { %v2340_v7 = vpack.c.bf16 %v2308_v59, %v2308_v59  ;;  %v1141_v40 = vrot.slane %v1037_v17, 1  ;;  %v3220_v10 = vunpack.c.l.bf16 %v2714_v34  ;;  %v1314_v25 = vmul.f32 %v2843_v13, %v1285_v42 }
  0x6c   : > { %v1651_v14 = vadd.f32 %v1619_v16, %v1517_v62  ;;  %v732_v15 = vsel %vm709_vm1, %v730_v63, %v731_v47  ;;  %v1142_v20 = vrot.slane %v3215_v5, 1  ;;  %v2105_v32 = vsel %vm709_vm1, %v2102_v52, %v2104_v36  ;;  %v302_v52 = vld [vmem:[%s2824_s26 + $0x38] sm:$0x1] }
  0x6d   : > { %2373 = vst.msk [vmem:[%s2970_s21 + $0x18] sm:$0xf] %vm2366_vm2, %v2340_v7  ;;  %v830_v8 = vadd.f32 %v732_v15, %v552_v18  ;;  %v1419_v16 = vrot.slane %v3218_v55, 2  ;;  %v3234_v35 = vunpack.c.h.bf16 %v2714_v34  ;;  %v1418_v39 = vrot.slane %v1314_v25, 2 }
  0x6e   : > { %v1928_v37 = vadd.f32 %v1828_v58, %v1651_v14  ;;  %v1143_v38 = vsel %vm431_vm0, %v1141_v40, %v1142_v20  ;;  %v1725_v28 = vmul.f32 %v2862_v24, %v3220_v10  ;;  %v1973_v45 = vunpack.c.l.bf16 %v2585_v27 }
  0x6f   : > { %v964_v43 = vadd.f32 %v932_v49, %v830_v8  ;;  %v1726_v11 = vmul.f32 %v2862_v24, %v3234_v35  ;;  %v3243_v22 = vmul.f32 %v2872_v33, %v3234_v35  ;;  %v1420_v30 = vsel %vm709_vm1, %v1418_v39, %v1419_v16  ;;  %v581_v8 = vld [vmem:[%s2824_s26 + $0x3c] sm:$0xe] }
  0x70   : > { %v2205_v51 = vadd.f32 %v2105_v32, %v1928_v37  ;;  %v1620_v53 = vmul.f32 %v2857_v23, %v3220_v10  ;;  %v1829_v31 = vrot.slane %v1725_v28, 1  ;;  %v2002_v19 = vmul.f32 %v2872_v33, %v1973_v45  ;;  %v208_v32 = vld [vmem:[%s2824_s26 + $0x3c] sm:$0xff]  }
  0x71   : > { %v1241_v58 = vadd.f32 %v1143_v38, %v964_v43  ;;  %v1830_v50 = vrot.slane %v1726_v11, 1  ;;  %v2107_v29 = vrot.slane %v3243_v22, 2  ;;  %v275_v36 = vmul.f32 %v2809_v0, %v3055_v9 }
  0x72   : > { %v2241_v44 = vmul.f32 %v2917_v46, %v2205_v51  ;;  %v318_v61 = vunpack.c.l.bf16 %v302_v52  ;;  %v1008_v6 = vunpack.c.l.bf16 %v2501_v57  ;;  %v2106_v34 = vrot.slane %v2002_v19, 2 }
  0x73   : > { %v1518_v21 = vadd.f32 %v1420_v30, %v1241_v58  ;;  %v1831_v60 = vsel %vm431_vm0, %v1829_v31, %v1830_v50  ;;  %v933_v59 = vmul.f32 %v2829_v3, %v896_v12  ;;  %v1696_v42 = vunpack.c.l.bf16 %v2568_v41 }
  0x74   : > { %v2277_v18 = vadd.f32 %v2935_v54, %v2241_v44  ;;  %v349_v49 = vmul.f32 %v2814_v1, %v318_v61  ;;  %v627_v17 = vmul.f32 %v2819_v2, %v318_v61  ;;  %v1039_v62 = vmul.f32 %v2834_v4, %v1008_v6 }
  0x75   : > { %v1652_v9 = vadd.f32 %v1620_v53, %v1518_v21  ;;  %v2108_v63 = vsel %vm709_vm1, %v2106_v34, %v2107_v29  ;;  %v1316_v5 = vmul.f32 %v2843_v13, %v1008_v6  ;;  %v1727_v25 = vmul.f32 %v2862_v24, %v1696_v42 }
  0x76   : > { %v2309_v7 = vmax.f32 %v2277_v18, 0.0  ;;  %v455_v12 = vrot.slane %v349_v49, 1  ;;  %v733_v40 = vrot.slane %v627_v17, 2  ;;  %v1144_v55 = vrot.slane %v1039_v62, 1  ;;  %v2586_v49 = vld [vmem:[%s2824_s26 + $0x54] sm:$0xe] }
  0x77   : > { %v1929_v14 = vadd.f32 %v1831_v60, %v1652_v9  ;;  %v1421_v15 = vrot.slane %v1316_v5, 2  ;;  %v2004_v27 = vmul.f32 %v2872_v33, %v1696_v42  ;;  %v1621_v39 = vmul.f32 %v2857_v23, %v3234_v35  ;;  %v2541_v60 = vld [vmem:[%s2824_s26 + $0x54] sm:$0xff]   ;;  %v3324_v5 = vld [vmem:[%s4438_s1 + $0x5] ss:$0 sm:$0xff] }
  0x78   : > { %v2341_v37 = vpack.c.bf16 %v2309_v7, %v2309_v7  ;;  %v456_v38 = vsel %vm431_vm0, %v453_v56, %v455_v12  ;;  %v734_v13 = vsel %vm709_vm1, %v731_v47, %v733_v40  ;;  %v1145_v11 = vsel %vm431_vm0, %v1142_v20, %v1144_v55 }
  0x79   : > { %v2206_v28 = vadd.f32 %v2108_v63, %v1929_v14  ;;  %v553_v43 = vadd.f32 %v456_v38, %v275_v36  ;;  %v1832_v45 = vrot.slane %v1727_v25, 1  ;;  %v1422_v52 = vsel %vm709_vm1, %v1419_v16, %v1421_v15 }
  0x7a   : > { %2374 = vst.msk [vmem:[%s2970_s21 + $0x1c] sm:$0xf] %vm2366_vm2, %v2341_v37  ;;  %v240_v48 = vunpack.c.l.bf16 %v208_v32  ;;  %v3282_v57 = vunpack.c.h.bf16 %v208_v32  ;;  %v597_v56 = vunpack.c.l.bf16 %v581_v8  ;;  %v2109_v23 = vrot.slane %v2004_v27, 2  ;;  %v3341_v37 = vld [vmem:[%s4438_s1 + $0x7] ss:$0 sm:$0xff] }
  0x7b   : > { %v2242_v26 = vmul.f32 %v2917_v46, %v2206_v28  ;;  %v831_v47 = vadd.f32 %v734_v13, %v553_v43  ;;  %v1833_v51 = vsel %vm431_vm0, %v1830_v50, %v1832_v45  ;;  %v934_v16 = vmul.f32 %v2829_v3, %v3220_v10  ;;  %v2502_v28 = vld [vmem:[%s2824_s26 + $0x50] sm:$0x1] }
  0x7c   : > { %v276_v30 = vmul.f32 %v2809_v0, %v240_v48  ;;  %v350_v20 = vmul.f32 %v2814_v1, %v240_v48  ;;  %v3290_v53 = vmul.f32 %v2814_v1, %v3282_v57  ;;  %v628_v19 = vmul.f32 %v2819_v2, %v597_v56  ;;  %v2519_v0 = vld [vmem:[%s2824_s26 + $0x48] sm:$0xe] }
  0x7d   : > { %v2278_v31 = vadd.f32 %v2935_v54, %v2242_v26  ;;  %v965_v58 = vadd.f32 %v933_v59, %v831_v47  ;;  %v3298_v50 = vmul.f32 %v2819_v2, %v3282_v57  ;;  %v1040_v1 = vmul.f32 %v2834_v4, %v3220_v10  ;;  %v3368_v47 = vld [vmem:[%s4438_s1] ss:$0 sm:$0xff] }
  0x7e   : > { %v457_v44 = vrot.slane %v350_v20, 1  ;;  %v458_v36 = vrot.slane %v3290_v53, 1  ;;  %v3306_v3 = vmul.f32 %v2834_v4, %v3234_v35  ;;  %v735_v41 = vrot.slane %v628_v19, 2 }
  0x7f   : > { %v2310_v61 = vmax.f32 %v2278_v31, 0.0  ;;  %v1242_v6 = vadd.f32 %v1145_v11, %v965_v58  ;;  %v736_v21 = vrot.slane %v3298_v50, 2  ;;  %v1146_v34 = vrot.slane %v1040_v1, 1  ;;  %v2569_v31 = vld [vmem:[%s2824_s26 + $0x5c] sm:$0x1] }
  0x80   : > { %v459_v2 = vsel %vm431_vm0, %v457_v44, %v458_v36  ;;  %v1147_v59 = vrot.slane %v3306_v3, 1  ;;  %v1286_v18 = vunpack.c.l.bf16 %v2519_v0  ;;  %v2110_v63 = vsel %vm709_vm1, %v2107_v29, %v2109_v23  ;;  %v3379_v44 = vld [vmem:[%s4438_s1 + $0x3] ss:$0 sm:$0xff] }
  0x81   : > { %v2342_v17 = vpack.c.bf16 %v2310_v61, %v2310_v61  ;;  %v1519_v62 = vadd.f32 %v1422_v52, %v1242_v6  ;;  %v554_v4 = vadd.f32 %v459_v2, %v276_v30  ;;  %v737_v9 = vsel %vm709_vm1, %v735_v41, %v736_v21  ;;  %v3359_v52 = vld [vmem:[%s4438_s1 + $0x8] ss:$0 sm:$0xff]  ;;  %v3392_v6 = vld [vmem:[%s4438_s1 + $0x2] ss:$0 sm:$0xff] }
  0x82   : > { %v1317_v42 = vmul.f32 %v3324_v5, %v1286_v18  ;;  %v3329_v7 = vmul.f32 %v3324_v5, %v3234_v35  ;;  %v1585_v12 = vunpack.c.l.bf16 %v2541_v60  ;;  %v1586_v55 = vunpack.c.h.bf16 %v2541_v60  ;;  %v3398_v60 = vld [vmem:[%s4438_s1 + $0x4] ss:$0 sm:$0xff] }
  0x83   : > { %2375 = vst.msk [vmem:[%s2970_s21 + $0x20] sm:$0xf] %vm2366_vm2, %v2342_v17  ;;  %v1653_v40 = vadd.f32 %v1621_v39, %v1519_v62  ;;  %v832_v22 = vadd.f32 %v737_v9, %v554_v4  ;;  %v1974_v29 = vunpack.c.l.bf16 %v2586_v49  ;;  %v1148_v14 = vsel %vm431_vm0, %v1146_v34, %v1147_v59  ;;  %v303_v39 = vld [vmem:[%s2824_s26 + $0x44] sm:$0x1] }
  0x84   : > { %v1423_v15 = vrot.slane %v1317_v42, 2  ;;  %v1424_v25 = vrot.slane %v3329_v7, 2  ;;  %v1728_v27 = vmul.f32 %v2862_v24, %v1585_v12  ;;  %v3344_v38 = vmul.f32 %v3341_v37, %v1586_v55  ;;  %v3353_v24 = vld [vmem:[%s4438_s1 + $0x6] ss:$0 sm:$0xff] }
  0x85   : > { %v1930_v32 = vadd.f32 %v1833_v51, %v1653_v40  ;;  %v966_v8 = vadd.f32 %v934_v16, %v832_v22  ;;  %v2005_v13 = vmul.f32 %v2872_v33, %v1974_v29  ;;  %v1622_v11 = vmul.f32 %v3353_v24, %v1585_v12 }
  0x86   : > { %v1425_v43 = vsel %vm709_vm1, %v1423_v15, %v1424_v25  ;;  %v1834_v45 = vrot.slane %v1728_v27, 1  ;;  %v3362_v33 = vmul.f32 %v3359_v52, %v1586_v55  ;;  %v1835_v26 = vrot.slane %v3344_v38, 1  ;;  %v582_v27 = vld [vmem:[%s2824_s26 + $0x48] sm:$0xe] }
  0x87   : > { %v2207_v48 = vadd.f32 %v2110_v63, %v1930_v32  ;;  %v1243_v56 = vadd.f32 %v1148_v14, %v966_v8  ;;  %v277_v51 = vmul.f32 %v3368_v47, %v3282_v57  ;;  %v2111_v23 = vrot.slane %v2005_v13, 2  ;;  %v3386_v57 = vld [vmem:[%s4438_s1 + $0x1] ss:$0 sm:$0xff] }
  0x88   : > { %v2112_v30 = vrot.slane %v3362_v33, 2  ;;  %v319_v20 = vunpack.c.l.bf16 %v303_v39  ;;  %v1009_v16 = vunpack.c.l.bf16 %v2502_v28  ;;  %v1836_v0 = vsel %vm431_vm0, %v1834_v45, %v1835_v26 }
  0x89   : > { %v2243_v58 = vmul.f32 %v2917_v46, %v2207_v48  ;;  %v1520_v19 = vadd.f32 %v1425_v43, %v1243_v56  ;;  %v935_v1 = vmul.f32 %v3379_v44, %v3234_v35  ;;  %v3402_v34 = vmul.f32 %v3353_v24, %v1586_v55 }
  0x8a   : > { %v352_v61 = vmul.f32 %v3386_v57, %v319_v20  ;;  %v630_v41 = vmul.f32 %v3392_v6, %v319_v20  ;;  %v1042_v2 = vmul.f32 %v3398_v60, %v1009_v16  ;;  %v1319_v17 = vmul.f32 %v3324_v5, %v1009_v16 }
  0x8b   : > { %v2279_v18 = vadd.f32 %v2935_v54, %v2243_v58  ;;  %v1654_v49 = vadd.f32 %v1622_v11, %v1520_v19  ;;  %v1697_v62 = vunpack.c.l.bf16 %v2569_v31  ;;  %v2113_v4 = vsel %vm709_vm1, %v2111_v23, %v2112_v30 }
  0x8c   : > { %v460_v9 = vrot.slane %v352_v61, 1  ;;  %v738_v63 = vrot.slane %v630_v41, 2  ;;  %v1149_v42 = vrot.slane %v1042_v2, 1  ;;  %v1426_v40 = vrot.slane %v1319_v17, 2 }
  0x8d   : > { %v2311_v7 = vmax.f32 %v2279_v18, 0.0  ;;  %v1931_v12 = vadd.f32 %v1836_v0, %v1654_v49  ;;  %v1730_v22 = vmul.f32 %v3341_v37, %v1697_v62  ;;  %v2007_v14 = vmul.f32 %v3359_v52, %v1697_v62  ;;  %v2715_v18 = vld [vmem:[%s2824_s26 + $0x60] sm:$0xff]  }
  0x8e   : > { %v461_v55 = vsel %vm431_vm0, %v458_v36, %v460_v9  ;;  %v739_v29 = vsel %vm709_vm1, %v736_v21, %v738_v63  ;;  %v278_v15 = vmul.f32 %v3368_v47, %v3220_v10  ;;  %v1150_v53 = vsel %vm431_vm0, %v1147_v59, %v1149_v42  ;;  %v2476_v59 = vld [vmem:[%s2824_s26 + $0x54] sm:$0xff]   ;;  %v2587_v9 = vld [vmem:[%s2824_s26 + $0x60] sm:$0xe] }
  0x8f   : > { %v2343_v32 = vpack.c.bf16 %v2311_v7, %v2311_v7  ;;  %v2208_v8 = vadd.f32 %v2113_v4, %v1931_v12  ;;  %v555_v38 = vadd.f32 %v461_v55, %v277_v51  ;;  %v1427_v36 = vsel %vm709_vm1, %v1424_v25, %v1426_v40  ;;  %v2520_v25 = vld [vmem:[%s2824_s26 + $0x54] sm:$0xe] }
  0x90   : > { %v1837_v50 = vrot.slane %v1730_v22, 1  ;;  %v353_v21 = vmul.f32 %v3386_v57, %v3220_v10  ;;  %v3428_v13 = vmul.f32 %v3386_v57, %v3234_v35  ;;  %v598_v43 = vunpack.c.l.bf16 %v582_v27 }
  0x91   : > { %2376 = vst.msk [vmem:[%s2970_s21 + $0x24] sm:$0xf] %vm2366_vm2, %v2343_v32  ;;  %v2244_v39 = vmul.f32 %v2917_v46, %v2208_v8  ;;  %v833_v28 = vadd.f32 %v739_v29, %v555_v38  ;;  %v3435_v3 = vmul.f32 %v3392_v6, %v3234_v35  ;;  %v2114_v45 = vrot.slane %v2007_v14, 2  ;;  %v304_v8 = vld [vmem:[%s2824_s26 + $0x50] sm:$0x1] }
  0x92   : > { %v1838_v11 = vsel %vm431_vm0, %v1835_v26, %v1837_v50  ;;  %v462_v10 = vrot.slane %v353_v21, 1  ;;  %v463_v48 = vrot.slane %v3428_v13, 1  ;;  %v631_v46 = vmul.f32 %v3392_v6, %v598_v43 }
  0x93   : > { %v2280_v56 = vadd.f32 %v2935_v54, %v2244_v39  ;;  %v967_v51 = vadd.f32 %v935_v1, %v833_v28  ;;  %v741_v23 = vrot.slane %v3435_v3, 2  ;;  %v899_v16 = vunpack.c.l.bf16 %v2476_v59  ;;  %v2503_v39 = vld [vmem:[%s2824_s26 + $0x5c] sm:$0x1] }
  0x94   : > { %v464_v20 = vsel %vm431_vm0, %v462_v10, %v463_v48  ;;  %v900_v31 = vunpack.c.h.bf16 %v2476_v59  ;;  %v1287_v26 = vunpack.c.l.bf16 %v2520_v25  ;;  %v740_v61 = vrot.slane %v631_v46, 2 }
  0x95   : > { %v2312_v58 = vmax.f32 %v2280_v56, 0.0  ;;  %v1244_v19 = vadd.f32 %v1150_v53, %v967_v51  ;;  %v556_v0 = vadd.f32 %v464_v20, %v278_v15  ;;  %v936_v54 = vmul.f32 %v3379_v44, %v899_v16  ;;  %v3498_v51 = vld [vmem:[%s4439_s2] ss:$0 sm:$0xff] }
  0x96   : > { %v1043_v1 = vmul.f32 %v3398_v60, %v899_v16  ;;  %v3450_v41 = vmul.f32 %v3398_v60, %v900_v31  ;;  %v1320_v2 = vmul.f32 %v3324_v5, %v1287_v26  ;;  %v742_v62 = vsel %vm709_vm1, %v740_v61, %v741_v23 }
  0x97   : > { %v2344_v49 = vpack.c.bf16 %v2312_v58, %v2312_v58  ;;  %v1521_v17 = vadd.f32 %v1427_v36, %v1244_v19  ;;  %v3458_v4 = vmul.f32 %v3324_v5, %v900_v31  ;;  %v834_v63 = vadd.f32 %v742_v62, %v556_v0  ;;  %v2570_v58 = vld [vmem:[%s2824_s26 + $0x68] sm:$0x1] }
  0x98   : > { %v1151_v42 = vrot.slane %v1043_v1, 1  ;;  %v1152_v7 = vrot.slane %v3450_v41, 1  ;;  %v1428_v12 = vrot.slane %v1320_v2, 2  ;;  %v2115_v22 = vsel %vm709_vm1, %v2112_v30, %v2114_v45  ;;  %v3513_v1 = vld [vmem:[%s4440_s3] ss:$0 sm:$0xff] }
  0x99   : > { %2377 = vst.msk [vmem:[%s2970_s21 + $0x28] sm:$0xf] %vm2366_vm2, %v2344_v49  ;;  %v1655_v40 = vadd.f32 %v3402_v34, %v1521_v17  ;;  %v1429_v55 = vrot.slane %v3458_v4, 2  ;;  %v3469_v29 = vunpack.c.l.bf16 %v2715_v18  ;;  %v968_v14 = vadd.f32 %v936_v54, %v834_v63 }
  0x9a   : > { %v1153_v15 = vsel %vm431_vm0, %v1151_v42, %v1152_v7  ;;  %v3474_v27 = vunpack.c.h.bf16 %v2715_v18  ;;  %v1975_v32 = vunpack.c.l.bf16 %v2587_v9  ;;  %v279_v59 = vmul.f32 %v3368_v47, %v3234_v35  ;;  %v212_v35 = vld [vmem:[%s2824_s26 + $0x54] sm:$0xff]  }
  0x9b   : > { %v1932_v38 = vadd.f32 %v1838_v11, %v1655_v40  ;;  %v1430_v33 = vsel %vm709_vm1, %v1428_v12, %v1429_v55  ;;  %v1624_v30 = vmul.f32 %v3353_v24, %v3469_v29  ;;  %v1731_v34 = vmul.f32 %v3341_v37, %v3469_v29 }
  0x9c   : > { %v1245_v53 = vadd.f32 %v1153_v15, %v968_v14  ;;  %v1732_v36 = vmul.f32 %v3341_v37, %v3474_v27  ;;  %v2008_v50 = vmul.f32 %v3359_v52, %v1975_v32  ;;  %v3489_v21 = vmul.f32 %v3359_v52, %v3474_v27 }
  0x9d   : > { %v2209_v28 = vadd.f32 %v2115_v22, %v1932_v38  ;;  %v1839_v43 = vrot.slane %v1731_v34, 1  ;;  %v320_v25 = vunpack.c.l.bf16 %v304_v8  ;;  %v1010_v26 = vunpack.c.l.bf16 %v2503_v39 }
  0x9e   : > { %v1522_v11 = vadd.f32 %v1430_v33, %v1245_v53  ;;  %v1840_v45 = vrot.slane %v1732_v36, 1  ;;  %v2116_v10 = vrot.slane %v2008_v50, 2  ;;  %v2117_v56 = vrot.slane %v3489_v21, 2 }
  0x9f   : > { %v2245_v46 = vmul.f32 %v3498_v51, %v2209_v28  ;;  %v355_v20 = vmul.f32 %v3386_v57, %v320_v25  ;;  %v633_v16 = vmul.f32 %v3392_v6, %v320_v25  ;;  %v937_v54 = vmul.f32 %v3379_v44, %v900_v31 }
  0xa0   : > { %v1656_v19 = vadd.f32 %v1624_v30, %v1522_v11  ;;  %v1841_v0 = vsel %vm431_vm0, %v1839_v43, %v1840_v45  ;;  %v2118_v61 = vsel %vm709_vm1, %v2116_v10, %v2117_v56  ;;  %v1045_v17 = vmul.f32 %v3398_v60, %v1010_v26 }
  0xa1   : > { %v2281_v2 = vadd.f32 %v3513_v1, %v2245_v46  ;;  %v465_v18 = vrot.slane %v355_v20, 1  ;;  %v743_v49 = vrot.slane %v633_v16, 2  ;;  %v1322_v9 = vmul.f32 %v3324_v5, %v1010_v26  ;;  %v2521_v26 = vld [vmem:[%s2824_s26 + $0x60] sm:$0xe] }
  0xa2   : > { %v1933_v62 = vadd.f32 %v1841_v0, %v1656_v19  ;;  %v1698_v63 = vunpack.c.l.bf16 %v2570_v58  ;;  %v244_v42 = vunpack.c.l.bf16 %v212_v35  ;;  %v1154_v22 = vrot.slane %v1045_v17, 1  ;;  %v2545_v0 = vld [vmem:[%s2824_s26 + $0x6c] sm:$0xff]  }
  0xa3   : > { %v2313_v12 = vmax.f32 %v2281_v2, 0.0  ;;  %v466_v31 = vsel %vm431_vm0, %v463_v48, %v465_v18  ;;  %v744_v40 = vsel %vm709_vm1, %v741_v23, %v743_v49  ;;  %v1431_v32 = vrot.slane %v1322_v9, 2  ;;  %v583_v48 = vld [vmem:[%s2824_s26 + $0x54] sm:$0xe] }
  0xa4   : > { %v2210_v14 = vadd.f32 %v2118_v61, %v1933_v62  ;;  %v557_v15 = vadd.f32 %v466_v31, %v279_v59  ;;  %v1733_v8 = vmul.f32 %v3341_v37, %v1698_v63  ;;  %v1625_v33 = vmul.f32 %v3353_v24, %v3474_v27 }
  0xa5   : > { %v2345_v38 = vpack.c.bf16 %v2313_v12, %v2313_v12  ;;  %v2010_v30 = vmul.f32 %v3359_v52, %v1698_v63  ;;  %v3528_v13 = vunpack.c.h.bf16 %v212_v35  ;;  %v1155_v23 = vsel %vm431_vm0, %v1152_v7, %v1154_v22 }
  0xa6   : > { %v2246_v3 = vmul.f32 %v3498_v51, %v2210_v14  ;;  %v835_v34 = vadd.f32 %v744_v40, %v557_v15  ;;  %v1842_v53 = vrot.slane %v1733_v8, 1  ;;  %v1432_v36 = vsel %vm709_vm1, %v1429_v55, %v1431_v32  ;;  %v2588_v40 = vld [vmem:[%s2824_s26 + $0x6c] sm:$0xe] }
  0xa7   : > { %2378 = vst.msk [vmem:[%s2970_s21 + $0x2c] sm:$0xf] %vm2366_vm2, %v2345_v38  ;;  %v2119_v50 = vrot.slane %v2010_v30, 2  ;;  %v356_v39 = vmul.f32 %v3386_v57, %v244_v42  ;;  %v3543_v28 = vmul.f32 %v3386_v57, %v3528_v13  ;;  %v280_v7 = vmul.f32 %v3368_v47, %v244_v42 }
  0xa8   : > { %v2282_v43 = vadd.f32 %v3513_v1, %v2246_v3  ;;  %v969_v41 = vadd.f32 %v937_v54, %v835_v34  ;;  %v599_v59 = vunpack.c.l.bf16 %v583_v48  ;;  %v1843_v25 = vsel %vm431_vm0, %v1840_v45, %v1842_v53  ;;  %v305_v34 = vld [vmem:[%s2824_s26 + $0x5c] sm:$0x1] }
  0xa9   : > { %v467_v4 = vrot.slane %v356_v39, 1  ;;  %v468_v55 = vrot.slane %v3543_v28, 1  ;;  %v3551_v11 = vmul.f32 %v3392_v6, %v3528_v13  ;;  %v938_v16 = vmul.f32 %v3379_v44, %v3469_v29  ;;  %v2504_v39 = vld [vmem:[%s2824_s26 + $0x68] sm:$0x1] }
  0xaa   : > { %v2314_v10 = vmax.f32 %v2282_v43, 0.0  ;;  %v1246_v46 = vadd.f32 %v1155_v23, %v969_v41  ;;  %v634_v20 = vmul.f32 %v3392_v6, %v599_v59  ;;  %v1046_v35 = vmul.f32 %v3398_v60, %v3469_v29 }
  0xab   : > { %v469_v45 = vsel %vm431_vm0, %v467_v4, %v468_v55  ;;  %v746_v58 = vrot.slane %v3551_v11, 2  ;;  %v3565_v19 = vmul.f32 %v3398_v60, %v3474_v27  ;;  %v1288_v62 = vunpack.c.l.bf16 %v2521_v26 }
  0xac   : > { %v2346_v61 = vpack.c.bf16 %v2314_v10, %v2314_v10  ;;  %v1523_v54 = vadd.f32 %v1432_v36, %v1246_v46  ;;  %v558_v2 = vadd.f32 %v469_v45, %v280_v7  ;;  %v745_v18 = vrot.slane %v634_v20, 2 }
  0xad   : > { %v1156_v49 = vrot.slane %v1046_v35, 1  ;;  %v1157_v17 = vrot.slane %v3565_v19, 1  ;;  %v3571_v9 = vmul.f32 %v3324_v5, %v3474_v27  ;;  %v1589_v12 = vunpack.c.l.bf16 %v2545_v0 }
  0xae   : > { %2379 = vst.msk [vmem:[%s2970_s21 + $0x30] sm:$0xf] %vm2366_vm2, %v2346_v61  ;;  %v1657_v63 = vadd.f32 %v1625_v33, %v1523_v54  ;;  %v747_v42 = vsel %vm709_vm1, %v745_v18, %v746_v58  ;;  %v1590_v31 = vunpack.c.h.bf16 %v2545_v0  ;;  %v2120_v22 = vsel %vm709_vm1, %v2117_v56, %v2119_v50 }
  0xaf   : > { %v836_v14 = vadd.f32 %v747_v42, %v558_v2  ;;  %v1323_v15 = vmul.f32 %v3324_v5, %v1288_v62  ;;  %v1434_v32 = vrot.slane %v3571_v9, 2  ;;  %v1158_v38 = vsel %vm431_vm0, %v1156_v49, %v1157_v17 }
  0xb0   : > { %v1934_v8 = vadd.f32 %v1843_v25, %v1657_v63  ;;  %v1734_v33 = vmul.f32 %v3341_v37, %v1589_v12  ;;  %v1735_v30 = vmul.f32 %v3341_v37, %v1590_v31  ;;  %v1976_v3 = vunpack.c.l.bf16 %v2588_v40  ;;  %v2571_v25 = vld [vmem:[%s2824_s26 + $0x74] sm:$0x1] }
  0xb1   : > { %v970_v48 = vadd.f32 %v938_v16, %v836_v14  ;;  %v1433_v21 = vrot.slane %v1323_v15, 2  ;;  %v3590_v56 = vmul.f32 %v3359_v52, %v1590_v31  ;;  %v1626_v53 = vmul.f32 %v3353_v24, %v1589_v12 }
  0xb2   : > { %v2211_v23 = vadd.f32 %v2120_v22, %v1934_v8  ;;  %v1844_v36 = vrot.slane %v1734_v33, 1  ;;  %v1845_v50 = vrot.slane %v1735_v30, 1  ;;  %v2011_v7 = vmul.f32 %v3359_v52, %v1976_v3 }
  0xb3   : > { %v1247_v43 = vadd.f32 %v1158_v38, %v970_v48  ;;  %v1435_v41 = vsel %vm709_vm1, %v1433_v21, %v1434_v32  ;;  %v2122_v59 = vrot.slane %v3590_v56, 2  ;;  %v281_v46 = vmul.f32 %v3368_v47, %v3528_v13  ;;  %v584_v48 = vld [vmem:[%s2824_s26 + $0x60] sm:$0xe] }
  0xb4   : > { %v2247_v4 = vmul.f32 %v3498_v51, %v2211_v23  ;;  %v1846_v10 = vsel %vm431_vm0, %v1844_v36, %v1845_v50  ;;  %v321_v20 = vunpack.c.l.bf16 %v305_v34  ;;  %v2121_v26 = vrot.slane %v2011_v7, 2 }
  0xb5   : > { %v1524_v16 = vadd.f32 %v1435_v41, %v1247_v43  ;;  %v939_v45 = vmul.f32 %v3379_v44, %v3474_v27  ;;  %v1011_v35 = vunpack.c.l.bf16 %v2504_v39  ;;  %v1699_v2 = vunpack.c.l.bf16 %v2571_v25 }
  0xb6   : > { %v2283_v0 = vadd.f32 %v3513_v1, %v2247_v4  ;;  %v358_v61 = vmul.f32 %v3386_v57, %v321_v20  ;;  %v636_v54 = vmul.f32 %v3392_v6, %v321_v20  ;;  %v2123_v13 = vsel %vm709_vm1, %v2121_v26, %v2122_v59 }
  0xb7   : > { %v1658_v18 = vadd.f32 %v1626_v53, %v1524_v16  ;;  %v1048_v49 = vmul.f32 %v3398_v60, %v1011_v35  ;;  %v1325_v62 = vmul.f32 %v3324_v5, %v1011_v35  ;;  %v1736_v12 = vmul.f32 %v3341_v37, %v1699_v2  ;;  %v2480_v53 = vld [vmem:[%s2824_s26 + $0x6c] sm:$0xff]  }
  0xb8   : > { %v2315_v9 = vmax.f32 %v2283_v0, 0.0  ;;  %v470_v63 = vrot.slane %v358_v61, 1  ;;  %v748_v42 = vrot.slane %v636_v54, 2  ;;  %v2013_v15 = vmul.f32 %v3359_v52, %v1699_v2  ;;  %v2716_v61 = vld [vmem:[%s2824_s26 + $0x78] sm:$0xff]  }
  0xb9   : > { %v1935_v40 = vadd.f32 %v1846_v10, %v1658_v18  ;;  %v1159_v22 = vrot.slane %v1048_v49, 1  ;;  %v1436_v14 = vrot.slane %v1325_v62, 2  ;;  %v1847_v30 = vrot.slane %v1736_v12, 1  ;;  %v2522_v10 = vld [vmem:[%s2824_s26 + $0x6c] sm:$0xe] }
  0xba   : > { %v2347_v8 = vpack.c.bf16 %v2315_v9, %v2315_v9  ;;  %v471_v38 = vsel %vm431_vm0, %v468_v55, %v470_v63  ;;  %v749_v33 = vsel %vm709_vm1, %v746_v58, %v748_v42  ;;  %v1627_v23 = vmul.f32 %v3353_v24, %v1590_v31  ;;  %v2589_v49 = vld [vmem:[%s2824_s26 + $0x78] sm:$0xe] }
  0xbb   : > { %v2212_v21 = vadd.f32 %v2123_v13, %v1935_v40  ;;  %v559_v3 = vadd.f32 %v471_v38, %v281_v46  ;;  %v1160_v34 = vsel %vm431_vm0, %v1157_v17, %v1159_v22  ;;  %v1437_v28 = vsel %vm709_vm1, %v1434_v32, %v1436_v14 }
  0xbc   : > { %2380 = vst.msk [vmem:[%s2970_s21 + $0x34] sm:$0xf] %vm2366_vm2, %v2347_v8  ;;  %v1848_v55 = vsel %vm431_vm0, %v1845_v50, %v1847_v30  ;;  %v2124_v11 = vrot.slane %v2013_v15, 2  ;;  %v359_v58 = vmul.f32 %v3386_v57, %v3469_v29  ;;  %v3636_v19 = vmul.f32 %v3386_v57, %v3474_v27 }
  0xbd   : > { %v2248_v36 = vmul.f32 %v3498_v51, %v2212_v21  ;;  %v837_v39 = vadd.f32 %v749_v33, %v559_v3  ;;  %v600_v17 = vunpack.c.l.bf16 %v584_v48  ;;  %v282_v31 = vmul.f32 %v3368_v47, %v3469_v29 }
  0xbe   : > { %v472_v43 = vrot.slane %v359_v58, 1  ;;  %v3642_v32 = vmul.f32 %v3392_v6, %v3474_v27  ;;  %v903_v50 = vunpack.c.l.bf16 %v2480_v53  ;;  %v473_v25 = vrot.slane %v3636_v19, 1  ;;  %v306_v58 = vld [vmem:[%s2824_s26 + $0x68] sm:$0x1] }
  0xbf   : > { %v2284_v41 = vadd.f32 %v3513_v1, %v2248_v36  ;;  %v971_v7 = vadd.f32 %v939_v45, %v837_v39  ;;  %v637_v4 = vmul.f32 %v3392_v6, %v600_v17  ;;  %v904_v20 = vunpack.c.h.bf16 %v2480_v53 }
  0xc0   : > { %v751_v46 = vrot.slane %v3642_v32, 2  ;;  %v940_v29 = vmul.f32 %v3379_v44, %v903_v50  ;;  %v1049_v16 = vmul.f32 %v3398_v60, %v903_v50  ;;  %v474_v0 = vsel %vm431_vm0, %v472_v43, %v473_v25 }
  0xc1   : > { %v2316_v26 = vmax.f32 %v2284_v41, 0.0  ;;  %v1248_v35 = vadd.f32 %v1160_v34, %v971_v7  ;;  %v750_v45 = vrot.slane %v637_v4, 2  ;;  %v560_v54 = vadd.f32 %v474_v0, %v282_v31  ;;  %v216_v0 = vld [vmem:[%s2824_s26 + $0x6c] sm:$0xff]  }
  0xc2   : > { %v3656_v2 = vmul.f32 %v3398_v60, %v904_v20  ;;  %v1161_v18 = vrot.slane %v1049_v16, 1  ;;  %v1289_v13 = vunpack.c.l.bf16 %v2522_v10  ;;  %v3663_v42 = vmul.f32 %v3324_v5, %v904_v20  ;;  %v2572_v10 = vld [vmem:[%s2824_s26 + $0x80] sm:$0x1] }
  0xc3   : > { %v2348_v62 = vpack.c.bf16 %v2316_v26, %v2316_v26  ;;  %v1525_v9 = vadd.f32 %v1437_v28, %v1248_v35  ;;  %v752_v63 = vsel %vm709_vm1, %v750_v45, %v751_v46  ;;  %v3667_v14 = vunpack.c.l.bf16 %v2716_v61 }
  0xc4   : > { %v838_v12 = vadd.f32 %v752_v63, %v560_v54  ;;  %v1162_v40 = vrot.slane %v3656_v2, 1  ;;  %v1326_v22 = vmul.f32 %v3324_v5, %v1289_v13  ;;  %v1439_v8 = vrot.slane %v3663_v42, 2 }
  0xc5   : > { %2381 = vst.msk [vmem:[%s2970_s21 + $0x38] sm:$0xf] %vm2366_vm2, %v2348_v62  ;;  %v1659_v15 = vadd.f32 %v1627_v23, %v1525_v9  ;;  %v3672_v38 = vunpack.c.h.bf16 %v2716_v61  ;;  %v1977_v33 = vunpack.c.l.bf16 %v2589_v49  ;;  %v2125_v30 = vsel %vm709_vm1, %v2122_v59, %v2124_v11  ;;  %v2505_v11 = vld [vmem:[%s2824_s26 + $0x74] sm:$0x1] }
  0xc6   : > { %v972_v48 = vadd.f32 %v940_v29, %v838_v12  ;;  %v1163_v21 = vsel %vm431_vm0, %v1161_v18, %v1162_v40  ;;  %v1438_v3 = vrot.slane %v1326_v22, 2  ;;  %v1737_v53 = vmul.f32 %v3341_v37, %v3667_v14 }
  0xc7   : > { %v1936_v34 = vadd.f32 %v1848_v55, %v1659_v15  ;;  %v1738_v23 = vmul.f32 %v3341_v37, %v3672_v38  ;;  %v2014_v28 = vmul.f32 %v3359_v52, %v1977_v33  ;;  %v1628_v59 = vmul.f32 %v3353_v24, %v3667_v14 }
  0xc8   : > { %v1249_v36 = vadd.f32 %v1163_v21, %v972_v48  ;;  %v1440_v56 = vsel %vm709_vm1, %v1438_v3, %v1439_v8  ;;  %v3689_v55 = vmul.f32 %v3359_v52, %v3672_v38  ;;  %v1849_v17 = vrot.slane %v1737_v53, 1  ;;  %v585_v3 = vld [vmem:[%s2824_s26 + $0x6c] sm:$0xe] }
  0xc9   : > { %v2213_v39 = vadd.f32 %v2125_v30, %v1936_v34  ;;  %v1850_v31 = vrot.slane %v1738_v23, 1  ;;  %v2126_v43 = vrot.slane %v2014_v28, 2  ;;  %v283_v7 = vmul.f32 %v3368_v47, %v3474_v27 }
  0xca   : > { %v1526_v50 = vadd.f32 %v1440_v56, %v1249_v36  ;;  %v2127_v41 = vrot.slane %v3689_v55, 2  ;;  %v322_v4 = vunpack.c.l.bf16 %v306_v58  ;;  %v941_v26 = vmul.f32 %v3379_v44, %v904_v20 }
  0xcb   : > { %v2249_v29 = vmul.f32 %v3498_v51, %v2213_v39  ;;  %v1851_v16 = vsel %vm431_vm0, %v1849_v17, %v1850_v31  ;;  %v1012_v35 = vunpack.c.l.bf16 %v2505_v11  ;;  %v1700_v49 = vunpack.c.l.bf16 %v2572_v10 }
  0xcc   : > { %v1660_v45 = vadd.f32 %v1628_v59, %v1526_v50  ;;  %v2128_v61 = vsel %vm709_vm1, %v2126_v43, %v2127_v41  ;;  %v361_v54 = vmul.f32 %v3386_v57, %v322_v4  ;;  %v639_v2 = vmul.f32 %v3392_v6, %v322_v4  ;;  %v2523_v4 = vld [vmem:[%s2824_s26 + $0x78] sm:$0xe] }
  0xcd   : > { %v2285_v27 = vadd.f32 %v3513_v1, %v2249_v29  ;;  %v1051_v18 = vmul.f32 %v3398_v60, %v1012_v35  ;;  %v1328_v13 = vmul.f32 %v3324_v5, %v1012_v35  ;;  %v248_v63 = vunpack.c.l.bf16 %v216_v0 }
  0xce   : > { %v1937_v20 = vadd.f32 %v1851_v16, %v1660_v45  ;;  %v475_v62 = vrot.slane %v361_v54, 1  ;;  %v753_v9 = vrot.slane %v639_v2, 2  ;;  %v1739_v15 = vmul.f32 %v3341_v37, %v1700_v49 }
  0xcf   : > { %v2317_v42 = vmax.f32 %v2285_v27, 0.0  ;;  %v1164_v12 = vrot.slane %v1051_v18, 1  ;;  %v1441_v22 = vrot.slane %v1328_v13, 2  ;;  %v2016_v21 = vmul.f32 %v3359_v52, %v1700_v49  ;;  %v2590_v13 = vld [vmem:[%s2824_s26 + $0x84] sm:$0xe] }
  0xd0   : > { %v2214_v33 = vadd.f32 %v2128_v61, %v1937_v20  ;;  %v476_v30 = vsel %vm431_vm0, %v473_v25, %v475_v62  ;;  %v754_v48 = vsel %vm709_vm1, %v751_v46, %v753_v9  ;;  %v1629_v28 = vmul.f32 %v3353_v24, %v3672_v38  ;;  %v2549_v61 = vld [vmem:[%s2824_s26 + $0x84] sm:$0xff]  }
  0xd1   : > { %v2349_v34 = vpack.c.bf16 %v2317_v42, %v2317_v42  ;;  %v561_v53 = vadd.f32 %v476_v30, %v283_v7  ;;  %v1165_v23 = vsel %vm431_vm0, %v1162_v40, %v1164_v12  ;;  %v1442_v19 = vsel %vm709_vm1, %v1439_v8, %v1441_v22 }
  0xd2   : > { %v2250_v58 = vmul.f32 %v3498_v51, %v2214_v33  ;;  %v1852_v25 = vrot.slane %v1739_v15, 1  ;;  %v249_v36 = vunpack.c.h.bf16 %v216_v0  ;;  %v2129_v46 = vrot.slane %v2016_v21, 2 }
  0xd3   : > { %2382 = vst.msk [vmem:[%s2970_s21 + $0x3c] sm:$0xf] %vm2366_vm2, %v2349_v34  ;;  %v839_v32 = vadd.f32 %v754_v48, %v561_v53  ;;  %v362_v56 = vmul.f32 %v3386_v57, %v248_v63  ;;  %v601_v59 = vunpack.c.l.bf16 %v585_v3  ;;  %v284_v39 = vmul.f32 %v3368_v47, %v248_v63 }
  0xd4   : > { %v2286_v11 = vadd.f32 %v3513_v1, %v2250_v58  ;;  %v1853_v40 = vsel %vm431_vm0, %v1850_v31, %v1852_v25  ;;  %v3729_v17 = vmul.f32 %v3386_v57, %v249_v36  ;;  %v3733_v7 = vmul.f32 %v3392_v6, %v249_v36 }
  0xd5   : > { %v973_v8 = vadd.f32 %v941_v26, %v839_v32  ;;  %v477_v43 = vrot.slane %v362_v56, 1  ;;  %v640_v50 = vmul.f32 %v3392_v6, %v601_v59  ;;  %v942_v31 = vmul.f32 %v3379_v44, %v3667_v14  ;;  %v2506_v32 = vld [vmem:[%s2824_s26 + $0x80] sm:$0x1] }
  0xd6   : > { %v2318_v10 = vmax.f32 %v2286_v11, 0.0  ;;  %v478_v29 = vrot.slane %v3729_v17, 1  ;;  %v1052_v16 = vmul.f32 %v3398_v60, %v3667_v14  ;;  %v756_v0 = vrot.slane %v3733_v7, 2 }
  0xd7   : > { %v1250_v35 = vadd.f32 %v1165_v23, %v973_v8  ;;  %v755_v26 = vrot.slane %v640_v50, 2  ;;  %v3744_v45 = vmul.f32 %v3398_v60, %v3672_v38  ;;  %v1290_v18 = vunpack.c.l.bf16 %v2523_v4 }
  0xd8   : > { %v2350_v54 = vpack.c.bf16 %v2318_v10, %v2318_v10  ;;  %v479_v2 = vsel %vm431_vm0, %v477_v43, %v478_v29  ;;  %v1166_v27 = vrot.slane %v1052_v16, 1  ;;  %v1330_v42 = vmul.f32 %v3324_v5, %v3672_v38  ;;  %v2573_v10 = vld [vmem:[%s2824_s26 + $0x8c] sm:$0x1] }
  0xd9   : > { %v1527_v49 = vadd.f32 %v1442_v19, %v1250_v35  ;;  %v562_v20 = vadd.f32 %v479_v2, %v284_v39  ;;  %v757_v62 = vsel %vm709_vm1, %v755_v26, %v756_v0  ;;  %v1167_v9 = vrot.slane %v3744_v45, 1 }
  0xda   : > { %2383 = vst.msk [vmem:[%s2970_s21 + $0x40] sm:$0xf] %vm2366_vm2, %v2350_v54  ;;  %v1329_v63 = vmul.f32 %v3324_v5, %v1290_v18  ;;  %v1593_v12 = vunpack.c.l.bf16 %v2549_v61  ;;  %v1594_v22 = vunpack.c.h.bf16 %v2549_v61  ;;  %v2130_v33 = vsel %vm709_vm1, %v2127_v41, %v2129_v46 }
  0xdb   : > { %v1661_v15 = vadd.f32 %v1629_v28, %v1527_v49  ;;  %v840_v30 = vadd.f32 %v757_v62, %v562_v20  ;;  %v1978_v48 = vunpack.c.l.bf16 %v2590_v13  ;;  %v1168_v21 = vsel %vm431_vm0, %v1166_v27, %v1167_v9  ;;  %v307_v28 = vld [vmem:[%s2824_s26 + $0x74] sm:$0x1] }
  0xdc   : > { %v1443_v3 = vrot.slane %v1329_v63, 2  ;;  %v1444_v34 = vrot.slane %v1330_v42, 2  ;;  %v1740_v53 = vmul.f32 %v3341_v37, %v1593_v12  ;;  %v1741_v19 = vmul.f32 %v3341_v37, %v1594_v22 }
  0xdd   : > { %v1938_v23 = vadd.f32 %v1853_v40, %v1661_v15  ;;  %v974_v58 = vadd.f32 %v942_v31, %v840_v30  ;;  %v2017_v25 = vmul.f32 %v3359_v52, %v1978_v48  ;;  %v1630_v41 = vmul.f32 %v3353_v24, %v1593_v12 }
  0xde   : > { %v1445_v55 = vsel %vm709_vm1, %v1443_v3, %v1444_v34  ;;  %v1854_v46 = vrot.slane %v1740_v53, 1  ;;  %v3772_v56 = vmul.f32 %v3359_v52, %v1594_v22  ;;  %v1855_v39 = vrot.slane %v1741_v19, 1  ;;  %v586_v3 = vld [vmem:[%s2824_s26 + $0x78] sm:$0xe] }
  0xdf   : > { %v2215_v59 = vadd.f32 %v2130_v33, %v1938_v23  ;;  %v1251_v11 = vadd.f32 %v1168_v21, %v974_v58  ;;  %v285_v40 = vmul.f32 %v3368_v47, %v249_v36  ;;  %v2131_v8 = vrot.slane %v2017_v25, 2 }
  0xe0   : > { %v2132_v43 = vrot.slane %v3772_v56, 2  ;;  %v323_v50 = vunpack.c.l.bf16 %v307_v28  ;;  %v1013_v4 = vunpack.c.l.bf16 %v2506_v32  ;;  %v1856_v35 = vsel %vm431_vm0, %v1854_v46, %v1855_v39 }
  0xe1   : > { %v2251_v31 = vmul.f32 %v3498_v51, %v2215_v59  ;;  %v1528_v16 = vadd.f32 %v1445_v55, %v1251_v11  ;;  %v943_v26 = vmul.f32 %v3379_v44, %v3672_v38  ;;  %v3785_v54 = vmul.f32 %v3353_v24, %v1594_v22 }
  0xe2   : > { %v364_v45 = vmul.f32 %v3386_v57, %v323_v50  ;;  %v642_v61 = vmul.f32 %v3392_v6, %v323_v50  ;;  %v1054_v36 = vmul.f32 %v3398_v60, %v1013_v4  ;;  %v1331_v18 = vmul.f32 %v3324_v5, %v1013_v4 }
  0xe3   : > { %v2287_v2 = vadd.f32 %v3513_v1, %v2251_v31  ;;  %v1662_v27 = vadd.f32 %v1630_v41, %v1528_v16  ;;  %v1701_v13 = vunpack.c.l.bf16 %v2573_v10  ;;  %v2133_v49 = vsel %vm709_vm1, %v2131_v8, %v2132_v43 }
  0xe4   : > { %v480_v20 = vrot.slane %v364_v45, 1  ;;  %v758_v62 = vrot.slane %v642_v61, 2  ;;  %v1169_v63 = vrot.slane %v1054_v36, 1  ;;  %v1446_v15 = vrot.slane %v1331_v18, 2  ;;  %v2717_v18 = vld [vmem:[%s2824_s26 + $0x90] sm:$0xff]  }
  0xe5   : > { %v2319_v42 = vmax.f32 %v2287_v2, 0.0  ;;  %v1939_v12 = vadd.f32 %v1856_v35, %v1662_v27  ;;  %v1742_v22 = vmul.f32 %v3341_v37, %v1701_v13  ;;  %v2019_v48 = vmul.f32 %v3359_v52, %v1701_v13 }
  0xe6   : > { %v481_v33 = vsel %vm431_vm0, %v478_v29, %v480_v20  ;;  %v759_v30 = vsel %vm709_vm1, %v756_v0, %v758_v62  ;;  %v286_v21 = vmul.f32 %v3368_v47, %v3667_v14  ;;  %v1170_v19 = vsel %vm431_vm0, %v1167_v9, %v1169_v63  ;;  %v2484_v9 = vld [vmem:[%s2824_s26 + $0x84] sm:$0xff]   ;;  %v2591_v63 = vld [vmem:[%s2824_s26 + $0x90] sm:$0xe] }
  0xe7   : > { %v2351_v53 = vpack.c.bf16 %v2319_v42, %v2319_v42  ;;  %v2216_v23 = vadd.f32 %v2133_v49, %v1939_v12  ;;  %v563_v58 = vadd.f32 %v481_v33, %v285_v40  ;;  %v1447_v17 = vsel %vm709_vm1, %v1444_v34, %v1446_v15  ;;  %v2524_v34 = vld [vmem:[%s2824_s26 + $0x84] sm:$0xe] }
  0xe8   : > { %v1857_v29 = vrot.slane %v1742_v22, 1  ;;  %v365_v7 = vmul.f32 %v3386_v57, %v3667_v14  ;;  %v3809_v0 = vmul.f32 %v3386_v57, %v3672_v38  ;;  %v602_v32 = vunpack.c.l.bf16 %v586_v3 }
  0xe9   : > { %2384 = vst.msk [vmem:[%s2970_s21 + $0x44] sm:$0xf] %vm2366_vm2, %v2351_v53  ;;  %v2252_v25 = vmul.f32 %v3498_v51, %v2216_v23  ;;  %v841_v28 = vadd.f32 %v759_v30, %v563_v58  ;;  %v3816_v55 = vmul.f32 %v3392_v6, %v3672_v38  ;;  %v2134_v46 = vrot.slane %v2019_v48, 2  ;;  %v308_v58 = vld [vmem:[%s2824_s26 + $0x80] sm:$0x1] }
  0xea   : > { %v1858_v41 = vsel %vm431_vm0, %v1855_v39, %v1857_v29  ;;  %v482_v14 = vrot.slane %v365_v7, 1  ;;  %v483_v59 = vrot.slane %v3809_v0, 1  ;;  %v643_v8 = vmul.f32 %v3392_v6, %v602_v32  ;;  %v3912_v0 = vld [vmem:[%s4438_s1 + $0x6] ss:$0 sm:$0xff] }
  0xeb   : > { %v2288_v11 = vadd.f32 %v3513_v1, %v2252_v25  ;;  %v975_v40 = vadd.f32 %v943_v26, %v841_v28  ;;  %v761_v50 = vrot.slane %v3816_v55, 2  ;;  %v907_v10 = vunpack.c.l.bf16 %v2484_v9  ;;  %v2507_v28 = vld [vmem:[%s2824_s26 + $0x8c] sm:$0x1] }
  0xec   : > { %v484_v4 = vsel %vm431_vm0, %v482_v14, %v483_v59  ;;  %v908_v31 = vunpack.c.h.bf16 %v2484_v9  ;;  %v1291_v39 = vunpack.c.l.bf16 %v2524_v34  ;;  %v760_v61 = vrot.slane %v643_v8, 2 }
  0xed   : > { %v2320_v16 = vmax.f32 %v2288_v11, 0.0  ;;  %v1252_v35 = vadd.f32 %v1170_v19, %v975_v40  ;;  %v564_v45 = vadd.f32 %v484_v4, %v286_v21  ;;  %v944_v36 = vmul.f32 %v3379_v44, %v907_v10  ;;  %v2574_v4 = vld [vmem:[%s2824_s26 + $0x98] sm:$0x1] }
  0xee   : > { %v1055_v26 = vmul.f32 %v3398_v60, %v907_v10  ;;  %v3831_v2 = vmul.f32 %v3398_v60, %v908_v31  ;;  %v1332_v27 = vmul.f32 %v3324_v5, %v1291_v39  ;;  %v762_v20 = vsel %vm709_vm1, %v760_v61, %v761_v50  ;;  %v220_v10 = vld [vmem:[%s2824_s26 + $0x84] sm:$0xff]  }
  0xef   : > { %v2352_v13 = vpack.c.bf16 %v2320_v16, %v2320_v16  ;;  %v1529_v49 = vadd.f32 %v1447_v17, %v1252_v35  ;;  %v3839_v62 = vmul.f32 %v3324_v5, %v908_v31  ;;  %v842_v42 = vadd.f32 %v762_v20, %v564_v45 }
  0xf0   : > { %v1171_v12 = vrot.slane %v1055_v26, 1  ;;  %v1172_v15 = vrot.slane %v3831_v2, 1  ;;  %v1448_v22 = vrot.slane %v1332_v27, 2  ;;  %v2135_v30 = vsel %vm709_vm1, %v2132_v43, %v2134_v46 }
  0xf1   : > { %2385 = vst.msk [vmem:[%s2970_s21 + $0x48] sm:$0xf] %vm2366_vm2, %v2352_v13  ;;  %v1663_v33 = vadd.f32 %v3785_v54, %v1529_v49  ;;  %v1449_v48 = vrot.slane %v3839_v62, 2  ;;  %v3850_v21 = vunpack.c.l.bf16 %v2717_v18  ;;  %v976_v5 = vadd.f32 %v944_v36, %v842_v42  ;;  %v3906_v42 = vld [vmem:[%s4438_s1 + $0x7] ss:$0 sm:$0xff] }
  0xf2   : > { %v1173_v3 = vsel %vm431_vm0, %v1171_v12, %v1172_v15  ;;  %v3855_v53 = vunpack.c.h.bf16 %v2717_v18  ;;  %v1979_v23 = vunpack.c.l.bf16 %v2591_v63  ;;  %v324_v34 = vunpack.c.l.bf16 %v308_v58  ;;  %v3948_v62 = vld [vmem:[%s4438_s1] ss:$0 sm:$0xff] }
  0xf3   : > { %v1940_v19 = vadd.f32 %v1858_v41, %v1663_v33  ;;  %v1450_v56 = vsel %vm709_vm1, %v1448_v22, %v1449_v48  ;;  %v1632_v43 = vmul.f32 %v3353_v24, %v3850_v21  ;;  %v1743_v54 = vmul.f32 %v3341_v37, %v3850_v21 }
  0xf4   : > { %v1253_v17 = vadd.f32 %v1173_v3, %v976_v5  ;;  %v3867_v29 = vmul.f32 %v3341_v37, %v3855_v53  ;;  %v2020_v7 = vmul.f32 %v3359_v52, %v1979_v23  ;;  %v3872_v25 = vmul.f32 %v3359_v52, %v3855_v53 }
  0xf5   : > { %v2217_v32 = vadd.f32 %v2135_v30, %v1940_v19  ;;  %v1859_v9 = vrot.slane %v1743_v54, 1  ;;  %v287_v24 = vmul.f32 %v3368_v47, %v3672_v38  ;;  %v367_v40 = vmul.f32 %v3386_v57, %v324_v34  ;;  %v587_v30 = vld [vmem:[%s2824_s26 + $0x84] sm:$0xe] }
  0xf6   : > { %v1530_v41 = vadd.f32 %v1450_v56, %v1253_v17  ;;  %v1860_v46 = vrot.slane %v3867_v29, 1  ;;  %v2136_v37 = vrot.slane %v2020_v7, 2  ;;  %v2137_v14 = vrot.slane %v3872_v25, 2 }
  0xf7   : > { %v2253_v11 = vmul.f32 %v3498_v51, %v2217_v32  ;;  %v645_v52 = vmul.f32 %v3392_v6, %v324_v34  ;;  %v1014_v8 = vunpack.c.l.bf16 %v2507_v28  ;;  %v945_v38 = vmul.f32 %v3379_v44, %v908_v31  ;;  %v3894_v6 = vld [vmem:[%s4438_s1 + $0x5] ss:$0 sm:$0xff] }
  0xf8   : > { %v1664_v39 = vadd.f32 %v1632_v43, %v1530_v41  ;;  %v1861_v16 = vsel %vm431_vm0, %v1859_v9, %v1860_v46  ;;  %v2138_v47 = vsel %vm709_vm1, %v2136_v37, %v2137_v14  ;;  %v485_v45 = vrot.slane %v367_v40, 1  ;;  %v3937_v43 = vld [vmem:[%s4438_s1 + $0x1] ss:$0 sm:$0xff]  ;;  %v3956_v9 = vld [vmem:[%s4438_s1 + $0x2] ss:$0 sm:$0xff] }
  0xf9   : > { %v2289_v35 = vadd.f32 %v3513_v1, %v2253_v11  ;;  %v763_v61 = vrot.slane %v645_v52, 2  ;;  %v1057_v57 = vmul.f32 %v3398_v60, %v1014_v8  ;;  %v1334_v26 = vmul.f32 %v3894_v6, %v1014_v8  ;;  %v2525_v40 = vld [vmem:[%s2824_s26 + $0x90] sm:$0xe] }
  0xfa   : > { %v1941_v36 = vadd.f32 %v1861_v16, %v1664_v39  ;;  %v1702_v27 = vunpack.c.l.bf16 %v2574_v4  ;;  %v252_v18 = vunpack.c.l.bf16 %v220_v10  ;;  %v486_v44 = vsel %vm431_vm0, %v483_v59, %v485_v45  ;;  %v3919_v59 = vld [vmem:[%s4438_s1 + $0x8] ss:$0 sm:$0xff]  ;;  %v3978_v4 = vld [vmem:[%s4438_s1 + $0x4] ss:$0 sm:$0xff]  ;;  %v2553_v16 = vld [vmem:[%s2824_s26 + $0x9c] sm:$0xff]  }
  0xfb   : > { %v2321_v13 = vmax.f32 %v2289_v35, 0.0  ;;  %v764_v60 = vsel %vm709_vm1, %v761_v50, %v763_v61  ;;  %v1174_v31 = vrot.slane %v1057_v57, 1  ;;  %v565_v20 = vadd.f32 %v486_v44, %v287_v24 }
  0xfc   : > { %v2218_v49 = vadd.f32 %v2138_v47, %v1941_v36  ;;  %v1451_v63 = vrot.slane %v1334_v26, 2  ;;  %v1745_v12 = vmul.f32 %v3906_v42, %v1702_v27  ;;  %v1633_v55 = vmul.f32 %v3912_v0, %v3855_v53 }
  0xfd   : > { %v2353_v22 = vpack.c.bf16 %v2321_v13, %v2321_v13  ;;  %v2022_v50 = vmul.f32 %v3919_v59, %v1702_v27  ;;  %v3922_v33 = vunpack.c.h.bf16 %v220_v10  ;;  %v843_v3 = vadd.f32 %v764_v60, %v565_v20  ;;  %v2592_v60 = vld [vmem:[%s2824_s26 + $0x9c] sm:$0xe] }
  0xfe   : > { %v2254_v5 = vmul.f32 %v3498_v51, %v2218_v49  ;;  %v1175_v23 = vsel %vm431_vm0, %v1172_v15, %v1174_v31  ;;  %v1862_v58 = vrot.slane %v1745_v12, 1  ;;  %v1452_v19 = vsel %vm709_vm1, %v1449_v48, %v1451_v63 }
  0xff   : > { %2386 = vst.msk [vmem:[%s2970_s21 + $0x4c] sm:$0xf] %vm2366_vm2, %v2353_v22  ;;  %v2139_v56 = vrot.slane %v2022_v50, 2  ;;  %v368_v54 = vmul.f32 %v3937_v43, %v252_v18  ;;  %v3942_v2 = vmul.f32 %v3937_v43, %v3922_v33  ;;  %v977_v17 = vadd.f32 %v945_v38, %v843_v3  ;;  %v309_v3 = vld [vmem:[%s2824_s26 + $0x8c] sm:$0x1] }
 0x100   : > { %v2290_v15 = vadd.f32 %v3513_v1, %v2254_v5  ;;  %v288_v48 = vmul.f32 %v3948_v62, %v252_v18  ;;  %v603_v29 = vunpack.c.l.bf16 %v587_v30  ;;  %v1863_v7 = vsel %vm431_vm0, %v1860_v46, %v1862_v58  ;;  %v3966_v46 = vld [vmem:[%s4438_s1 + $0x3] ss:$0 sm:$0xff] }
 0x101   : > { %v487_v28 = vrot.slane %v368_v54, 1  ;;  %v488_v32 = vrot.slane %v3942_v2, 1  ;;  %v3960_v24 = vmul.f32 %v3956_v9, %v3922_v33  ;;  %v1254_v41 = vadd.f32 %v1175_v23, %v977_v17  ;;  %v2508_v54 = vld [vmem:[%s2824_s26 + $0x98] sm:$0x1] }
 0x102   : > { %v2322_v34 = vmax.f32 %v2290_v15, 0.0  ;;  %v646_v37 = vmul.f32 %v3956_v9, %v603_v29  ;;  %v946_v11 = vmul.f32 %v3966_v46, %v3850_v21  ;;  %v1058_v10 = vmul.f32 %v3978_v4, %v3850_v21 }
 0x103   : > { %v489_v52 = vsel %vm431_vm0, %v487_v28, %v488_v32  ;;  %v766_v8 = vrot.slane %v3960_v24, 2  ;;  %v3984_v39 = vmul.f32 %v3978_v4, %v3855_v53  ;;  %v1531_v38 = vadd.f32 %v1452_v19, %v1254_v41 }
 0x104   : > { %v2354_v47 = vpack.c.bf16 %v2322_v34, %v2322_v34  ;;  %v566_v35 = vadd.f32 %v489_v52, %v288_v48  ;;  %v765_v45 = vrot.slane %v646_v37, 2  ;;  %v1176_v61 = vrot.slane %v1058_v10, 1 }
 0x105   : > { %v1177_v57 = vrot.slane %v3984_v39, 1  ;;  %v1292_v36 = vunpack.c.l.bf16 %v2525_v40  ;;  %v3990_v26 = vmul.f32 %v3894_v6, %v3855_v53  ;;  %v1665_v27 = vadd.f32 %v1633_v55, %v1531_v38  ;;  %v4055_v39 = vld [vmem:[%s4439_s2] ss:$0 sm:$0xff] }
 0x106   : > { %2387 = vst.msk [vmem:[%s2970_s21 + $0x50] sm:$0xf] %vm2366_vm2, %v2354_v47  ;;  %v767_v18 = vsel %vm709_vm1, %v765_v45, %v766_v8  ;;  %v1597_v13 = vunpack.c.l.bf16 %v2553_v16  ;;  %v1598_v44 = vunpack.c.h.bf16 %v2553_v16  ;;  %v2140_v31 = vsel %vm709_vm1, %v2137_v14, %v2139_v56 }
 0x107   : > { %v844_v49 = vadd.f32 %v767_v18, %v566_v35  ;;  %v1335_v20 = vmul.f32 %v3894_v6, %v1292_v36  ;;  %v1454_v63 = vrot.slane %v3990_v26, 2  ;;  %v1942_v12 = vadd.f32 %v1863_v7, %v1665_v27  ;;  %v2575_v7 = vld [vmem:[%s2824_s26 + $0xa4] sm:$0x1] }
 0x108   : > { %v1178_v22 = vsel %vm431_vm0, %v1176_v61, %v1177_v57  ;;  %v1746_v55 = vmul.f32 %v3906_v42, %v1597_v13  ;;  %v1747_v50 = vmul.f32 %v3906_v42, %v1598_v44  ;;  %v1980_v5 = vunpack.c.l.bf16 %v2592_v60 }
 0x109   : > { %v978_v30 = vadd.f32 %v946_v11, %v844_v49  ;;  %v1453_v25 = vrot.slane %v1335_v20, 2  ;;  %v4009_v14 = vmul.f32 %v3919_v59, %v1598_v44  ;;  %v2219_v23 = vadd.f32 %v2140_v31, %v1942_v12 }
 0x10a   : > { %v1634_v58 = vmul.f32 %v3912_v0, %v1597_v13  ;;  %v1864_v19 = vrot.slane %v1746_v55, 1  ;;  %v1865_v56 = vrot.slane %v1747_v50, 1  ;;  %v2023_v48 = vmul.f32 %v3919_v59, %v1980_v5  ;;  %v588_v55 = vld [vmem:[%s2824_s26 + $0x90] sm:$0xe] }
 0x10b   : > { %v1255_v15 = vadd.f32 %v1178_v22, %v978_v30  ;;  %v1455_v17 = vsel %vm709_vm1, %v1453_v25, %v1454_v63  ;;  %v2142_v29 = vrot.slane %v4009_v14, 2  ;;  %v2255_v28 = vmul.f32 %v3498_v51, %v2219_v23 }
 0x10c   : > { %v1866_v34 = vsel %vm431_vm0, %v1864_v19, %v1865_v56  ;;  %v289_v41 = vmul.f32 %v3948_v62, %v3922_v33  ;;  %v325_v37 = vunpack.c.l.bf16 %v309_v3  ;;  %v2141_v40 = vrot.slane %v2023_v48, 2  ;;  %v2488_v3 = vld [vmem:[%s2824_s26 + $0x9c] sm:$0xff]  }
 0x10d   : > { %v1532_v11 = vadd.f32 %v1455_v17, %v1255_v15  ;;  %v947_v52 = vmul.f32 %v3966_v46, %v3855_v53  ;;  %v1015_v10 = vunpack.c.l.bf16 %v2508_v54  ;;  %v2291_v16 = vadd.f32 %v3513_v1, %v2255_v28  ;;  %v4071_v15 = vld [vmem:[%s4440_s3] ss:$0 sm:$0xff]  ;;  %v2526_v28 = vld [vmem:[%s2824_s26 + $0x9c] sm:$0xe] }
 0x10e   : > { %v370_v47 = vmul.f32 %v3937_v43, %v325_v37  ;;  %v648_v38 = vmul.f32 %v3956_v9, %v325_v37  ;;  %v1703_v35 = vunpack.c.l.bf16 %v2575_v7  ;;  %v2143_v33 = vsel %vm709_vm1, %v2141_v40, %v2142_v29 }
 0x10f   : > { %v1666_v51 = vadd.f32 %v1634_v58, %v1532_v11  ;;  %v1060_v45 = vmul.f32 %v3978_v4, %v1015_v10  ;;  %v1337_v61 = vmul.f32 %v3894_v6, %v1015_v10  ;;  %v2323_v36 = vmax.f32 %v2291_v16, 0.0 }
 0x110   : > { %v490_v26 = vrot.slane %v370_v47, 1  ;;  %v768_v27 = vrot.slane %v648_v38, 2  ;;  %v1748_v1 = vmul.f32 %v3906_v42, %v1703_v35  ;;  %v2025_v31 = vmul.f32 %v3919_v59, %v1703_v35  ;;  %v2718_v47 = vld [vmem:[%s2824_s26 + $0xa8] sm:$0xff]  }
 0x111   : > { %v1943_v18 = vadd.f32 %v1866_v34, %v1666_v51  ;;  %v1179_v13 = vrot.slane %v1060_v45, 1  ;;  %v1456_v60 = vrot.slane %v1337_v61, 2  ;;  %v2355_v49 = vpack.c.bf16 %v2323_v36, %v2323_v36  ;;  %v2593_v45 = vld [vmem:[%s2824_s26 + $0xa8] sm:$0xe] }
 0x112   : > { %v491_v20 = vsel %vm431_vm0, %v488_v32, %v490_v26  ;;  %v769_v12 = vsel %vm709_vm1, %v766_v8, %v768_v27  ;;  %v1867_v22 = vrot.slane %v1748_v1, 1  ;;  %v1635_v5 = vmul.f32 %v3912_v0, %v1598_v44 }
 0x113   : > { %v2220_v50 = vadd.f32 %v2143_v33, %v1943_v18  ;;  %v567_v30 = vadd.f32 %v491_v20, %v289_v41  ;;  %v1180_v25 = vsel %vm431_vm0, %v1177_v57, %v1179_v13  ;;  %2388 = vst.msk [vmem:[%s2970_s21 + $0x54] sm:$0xf] %vm2366_vm2, %v2355_v49  ;;  %v1457_v2 = vsel %vm709_vm1, %v1454_v63, %v1456_v60 }
 0x114   : > { %v1868_v32 = vsel %vm431_vm0, %v1865_v56, %v1867_v22  ;;  %v2144_v24 = vrot.slane %v2025_v31, 2  ;;  %v371_v8 = vmul.f32 %v3937_v43, %v3850_v21  ;;  %v4060_v23 = vmul.f32 %v3937_v43, %v3855_v53 }
 0x115   : > { %v2256_v57 = vmul.f32 %v4055_v39, %v2220_v50  ;;  %v845_v44 = vadd.f32 %v769_v12, %v567_v30  ;;  %v604_v63 = vunpack.c.l.bf16 %v588_v55  ;;  %v290_v58 = vmul.f32 %v3948_v62, %v3850_v21 }
 0x116   : > { %v492_v19 = vrot.slane %v371_v8, 1  ;;  %v4066_v56 = vmul.f32 %v3956_v9, %v3855_v53  ;;  %v911_v54 = vunpack.c.l.bf16 %v2488_v3  ;;  %v493_v7 = vrot.slane %v4060_v23, 1  ;;  %v310_v8 = vld [vmem:[%s2824_s26 + $0x98] sm:$0x1] }
 0x117   : > { %v2292_v17 = vadd.f32 %v4071_v15, %v2256_v57  ;;  %v979_v48 = vadd.f32 %v947_v52, %v845_v44  ;;  %v649_v21 = vmul.f32 %v3956_v9, %v604_v63  ;;  %v912_v41 = vunpack.c.h.bf16 %v2488_v3 }
 0x118   : > { %v771_v34 = vrot.slane %v4066_v56, 2  ;;  %v948_v37 = vmul.f32 %v3966_v46, %v911_v54  ;;  %v1061_v11 = vmul.f32 %v3978_v4, %v911_v54  ;;  %v494_v16 = vsel %vm431_vm0, %v492_v19, %v493_v7 }
 0x119   : > { %v2324_v40 = vmax.f32 %v2292_v17, 0.0  ;;  %v1256_v10 = vadd.f32 %v1180_v25, %v979_v48  ;;  %v770_v52 = vrot.slane %v649_v21, 2  ;;  %v568_v38 = vadd.f32 %v494_v16, %v290_v58  ;;  %v224_v16 = vld [vmem:[%s2824_s26 + $0x9c] sm:$0xff]  }
 0x11a   : > { %v4085_v35 = vmul.f32 %v3978_v4, %v912_v41  ;;  %v1181_v51 = vrot.slane %v1061_v11, 1  ;;  %v1293_v33 = vunpack.c.l.bf16 %v2526_v28  ;;  %v4092_v27 = vmul.f32 %v3894_v6, %v912_v41  ;;  %v2576_v28 = vld [vmem:[%s2824_s26 + $0xb0] sm:$0x1] }
 0x11b   : > { %v2356_v61 = vpack.c.bf16 %v2324_v40, %v2324_v40  ;;  %v1533_v36 = vadd.f32 %v1457_v2, %v1256_v10  ;;  %v772_v26 = vsel %vm709_vm1, %v770_v52, %v771_v34  ;;  %v4096_v60 = vunpack.c.l.bf16 %v2718_v47 }
 0x11c   : > { %v846_v1 = vadd.f32 %v772_v26, %v568_v38  ;;  %v1182_v18 = vrot.slane %v4085_v35, 1  ;;  %v1338_v13 = vmul.f32 %v3894_v6, %v1293_v33  ;;  %v1459_v49 = vrot.slane %v4092_v27, 2 }
 0x11d   : > { %2389 = vst.msk [vmem:[%s2970_s21 + $0x58] sm:$0xf] %vm2366_vm2, %v2356_v61  ;;  %v1667_v31 = vadd.f32 %v1635_v5, %v1533_v36  ;;  %v4101_v20 = vunpack.c.h.bf16 %v2718_v47  ;;  %v1981_v12 = vunpack.c.l.bf16 %v2593_v45  ;;  %v2145_v22 = vsel %vm709_vm1, %v2142_v29, %v2144_v24  ;;  %v2509_v24 = vld [vmem:[%s2824_s26 + $0xa4] sm:$0x1] }
 0x11e   : > { %v980_v55 = vadd.f32 %v948_v37, %v846_v1  ;;  %v1183_v50 = vsel %vm431_vm0, %v1181_v51, %v1182_v18  ;;  %v1458_v30 = vrot.slane %v1338_v13, 2  ;;  %v1749_v3 = vmul.f32 %v3906_v42, %v4096_v60 }
 0x11f   : > { %v1944_v25 = vadd.f32 %v1868_v32, %v1667_v31  ;;  %v1750_v5 = vmul.f32 %v3906_v42, %v4101_v20  ;;  %v2026_v2 = vmul.f32 %v3919_v59, %v1981_v12  ;;  %v1636_v29 = vmul.f32 %v3912_v0, %v4096_v60 }
 0x120   : > { %v1257_v57 = vadd.f32 %v1183_v50, %v980_v55  ;;  %v1460_v14 = vsel %vm709_vm1, %v1458_v30, %v1459_v49  ;;  %v4118_v32 = vmul.f32 %v3919_v59, %v4101_v20  ;;  %v1869_v63 = vrot.slane %v1749_v3, 1  ;;  %v589_v30 = vld [vmem:[%s2824_s26 + $0x9c] sm:$0xe] }
 0x121   : > { %v2221_v44 = vadd.f32 %v2145_v22, %v1944_v25  ;;  %v1870_v58 = vrot.slane %v1750_v5, 1  ;;  %v2146_v19 = vrot.slane %v2026_v2, 2  ;;  %v291_v48 = vmul.f32 %v3948_v62, %v3855_v53 }
 0x122   : > { %v1534_v54 = vadd.f32 %v1460_v14, %v1257_v57  ;;  %v2147_v17 = vrot.slane %v4118_v32, 2  ;;  %v326_v21 = vunpack.c.l.bf16 %v310_v8  ;;  %v949_v40 = vmul.f32 %v3966_v46, %v912_v41 }
 0x123   : > { %v2257_v37 = vmul.f32 %v4055_v39, %v2221_v44  ;;  %v1871_v11 = vsel %vm431_vm0, %v1869_v63, %v1870_v58  ;;  %v1016_v10 = vunpack.c.l.bf16 %v2509_v24  ;;  %v1704_v45 = vunpack.c.l.bf16 %v2576_v28 }
 0x124   : > { %v1668_v52 = vadd.f32 %v1636_v29, %v1534_v54  ;;  %v2148_v47 = vsel %vm709_vm1, %v2146_v19, %v2147_v17  ;;  %v373_v38 = vmul.f32 %v3937_v43, %v326_v21  ;;  %v651_v35 = vmul.f32 %v3956_v9, %v326_v21  ;;  %v2527_v21 = vld [vmem:[%s2824_s26 + $0xa8] sm:$0xe] }
 0x125   : > { %v2293_v53 = vadd.f32 %v4071_v15, %v2257_v37  ;;  %v1063_v51 = vmul.f32 %v3978_v4, %v1016_v10  ;;  %v1340_v33 = vmul.f32 %v3894_v6, %v1016_v10  ;;  %v256_v26 = vunpack.c.l.bf16 %v224_v16 }
 0x126   : > { %v1945_v41 = vadd.f32 %v1871_v11, %v1668_v52  ;;  %v495_v61 = vrot.slane %v373_v38, 1  ;;  %v773_v36 = vrot.slane %v651_v35, 2  ;;  %v1751_v31 = vmul.f32 %v3906_v42, %v1704_v45 }
 0x127   : > { %v2325_v27 = vmax.f32 %v2293_v53, 0.0  ;;  %v1184_v1 = vrot.slane %v1063_v51, 1  ;;  %v1461_v13 = vrot.slane %v1340_v33, 2  ;;  %v2028_v50 = vmul.f32 %v3919_v59, %v1704_v45  ;;  %v2594_v33 = vld [vmem:[%s2824_s26 + $0xb4] sm:$0xe] }
 0x128   : > { %v2222_v12 = vadd.f32 %v2148_v47, %v1945_v41  ;;  %v496_v22 = vsel %vm431_vm0, %v493_v7, %v495_v61  ;;  %v774_v55 = vsel %vm709_vm1, %v771_v34, %v773_v36  ;;  %v1637_v2 = vmul.f32 %v3912_v0, %v4101_v20  ;;  %v2557_v47 = vld [vmem:[%s2824_s26 + $0xb4] sm:$0xff]  }
 0x129   : > { %v2357_v25 = vpack.c.bf16 %v2325_v27, %v2325_v27  ;;  %v569_v3 = vadd.f32 %v496_v22, %v291_v48  ;;  %v1185_v5 = vsel %vm431_vm0, %v1182_v18, %v1184_v1  ;;  %v1462_v23 = vsel %vm709_vm1, %v1459_v49, %v1461_v13 }
 0x12a   : > { %v2258_v8 = vmul.f32 %v4055_v39, %v2222_v12  ;;  %v1872_v7 = vrot.slane %v1751_v31, 1  ;;  %v257_v57 = vunpack.c.h.bf16 %v224_v16  ;;  %v2149_v34 = vrot.slane %v2028_v50, 2 }
 0x12b   : > { %2390 = vst.msk [vmem:[%s2970_s21 + $0x5c] sm:$0xf] %vm2366_vm2, %v2357_v25  ;;  %v847_v56 = vadd.f32 %v774_v55, %v569_v3  ;;  %v374_v14 = vmul.f32 %v3937_v43, %v256_v26  ;;  %v605_v29 = vunpack.c.l.bf16 %v589_v30  ;;  %v292_v44 = vmul.f32 %v3948_v62, %v256_v26 }
 0x12c   : > { %v2294_v24 = vadd.f32 %v4071_v15, %v2258_v8  ;;  %v1873_v18 = vsel %vm431_vm0, %v1870_v58, %v1872_v7  ;;  %v4158_v63 = vmul.f32 %v3937_v43, %v257_v57  ;;  %v4162_v48 = vmul.f32 %v3956_v9, %v257_v57 }
 0x12d   : > { %v981_v49 = vadd.f32 %v949_v40, %v847_v56  ;;  %v497_v19 = vrot.slane %v374_v14, 1  ;;  %v652_v54 = vmul.f32 %v3956_v9, %v605_v29  ;;  %v950_v58 = vmul.f32 %v3966_v46, %v4096_v60  ;;  %v2510_v56 = vld [vmem:[%s2824_s26 + $0xb0] sm:$0x1] }
 0x12e   : > { %v2326_v28 = vmax.f32 %v2294_v24, 0.0  ;;  %v498_v37 = vrot.slane %v4158_v63, 1  ;;  %v1064_v11 = vmul.f32 %v3978_v4, %v4096_v60  ;;  %v776_v16 = vrot.slane %v4162_v48, 2 }
 0x12f   : > { %v1258_v10 = vadd.f32 %v1185_v5, %v981_v49  ;;  %v775_v40 = vrot.slane %v652_v54, 2  ;;  %v4173_v52 = vmul.f32 %v3978_v4, %v4101_v20  ;;  %v1294_v51 = vunpack.c.l.bf16 %v2527_v21 }
 0x130   : > { %v2358_v38 = vpack.c.bf16 %v2326_v28, %v2326_v28  ;;  %v499_v35 = vsel %vm431_vm0, %v497_v19, %v498_v37  ;;  %v1186_v53 = vrot.slane %v1064_v11, 1  ;;  %v1342_v27 = vmul.f32 %v3894_v6, %v4101_v20  ;;  %v2577_v28 = vld [vmem:[%s2824_s26 + $0xbc] sm:$0x1] }
 0x131   : > { %v1535_v45 = vadd.f32 %v1462_v23, %v1258_v10  ;;  %v570_v41 = vadd.f32 %v499_v35, %v292_v44  ;;  %v777_v61 = vsel %vm709_vm1, %v775_v40, %v776_v16  ;;  %v1187_v36 = vrot.slane %v4173_v52, 1 }
 0x132   : > { %2391 = vst.msk [vmem:[%s2970_s21 + $0x60] sm:$0xf] %vm2366_vm2, %v2358_v38  ;;  %v1341_v26 = vmul.f32 %v3894_v6, %v1294_v51  ;;  %v1601_v1 = vunpack.c.l.bf16 %v2557_v47  ;;  %v1602_v13 = vunpack.c.h.bf16 %v2557_v47  ;;  %v2150_v12 = vsel %vm709_vm1, %v2147_v17, %v2149_v34 }
 0x133   : > { %v1669_v31 = vadd.f32 %v1637_v2, %v1535_v45  ;;  %v848_v22 = vadd.f32 %v777_v61, %v570_v41  ;;  %v1982_v55 = vunpack.c.l.bf16 %v2594_v33  ;;  %v1188_v50 = vsel %vm431_vm0, %v1186_v53, %v1187_v36  ;;  %v311_v2 = vld [vmem:[%s2824_s26 + $0xa4] sm:$0x1] }
 0x134   : > { %v1463_v30 = vrot.slane %v1341_v26, 2  ;;  %v1464_v25 = vrot.slane %v1342_v27, 2  ;;  %v1752_v3 = vmul.f32 %v3906_v42, %v1601_v1  ;;  %v1753_v23 = vmul.f32 %v3906_v42, %v1602_v13 }
 0x135   : > { %v1946_v5 = vadd.f32 %v1873_v18, %v1669_v31  ;;  %v982_v8 = vadd.f32 %v950_v58, %v848_v22  ;;  %v2029_v7 = vmul.f32 %v3919_v59, %v1982_v55  ;;  %v1638_v17 = vmul.f32 %v3912_v0, %v1601_v1 }
 0x136   : > { %v1465_v32 = vsel %vm709_vm1, %v1463_v30, %v1464_v25  ;;  %v1874_v34 = vrot.slane %v1752_v3, 1  ;;  %v4201_v14 = vmul.f32 %v3919_v59, %v1602_v13  ;;  %v1875_v44 = vrot.slane %v1753_v23, 1  ;;  %v590_v30 = vld [vmem:[%s2824_s26 + $0xa8] sm:$0xe] }
 0x137   : > { %v2223_v29 = vadd.f32 %v2150_v12, %v1946_v5  ;;  %v1259_v24 = vadd.f32 %v1188_v50, %v982_v8  ;;  %v293_v18 = vmul.f32 %v3948_v62, %v257_v57  ;;  %v2151_v49 = vrot.slane %v2029_v7, 2 }
 0x138   : > { %v2152_v19 = vrot.slane %v4201_v14, 2  ;;  %v327_v54 = vunpack.c.l.bf16 %v311_v2  ;;  %v1017_v21 = vunpack.c.l.bf16 %v2510_v56  ;;  %v1876_v10 = vsel %vm431_vm0, %v1874_v34, %v1875_v44 }
 0x139   : > { %v2259_v58 = vmul.f32 %v4055_v39, %v2223_v29  ;;  %v1536_v11 = vadd.f32 %v1465_v32, %v1259_v24  ;;  %v951_v40 = vmul.f32 %v3966_v46, %v4101_v20  ;;  %v4214_v38 = vmul.f32 %v3912_v0, %v1602_v13 }
 0x13a   : > { %v376_v52 = vmul.f32 %v3937_v43, %v327_v54  ;;  %v654_v47 = vmul.f32 %v3956_v9, %v327_v54  ;;  %v1066_v57 = vmul.f32 %v3978_v4, %v1017_v21  ;;  %v1343_v51 = vmul.f32 %v3894_v6, %v1017_v21 }
 0x13b   : > { %v2295_v35 = vadd.f32 %v4071_v15, %v2259_v58  ;;  %v1670_v53 = vadd.f32 %v1638_v17, %v1536_v11  ;;  %v1705_v33 = vunpack.c.l.bf16 %v2577_v28  ;;  %v2153_v45 = vsel %vm709_vm1, %v2151_v49, %v2152_v19 }
 0x13c   : > { %v500_v41 = vrot.slane %v376_v52, 1  ;;  %v778_v61 = vrot.slane %v654_v47, 2  ;;  %v1189_v26 = vrot.slane %v1066_v57, 1  ;;  %v1466_v31 = vrot.slane %v1343_v51, 2  ;;  %v2719_v51 = vld [vmem:[%s2824_s26 + $0xc0] sm:$0xff]  }
 0x13d   : > { %v2327_v27 = vmax.f32 %v2295_v35, 0.0  ;;  %v1947_v1 = vadd.f32 %v1876_v10, %v1670_v53  ;;  %v1754_v13 = vmul.f32 %v3906_v42, %v1705_v33  ;;  %v2031_v55 = vmul.f32 %v3919_v59, %v1705_v33 }
 0x13e   : > { %v501_v12 = vsel %vm431_vm0, %v498_v37, %v500_v41  ;;  %v779_v22 = vsel %vm709_vm1, %v776_v16, %v778_v61  ;;  %v294_v50 = vmul.f32 %v3948_v62, %v4096_v60  ;;  %v1190_v23 = vsel %vm431_vm0, %v1187_v36, %v1189_v26  ;;  %v2492_v36 = vld [vmem:[%s2824_s26 + $0xb4] sm:$0xff]   ;;  %v2595_v26 = vld [vmem:[%s2824_s26 + $0xc0] sm:$0xe] }
 0x13f   : > { %v2359_v3 = vpack.c.bf16 %v2327_v27, %v2327_v27  ;;  %v2224_v5 = vadd.f32 %v2153_v45, %v1947_v1  ;;  %v571_v8 = vadd.f32 %v501_v12, %v293_v18  ;;  %v1467_v63 = vsel %vm709_vm1, %v1464_v25, %v1466_v31  ;;  %v2528_v25 = vld [vmem:[%s2824_s26 + $0xb4] sm:$0xe] }
 0x140   : > { %v1877_v37 = vrot.slane %v1754_v13, 1  ;;  %v377_v48 = vmul.f32 %v3937_v43, %v4096_v60  ;;  %v4238_v16 = vmul.f32 %v3937_v43, %v4101_v20  ;;  %v606_v56 = vunpack.c.l.bf16 %v590_v30 }
 0x141   : > { %2392 = vst.msk [vmem:[%s2970_s21 + $0x64] sm:$0xf] %vm2366_vm2, %v2359_v3  ;;  %v2260_v7 = vmul.f32 %v4055_v39, %v2224_v5  ;;  %v849_v2 = vadd.f32 %v779_v22, %v571_v8  ;;  %v4245_v32 = vmul.f32 %v3956_v9, %v4101_v20  ;;  %v2154_v34 = vrot.slane %v2031_v55, 2 }
 0x142   : > { %v1878_v17 = vsel %vm431_vm0, %v1875_v44, %v1877_v37  ;;  %v502_v60 = vrot.slane %v377_v48, 1  ;;  %v503_v29 = vrot.slane %v4238_v16, 1  ;;  %v655_v49 = vmul.f32 %v3956_v9, %v606_v56  ;;  %v2511_v56 = vld [vmem:[%s2824_s26 + $0xbc] sm:$0x1] }
 0x143   : > { %v2296_v24 = vadd.f32 %v4071_v15, %v2260_v7  ;;  %v983_v18 = vadd.f32 %v951_v40, %v849_v2  ;;  %v781_v54 = vrot.slane %v4245_v32, 2  ;;  %v915_v28 = vunpack.c.l.bf16 %v2492_v36 }
 0x144   : > { %v504_v21 = vsel %vm431_vm0, %v502_v60, %v503_v29  ;;  %v916_v58 = vunpack.c.h.bf16 %v2492_v36  ;;  %v1295_v44 = vunpack.c.l.bf16 %v2528_v25  ;;  %v780_v47 = vrot.slane %v655_v49, 2 }
 0x145   : > { %v2328_v11 = vmax.f32 %v2296_v24, 0.0  ;;  %v1260_v10 = vadd.f32 %v1190_v23, %v983_v18  ;;  %v572_v52 = vadd.f32 %v504_v21, %v294_v50  ;;  %v952_v57 = vmul.f32 %v3966_v46, %v915_v28  ;;  %v312_v23 = vld [vmem:[%s2824_s26 + $0xb0] sm:$0x1] }
 0x146   : > { %v1067_v40 = vmul.f32 %v3978_v4, %v915_v28  ;;  %v4260_v35 = vmul.f32 %v3978_v4, %v916_v58  ;;  %v1344_v53 = vmul.f32 %v3894_v6, %v1295_v44  ;;  %v782_v41 = vsel %vm709_vm1, %v780_v47, %v781_v54 }
 0x147   : > { %v2360_v33 = vpack.c.bf16 %v2328_v11, %v2328_v11  ;;  %v1537_v45 = vadd.f32 %v1467_v63, %v1260_v10  ;;  %v4268_v61 = vmul.f32 %v3894_v6, %v916_v58  ;;  %v850_v27 = vadd.f32 %v782_v41, %v572_v52  ;;  %v2578_v10 = vld [vmem:[%s2824_s26 + $0xc8] sm:$0x1]  ;;  %v228_v52 = vld [vmem:[%s2824_s26 + $0xb4] sm:$0xff]  }
 0x148   : > { %v1191_v1 = vrot.slane %v1067_v40, 1  ;;  %v1192_v31 = vrot.slane %v4260_v35, 1  ;;  %v1468_v13 = vrot.slane %v1344_v53, 2  ;;  %v2155_v22 = vsel %vm709_vm1, %v2152_v19, %v2154_v34 }
 0x149   : > { %2393 = vst.msk [vmem:[%s2970_s21 + $0x68] sm:$0xf] %vm2366_vm2, %v2360_v33  ;;  %v1671_v12 = vadd.f32 %v4214_v38, %v1537_v45  ;;  %v1469_v55 = vrot.slane %v4268_v61, 2  ;;  %v4279_v50 = vunpack.c.l.bf16 %v2719_v51  ;;  %v984_v30 = vadd.f32 %v952_v57, %v850_v27 }
 0x14a   : > { %v1193_v3 = vsel %vm431_vm0, %v1191_v1, %v1192_v31  ;;  %v4284_v5 = vunpack.c.h.bf16 %v2719_v51  ;;  %v1983_v8 = vunpack.c.l.bf16 %v2595_v26  ;;  %v328_v34 = vunpack.c.l.bf16 %v312_v23 }
 0x14b   : > { %v1948_v63 = vadd.f32 %v1878_v17, %v1671_v12  ;;  %v1470_v38 = vsel %vm709_vm1, %v1468_v13, %v1469_v55  ;;  %v1640_v14 = vmul.f32 %v3912_v0, %v4279_v50  ;;  %v1755_v19 = vmul.f32 %v3906_v42, %v4279_v50 }
 0x14c   : > { %v1261_v37 = vadd.f32 %v1193_v3, %v984_v30  ;;  %v1756_v48 = vmul.f32 %v3906_v42, %v4284_v5  ;;  %v2032_v7 = vmul.f32 %v3919_v59, %v1983_v8  ;;  %v4297_v2 = vmul.f32 %v3919_v59, %v4284_v5 }
 0x14d   : > { %v2225_v36 = vadd.f32 %v2155_v22, %v1948_v63  ;;  %v1879_v25 = vrot.slane %v1755_v19, 1  ;;  %v295_v17 = vmul.f32 %v3948_v62, %v4101_v20  ;;  %v379_v28 = vmul.f32 %v3937_v43, %v328_v34 }
 0x14e   : > { %v1538_v60 = vadd.f32 %v1470_v38, %v1261_v37  ;;  %v1880_v24 = vrot.slane %v1756_v48, 1  ;;  %v2156_v18 = vrot.slane %v2032_v7, 2  ;;  %v2157_v49 = vrot.slane %v4297_v2, 2 }
 0x14f   : > { %v2261_v21 = vmul.f32 %v4055_v39, %v2225_v36  ;;  %v657_v44 = vmul.f32 %v3956_v9, %v328_v34  ;;  %v1018_v11 = vunpack.c.l.bf16 %v2511_v56  ;;  %v953_v40 = vmul.f32 %v3966_v46, %v916_v58 }
 0x150   : > { %v1672_v47 = vadd.f32 %v1640_v14, %v1538_v60  ;;  %v1881_v57 = vsel %vm431_vm0, %v1879_v25, %v1880_v24  ;;  %v2158_v20 = vsel %vm709_vm1, %v2156_v18, %v2157_v49  ;;  %v505_v51 = vrot.slane %v379_v28, 1 }
 0x151   : > { %v2297_v53 = vadd.f32 %v4071_v15, %v2261_v21  ;;  %v783_v33 = vrot.slane %v657_v44, 2  ;;  %v1069_v45 = vmul.f32 %v3978_v4, %v1018_v11  ;;  %v1346_v61 = vmul.f32 %v3894_v6, %v1018_v11  ;;  %v2529_v11 = vld [vmem:[%s2824_s26 + $0xc0] sm:$0xe] }
 0x152   : > { %v1949_v41 = vadd.f32 %v1881_v57, %v1672_v47  ;;  %v1706_v26 = vunpack.c.l.bf16 %v2578_v10  ;;  %v260_v27 = vunpack.c.l.bf16 %v228_v52  ;;  %v506_v13 = vsel %vm431_vm0, %v503_v29, %v505_v51  ;;  %v591_v29 = vld [vmem:[%s2824_s26 + $0xb4] sm:$0xe]  ;;  %v2561_v57 = vld [vmem:[%s2824_s26 + $0xcc] sm:$0xff]  }
 0x153   : > { %v2329_v1 = vmax.f32 %v2297_v53, 0.0  ;;  %v784_v58 = vsel %vm709_vm1, %v781_v54, %v783_v33  ;;  %v1194_v12 = vrot.slane %v1069_v45, 1  ;;  %v573_v30 = vadd.f32 %v506_v13, %v295_v17  ;;  %v2596_v13 = vld [vmem:[%s2824_s26 + $0xcc] sm:$0xe] }
 0x154   : > { %v2226_v22 = vadd.f32 %v2158_v20, %v1949_v41  ;;  %v1471_v3 = vrot.slane %v1346_v61, 2  ;;  %v1757_v8 = vmul.f32 %v3906_v42, %v1706_v26  ;;  %v1641_v63 = vmul.f32 %v3912_v0, %v4284_v5 }
 0x155   : > { %v2361_v23 = vpack.c.bf16 %v2329_v1, %v2329_v1  ;;  %v2034_v38 = vmul.f32 %v3919_v59, %v1706_v26  ;;  %v4326_v16 = vunpack.c.h.bf16 %v228_v52  ;;  %v851_v14 = vadd.f32 %v784_v58, %v573_v30 }
 0x156   : > { %v2262_v32 = vmul.f32 %v4055_v39, %v2226_v22  ;;  %v1195_v54 = vsel %vm431_vm0, %v1192_v31, %v1194_v12  ;;  %v1882_v19 = vrot.slane %v1757_v8, 1  ;;  %v1472_v37 = vsel %vm709_vm1, %v1469_v55, %v1471_v3 }
 0x157   : > { %2394 = vst.msk [vmem:[%s2970_s21 + $0x6c] sm:$0xf] %vm2366_vm2, %v2361_v23  ;;  %v2159_v48 = vrot.slane %v2034_v38, 2  ;;  %v380_v7 = vmul.f32 %v3937_v43, %v260_v27  ;;  %v4339_v56 = vmul.f32 %v3937_v43, %v4326_v16  ;;  %v985_v25 = vadd.f32 %v953_v40, %v851_v14 }
 0x158   : > { %v2298_v36 = vadd.f32 %v4071_v15, %v2262_v32  ;;  %v296_v35 = vmul.f32 %v3948_v62, %v260_v27  ;;  %v607_v31 = vunpack.c.l.bf16 %v591_v29  ;;  %v1883_v17 = vsel %vm431_vm0, %v1880_v24, %v1882_v19  ;;  %v313_v32 = vld [vmem:[%s2824_s26 + $0xbc] sm:$0x1] }
 0x159   : > { %v507_v34 = vrot.slane %v380_v7, 1  ;;  %v508_v55 = vrot.slane %v4339_v56, 1  ;;  %v4347_v60 = vmul.f32 %v3956_v9, %v4326_v16  ;;  %v1262_v21 = vadd.f32 %v1195_v54, %v985_v25 }
 0x15a   : > { %v2330_v18 = vmax.f32 %v2298_v36, 0.0  ;;  %v658_v28 = vmul.f32 %v3956_v9, %v607_v31  ;;  %v954_v44 = vmul.f32 %v3966_v46, %v4279_v50  ;;  %v1070_v52 = vmul.f32 %v3978_v4, %v4279_v50 }
 0x15b   : > { %v509_v24 = vsel %vm431_vm0, %v507_v34, %v508_v55  ;;  %v786_v10 = vrot.slane %v4347_v60, 2  ;;  %v4361_v47 = vmul.f32 %v3978_v4, %v4284_v5  ;;  %v1539_v40 = vadd.f32 %v1472_v37, %v1262_v21  ;;  %v2579_v34 = vld [vmem:[%s2824_s26 + $0xd4] sm:$0x1] }
 0x15c   : > { %v2362_v20 = vpack.c.bf16 %v2330_v18, %v2330_v18  ;;  %v574_v53 = vadd.f32 %v509_v24, %v296_v35  ;;  %v785_v51 = vrot.slane %v658_v28, 2  ;;  %v1196_v33 = vrot.slane %v1070_v52, 1 }
 0x15d   : > { %v1197_v45 = vrot.slane %v4361_v47, 1  ;;  %v1296_v41 = vunpack.c.l.bf16 %v2529_v11  ;;  %v4367_v61 = vmul.f32 %v3894_v6, %v4284_v5  ;;  %v1673_v50 = vadd.f32 %v1641_v63, %v1539_v40 }
 0x15e   : > { %2395 = vst.msk [vmem:[%s2970_s21 + $0x70] sm:$0xf] %vm2366_vm2, %v2362_v20  ;;  %v787_v26 = vsel %vm709_vm1, %v785_v51, %v786_v10  ;;  %v1605_v27 = vunpack.c.l.bf16 %v2561_v57  ;;  %v4374_v1 = vunpack.c.h.bf16 %v2561_v57  ;;  %v2160_v58 = vsel %vm709_vm1, %v2157_v49, %v2159_v48  ;;  %v2512_v48 = vld [vmem:[%s2824_s26 + $0xc8] sm:$0x1] }
 0x15f   : > { %v852_v12 = vadd.f32 %v787_v26, %v574_v53  ;;  %v1347_v22 = vmul.f32 %v3894_v6, %v1296_v41  ;;  %v1474_v30 = vrot.slane %v4367_v61, 2  ;;  %v1950_v3 = vadd.f32 %v1883_v17, %v1673_v50 }
 0x160   : > { %v1198_v8 = vsel %vm431_vm0, %v1196_v33, %v1197_v45  ;;  %v1758_v23 = vmul.f32 %v3906_v42, %v1605_v27  ;;  %v1759_v63 = vmul.f32 %v3906_v42, %v4374_v1  ;;  %v1984_v49 = vunpack.c.l.bf16 %v2596_v13 }
 0x161   : > { %v986_v38 = vadd.f32 %v954_v44, %v852_v12  ;;  %v1473_v2 = vrot.slane %v1347_v22, 2  ;;  %v2036_v29 = vmul.f32 %v3919_v59, %v4374_v1  ;;  %v2227_v14 = vadd.f32 %v2160_v58, %v1950_v3 }
 0x162   : > { %v1642_v54 = vmul.f32 %v3912_v0, %v1605_v27  ;;  %v1884_v19 = vrot.slane %v1758_v23, 1  ;;  %v1885_v37 = vrot.slane %v1759_v63, 1  ;;  %v2035_v25 = vmul.f32 %v3919_v59, %v1984_v49 }
 0x163   : > { %v1263_v7 = vadd.f32 %v1198_v8, %v986_v38  ;;  %v1475_v36 = vsel %vm709_vm1, %v1473_v2, %v1474_v30  ;;  %v2162_v35 = vrot.slane %v2036_v29, 2  ;;  %v2263_v31 = vmul.f32 %v4055_v39, %v2227_v14 }
 0x164   : > { %v329_v17 = vunpack.c.l.bf16 %v313_v32  ;;  %v2161_v21 = vrot.slane %v2035_v25, 2  ;;  %v297_v28 = vmul.f32 %v3948_v62, %v4326_v16  ;;  %v1019_v44 = vunpack.c.l.bf16 %v2512_v48 }
 0x165   : > { %v1540_v18 = vadd.f32 %v1475_v36, %v1263_v7  ;;  %v2299_v11 = vadd.f32 %v4071_v15, %v2263_v31  ;;  %v1886_v24 = vsel %vm431_vm0, %v1884_v19, %v1885_v37  ;;  %v1707_v51 = vunpack.c.l.bf16 %v2579_v34 }
 0x166   : > { %v382_v52 = vmul.f32 %v3937_v43, %v329_v17  ;;  %v660_v57 = vmul.f32 %v3956_v9, %v329_v17  ;;  %v2163_v40 = vsel %vm709_vm1, %v2161_v21, %v2162_v35  ;;  %v1072_v53 = vmul.f32 %v3978_v4, %v1019_v44 }
 0x167   : > { %v1674_v20 = vadd.f32 %v1642_v54, %v1540_v18  ;;  %v2331_v33 = vmax.f32 %v2299_v11, 0.0  ;;  %v1349_v62 = vmul.f32 %v3894_v6, %v1019_v44  ;;  %v955_v4 = vmul.f32 %v3966_v46, %v4284_v5 }
 0x168   : > { %v510_v41 = vrot.slane %v382_v52, 1  ;;  %v788_v61 = vrot.slane %v660_v57, 2  ;;  %v1199_v26 = vrot.slane %v1072_v53, 1  ;;  %v1760_v6 = vmul.f32 %v3906_v42, %v1707_v51 }
 0x169   : > { %v1951_v16 = vadd.f32 %v1886_v24, %v1674_v20  ;;  %v2363_v50 = vpack.c.bf16 %v2331_v33, %v2331_v33  ;;  %v1476_v58 = vrot.slane %v1349_v62, 2  ;;  %v2037_v60 = vmul.f32 %v3919_v59, %v1707_v51 }
 0x16a   : > { %v511_v43 = vsel %vm431_vm0, %v508_v55, %v510_v41  ;;  %v789_v9 = vsel %vm709_vm1, %v786_v10, %v788_v61  ;;  %v1200_v55 = vsel %vm431_vm0, %v1197_v45, %v1199_v26  ;;  %v1887_v5 = vrot.slane %v1760_v6, 1 }
 0x16b   : > { %v2228_v27 = vadd.f32 %v2163_v40, %v1951_v16  ;;  %v575_v13 = vadd.f32 %v511_v43, %v297_v28  ;;  %2396 = vst.msk [vmem:[%s2970_s21 + $0x74] sm:$0xf] %vm2366_vm2, %v2363_v50  ;;  %v1477_v46 = vsel %vm709_vm1, %v1474_v30, %v1476_v58  ;;  %v1643_v42 = vmul.f32 %v3912_v0, %v4374_v1 }
 0x16c   : > { %v2164_v23 = vrot.slane %v2037_v60, 2  ;;  %v1888_v47 = vsel %vm431_vm0, %v1885_v37, %v1887_v5 }
 0x16d   : > { %v2264_v56 = vmul.f32 %v4055_v39, %v2228_v27  ;;  %v853_v12 = vadd.f32 %v789_v9, %v575_v13 }
 0x16e   : > { %v2165_v45 = vsel %vm709_vm1, %v2162_v35, %v2164_v23 }
 0x16f   : > { %v2300_v10 = vadd.f32 %v4071_v15, %v2264_v56  ;;  %v987_v22 = vadd.f32 %v955_v4, %v853_v12 }
 0x171   : > { %v2332_v3 = vmax.f32 %v2300_v10, 0.0  ;;  %v1264_v8 = vadd.f32 %v1200_v55, %v987_v22 }
 0x173   : > { %v2364_v63 = vpack.c.bf16 %v2332_v3, %v2332_v3  ;;  %v1541_v38 = vadd.f32 %v1477_v46, %v1264_v8 }
 0x175   : > { %2397 = vst.msk [vmem:[%s2970_s21 + $0x78] sm:$0xf] %vm2366_vm2, %v2364_v63  ;;  %v1675_v59 = vadd.f32 %v1643_v42, %v1541_v38 }
 0x177   : > { %v1952_v2 = vadd.f32 %v1888_v47, %v1675_v59 }
 0x179   : > { %v2229_v49 = vadd.f32 %v2165_v45, %v1952_v2 }
 0x17b   : > { %v2265_v30 = vmul.f32 %v4055_v39, %v2229_v49 }
 0x17d   : > { %v2301_v29 = vadd.f32 %v4071_v15, %v2265_v30 }
 0x17f   : > { %v2333_v32 = vmax.f32 %v2301_v29, 0.0 }
 0x181   : > { %v2365_v14 = vpack.c.bf16 %v2333_v32, %v2333_v32 }
 0x183   : > { %2398 = vst.msk [vmem:[%s2970_s21 + $0x7c] sm:$0xf] %vm2366_vm2, %v2365_v14 }
 0x184 PF: > { %s14_s15 = sadd.s32 1, %s2768_s15  }
 0x185   : > { %p11_p4 = scmp.ge.s32.totalorder %s14_s15, 4  }
 0x187   :  { %13 = sbr.rel (!%p11_p4) target bundleno = 1 (0x1), region = 76 }

// kernel: _lambda_.19
= control target key start
LH: loop header
LB: loop body
LE: loop exit
PB: predicated region body
PF: predicated region fallthrough
CT: control target
= control target key end

     0   :  { %s612_s15 = smov 0   ;;  %s614_s16 = smov 0   ;;  %s684_s0 = inlined_call_operand.vmem [shape: bf16[2,64,64], index: 0, kind: input, shape index: {}]   ;;  %s685_s1 = inlined_call_operand.vmem [shape: bf16[64,24], index: 1, kind: input, shape index: {}]   ;;  %s686_s2 = inlined_call_operand.vmem [shape: f32[1,24], index: 2, kind: input, shape index: {}]   ;;  %s687_s3 = inlined_call_operand.vmem [shape: f32[1,24], index: 3, kind: input, shape index: {}]   ;;  %s688_s4 = inlined_call_operand.vmem [shape: bf16[2,64,24], index: 4, kind: output, shape index: {}]  }
   0x1   :  { %s616_s17 = smov 0  }
   0x2 LB: > { %s26_s18 = sadd.s32 1, %s581_s16  ;;  %p472_p0 = scmp.ge.s32.totalorder %s585_s17, 1  ;;  %s585_s17 = sphi %s616_s17, %s14_s17   ;;  %s581_s16 = sphi %s614_s16, %s690_s16   ;;  %s577_s15 = sphi %s612_s15, %s689_s15  }
   0x3   : > { %p28_p1 = scmp.ge.s32.totalorder %s26_s18, 2  ;;  %p183_p2 = scmp.lt.s32.totalorder %s585_s17, 3 }
   0x5   : > { %s692_s18 = smov (%p28_p1, %s26_s18), 0  ;;  %p184_p3 = pnand %p472_p0, %p183_p2 }
   0x6   : > { %p218_p4 = scmp.lt.s32.totalorder (!%p184_p3), %s577_s15, 1 }
   0x7   : > { %187 = sbr.rel (%p184_p3) target bundleno = 177 (0xb1), region = 36 }
   0xc   : > { %v524_v0 = vld [vmem:[%s685_s1 + $0x18] sm:$0xff]  ;;  %v523_v1 = vld [vmem:[%s685_s1 + $0x10] sm:$0xff]  ;;  %s694_s15 = smov (!%p218_p4, %s577_s15), 1  ;;  %v522_v2 = vld [vmem:[%s685_s1 + $0x8] sm:$0xff]  ;;  %vm298_vm0 = vcmask 523264   ;;  %vm372_vm1 = vcmask 191488  }
   0xd   : > { %315 = vmatpush.bf16.msra.mxu0 %v524_v0  ;;  %525 = vmatpush.bf16.msra.mxu1 %v524_v0  ;;  %s515_s25 = sshll.u32 %s694_s15, 5  ;;  %v521_v3 = vld [vmem:[%s685_s1] sm:$0xff] }
   0xe   : > { %526 = vmatpush.bf16.msra.mxu2 %v524_v0  ;;  %527 = vmatpush.bf16.msra.mxu3 %v524_v0  ;;  %s225_s30 = scalar_lea.vmem %s684_s0, %s515_s25  ;;  %v561_v8 = vld [vmem:[%s686_s2] ss:$0 sm:$0xff]  ;;  %s657_s11 = scalar_lea.vmem %s688_s4, %s515_s25 }
   0xf   : > { %v517_v4 = vld [vmem:[%s225_s30] sm:$0xff]  ;;  %v518_v5 = vld [vmem:[%s225_s30 + $0x8] sm:$0xff]  ;;  %v519_v6 = vld [vmem:[%s225_s30 + $0x10] sm:$0xff] }
  0x10   : > { %v520_v7 = vld [vmem:[%s225_s30 + $0x18] sm:$0xff]  ;;  %v562_v9 = vld [vmem:[%s687_s3] ss:$0 sm:$0xff] }
  0x11   : > { %316 = vmatpush.bf16.msra.mxu0 %v523_v1  ;;  %528 = vmatpush.bf16.msra.mxu1 %v523_v1 }
  0x12   : > { %529 = vmatpush.bf16.msra.mxu2 %v523_v1  ;;  %530 = vmatpush.bf16.msra.mxu3 %v523_v1 }
  0x15   : > { %317 = vmatpush.bf16.msra.mxu0 %v522_v2  ;;  %531 = vmatpush.bf16.msra.mxu1 %v522_v2 }
  0x16   : > { %532 = vmatpush.bf16.msra.mxu2 %v522_v2  ;;  %533 = vmatpush.bf16.msra.mxu3 %v522_v2 }
  0x19   : > { %318 = vmatpush.bf16.msra.mxu0 %v521_v3  ;;  %534 = vmatpush.bf16.msra.mxu1 %v521_v3 }
  0x1a   : > { %535 = vmatpush.bf16.msra.mxu2 %v521_v3  ;;  %536 = vmatpush.bf16.msra.mxu3 %v521_v3 }
  0x1c   : > { %509 = vmatmul.msk.bf16.vlgmr.msra.gmra.mxu0 %vm298_vm0, %v517_v4  ;;  %510 = vmatmul.msk.bf16.vlgmr.msra.gmra.mxu1 %vm298_vm0, %v518_v5 }
  0x1d   : > { %511 = vmatmul.msk.bf16.vlgmr.msra.gmra.mxu2 %vm298_vm0, %v519_v6  ;;  %512 = vmatmul.msk.bf16.vlgmr.msra.gmra.mxu3 %vm298_vm0, %v520_v7 }
  0x99   : > { %v320_v10 = vpop.f32.mrf.mxu0  ;;  %v325_v11 = vpop.f32.mrf.mxu1 }
  0x9a   : > { %v344_v12 = vmul.f32 %v561_v8, %v320_v10  ;;  %v346_v13 = vmul.f32 %v561_v8, %v325_v11 }
  0x9c   : > { %v356_v14 = vadd.f32 %v562_v9, %v344_v12  ;;  %v358_v15 = vadd.f32 %v562_v9, %v346_v13 }
  0x9e   : > { %v364_v16 = vpack.c.bf16 %v356_v14, %v356_v14  ;;  %v366_v17 = vpack.c.bf16 %v358_v15, %v358_v15 }
  0xa0   : > { %373 = vst.msk [vmem:[%s657_s11] sm:$0xf] %vm372_vm1, %v364_v16  ;;  %v330_v18 = vpop.f32.mrf.mxu2  ;;  %v335_v19 = vpop.f32.mrf.mxu3 }
  0xa1   : > { %375 = vst.msk [vmem:[%s657_s11 + $0x8] sm:$0xf] %vm372_vm1, %v366_v17  ;;  %v348_v20 = vmul.f32 %v561_v8, %v330_v18  ;;  %v350_v21 = vmul.f32 %v561_v8, %v335_v19  ;;  %v322_v22 = vpop.f32.mrf.mxu0  ;;  %v327_v23 = vpop.f32.mrf.mxu1 }
  0xa2   : > { %v345_v24 = vmul.f32 %v561_v8, %v322_v22  ;;  %v347_v25 = vmul.f32 %v561_v8, %v327_v23 }
  0xa3   : > { %v360_v26 = vadd.f32 %v562_v9, %v348_v20  ;;  %v362_v27 = vadd.f32 %v562_v9, %v350_v21 }
  0xa4   : > { %v357_v28 = vadd.f32 %v562_v9, %v345_v24  ;;  %v359_v29 = vadd.f32 %v562_v9, %v347_v25 }
  0xa5   : > { %v368_v30 = vpack.c.bf16 %v360_v26, %v360_v26  ;;  %v370_v31 = vpack.c.bf16 %v362_v27, %v362_v27 }
  0xa6   : > { %v365_v32 = vpack.c.bf16 %v357_v28, %v357_v28  ;;  %v367_v33 = vpack.c.bf16 %v359_v29, %v359_v29 }
  0xa7   : > { %377 = vst.msk [vmem:[%s657_s11 + $0x10] sm:$0xf] %vm372_vm1, %v368_v30 }
  0xa8   : > { %379 = vst.msk [vmem:[%s657_s11 + $0x18] sm:$0xf] %vm372_vm1, %v370_v31  ;;  %v332_v34 = vpop.f32.mrf.mxu2  ;;  %v337_v35 = vpop.f32.mrf.mxu3 }
  0xa9   : > { %374 = vst.msk [vmem:[%s657_s11 + $0x4] sm:$0xf] %vm372_vm1, %v365_v32  ;;  %v349_v36 = vmul.f32 %v561_v8, %v332_v34  ;;  %v351_v37 = vmul.f32 %v561_v8, %v337_v35 }
  0xaa   : > { %376 = vst.msk [vmem:[%s657_s11 + $0xc] sm:$0xf] %vm372_vm1, %v367_v33 }
  0xab   : > { %v361_v38 = vadd.f32 %v562_v9, %v349_v36  ;;  %v363_v39 = vadd.f32 %v562_v9, %v351_v37 }
  0xad   : > { %v369_v40 = vpack.c.bf16 %v361_v38, %v361_v38  ;;  %v371_v41 = vpack.c.bf16 %v363_v39, %v363_v39 }
  0xaf   : > { %378 = vst.msk [vmem:[%s657_s11 + $0x14] sm:$0xf] %vm372_vm1, %v369_v40 }
  0xb0   : > { %380 = vst.msk [vmem:[%s657_s11 + $0x1c] sm:$0xf] %vm372_vm1, %v371_v41 }
  0xb1 PF: > { %s14_s17 = sadd.s32 1, %s585_s17   ;;  %s689_s15 = smov %s581_s16 }
  0xb2   : > { %p11_p5 = scmp.ge.s32.totalorder %s14_s17, 4   ;;  %s690_s16 = smov %s692_s18 }
  0xb4   :  { %13 = sbr.rel (!%p11_p5) target bundleno = 2 (0x2), region = 66 }

// kernel: _lambda_.20
= control target key start
LH: loop header
LB: loop body
LE: loop exit
PB: predicated region body
PF: predicated region fallthrough
CT: control target
= control target key end

     0   :  { %s615_s15 = smov 0   ;;  %s617_s16 = smov 0   ;;  %s685_s0 = inlined_call_operand.vmem [shape: bf16[2,64,24], index: 0, kind: input, shape index: {}]   ;;  %s686_s1 = inlined_call_operand.vmem [shape: bf16[24,96], index: 1, kind: input, shape index: {}]   ;;  %s687_s2 = inlined_call_operand.vmem [shape: f32[1,96], index: 2, kind: input, shape index: {}]   ;;  %s688_s3 = inlined_call_operand.vmem [shape: f32[1,96], index: 3, kind: input, shape index: {}]   ;;  %s689_s4 = inlined_call_operand.vmem [shape: bf16[2,64,96], index: 4, kind: output, shape index: {}]  }
   0x1   :  { %s619_s17 = smov 0  }
   0x2 LB: > { %s26_s18 = sadd.s32 1, %s584_s16  ;;  %p496_p0 = scmp.ge.s32.totalorder %s588_s17, 1  ;;  %s588_s17 = sphi %s619_s17, %s14_s17   ;;  %s584_s16 = sphi %s617_s16, %s691_s16   ;;  %s580_s15 = sphi %s615_s15, %s690_s15  }
   0x3   : > { %p28_p1 = scmp.ge.s32.totalorder %s26_s18, 2  ;;  %p183_p2 = scmp.lt.s32.totalorder %s588_s17, 3 }
   0x5   : > { %s693_s18 = smov (%p28_p1, %s26_s18), 0  ;;  %p184_p3 = pnand %p496_p0, %p183_p2 }
   0x6   : > { %p218_p4 = scmp.lt.s32.totalorder (!%p184_p3), %s580_s15, 1 }
   0x7   : > { %187 = sbr.rel (%p184_p3) target bundleno = 184 (0xb8), region = 36 }
   0xc   : > { %v248_v0 = vld [vmem:[%s686_s1 + $0x8] sm:$0xf]  ;;  %vm291_vm0 = vcmask 1043456   ;;  %s695_s15 = smov (!%p218_p4, %s580_s15), 1  ;;  %v533_v4 = vld [vmem:[%s686_s1] sm:$0xff]  ;;  %vm278_vm1 = vcmask 195584  }
   0xd   : > { %v274_v1 = vunpack.c.l.b16 %v248_v0  ;;  %s527_s21 = sshll.u32 %s695_s15, 5  ;;  %v564_v9 = vld [vmem:[%s687_s2] ss:$0 sm:$0xff]  ;;  %vm396_vm2 = vcmask 781312  }
   0xe   : > { %s225_s26 = scalar_lea.vmem %s685_s0, %s527_s21  ;;  %v565_v10 = vld [vmem:[%s688_s3] ss:$0 sm:$0xff]  ;;  %s658_s7 = scalar_lea.vmem %s689_s4, %s527_s21 }
   0xf   : > { %v276_v2 = vpack.c.b16 %v274_v1, %v274_v1  ;;  %v529_v5 = vld [vmem:[%s225_s26] sm:$0xff]  ;;  %v530_v6 = vld [vmem:[%s225_s26 + $0x8] sm:$0xff]  ;;  %v531_v7 = vld [vmem:[%s225_s26 + $0x10] sm:$0xff] }
  0x10   : > { %v532_v8 = vld [vmem:[%s225_s26 + $0x18] sm:$0xff] }
  0x11   : > { %v293_v3 = vsel %vm291_vm0, %v276_v2, 0 }
  0x12   : > { %301 = vmatpush.bf16.msra.mxu0 %v293_v3  ;;  %534 = vmatpush.bf16.msra.mxu1 %v293_v3 }
  0x13   : > { %535 = vmatpush.bf16.msra.mxu2 %v293_v3  ;;  %536 = vmatpush.bf16.msra.mxu3 %v293_v3 }
  0x16   : > { %302 = vmatpush.bf16.msra.mxu0 %v533_v4  ;;  %537 = vmatpush.bf16.msra.mxu1 %v533_v4 }
  0x17   : > { %538 = vmatpush.bf16.msra.mxu2 %v533_v4  ;;  %539 = vmatpush.bf16.msra.mxu3 %v533_v4 }
  0x19   : > { %521 = vmatmul.msk.bf16.vlgmr.msra.gmra.mxu0 %vm278_vm1, %v529_v5  ;;  %522 = vmatmul.msk.bf16.vlgmr.msra.gmra.mxu1 %vm278_vm1, %v530_v6 }
  0x1a   : > { %523 = vmatmul.msk.bf16.vlgmr.msra.gmra.mxu2 %vm278_vm1, %v531_v7  ;;  %524 = vmatmul.msk.bf16.vlgmr.msra.gmra.mxu3 %vm278_vm1, %v532_v8 }
  0x96   : > { %v304_v11 = vpop.f32.mrf.mxu0  ;;  %v309_v12 = vpop.f32.mrf.mxu1 }
  0x97   : > { %v328_v13 = vmul.f32 %v564_v9, %v304_v11  ;;  %v330_v14 = vmul.f32 %v564_v9, %v309_v12 }
  0x99   : > { %v340_v15 = vadd.f32 %v565_v10, %v328_v13  ;;  %v342_v16 = vadd.f32 %v565_v10, %v330_v14 }
  0x9b   : > { %v348_v17 = vadd.f32 3.0, %v340_v15  ;;  %v350_v18 = vadd.f32 3.0, %v342_v16 }
  0x9d   : > { %v356_v19 = vmax.f32 %v348_v17, 0.0  ;;  %v358_v20 = vmax.f32 %v350_v18, 0.0  ;;  %v314_v21 = vpop.f32.mrf.mxu2  ;;  %v319_v22 = vpop.f32.mrf.mxu3 }
  0x9e   : > { %v332_v23 = vmul.f32 %v564_v9, %v314_v21  ;;  %v334_v24 = vmul.f32 %v564_v9, %v319_v22  ;;  %v306_v25 = vpop.f32.mrf.mxu0  ;;  %v311_v26 = vpop.f32.mrf.mxu1 }
  0x9f   : > { %v364_v27 = vmin.f32 %v356_v19, 6.0  ;;  %v366_v28 = vmin.f32 %v358_v20, 6.0  ;;  %v329_v29 = vmul.f32 %v564_v9, %v306_v25  ;;  %v331_v30 = vmul.f32 %v564_v9, %v311_v26 }
  0xa0   : > { %v344_v31 = vadd.f32 %v565_v10, %v332_v23  ;;  %v346_v32 = vadd.f32 %v565_v10, %v334_v24 }
  0xa1   : > { %v372_v33 = vmul.f32 %v364_v27, %v340_v15  ;;  %v374_v34 = vmul.f32 %v366_v28, %v342_v16  ;;  %v341_v35 = vadd.f32 %v565_v10, %v329_v29  ;;  %v343_v36 = vadd.f32 %v565_v10, %v331_v30 }
  0xa2   : > { %v352_v37 = vadd.f32 3.0, %v344_v31  ;;  %v354_v38 = vadd.f32 3.0, %v346_v32 }
  0xa3   : > { %v380_v39 = vmul.f32 0.16666667, %v372_v33  ;;  %v382_v40 = vmul.f32 0.16666667, %v374_v34  ;;  %v349_v41 = vadd.f32 3.0, %v341_v35  ;;  %v351_v42 = vadd.f32 3.0, %v343_v36 }
  0xa4   : > { %v360_v43 = vmax.f32 %v352_v37, 0.0  ;;  %v362_v44 = vmax.f32 %v354_v38, 0.0 }
  0xa5   : > { %v388_v45 = vpack.c.bf16 %v380_v39, %v380_v39  ;;  %v390_v46 = vpack.c.bf16 %v382_v40, %v382_v40  ;;  %v357_v47 = vmax.f32 %v349_v41, 0.0  ;;  %v359_v48 = vmax.f32 %v351_v42, 0.0  ;;  %v316_v49 = vpop.f32.mrf.mxu2  ;;  %v321_v50 = vpop.f32.mrf.mxu3 }
  0xa6   : > { %v368_v51 = vmin.f32 %v360_v43, 6.0  ;;  %v370_v52 = vmin.f32 %v362_v44, 6.0  ;;  %v333_v53 = vmul.f32 %v564_v9, %v316_v49  ;;  %v335_v54 = vmul.f32 %v564_v9, %v321_v50 }
  0xa7   : > { %397 = vst.msk [vmem:[%s658_s7] sm:$0xf] %vm396_vm2, %v388_v45  ;;  %v365_v55 = vmin.f32 %v357_v47, 6.0  ;;  %v367_v56 = vmin.f32 %v359_v48, 6.0 }
  0xa8   : > { %399 = vst.msk [vmem:[%s658_s7 + $0x8] sm:$0xf] %vm396_vm2, %v390_v46  ;;  %v376_v57 = vmul.f32 %v368_v51, %v344_v31  ;;  %v378_v58 = vmul.f32 %v370_v52, %v346_v32  ;;  %v345_v59 = vadd.f32 %v565_v10, %v333_v53  ;;  %v347_v60 = vadd.f32 %v565_v10, %v335_v54 }
  0xa9   : > { %v373_v61 = vmul.f32 %v365_v55, %v341_v35  ;;  %v375_v62 = vmul.f32 %v367_v56, %v343_v36 }
  0xaa   : > { %v384_v63 = vmul.f32 0.16666667, %v376_v57  ;;  %v386_v0 = vmul.f32 0.16666667, %v378_v58  ;;  %v353_v1 = vadd.f32 3.0, %v345_v59  ;;  %v355_v2 = vadd.f32 3.0, %v347_v60 }
  0xab   : > { %v381_v3 = vmul.f32 0.16666667, %v373_v61  ;;  %v383_v4 = vmul.f32 0.16666667, %v375_v62 }
  0xac   : > { %v392_v5 = vpack.c.bf16 %v384_v63, %v384_v63  ;;  %v394_v6 = vpack.c.bf16 %v386_v0, %v386_v0  ;;  %v361_v7 = vmax.f32 %v353_v1, 0.0  ;;  %v363_v8 = vmax.f32 %v355_v2, 0.0 }
  0xad   : > { %v389_v9 = vpack.c.bf16 %v381_v3, %v381_v3  ;;  %v391_v11 = vpack.c.bf16 %v383_v4, %v383_v4 }
  0xae   : > { %401 = vst.msk [vmem:[%s658_s7 + $0x10] sm:$0xf] %vm396_vm2, %v392_v5  ;;  %v369_v10 = vmin.f32 %v361_v7, 6.0  ;;  %v371_v12 = vmin.f32 %v363_v8, 6.0 }
  0xaf   : > { %403 = vst.msk [vmem:[%s658_s7 + $0x18] sm:$0xf] %vm396_vm2, %v394_v6 }
  0xb0   : > { %398 = vst.msk [vmem:[%s658_s7 + $0x4] sm:$0xf] %vm396_vm2, %v389_v9  ;;  %v377_v13 = vmul.f32 %v369_v10, %v345_v59  ;;  %v379_v14 = vmul.f32 %v371_v12, %v347_v60 }
  0xb1   : > { %400 = vst.msk [vmem:[%s658_s7 + $0xc] sm:$0xf] %vm396_vm2, %v391_v11 }
  0xb2   : > { %v385_v15 = vmul.f32 0.16666667, %v377_v13  ;;  %v387_v16 = vmul.f32 0.16666667, %v379_v14 }
  0xb4   : > { %v393_v17 = vpack.c.bf16 %v385_v15, %v385_v15  ;;  %v395_v18 = vpack.c.bf16 %v387_v16, %v387_v16 }
  0xb6   : > { %402 = vst.msk [vmem:[%s658_s7 + $0x14] sm:$0xf] %vm396_vm2, %v393_v17 }
  0xb7   : > { %404 = vst.msk [vmem:[%s658_s7 + $0x1c] sm:$0xf] %vm396_vm2, %v395_v18 }
  0xb8 PF: > { %s14_s17 = sadd.s32 1, %s588_s17   ;;  %s690_s15 = smov %s584_s16 }
  0xb9   : > { %p11_p5 = scmp.ge.s32.totalorder %s14_s17, 4   ;;  %s691_s16 = smov %s693_s18 }
  0xbb   :  { %13 = sbr.rel (!%p11_p5) target bundleno = 2 (0x2), region = 66 }

// kernel: _lambda_.18
= control target key start
LH: loop header
LB: loop body
LE: loop exit
PB: predicated region body
PF: predicated region fallthrough
CT: control target
= control target key end

     0   :  { %s928_s15 = smov 0   ;;  %s1232_s0 = inlined_call_operand.vmem [shape: bf16[2,36,9,64], index: 0, kind: input, shape index: {}]   ;;  %s1233_s1 = inlined_call_operand.vmem [shape: f32[9,1,64], index: 1, kind: input, shape index: {}]   ;;  %s1234_s2 = inlined_call_operand.vmem [shape: f32[1,1,64], index: 2, kind: input, shape index: {}]   ;;  %s1235_s3 = inlined_call_operand.vmem [shape: f32[1,1,64], index: 3, kind: input, shape index: {}]   ;;  %s1236_s4 = inlined_call_operand.vmem [shape: bf16[2,8,8,64], index: 4, kind: output, shape index: {}]  }
   0x1 LB: > { %s800_s16 = sadd.s32 4294967295, %s901_s15   ;;  %p804_p0 = scmp.ge.s32.totalorder %s901_s15, 1  ;;  %s901_s15 = sphi %s928_s15, %s14_s15  }
   0x2   : > { %p162_p1 = scmp.lt.s32.totalorder %s901_s15, 3 }
   0x4   : > { %p163_p2 = pnand %p804_p0, %p162_p1 }
   0x5   : > { %p188_p3 = scmp.lt.s32.totalorder (!%p163_p2), %s800_s16, 1 }
   0x6   : > { %166 = sbr.rel (%p163_p2) target bundleno = 116 (0x74), region = 36 }
   0xb   : > { %s1238_s16 = smov (!%p188_p3, %s800_s16), 1  ;;  %v942_v0 = vld [vmem:[%s1233_s1] ss:$0 sm:$0xff]  ;;  %v947_v1 = vld [vmem:[%s1233_s1 + $0x1] ss:$0 sm:$0xff]  ;;  %vm317_vm0 = vcmask 1046528  }
   0xc   : > { %s875_s17 = smul.u32 288, %s1238_s16  ;;  %v952_v2 = vld [vmem:[%s1233_s1 + $0x2] ss:$0 sm:$0xff]  ;;  %v962_v3 = vld [vmem:[%s1233_s1 + $0x3] ss:$0 sm:$0xff]  ;;  %vm736_vm1 = vcmask 519168  }
   0xd   : > { %v967_v4 = vld [vmem:[%s1233_s1 + $0x5] ss:$0 sm:$0xff]  ;;  %v977_v13 = vld [vmem:[%s1233_s1 + $0x4] ss:$0 sm:$0xff]  ;;  %v983_v15 = vld [vmem:[%s1233_s1 + $0x6] ss:$0 sm:$0xff] }
   0xe   : > { %s957_s26 = scalar_lea.vmem %s1232_s0, %s875_s17  ;;  %v990_v21 = vld [vmem:[%s1233_s1 + $0x8] ss:$0 sm:$0xff]  ;;  %v1003_v30 = vld [vmem:[%s1233_s1 + $0x7] ss:$0 sm:$0xff]  ;;  %s874_s19 = sshll.u32 %s1238_s16, 5 }
   0xf   : > { %v198_v5 = vld [vmem:[%s957_s26] sm:$0xf]  ;;  %v808_v6 = vld [vmem:[%s957_s26 + $0x48] sm:$0xf]  ;;  %v264_v7 = vld [vmem:[%s957_s26 + $0x4] sm:$0x1]  ;;  %s1073_s21 = scalar_lea.vmem %s1236_s4, %s874_s19 }
  0x10   : > { %v206_v8 = vunpack.c.l.bf16 %v198_v5  ;;  %v235_v9 = vunpack.c.l.bf16 %v808_v6  ;;  %v272_v10 = vunpack.c.l.bf16 %v264_v7  ;;  %v818_v11 = vld [vmem:[%s957_s26 + $0x90] sm:$0xf]  ;;  %v827_v12 = vld [vmem:[%s957_s26 + $0xd8] sm:$0xf]  ;;  %v836_v14 = vld [vmem:[%s957_s26 + $0x94] sm:$0x1] }
  0x11   : > { %v367_v16 = vunpack.c.l.bf16 %v818_v11  ;;  %v405_v17 = vunpack.c.l.bf16 %v827_v12  ;;  %v442_v18 = vunpack.c.l.bf16 %v836_v14  ;;  %v845_v19 = vld [vmem:[%s957_s26 + $0x8] sm:$0xf]  ;;  %v854_v20 = vld [vmem:[%s957_s26 + $0x50] sm:$0xf]  ;;  %v863_v26 = vld [vmem:[%s957_s26 + $0xc] sm:$0x1] }
  0x12   : > { %v218_v22 = vmul.f32 %v942_v0, %v206_v8  ;;  %v248_v23 = vmul.f32 %v947_v1, %v235_v9  ;;  %v285_v24 = vmul.f32 %v952_v2, %v206_v8  ;;  %v286_v25 = vmul.f32 %v952_v2, %v272_v10  ;;  %v199_v35 = vld [vmem:[%s957_s26 + $0x8] sm:$0xf]  ;;  %v809_v40 = vld [vmem:[%s957_s26 + $0x50] sm:$0xf]  ;;  %v265_v41 = vld [vmem:[%s957_s26 + $0xc] sm:$0x1] }
  0x13   : > { %v380_v27 = vmul.f32 %v962_v3, %v367_v16  ;;  %v455_v28 = vmul.f32 %v967_v4, %v367_v16  ;;  %v456_v29 = vmul.f32 %v967_v4, %v442_v18  ;;  %v536_v34 = vunpack.c.l.bf16 %v845_v19  ;;  %v819_v46 = vld [vmem:[%s957_s26 + $0x98] sm:$0xf]  ;;  %v828_v47 = vld [vmem:[%s957_s26 + $0xe0] sm:$0xf]  ;;  %v837_v60 = vld [vmem:[%s957_s26 + $0x9c] sm:$0x1] }
  0x14   : > { %v256_v31 = vadd.f32 %v248_v23, %v218_v22  ;;  %v318_v32 = vrot.slane %v285_v24, 1  ;;  %v319_v33 = vrot.slane %v286_v25, 1  ;;  %v574_v38 = vunpack.c.l.bf16 %v854_v20  ;;  %v846_v6 = vld [vmem:[%s957_s26 + $0x10] sm:$0xf]  ;;  %v855_v7 = vld [vmem:[%s957_s26 + $0x58] sm:$0xf] }
  0x15   : > { %v487_v36 = vrot.slane %v455_v28, 1  ;;  %v488_v37 = vrot.slane %v456_v29, 1  ;;  %v611_v39 = vunpack.c.l.bf16 %v863_v26  ;;  %v418_v43 = vmul.f32 %v977_v13, %v405_v17  ;;  %v864_v12 = vld [vmem:[%s957_s26 + $0x14] sm:$0x1]  ;;  %v200_v14 = vld [vmem:[%s957_s26 + $0x10] sm:$0xf] }
  0x16   : > { %v320_v42 = vsel %vm317_vm0, %v318_v32, %v319_v33  ;;  %v549_v44 = vmul.f32 %v983_v15, %v536_v34  ;;  %v624_v45 = vmul.f32 %v990_v21, %v536_v34  ;;  %v587_v50 = vmul.f32 %v1003_v30, %v574_v38  ;;  %v810_v29 = vld [vmem:[%s957_s26 + $0x58] sm:$0xf] }
  0x17   : > { %v350_v48 = vadd.f32 %v320_v42, %v256_v31  ;;  %v489_v49 = vsel %vm317_vm0, %v487_v36, %v488_v37  ;;  %v625_v51 = vmul.f32 %v990_v21, %v611_v39  ;;  %v207_v53 = vunpack.c.l.bf16 %v199_v35  ;;  %v266_v35 = vld [vmem:[%s957_s26 + $0x14] sm:$0x1] }
  0x18   : > { %v656_v52 = vrot.slane %v624_v45, 1  ;;  %v236_v54 = vunpack.c.l.bf16 %v809_v40  ;;  %v273_v55 = vunpack.c.l.bf16 %v265_v41  ;;  %v368_v58 = vunpack.c.l.bf16 %v819_v46  ;;  %v1041_v41 = vld [vmem:[%s1234_s2] ss:$0 sm:$0xff]  ;;  %v829_v46 = vld [vmem:[%s957_s26 + $0xe8] sm:$0xf] }
  0x19   : > { %v388_v56 = vadd.f32 %v380_v27, %v350_v48  ;;  %v657_v57 = vrot.slane %v625_v51, 1  ;;  %v406_v59 = vunpack.c.l.bf16 %v828_v47  ;;  %v219_v61 = vmul.f32 %v942_v0, %v207_v53  ;;  %v820_v45 = vld [vmem:[%s957_s26 + $0xa0] sm:$0xf] }
  0x1a   : > { %v249_v62 = vmul.f32 %v947_v1, %v236_v54  ;;  %v287_v63 = vmul.f32 %v952_v2, %v207_v53  ;;  %v288_v5 = vmul.f32 %v952_v2, %v273_v55  ;;  %v381_v10 = vmul.f32 %v962_v3, %v368_v58 }
  0x1b   : > { %v426_v8 = vadd.f32 %v418_v43, %v388_v56  ;;  %v658_v9 = vsel %vm317_vm0, %v656_v52, %v657_v57  ;;  %v419_v11 = vmul.f32 %v977_v13, %v406_v59  ;;  %v443_v19 = vunpack.c.l.bf16 %v837_v60  ;;  %v1050_v52 = vld [vmem:[%s1235_s3] ss:$0 sm:$0xff]  ;;  %v838_v56 = vld [vmem:[%s957_s26 + $0xa4] sm:$0x1] }
  0x1c   : > { %v257_v16 = vadd.f32 %v249_v62, %v219_v61  ;;  %v321_v17 = vrot.slane %v287_v63, 1  ;;  %v322_v18 = vrot.slane %v288_v5, 1  ;;  %v457_v22 = vmul.f32 %v967_v4, %v368_v58  ;;  %v847_v61 = vld [vmem:[%s957_s26 + $0x18] sm:$0xf] }
  0x1d   : > { %v519_v20 = vadd.f32 %v489_v49, %v426_v8  ;;  %v537_v23 = vunpack.c.l.bf16 %v846_v6  ;;  %v575_v24 = vunpack.c.l.bf16 %v855_v7  ;;  %v458_v26 = vmul.f32 %v967_v4, %v443_v19  ;;  %v856_v7 = vld [vmem:[%s957_s26 + $0x60] sm:$0xf]  ;;  %v865_v8 = vld [vmem:[%s957_s26 + $0x1c] sm:$0x1] }
  0x1e   : > { %v323_v25 = vsel %vm317_vm0, %v321_v17, %v322_v18  ;;  %v612_v27 = vunpack.c.l.bf16 %v864_v12  ;;  %v208_v28 = vunpack.c.l.bf16 %v200_v14  ;;  %v490_v33 = vrot.slane %v457_v22, 1 }
  0x1f   : > { %v557_v31 = vadd.f32 %v549_v44, %v519_v20  ;;  %v351_v32 = vadd.f32 %v323_v25, %v257_v16  ;;  %v550_v34 = vmul.f32 %v983_v15, %v537_v23  ;;  %v491_v36 = vrot.slane %v458_v26, 1 }
  0x20   : > { %v588_v37 = vmul.f32 %v1003_v30, %v575_v24  ;;  %v626_v38 = vmul.f32 %v990_v21, %v537_v23  ;;  %v627_v39 = vmul.f32 %v990_v21, %v612_v27  ;;  %v220_v43 = vmul.f32 %v942_v0, %v208_v28 }
  0x21   : > { %v595_v40 = vadd.f32 %v587_v50, %v557_v31  ;;  %v389_v42 = vadd.f32 %v381_v10, %v351_v32  ;;  %v237_v44 = vunpack.c.l.bf16 %v810_v29  ;;  %v492_v47 = vsel %vm317_vm0, %v490_v33, %v491_v36  ;;  %v811_v29 = vld [vmem:[%s957_s26 + $0x60] sm:$0xf] }
  0x22   : > { %v659_v48 = vrot.slane %v626_v38, 1  ;;  %v660_v49 = vrot.slane %v627_v39, 1  ;;  %v274_v51 = vunpack.c.l.bf16 %v266_v35  ;;  %v289_v55 = vmul.f32 %v952_v2, %v208_v28  ;;  %v201_v28 = vld [vmem:[%s957_s26 + $0x18] sm:$0xf]  ;;  %v267_v35 = vld [vmem:[%s957_s26 + $0x1c] sm:$0x1] }
  0x23   : > { %v688_v50 = vadd.f32 %v658_v9, %v595_v40  ;;  %v427_v53 = vadd.f32 %v419_v11, %v389_v42  ;;  %v250_v54 = vmul.f32 %v947_v1, %v237_v44  ;;  %v369_v59 = vunpack.c.l.bf16 %v820_v45  ;;  %v821_v40 = vld [vmem:[%s957_s26 + $0xa8] sm:$0xf] }
  0x24   : > { %v661_v57 = vsel %vm317_vm0, %v659_v48, %v660_v49  ;;  %v290_v58 = vmul.f32 %v952_v2, %v274_v51  ;;  %v407_v60 = vunpack.c.l.bf16 %v829_v46  ;;  %v324_v6 = vrot.slane %v289_v55, 1  ;;  %v830_v51 = vld [vmem:[%s957_s26 + $0xf0] sm:$0xf] }
  0x25   : > { %v700_v62 = vmul.f32 %v1041_v41, %v688_v50  ;;  %v520_v63 = vadd.f32 %v492_v47, %v427_v53  ;;  %v258_v5 = vadd.f32 %v250_v54, %v220_v43  ;;  %v382_v10 = vmul.f32 %v962_v3, %v369_v59 }
  0x26   : > { %v325_v9 = vrot.slane %v290_v58, 1  ;;  %v420_v11 = vmul.f32 %v977_v13, %v407_v60  ;;  %v444_v12 = vunpack.c.l.bf16 %v838_v56  ;;  %v459_v17 = vmul.f32 %v967_v4, %v369_v59  ;;  %v839_v56 = vld [vmem:[%s957_s26 + $0xac] sm:$0x1] }
  0x27   : > { %v712_v14 = vadd.f32 %v1050_v52, %v700_v62  ;;  %v558_v16 = vadd.f32 %v550_v34, %v520_v63  ;;  %v538_v18 = vunpack.c.l.bf16 %v847_v61  ;;  %v576_v22 = vunpack.c.l.bf16 %v856_v7  ;;  %v848_v61 = vld [vmem:[%s957_s26 + $0x20] sm:$0xf]  ;;  %v857_v62 = vld [vmem:[%s957_s26 + $0x68] sm:$0xf] }
  0x28   : > { %v326_v19 = vsel %vm317_vm0, %v324_v6, %v325_v9  ;;  %v460_v20 = vmul.f32 %v967_v4, %v444_v12  ;;  %v613_v23 = vunpack.c.l.bf16 %v865_v8  ;;  %v493_v27 = vrot.slane %v459_v17, 1 }
  0x29   : > { %v720_v24 = vmax.f32 %v712_v14, 0.0  ;;  %v596_v25 = vadd.f32 %v588_v37, %v558_v16  ;;  %v352_v26 = vadd.f32 %v326_v19, %v258_v5  ;;  %v551_v32 = vmul.f32 %v983_v15, %v538_v18 }
  0x2a   : > { %v494_v31 = vrot.slane %v460_v20, 1  ;;  %v589_v33 = vmul.f32 %v1003_v30, %v576_v22  ;;  %v628_v34 = vmul.f32 %v990_v21, %v538_v18  ;;  %v629_v39 = vmul.f32 %v990_v21, %v613_v23  ;;  %v866_v18 = vld [vmem:[%s957_s26 + $0x24] sm:$0x1] }
  0x2b   : > { %v728_v36 = vpack.c.bf16 %v720_v24, %v720_v24  ;;  %v689_v37 = vadd.f32 %v661_v57, %v596_v25  ;;  %v390_v38 = vadd.f32 %v382_v10, %v352_v26  ;;  %v209_v44 = vunpack.c.l.bf16 %v201_v28  ;;  %v202_v24 = vld [vmem:[%s957_s26 + $0x20] sm:$0xf]  ;;  %v812_v25 = vld [vmem:[%s957_s26 + $0x68] sm:$0xf]  ;;  %v268_v26 = vld [vmem:[%s957_s26 + $0x24] sm:$0x1] }
  0x2c   : > { %v495_v42 = vsel %vm317_vm0, %v493_v27, %v494_v31  ;;  %v662_v43 = vrot.slane %v628_v34, 1  ;;  %v238_v45 = vunpack.c.l.bf16 %v811_v29  ;;  %v663_v48 = vrot.slane %v629_v39, 1 }
  0x2d   : > { %737 = vst.msk [vmem:[%s1073_s21] sm:$0xf] %vm736_vm1, %v728_v36  ;;  %v701_v46 = vmul.f32 %v1041_v41, %v689_v37  ;;  %v428_v47 = vadd.f32 %v420_v11, %v390_v38  ;;  %v275_v49 = vunpack.c.l.bf16 %v267_v35  ;;  %v221_v50 = vmul.f32 %v942_v0, %v209_v44 }
  0x2e   : > { %v251_v53 = vmul.f32 %v947_v1, %v238_v45  ;;  %v291_v54 = vmul.f32 %v952_v2, %v209_v44  ;;  %v370_v55 = vunpack.c.l.bf16 %v821_v40  ;;  %v664_v59 = vsel %vm317_vm0, %v662_v43, %v663_v48  ;;  %v822_v40 = vld [vmem:[%s957_s26 + $0xb0] sm:$0xf] }
  0x2f   : > { %v713_v57 = vadd.f32 %v1050_v52, %v701_v46  ;;  %v521_v58 = vadd.f32 %v495_v42, %v428_v47  ;;  %v292_v60 = vmul.f32 %v952_v2, %v275_v49  ;;  %v408_v7 = vunpack.c.l.bf16 %v830_v51  ;;  %v831_v46 = vld [vmem:[%s957_s26 + $0xf8] sm:$0xf] }
  0x30   : > { %v259_v63 = vadd.f32 %v251_v53, %v221_v50  ;;  %v327_v5 = vrot.slane %v291_v54, 1  ;;  %v383_v6 = vmul.f32 %v962_v3, %v370_v55  ;;  %v445_v11 = vunpack.c.l.bf16 %v839_v56  ;;  %v840_v56 = vld [vmem:[%s957_s26 + $0xb4] sm:$0x1] }
  0x31   : > { %v721_v8 = vmax.f32 %v713_v57, 0.0  ;;  %v559_v9 = vadd.f32 %v551_v32, %v521_v58  ;;  %v328_v10 = vrot.slane %v292_v60, 1  ;;  %v421_v12 = vmul.f32 %v977_v13, %v408_v7 }
  0x32   : > { %v461_v14 = vmul.f32 %v967_v4, %v370_v55  ;;  %v539_v16 = vunpack.c.l.bf16 %v848_v61  ;;  %v577_v17 = vunpack.c.l.bf16 %v857_v62  ;;  %v462_v23 = vmul.f32 %v967_v4, %v445_v11  ;;  %v849_v61 = vld [vmem:[%s957_s26 + $0x28] sm:$0xf]  ;;  %v858_v62 = vld [vmem:[%s957_s26 + $0x70] sm:$0xf] }
  0x33   : > { %v729_v19 = vpack.c.bf16 %v721_v8, %v721_v8  ;;  %v597_v20 = vadd.f32 %v589_v33, %v559_v9  ;;  %v329_v22 = vsel %vm317_vm0, %v327_v5, %v328_v10  ;;  %v614_v33 = vunpack.c.l.bf16 %v866_v18 }
  0x34   : > { %v353_v27 = vadd.f32 %v329_v22, %v259_v63  ;;  %v496_v28 = vrot.slane %v461_v14, 1  ;;  %v552_v29 = vmul.f32 %v983_v15, %v539_v16  ;;  %v590_v31 = vmul.f32 %v1003_v30, %v577_v17 }
  0x35   : > { %738 = vst.msk [vmem:[%s1073_s21 + $0x4] sm:$0xf] %vm736_vm1, %v729_v19  ;;  %v690_v32 = vadd.f32 %v664_v59, %v597_v20  ;;  %v497_v34 = vrot.slane %v462_v23, 1  ;;  %v630_v35 = vmul.f32 %v990_v21, %v539_v16  ;;  %v210_v37 = vunpack.c.l.bf16 %v202_v24  ;;  %v203_v19 = vld [vmem:[%s957_s26 + $0x28] sm:$0xf] }
  0x36   : > { %v391_v36 = vadd.f32 %v383_v6, %v353_v27  ;;  %v239_v38 = vunpack.c.l.bf16 %v812_v25  ;;  %v276_v39 = vunpack.c.l.bf16 %v268_v26  ;;  %v631_v44 = vmul.f32 %v990_v21, %v614_v33  ;;  %v813_v25 = vld [vmem:[%s957_s26 + $0x70] sm:$0xf]  ;;  %v269_v26 = vld [vmem:[%s957_s26 + $0x2c] sm:$0x1] }
  0x37   : > { %v702_v42 = vmul.f32 %v1041_v41, %v690_v32  ;;  %v498_v43 = vsel %vm317_vm0, %v496_v28, %v497_v34  ;;  %v665_v45 = vrot.slane %v630_v35, 1  ;;  %v222_v48 = vmul.f32 %v942_v0, %v210_v37 }
  0x38   : > { %v429_v47 = vadd.f32 %v421_v12, %v391_v36  ;;  %v252_v49 = vmul.f32 %v947_v1, %v239_v38  ;;  %v293_v51 = vmul.f32 %v952_v2, %v210_v37  ;;  %v666_v53 = vrot.slane %v631_v44, 1  ;;  %v867_v12 = vld [vmem:[%s957_s26 + $0x2c] sm:$0x1] }
  0x39   : > { %v714_v50 = vadd.f32 %v1050_v52, %v702_v42  ;;  %v294_v54 = vmul.f32 %v952_v2, %v276_v39  ;;  %v371_v55 = vunpack.c.l.bf16 %v822_v40  ;;  %v409_v60 = vunpack.c.l.bf16 %v831_v46  ;;  %v823_v40 = vld [vmem:[%s957_s26 + $0xb8] sm:$0xf]  ;;  %v832_v42 = vld [vmem:[%s957_s26 + $0x100] sm:$0xf] }
  0x3a   : > { %v522_v57 = vadd.f32 %v498_v43, %v429_v47  ;;  %v260_v58 = vadd.f32 %v252_v49, %v222_v48  ;;  %v330_v59 = vrot.slane %v293_v51, 1  ;;  %v667_v5 = vsel %vm317_vm0, %v665_v45, %v666_v53 }
  0x3b   : > { %v722_v63 = vmax.f32 %v714_v50, 0.0  ;;  %v331_v6 = vrot.slane %v294_v54, 1  ;;  %v384_v7 = vmul.f32 %v962_v3, %v371_v55  ;;  %v422_v9 = vmul.f32 %v977_v13, %v409_v60 }
  0x3c   : > { %v560_v8 = vadd.f32 %v552_v29, %v522_v57  ;;  %v446_v10 = vunpack.c.l.bf16 %v840_v56  ;;  %v463_v11 = vmul.f32 %v967_v4, %v371_v55  ;;  %v540_v17 = vunpack.c.l.bf16 %v849_v61  ;;  %v841_v56 = vld [vmem:[%s957_s26 + $0xbc] sm:$0x1]  ;;  %v850_v57 = vld [vmem:[%s957_s26 + $0x30] sm:$0xf] }
  0x3d   : > { %v730_v14 = vpack.c.bf16 %v722_v63, %v722_v63  ;;  %v332_v16 = vsel %vm317_vm0, %v330_v59, %v331_v6  ;;  %v578_v18 = vunpack.c.l.bf16 %v858_v62  ;;  %v615_v29 = vunpack.c.l.bf16 %v867_v12  ;;  %v859_v62 = vld [vmem:[%s957_s26 + $0x78] sm:$0xf] }
  0x3e   : > { %v598_v20 = vadd.f32 %v590_v31, %v560_v8  ;;  %v354_v22 = vadd.f32 %v332_v16, %v260_v58  ;;  %v464_v23 = vmul.f32 %v967_v4, %v446_v10  ;;  %v499_v24 = vrot.slane %v463_v11, 1  ;;  %v868_v8 = vld [vmem:[%s957_s26 + $0x34] sm:$0x1] }
  0x3f   : > { %739 = vst.msk [vmem:[%s1073_s21 + $0x8] sm:$0xf] %vm736_vm1, %v730_v14  ;;  %v553_v27 = vmul.f32 %v983_v15, %v540_v17  ;;  %v591_v28 = vmul.f32 %v1003_v30, %v578_v18  ;;  %v632_v32 = vmul.f32 %v990_v21, %v540_v17  ;;  %v211_v35 = vunpack.c.l.bf16 %v203_v19  ;;  %v204_v19 = vld [vmem:[%s957_s26 + $0x30] sm:$0xf] }
  0x40   : > { %v691_v34 = vadd.f32 %v667_v5, %v598_v20  ;;  %v392_v33 = vadd.f32 %v384_v7, %v354_v22  ;;  %v500_v31 = vrot.slane %v464_v23, 1  ;;  %v633_v36 = vmul.f32 %v990_v21, %v615_v29  ;;  %v814_v20 = vld [vmem:[%s957_s26 + $0x78] sm:$0xf] }
  0x41   : > { %v668_v37 = vrot.slane %v632_v32, 1  ;;  %v240_v38 = vunpack.c.l.bf16 %v813_v25  ;;  %v277_v39 = vunpack.c.l.bf16 %v269_v26  ;;  %v223_v46 = vmul.f32 %v942_v0, %v211_v35  ;;  %v270_v26 = vld [vmem:[%s957_s26 + $0x34] sm:$0x1] }
  0x42   : > { %v703_v43 = vmul.f32 %v1041_v41, %v691_v34  ;;  %v430_v44 = vadd.f32 %v422_v9, %v392_v33  ;;  %v501_v45 = vsel %vm317_vm0, %v499_v24, %v500_v31  ;;  %v669_v47 = vrot.slane %v633_v36, 1 }
  0x43   : > { %v253_v48 = vmul.f32 %v947_v1, %v240_v38  ;;  %v295_v49 = vmul.f32 %v952_v2, %v211_v35  ;;  %v296_v51 = vmul.f32 %v952_v2, %v277_v39  ;;  %v372_v54 = vunpack.c.l.bf16 %v823_v40  ;;  %v824_v40 = vld [vmem:[%s957_s26 + $0xc0] sm:$0xf] }
  0x44   : > { %v715_v50 = vadd.f32 %v1050_v52, %v703_v43  ;;  %v523_v53 = vadd.f32 %v501_v45, %v430_v44  ;;  %v410_v55 = vunpack.c.l.bf16 %v832_v42  ;;  %v670_v58 = vsel %vm317_vm0, %v668_v37, %v669_v47  ;;  %v833_v42 = vld [vmem:[%s957_s26 + $0x108] sm:$0xf] }
  0x45   : > { %v261_v59 = vadd.f32 %v253_v48, %v223_v46  ;;  %v333_v60 = vrot.slane %v295_v49, 1  ;;  %v334_v61 = vrot.slane %v296_v51, 1  ;;  %v385_v6 = vmul.f32 %v962_v3, %v372_v54 }
  0x46   : > { %v723_v63 = vmax.f32 %v715_v50, 0.0  ;;  %v561_v5 = vadd.f32 %v553_v27, %v523_v53  ;;  %v423_v7 = vmul.f32 %v977_v13, %v410_v55  ;;  %v447_v10 = vunpack.c.l.bf16 %v841_v56  ;;  %v842_v50 = vld [vmem:[%s957_s26 + $0xc4] sm:$0x1]  ;;  %v851_v56 = vld [vmem:[%s957_s26 + $0x38] sm:$0xf] }
  0x47   : > { %v335_v9 = vsel %vm317_vm0, %v333_v60, %v334_v61  ;;  %v465_v11 = vmul.f32 %v967_v4, %v372_v54  ;;  %v541_v12 = vunpack.c.l.bf16 %v850_v57  ;;  %v579_v18 = vunpack.c.l.bf16 %v859_v62 }
  0x48   : > { %v731_v14 = vpack.c.bf16 %v723_v63, %v723_v63  ;;  %v599_v16 = vadd.f32 %v591_v28, %v561_v5  ;;  %v355_v17 = vadd.f32 %v335_v9, %v261_v59  ;;  %v466_v22 = vmul.f32 %v967_v4, %v447_v10 }
  0x49   : > { %v502_v23 = vrot.slane %v465_v11, 1  ;;  %v554_v24 = vmul.f32 %v983_v15, %v541_v12  ;;  %v616_v25 = vunpack.c.l.bf16 %v868_v8  ;;  %v592_v32 = vmul.f32 %v1003_v30, %v579_v18 }
  0x4a   : > { %740 = vst.msk [vmem:[%s1073_s21 + $0xc] sm:$0xf] %vm736_vm1, %v731_v14  ;;  %v692_v27 = vadd.f32 %v670_v58, %v599_v16  ;;  %v393_v29 = vadd.f32 %v385_v6, %v355_v17  ;;  %v634_v28 = vmul.f32 %v990_v21, %v541_v12  ;;  %v503_v34 = vrot.slane %v466_v22, 1  ;;  %v860_v6 = vld [vmem:[%s957_s26 + $0x80] sm:$0xf] }
  0x4b   : > { %v635_v33 = vmul.f32 %v990_v21, %v616_v25  ;;  %v212_v31 = vunpack.c.l.bf16 %v204_v19  ;;  %v241_v35 = vunpack.c.l.bf16 %v814_v20  ;;  %v278_v39 = vunpack.c.l.bf16 %v270_v26  ;;  %v205_v12 = vld [vmem:[%s957_s26 + $0x38] sm:$0xf]  ;;  %v815_v19 = vld [vmem:[%s957_s26 + $0x80] sm:$0xf]  ;;  %v271_v25 = vld [vmem:[%s957_s26 + $0x3c] sm:$0x1] }
  0x4c   : > { %v704_v36 = vmul.f32 %v1041_v41, %v692_v27  ;;  %v431_v37 = vadd.f32 %v423_v7, %v393_v29  ;;  %v671_v38 = vrot.slane %v634_v28, 1  ;;  %v504_v43 = vsel %vm317_vm0, %v502_v23, %v503_v34  ;;  %v869_v7 = vld [vmem:[%s957_s26 + $0x3c] sm:$0x1] }
  0x4d   : > { %v672_v44 = vrot.slane %v635_v33, 1  ;;  %v224_v45 = vmul.f32 %v942_v0, %v212_v31  ;;  %v254_v46 = vmul.f32 %v947_v1, %v241_v35  ;;  %v297_v49 = vmul.f32 %v952_v2, %v212_v31  ;;  %v825_v35 = vld [vmem:[%s957_s26 + $0xc8] sm:$0xf] }
  0x4e   : > { %v716_v47 = vadd.f32 %v1050_v52, %v704_v36  ;;  %v524_v48 = vadd.f32 %v504_v43, %v431_v37  ;;  %v298_v51 = vmul.f32 %v952_v2, %v278_v39  ;;  %v373_v54 = vunpack.c.l.bf16 %v824_v40  ;;  %v834_v40 = vld [vmem:[%s957_s26 + $0x110] sm:$0xf] }
  0x4f   : > { %v262_v53 = vadd.f32 %v254_v46, %v224_v45  ;;  %v411_v55 = vunpack.c.l.bf16 %v833_v42  ;;  %v336_v59 = vrot.slane %v297_v49, 1  ;;  %v673_v61 = vsel %vm317_vm0, %v671_v38, %v672_v44 }
  0x50   : > { %v724_v57 = vmax.f32 %v716_v47, 0.0  ;;  %v562_v58 = vadd.f32 %v554_v24, %v524_v48  ;;  %v337_v60 = vrot.slane %v298_v51, 1  ;;  %v386_v62 = vmul.f32 %v962_v3, %v373_v54  ;;  %v843_v51 = vld [vmem:[%s957_s26 + $0xcc] sm:$0x1] }
  0x51   : > { %v448_v63 = vunpack.c.l.bf16 %v842_v50  ;;  %v467_v5 = vmul.f32 %v967_v4, %v373_v54  ;;  %v542_v11 = vunpack.c.l.bf16 %v851_v56  ;;  %v424_v16 = vmul.f32 %v977_v13, %v411_v55  ;;  %v852_v50 = vld [vmem:[%s957_s26 + $0x40] sm:$0xf]  ;;  %v870_v56 = vld [vmem:[%s957_s26 + $0x44] sm:$0x1] }
  0x52   : > { %v732_v8 = vpack.c.bf16 %v724_v57, %v724_v57  ;;  %v600_v9 = vadd.f32 %v592_v32, %v562_v58  ;;  %v338_v10 = vsel %vm317_vm0, %v336_v59, %v337_v60  ;;  %v580_v22 = vunpack.c.l.bf16 %v860_v6  ;;  %v861_v6 = vld [vmem:[%s957_s26 + $0x88] sm:$0xf] }
  0x53   : > { %v356_v14 = vadd.f32 %v338_v10, %v262_v53  ;;  %v468_v17 = vmul.f32 %v967_v4, %v448_v63  ;;  %v505_v18 = vrot.slane %v467_v5, 1  ;;  %v617_v23 = vunpack.c.l.bf16 %v869_v7 }
  0x54   : > { %741 = vst.msk [vmem:[%s1073_s21 + $0x10] sm:$0xf] %vm736_vm1, %v732_v8  ;;  %v693_v20 = vadd.f32 %v673_v61, %v600_v9  ;;  %v636_v24 = vmul.f32 %v990_v21, %v542_v11  ;;  %v555_v29 = vmul.f32 %v983_v15, %v542_v11  ;;  %v213_v32 = vunpack.c.l.bf16 %v205_v12 }
  0x55   : > { %v394_v26 = vadd.f32 %v386_v62, %v356_v14  ;;  %v506_v27 = vrot.slane %v468_v17, 1  ;;  %v637_v34 = vmul.f32 %v990_v21, %v617_v23  ;;  %v242_v31 = vunpack.c.l.bf16 %v815_v19 }
  0x56   : > { %v705_v28 = vmul.f32 %v1041_v41, %v693_v20  ;;  %v674_v33 = vrot.slane %v636_v24, 1  ;;  %v225_v38 = vmul.f32 %v942_v0, %v213_v32  ;;  %v279_v39 = vunpack.c.l.bf16 %v271_v25 }
  0x57   : > { %v432_v36 = vadd.f32 %v424_v16, %v394_v26  ;;  %v507_v37 = vsel %vm317_vm0, %v505_v18, %v506_v27  ;;  %v675_v43 = vrot.slane %v637_v34, 1  ;;  %v255_v44 = vmul.f32 %v947_v1, %v242_v31 }
  0x58   : > { %v717_v42 = vadd.f32 %v1050_v52, %v705_v28  ;;  %v299_v45 = vmul.f32 %v952_v2, %v213_v32  ;;  %v593_v47 = vmul.f32 %v1003_v30, %v580_v22  ;;  %v300_v48 = vmul.f32 %v952_v2, %v279_v39 }
  0x59   : > { %v525_v46 = vadd.f32 %v507_v37, %v432_v36  ;;  %v374_v49 = vunpack.c.l.bf16 %v825_v35  ;;  %v263_v53 = vadd.f32 %v255_v44, %v225_v38  ;;  %v412_v55 = vunpack.c.l.bf16 %v834_v40 }
  0x5a   : > { %v725_v0 = vmax.f32 %v717_v42, 0.0  ;;  %v339_v54 = vrot.slane %v299_v45, 1  ;;  %v676_v1 = vsel %vm317_vm0, %v674_v33, %v675_v43  ;;  %v340_v58 = vrot.slane %v300_v48, 1 }
  0x5b   : > { %v563_v57 = vadd.f32 %v555_v29, %v525_v46  ;;  %v387_v59 = vmul.f32 %v962_v3, %v374_v49  ;;  %v449_v61 = vunpack.c.l.bf16 %v843_v51  ;;  %v469_v2 = vmul.f32 %v967_v4, %v374_v49 }
  0x5c   : > { %v733_v60 = vpack.c.bf16 %v725_v0, %v725_v0  ;;  %v543_v62 = vunpack.c.l.bf16 %v852_v50  ;;  %v341_v5 = vsel %vm317_vm0, %v339_v54, %v340_v58  ;;  %v618_v7 = vunpack.c.l.bf16 %v870_v56 }
  0x5d   : > { %v601_v63 = vadd.f32 %v593_v47, %v563_v57  ;;  %v357_v8 = vadd.f32 %v341_v5, %v263_v53  ;;  %v425_v9 = vmul.f32 %v977_v13, %v412_v55  ;;  %v470_v10 = vmul.f32 %v967_v4, %v449_v61 }
  0x5e   : > { %742 = vst.msk [vmem:[%s1073_s21 + $0x14] sm:$0xf] %vm736_vm1, %v733_v60  ;;  %v508_v11 = vrot.slane %v469_v2, 1  ;;  %v638_v3 = vmul.f32 %v990_v21, %v543_v62  ;;  %v639_v14 = vmul.f32 %v990_v21, %v618_v7  ;;  %v581_v18 = vunpack.c.l.bf16 %v861_v6 }
  0x5f   : > { %v694_v12 = vadd.f32 %v676_v1, %v601_v63  ;;  %v395_v16 = vadd.f32 %v387_v59, %v357_v8  ;;  %v509_v17 = vrot.slane %v470_v10, 1  ;;  %v556_v23 = vmul.f32 %v983_v15, %v543_v62 }
  0x60   : > { %v677_v4 = vrot.slane %v638_v3, 1  ;;  %v678_v24 = vrot.slane %v639_v14, 1  ;;  %v594_v26 = vmul.f32 %v1003_v30, %v581_v18 }
  0x61   : > { %v706_v19 = vmul.f32 %v1041_v41, %v694_v12  ;;  %v433_v20 = vadd.f32 %v425_v9, %v395_v16  ;;  %v510_v22 = vsel %vm317_vm0, %v508_v11, %v509_v17 }
  0x62   : > { %v679_v32 = vsel %vm317_vm0, %v677_v4, %v678_v24 }
  0x63   : > { %v718_v13 = vadd.f32 %v1050_v52, %v706_v19  ;;  %v526_v25 = vadd.f32 %v510_v22, %v433_v20 }
  0x65   : > { %v726_v21 = vmax.f32 %v718_v13, 0.0  ;;  %v564_v27 = vadd.f32 %v556_v23, %v526_v25 }
  0x67   : > { %v734_v29 = vpack.c.bf16 %v726_v21, %v726_v21  ;;  %v602_v28 = vadd.f32 %v594_v26, %v564_v27 }
  0x69   : > { %743 = vst.msk [vmem:[%s1073_s21 + $0x18] sm:$0xf] %vm736_vm1, %v734_v29  ;;  %v695_v34 = vadd.f32 %v679_v32, %v602_v28 }
  0x6b   : > { %v707_v33 = vmul.f32 %v1041_v41, %v695_v34 }
  0x6d   : > { %v719_v15 = vadd.f32 %v1050_v52, %v707_v33 }
  0x6f   : > { %v727_v31 = vmax.f32 %v719_v15, 0.0 }
  0x71   : > { %v735_v35 = vpack.c.bf16 %v727_v31, %v727_v31 }
  0x73   : > { %744 = vst.msk [vmem:[%s1073_s21 + $0x1c] sm:$0xf] %vm736_vm1, %v735_v35 }
  0x74 PF: > { %s14_s15 = sadd.s32 1, %s901_s15  }
  0x75   : > { %p11_p4 = scmp.ge.s32.totalorder %s14_s15, 4  }
  0x77   :  { %13 = sbr.rel (!%p11_p4) target bundleno = 1 (0x1), region = 79 }

// kernel: _lambda_.22
= control target key start
LH: loop header
LB: loop body
LE: loop exit
PB: predicated region body
PF: predicated region fallthrough
CT: control target
= control target key end

     0   :  { %s416_s18 = smov 0   ;;  %s491_s0 = inlined_call_operand.vmem [shape: bf16[2,16,96], index: 0, kind: input, shape index: {}]   ;;  %s492_s1 = inlined_call_operand.vmem [shape: f32[96,24], index: 1, kind: input, shape index: {}]   ;;  %s493_s2 = inlined_call_operand.vmem [shape: f32[1,24], index: 2, kind: input, shape index: {}]   ;;  %s494_s3 = inlined_call_operand.vmem [shape: f32[24,96], index: 3, kind: input, shape index: {}]   ;;  %s495_s4 = inlined_call_operand.vmem [shape: f32[1,96], index: 4, kind: input, shape index: {}]   ;;  %s496_s5 = inlined_call_operand.vmem [shape: f32[2,1,96], index: 5, kind: output, shape index: {}]  }
   0x1 LB: > { %s354_s19 = sadd.s32 4294967295, %s384_s18   ;;  %p358_p0 = scmp.ge.s32.totalorder %s384_s18, 1  ;;  %s384_s18 = sphi %s416_s18, %s15_s18  }
   0x2   : > { %p187_p1 = scmp.lt.s32.totalorder %s384_s18, 3 }
   0x4   : > { %p188_p2 = pnand %p358_p0, %p187_p1 }
   0x5   : > { %p213_p3 = scmp.lt.s32.totalorder (!%p188_p2), %s354_s19, 1 }
   0x6   : > { %191 = sbr.rel (%p188_p2) target bundleno = 302 (0x12e), region = 40 }
   0xb   : > { %v247_v0 = vld [vmem:[%s492_s1 + $0x58] sm:$0xff]  ;;  %v246_v1 = vld [vmem:[%s492_s1 + $0x50] sm:$0xff]  ;;  %v245_v2 = vld [vmem:[%s492_s1 + $0x48] sm:$0xff]  ;;  %s498_s19 = smov (!%p213_p3, %s354_s19), 1  ;;  %vm225_vm0 = vcmask 785408   ;;  %vm277_vm1 = vcmask 195584  }
   0xc   : > { %256 = vmatpush.msra.mxu0 %v247_v0  ;;  %v244_v3 = vld [vmem:[%s492_s1 + $0x40] sm:$0xff]  ;;  %s365_s28 = sshll.u32 %s498_s19, 3  ;;  %v243_v4 = vld [vmem:[%s492_s1 + $0x38] sm:$0xff]  ;;  %v242_v8 = vld [vmem:[%s492_s1 + $0x30] sm:$0xff]  ;;  %s220_s12 = scalar_lea.vmem %s496_s5, %s498_s19  ;;  %vm305_vm2 = vcmask 778240  }
   0xd   : > { %s217_s6 = scalar_lea.vmem %s491_s0, %s365_s28  ;;  %v241_v11 = vld [vmem:[%s492_s1 + $0x28] sm:$0xff]  ;;  %v240_v13 = vld [vmem:[%s492_s1 + $0x20] sm:$0xff]  ;;  %v239_v15 = vld [vmem:[%s492_s1 + $0x18] sm:$0xff] }
   0xe   : > { %257 = vmatpush.msra.mxu0 %v246_v1  ;;  %v367_v5 = vld [vmem:[%s217_s6] sm:$0xff]   ;;  %v238_v17 = vld [vmem:[%s492_s1 + $0x10] sm:$0xff]  ;;  %v237_v19 = vld [vmem:[%s492_s1 + $0x8] sm:$0xff] }
   0xf   : > { %v368_v6 = vunpack.c.l.bf16 %v367_v5  ;;  %v369_v7 = vunpack.c.h.bf16 %v367_v5  ;;  %v236_v21 = vld [vmem:[%s492_s1] sm:$0xff]  ;;  %v275_v25 = vld [vmem:[%s494_s3 + $0x10] sm:$0xff]  ;;  %v274_v26 = vld [vmem:[%s494_s3 + $0x8] sm:$0xff] }
  0x10   : > { %258 = vmatpush.msra.mxu0 %v245_v2  ;;  %294 = vmatpush.msra.mxu1 %v275_v25  ;;  %v273_v27 = vld [vmem:[%s494_s3] sm:$0xff] }
  0x11   : > { %v226_v9 = vsel %vm225_vm0, %v368_v6, 0.0  ;;  %v227_v10 = vsel %vm225_vm0, %v369_v7, 0.0  ;;  %v248_v28 = vld [vmem:[%s493_s2] sm:$0x1] }
  0x12   : > { %259 = vmatpush.msra.mxu0 %v244_v3  ;;  %v228_v12 = vadd.f32 %v227_v10, %v226_v9  ;;  %295 = vmatpush.msra.mxu1 %v274_v26  ;;  %v276_v32 = vld [vmem:[%s495_s4] sm:$0x1] }
  0x14   : > { %260 = vmatpush.msra.mxu0 %v243_v4  ;;  %v229_v14 = vrot.slane %v228_v12, 4  ;;  %296 = vmatpush.msra.mxu1 %v273_v27 }
  0x16   : > { %261 = vmatpush.msra.mxu0 %v242_v8  ;;  %v230_v16 = vadd.f32 %v229_v14, %v228_v12 }
  0x18   : > { %262 = vmatpush.msra.mxu0 %v241_v11  ;;  %v231_v18 = vrot.slane %v230_v16, 2 }
  0x1a   : > { %263 = vmatpush.msra.mxu0 %v240_v13  ;;  %v232_v20 = vadd.f32 %v231_v18, %v230_v16 }
  0x1c   : > { %264 = vmatpush.msra.mxu0 %v239_v15  ;;  %v233_v22 = vrot.slane %v232_v20, 1 }
  0x1e   : > { %265 = vmatpush.msra.mxu0 %v238_v17  ;;  %v234_v23 = vadd.f32 %v233_v22, %v232_v20 }
  0x20   : > { %266 = vmatpush.msra.mxu0 %v237_v19  ;;  %v235_v24 = vmul.f32 0.0625, %v234_v23 }
  0x22   : > { %267 = vmatpush.msra.mxu0 %v236_v21 }
  0x23   : > { %361 = vmatmul.msk.f32.vlgmr.msra.gmra.mxu0 %vm225_vm0, %v235_v24 }
  0xa0   : > { %v269_v29 = vpop.f32.mrf.mxu0 }
  0xa1   : > { %v270_v30 = vadd.f32 %v269_v29, %v248_v28 }
  0xa3   : > { %v272_v31 = vmax.f32 %v270_v30, 0.0 }
  0xa5   : > { %362 = vmatmul.msk.f32.vlgmr.msra.gmra.mxu1 %vm277_vm1, %v272_v31 }
 0x122   : > { %v298_v33 = vpop.f32.mrf.mxu1 }
 0x123   : > { %v299_v34 = vadd.f32 %v298_v33, %v276_v32 }
 0x125   : > { %v301_v35 = vadd.f32 3.0, %v299_v34 }
 0x127   : > { %v302_v36 = vmax.f32 %v301_v35, 0.0 }
 0x129   : > { %v303_v37 = vmin.f32 %v302_v36, 6.0 }
 0x12b   : > { %v304_v38 = vmul.f32 0.16666667, %v303_v37 }
 0x12d   : > { %306 = vst.msk [vmem:[%s220_s12] sm:$0x1] %vm305_vm2, %v304_v38 }
 0x12e PF: > { %s15_s18 = sadd.s32 1, %s384_s18  }
 0x12f   : > { %p12_p4 = scmp.ge.s32.totalorder %s15_s18, 4  }
 0x131   :  { %14 = sbr.rel (!%p12_p4) target bundleno = 1 (0x1), region = 70 }

// kernel: _lambda_.23
= control target key start
LH: loop header
LB: loop body
LE: loop exit
PB: predicated region body
PF: predicated region fallthrough
CT: control target
= control target key end

     0   :  { %s608_s18 = smov 0   ;;  %s610_s19 = smov 0   ;;  %s676_s0 = inlined_call_operand.vmem [shape: bf16[2,16,96], index: 0, kind: input, shape index: {}]   ;;  %s677_s1 = inlined_call_operand.vmem [shape: bf16[96,40], index: 1, kind: input, shape index: {}]   ;;  %s678_s2 = inlined_call_operand.vmem [shape: f32[1,40], index: 2, kind: input, shape index: {}]   ;;  %s679_s3 = inlined_call_operand.vmem [shape: f32[1,40], index: 3, kind: input, shape index: {}]   ;;  %s680_s4 = inlined_call_operand.vmem [shape: f32[2,1,96], index: 4, kind: input, shape index: {}]   ;;  %s681_s5 = inlined_call_operand.vmem [shape: bf16[2,16,40], index: 5, kind: output, shape index: {}]  }
   0x1   :  { %s612_s20 = smov 0  }
   0x2 LB: > { %s27_s21 = sadd.s32 1, %s572_s19  ;;  %p483_p0 = scmp.ge.s32.totalorder %s576_s20, 1  ;;  %s576_s20 = sphi %s612_s20, %s15_s20   ;;  %s572_s19 = sphi %s610_s19, %s683_s19   ;;  %s568_s18 = sphi %s608_s18, %s682_s18  }
   0x3   : > { %p29_p1 = scmp.ge.s32.totalorder %s27_s21, 2  ;;  %p216_p2 = scmp.lt.s32.totalorder %s576_s20, 3 }
   0x5   : > { %s685_s21 = smov (%p29_p1, %s27_s21), 0  ;;  %p217_p3 = pnand %p483_p0, %p216_p2 }
   0x6   : > { %p256_p4 = scmp.lt.s32.totalorder (!%p217_p3), %s568_s18, 1 }
   0x7   : > { %220 = sbr.rel (%p217_p3) target bundleno = 177 (0xb1), region = 40 }
   0xc   : > { %v522_v0 = vld [vmem:[%s677_s1 + $0x28] sm:$0xff]  ;;  %v521_v1 = vld [vmem:[%s677_s1 + $0x20] sm:$0xff]  ;;  %s687_s18 = smov (!%p256_p4, %s568_s18), 1  ;;  %v520_v3 = vld [vmem:[%s677_s1 + $0x18] sm:$0xff]  ;;  %vm348_vm0 = vcmask 785408   ;;  %vm380_vm1 = vcmask 322560  }
   0xd   : > { %354 = vmatpush.bf16.msra.mxu0 %v522_v0  ;;  %s515_s26 = sshll.u32 %s687_s18, 3  ;;  %s267_s29 = scalar_lea.vmem %s680_s4, %s687_s18  ;;  %v519_v9 = vld [vmem:[%s677_s1 + $0x10] sm:$0xff]  ;;  %v518_v14 = vld [vmem:[%s677_s1 + $0x8] sm:$0xff]  ;;  %v517_v19 = vld [vmem:[%s677_s1] sm:$0xff] }
   0xe   : > { %s263_s7 = scalar_lea.vmem %s676_s0, %s515_s26  ;;  %v551_v2 = vld [vmem:[%s267_s29] ss:$0 sm:$0xff]  ;;  %s276_s27 = scalar_lea.vmem %s681_s5, %s515_s26 }
   0xf   : > { %v524_v4 = vld [vmem:[%s263_s7] sm:$0xff]  }
  0x10   : > { %v525_v5 = vunpack.c.l.bf16 %v524_v4  ;;  %v526_v6 = vunpack.c.h.bf16 %v524_v4  ;;  %v552_v23 = vld [vmem:[%s678_s2] ss:$0 sm:$0xff] }
  0x11   : > { %355 = vmatpush.bf16.msra.mxu0 %v521_v1  ;;  %v553_v24 = vld [vmem:[%s679_s3] ss:$0 sm:$0xff] }
  0x12   : > { %v287_v7 = vmul.f32 %v551_v2, %v525_v5  ;;  %v288_v8 = vmul.f32 %v551_v2, %v526_v6 }
  0x14   : > { %v289_v10 = vadd.f32 3.0, %v287_v7  ;;  %v290_v11 = vadd.f32 3.0, %v288_v8 }
  0x15   : > { %356 = vmatpush.bf16.msra.mxu0 %v520_v3 }
  0x16   : > { %v291_v12 = vmax.f32 %v289_v10, 0.0  ;;  %v292_v13 = vmax.f32 %v290_v11, 0.0 }
  0x18   : > { %v293_v15 = vmin.f32 %v291_v12, 6.0  ;;  %v294_v16 = vmin.f32 %v292_v13, 6.0 }
  0x19   : > { %357 = vmatpush.bf16.msra.mxu0 %v519_v9 }
  0x1a   : > { %v295_v17 = vmul.f32 %v293_v15, %v287_v7  ;;  %v296_v18 = vmul.f32 %v294_v16, %v288_v8 }
  0x1c   : > { %v297_v20 = vmul.f32 0.16666667, %v295_v17  ;;  %v298_v21 = vmul.f32 0.16666667, %v296_v18 }
  0x1d   : > { %358 = vmatpush.bf16.msra.mxu0 %v518_v14 }
  0x1e   : > { %v299_v22 = vpack.c.bf16 %v298_v21, %v297_v20 }
  0x21   : > { %359 = vmatpush.bf16.msra.mxu0 %v517_v19 }
  0x24   : > { %512 = vmatmul.msk.bf16.vlgmr.msra.gmra.mxu0 %vm348_vm0, %v299_v22 }
  0xa1   : > { %v361_v25 = vpop.f32.mrf.mxu0 }
  0xa2   : > { %v370_v26 = vmul.f32 %v552_v23, %v361_v25 }
  0xa4   : > { %v376_v27 = vadd.f32 %v553_v24, %v370_v26 }
  0xa6   : > { %v378_v28 = vpack.c.bf16 %v376_v27, %v376_v27 }
  0xa8   : > { %381 = vst.msk [vmem:[%s276_s27] sm:$0xf] %vm380_vm1, %v378_v28 }
  0xa9   : > { %v363_v29 = vpop.f32.mrf.mxu0 }
  0xaa   : > { %v371_v30 = vmul.f32 %v552_v23, %v363_v29 }
  0xac   : > { %v377_v31 = vadd.f32 %v553_v24, %v371_v30 }
  0xae   : > { %v379_v32 = vpack.c.bf16 %v377_v31, %v377_v31 }
  0xb0   : > { %382 = vst.msk [vmem:[%s276_s27 + $0x4] sm:$0xf] %vm380_vm1, %v379_v32 }
  0xb1 PF: > { %s15_s20 = sadd.s32 1, %s576_s20   ;;  %s682_s18 = smov %s572_s19 }
  0xb2   : > { %p12_p5 = scmp.ge.s32.totalorder %s15_s20, 4   ;;  %s683_s19 = smov %s685_s21 }
  0xb4   :  { %14 = sbr.rel (!%p12_p5) target bundleno = 2 (0x2), region = 73 }

// kernel: _lambda_.25
= control target key start
LH: loop header
LB: loop body
LE: loop exit
PB: predicated region body
PF: predicated region fallthrough
CT: control target
= control target key end

     0   :  { %s227_s6 = smov 0   ;;  %s244_s0 = inlined_call_operand.vmem [shape: bf16[2,16,64], index: 0, kind: input, shape index: {}]   ;;  %s245_s1 = inlined_call_operand.vmem [shape: bf16[2,1,64], index: 1, kind: output, shape index: {}]  }
   0x1 LB: > { %s187_s7 = sadd.s32 4294967295, %s215_s6   ;;  %p191_p0 = scmp.ge.s32.totalorder %s215_s6, 1  ;;  %s215_s6 = sphi %s227_s6, %s11_s6  }
   0x2   : > { %p87_p1 = scmp.lt.s32.totalorder %s215_s6, 3 }
   0x4   : > { %p88_p2 = pnand %p191_p0, %p87_p1 }
   0x5   : > { %p105_p3 = scmp.lt.s32.totalorder (!%p88_p2), %s187_s7, 1 }
   0x6   : > { %91 = sbr.rel (%p88_p2) target bundleno = 48 (0x30), region = 24 }
   0xb   : > { %s247_s7 = smov (!%p105_p3, %s187_s7), 1  ;;  %vm117_vm0 = vcmask 523264   ;;  %vm134_vm1 = vcmask 516096   ;;  %vm135_vm2 = vsmask.f32 256 }
   0xc   : > { %s196_s8 = sshll.u32 %s247_s7, 3  ;;  %s112_s14 = scalar_lea.vmem %s245_s1, %s247_s7  ;;  %vm136_vm3 = vmand %vm134_vm1, %vm135_vm2 }
   0xd   : > { %s109_s11 = scalar_lea.vmem %s244_s0, %s196_s8  ;;  %v137_v18 = vld [vmem:[%s112_s14] sm:$0x1] }
   0xe   : > { %v198_v0 = vld [vmem:[%s109_s11] sm:$0xff]  }
   0xf   : > { %v199_v1 = vunpack.c.l.bf16 %v198_v0  ;;  %v200_v2 = vunpack.c.h.bf16 %v198_v0 }
  0x11   : > { %v118_v3 = vsel %vm117_vm0, %v199_v1, 0.0  ;;  %v119_v4 = vsel %vm117_vm0, %v200_v2, 0.0 }
  0x12   : > { %v120_v5 = vadd.f32 %v119_v4, %v118_v3 }
  0x14   : > { %v121_v6 = vrot.slane %v120_v5, 4 }
  0x16   : > { %v122_v7 = vadd.f32 %v121_v6, %v120_v5 }
  0x18   : > { %v123_v8 = vrot.slane %v122_v7, 2 }
  0x1a   : > { %v124_v9 = vadd.f32 %v123_v8, %v122_v7 }
  0x1c   : > { %v125_v10 = vrot.slane %v124_v9, 1 }
  0x1e   : > { %v126_v11 = vadd.f32 %v125_v10, %v124_v9 }
  0x20   : > { %v127_v12 = vmul.f32 0.0625, %v126_v11 }
  0x22   : > { %v128_v13 = vadd.f32 3.0, %v127_v12 }
  0x24   : > { %v129_v14 = vmax.f32 %v128_v13, 0.0 }
  0x26   : > { %v130_v15 = vmin.f32 %v129_v14, 6.0 }
  0x28   : > { %v131_v16 = vmul.f32 %v130_v15, %v127_v12 }
  0x2a   : > { %v132_v17 = vmul.f32 0.16666667, %v131_v16 }
  0x2c   : > { %v133_v19 = vpack.c.bf16 %v132_v17, %v132_v17 }
  0x2e   : > { %v138_v20 = vsel %vm136_vm3, %v133_v19, %v137_v18 }
  0x2f   : > { %139 = vst [vmem:[%s112_s14] sm:$0x1] %v138_v20 }
  0x30 PF: > { %s11_s6 = sadd.s32 1, %s215_s6  }
  0x31   : > { %p8_p4 = scmp.ge.s32.totalorder %s11_s6, 4  }
  0x33   :  { %10 = sbr.rel (!%p8_p4) target bundleno = 1 (0x1), region = 54 }

// kernel: _lambda_.24
= control target key start
LH: loop header
LB: loop body
LE: loop exit
PB: predicated region body
PF: predicated region fallthrough
CT: control target
= control target key end

     0   :  { %s505_s15 = smov 0   ;;  %s507_s16 = smov 0   ;;  %s553_s0 = inlined_call_operand.vmem [shape: bf16[2,16,40], index: 0, kind: input, shape index: {}]   ;;  %s554_s1 = inlined_call_operand.vmem [shape: bf16[40,64], index: 1, kind: input, shape index: {}]   ;;  %s555_s2 = inlined_call_operand.vmem [shape: f32[1,64], index: 2, kind: input, shape index: {}]   ;;  %s556_s3 = inlined_call_operand.vmem [shape: f32[1,64], index: 3, kind: input, shape index: {}]   ;;  %s557_s4 = inlined_call_operand.vmem [shape: bf16[2,16,64], index: 4, kind: output, shape index: {}]  }
   0x1   :  { %s509_s17 = smov 0  }
   0x2 LB: > { %s26_s18 = sadd.s32 1, %s474_s16  ;;  %p405_p0 = scmp.ge.s32.totalorder %s478_s17, 1  ;;  %s478_s17 = sphi %s509_s17, %s14_s17   ;;  %s474_s16 = sphi %s507_s16, %s559_s16   ;;  %s470_s15 = sphi %s505_s15, %s558_s15  }
   0x3   : > { %p28_p1 = scmp.ge.s32.totalorder %s26_s18, 2  ;;  %p183_p2 = scmp.lt.s32.totalorder %s478_s17, 3 }
   0x5   : > { %s561_s18 = smov (%p28_p1, %s26_s18), 0  ;;  %p184_p3 = pnand %p405_p0, %p183_p2 }
   0x6   : > { %p218_p4 = scmp.lt.s32.totalorder (!%p184_p3), %s470_s15, 1 }
   0x7   : > { %187 = sbr.rel (%p184_p3) target bundleno = 180 (0xb4), region = 36 }
   0xc   : > { %v244_v0 = vld [vmem:[%s554_s1 + $0x10] sm:$0xf]  ;;  %vm269_vm0 = vcmask 1043456   ;;  %s563_s15 = smov (!%p218_p4, %s470_s15), 1  ;;  %v429_v4 = vld [vmem:[%s554_s1 + $0x8] sm:$0xff]  ;;  %v428_v5 = vld [vmem:[%s554_s1] sm:$0xff] }
   0xd   : > { %v259_v1 = vunpack.c.l.b16 %v244_v0  ;;  %s425_s23 = sshll.u32 %s563_s15, 3  ;;  %vm265_vm1 = vcmask 326656   ;;  %v454_v7 = vld [vmem:[%s555_s2] ss:$0 sm:$0xff]  ;;  %vm311_vm2 = vcmask 519168  }
   0xe   : > { %s225_s28 = scalar_lea.vmem %s553_s0, %s425_s23  ;;  %v455_v8 = vld [vmem:[%s556_s3] ss:$0 sm:$0xff]  ;;  %s235_s9 = scalar_lea.vmem %s557_s4, %s425_s23 }
   0xf   : > { %v262_v2 = vpack.c.b16 %v259_v1, %v259_v1  ;;  %v427_v6 = vld [vmem:[%s225_s28] sm:$0xff] }
  0x11   : > { %v271_v3 = vsel %vm269_vm0, %v262_v2, 0 }
  0x12   : > { %278 = vmatpush.bf16.msra.mxu0 %v271_v3 }
  0x16   : > { %279 = vmatpush.bf16.msra.mxu0 %v429_v4 }
  0x1a   : > { %280 = vmatpush.bf16.msra.mxu0 %v428_v5 }
  0x1d   : > { %422 = vmatmul.msk.bf16.vlgmr.msra.gmra.mxu0 %vm265_vm1, %v427_v6 }
  0x9a   : > { %v282_v9 = vpop.f32.mrf.mxu0 }
  0x9b   : > { %v291_v10 = vmul.f32 %v454_v7, %v282_v9 }
  0x9d   : > { %v297_v11 = vadd.f32 %v455_v8, %v291_v10 }
  0x9f   : > { %v299_v12 = vadd.f32 3.0, %v297_v11 }
  0xa1   : > { %v301_v13 = vmax.f32 %v299_v12, 0.0 }
  0xa2   : > { %v284_v14 = vpop.f32.mrf.mxu0 }
  0xa3   : > { %v303_v15 = vmin.f32 %v301_v13, 6.0  ;;  %v292_v16 = vmul.f32 %v454_v7, %v284_v14 }
  0xa5   : > { %v305_v17 = vmul.f32 %v303_v15, %v297_v11  ;;  %v298_v18 = vadd.f32 %v455_v8, %v292_v16 }
  0xa7   : > { %v307_v19 = vmul.f32 0.16666667, %v305_v17  ;;  %v300_v20 = vadd.f32 3.0, %v298_v18 }
  0xa9   : > { %v309_v21 = vpack.c.bf16 %v307_v19, %v307_v19  ;;  %v302_v22 = vmax.f32 %v300_v20, 0.0 }
  0xab   : > { %312 = vst.msk [vmem:[%s235_s9] sm:$0xf] %vm311_vm2, %v309_v21  ;;  %v304_v23 = vmin.f32 %v302_v22, 6.0 }
  0xad   : > { %v306_v24 = vmul.f32 %v304_v23, %v298_v18 }
  0xaf   : > { %v308_v25 = vmul.f32 0.16666667, %v306_v24 }
  0xb1   : > { %v310_v26 = vpack.c.bf16 %v308_v25, %v308_v25 }
  0xb3   : > { %313 = vst.msk [vmem:[%s235_s9 + $0x4] sm:$0xf] %vm311_vm2, %v310_v26 }
  0xb4 PF: > { %s14_s17 = sadd.s32 1, %s478_s17   ;;  %s558_s15 = smov %s474_s16 }
  0xb5   : > { %p11_p5 = scmp.ge.s32.totalorder %s14_s17, 4   ;;  %s559_s16 = smov %s561_s18 }
  0xb7   :  { %13 = sbr.rel (!%p11_p5) target bundleno = 2 (0x2), region = 66 }

// kernel: _lambda_.21
= control target key start
LH: loop header
LB: loop body
LE: loop exit
PB: predicated region body
PF: predicated region fallthrough
CT: control target
= control target key end

     0   :  { %s1179_s15 = smov 0   ;;  %s1383_s0 = inlined_call_operand.vmem [shape: bf16[2,24,6,96], index: 0, kind: input, shape index: {}]   ;;  %s1384_s1 = inlined_call_operand.vmem [shape: f32[25,1,96], index: 1, kind: input, shape index: {}]   ;;  %s1385_s2 = inlined_call_operand.vmem [shape: f32[1,1,96], index: 2, kind: input, shape index: {}]   ;;  %s1386_s3 = inlined_call_operand.vmem [shape: f32[1,1,96], index: 3, kind: input, shape index: {}]   ;;  %s1387_s4 = inlined_call_operand.vmem [shape: bf16[2,4,4,96], index: 4, kind: output, shape index: {}]  }
   0x1 LB: > { %s987_s16 = sadd.s32 4294967295, %s1152_s15   ;;  %p991_p0 = scmp.ge.s32.totalorder %s1152_s15, 1  ;;  %s1152_s15 = sphi %s1179_s15, %s14_s15  }
   0x2   : > { %p162_p1 = scmp.lt.s32.totalorder %s1152_s15, 3 }
   0x4   : > { %p163_p2 = pnand %p991_p0, %p162_p1 }
   0x5   : > { %p188_p3 = scmp.lt.s32.totalorder (!%p163_p2), %s987_s16, 1 }
   0x6   : > { %166 = sbr.rel (%p163_p2) target bundleno = 118 (0x76), region = 36 }
   0xb   : > { %s1389_s16 = smov (!%p188_p3, %s987_s16), 1  ;;  %v1119_v0 = vld [vmem:[%s1384_s1] ss:$0 sm:$0xff]  ;;  %v1120_v1 = vld [vmem:[%s1384_s1 + $0x1] ss:$0 sm:$0xff]  ;;  %vm927_vm0 = vcmask 779264  }
   0xc   : > { %s1110_s17 = smul.u32 96, %s1389_s16  ;;  %v1121_v11 = vld [vmem:[%s1384_s1 + $0x2] ss:$0 sm:$0xff]  ;;  %v1122_v40 = vld [vmem:[%s1384_s1 + $0x3] ss:$0 sm:$0xff]  ;;  %s1109_s28 = sshll.u32 %s1389_s16, 3 }
   0xd   : > { %s197_s5 = scalar_lea.vmem %s1387_s4, %s1109_s28 }
   0xe   : > { %s1193_s20 = scalar_lea.vmem %s1383_s0, %s1110_s17 }
   0xf   : > { %v198_v2 = vld [vmem:[%s1193_s20] sm:$0x3]  ;;  %v199_v3 = vld [vmem:[%s1193_s20 + $0x4] sm:$0x3]  ;;  %v200_v4 = vld [vmem:[%s1193_s20 + $0x8] sm:$0x3] }
  0x10   : > { %v201_v5 = vld [vmem:[%s1193_s20 + $0xc] sm:$0x3]  ;;  %v202_v6 = vunpack.c.l.bf16 %v198_v2  ;;  %v203_v7 = vunpack.c.l.bf16 %v199_v3  ;;  %v204_v8 = vunpack.c.l.bf16 %v200_v4  ;;  %v995_v9 = vld [vmem:[%s1193_s20 + $0x18] sm:$0x3]  ;;  %v996_v10 = vld [vmem:[%s1193_s20 + $0x1c] sm:$0x3] }
  0x11   : > { %v205_v12 = vunpack.c.l.bf16 %v201_v5  ;;  %v997_v13 = vld [vmem:[%s1193_s20 + $0x20] sm:$0x3]  ;;  %v998_v14 = vld [vmem:[%s1193_s20 + $0x24] sm:$0x3]  ;;  %v219_v15 = vunpack.c.l.bf16 %v995_v9  ;;  %v220_v16 = vunpack.c.l.bf16 %v996_v10  ;;  %v238_v23 = vld [vmem:[%s1193_s20 + $0x8] sm:$0x7] }
  0x12   : > { %v236_v17 = vld [vmem:[%s1193_s20] sm:$0x7]  ;;  %v210_v18 = vmul.f32 %v1119_v0, %v202_v6  ;;  %v211_v19 = vmul.f32 %v1119_v0, %v203_v7  ;;  %v212_v20 = vmul.f32 %v1119_v0, %v204_v8  ;;  %v221_v21 = vunpack.c.l.bf16 %v997_v13  ;;  %v237_v22 = vld [vmem:[%s1193_s20 + $0x4] sm:$0x7]  ;;  %v239_v24 = vld [vmem:[%s1193_s20 + $0xc] sm:$0x7] }
  0x13   : > { %v213_v25 = vmul.f32 %v1119_v0, %v205_v12  ;;  %v222_v26 = vunpack.c.l.bf16 %v998_v14  ;;  %v228_v27 = vmul.f32 %v1120_v1, %v219_v15  ;;  %v229_v28 = vmul.f32 %v1120_v1, %v220_v16  ;;  %v1001_v33 = vld [vmem:[%s1193_s20 + $0x18] sm:$0x7]  ;;  %v1002_v34 = vld [vmem:[%s1193_s20 + $0x1c] sm:$0x7]  ;;  %v1003_v39 = vld [vmem:[%s1193_s20 + $0x20] sm:$0x7] }
  0x14   : > { %v230_v29 = vmul.f32 %v1120_v1, %v221_v21  ;;  %v240_v30 = vunpack.c.l.bf16 %v236_v17  ;;  %v241_v31 = vunpack.c.l.bf16 %v237_v22  ;;  %v242_v32 = vunpack.c.l.bf16 %v238_v23  ;;  %v1004_v45 = vld [vmem:[%s1193_s20 + $0x24] sm:$0x7]  ;;  %v302_v54 = vld [vmem:[%s1193_s20] sm:$0x6]  ;;  %v304_v60 = vld [vmem:[%s1193_s20 + $0x8] sm:$0x6] }
  0x15   : > { %v231_v35 = vmul.f32 %v1120_v1, %v222_v26  ;;  %v232_v36 = vadd.f32 %v228_v27, %v210_v18  ;;  %v233_v37 = vadd.f32 %v229_v28, %v211_v19  ;;  %v243_v38 = vunpack.c.l.bf16 %v239_v24  ;;  %v303_v59 = vld [vmem:[%s1193_s20 + $0x4] sm:$0x6]  ;;  %v305_v1 = vld [vmem:[%s1193_s20 + $0xc] sm:$0x6]  ;;  %v1123_v2 = vld [vmem:[%s1384_s1 + $0x4] ss:$0 sm:$0xff] }
  0x16   : > { %v234_v41 = vadd.f32 %v230_v29, %v212_v20  ;;  %v249_v42 = vmul.f32 %v1121_v11, %v240_v30  ;;  %v250_v43 = vmul.f32 %v1121_v11, %v241_v31  ;;  %v251_v44 = vmul.f32 %v1121_v11, %v242_v32  ;;  %v1008_v12 = vld [vmem:[%s1193_s20 + $0x34] sm:$0x3]  ;;  %v1009_v17 = vld [vmem:[%s1193_s20 + $0x38] sm:$0x3]  ;;  %v1124_v18 = vld [vmem:[%s1384_s1 + $0x5] ss:$0 sm:$0xff] }
  0x17   : > { %v235_v46 = vadd.f32 %v231_v35, %v213_v25  ;;  %v252_v47 = vmul.f32 %v1121_v11, %v243_v38  ;;  %v273_v48 = vunpack.c.l.bf16 %v1001_v33  ;;  %v274_v49 = vunpack.c.l.bf16 %v1002_v34  ;;  %v1007_v11 = vld [vmem:[%s1193_s20 + $0x30] sm:$0x3]  ;;  %v1010_v23 = vld [vmem:[%s1193_s20 + $0x3c] sm:$0x3]  ;;  %v1012_v28 = vld [vmem:[%s1193_s20 + $0x48] sm:$0x3] }
  0x18   : > { %v257_v50 = vrot.slane %v249_v42, 1  ;;  %v258_v51 = vrot.slane %v250_v43, 1  ;;  %v259_v52 = vrot.slane %v251_v44, 1  ;;  %v275_v53 = vunpack.c.l.bf16 %v1003_v39  ;;  %v1125_v29 = vld [vmem:[%s1384_s1 + $0x6] ss:$0 sm:$0xff] }
  0x19   : > { %v260_v55 = vrot.slane %v252_v47, 1  ;;  %v276_v56 = vunpack.c.l.bf16 %v1004_v45  ;;  %v282_v57 = vmul.f32 %v1122_v40, %v273_v48  ;;  %v283_v58 = vmul.f32 %v1122_v40, %v274_v49  ;;  %v1013_v34 = vld [vmem:[%s1193_s20 + $0x4c] sm:$0x3]  ;;  %v1014_v39 = vld [vmem:[%s1193_s20 + $0x50] sm:$0x3] }
  0x1a   : > { %v265_v61 = vadd.f32 %v257_v50, %v232_v36  ;;  %v266_v62 = vadd.f32 %v258_v51, %v233_v37  ;;  %v267_v63 = vadd.f32 %v259_v52, %v234_v41  ;;  %v284_v0 = vmul.f32 %v1122_v40, %v275_v53  ;;  %v1015_v44 = vld [vmem:[%s1193_s20 + $0x54] sm:$0x3]  ;;  %v1017_v45 = vld [vmem:[%s1193_s20 + $0x30] sm:$0x7]  ;;  %v1019_v51 = vld [vmem:[%s1193_s20 + $0x38] sm:$0x7] }
  0x1b   : > { %v268_v3 = vadd.f32 %v260_v55, %v235_v46  ;;  %v285_v4 = vmul.f32 %v1122_v40, %v276_v56  ;;  %v290_v5 = vrot.slane %v282_v57, 1  ;;  %v291_v6 = vrot.slane %v283_v58, 1  ;;  %v1018_v50 = vld [vmem:[%s1193_s20 + $0x34] sm:$0x7]  ;;  %v1020_v56 = vld [vmem:[%s1193_s20 + $0x3c] sm:$0x7] }
  0x1c   : > { %v292_v7 = vrot.slane %v284_v0, 1  ;;  %v306_v8 = vunpack.c.l.bf16 %v302_v54  ;;  %v307_v9 = vunpack.c.l.bf16 %v303_v59  ;;  %v308_v10 = vunpack.c.l.bf16 %v304_v60  ;;  %v1126_v57 = vld [vmem:[%s1384_s1 + $0x7] ss:$0 sm:$0xff] }
  0x1d   : > { %v293_v13 = vrot.slane %v285_v4, 1  ;;  %v298_v14 = vadd.f32 %v290_v5, %v265_v61  ;;  %v299_v15 = vadd.f32 %v291_v6, %v266_v62  ;;  %v309_v16 = vunpack.c.l.bf16 %v305_v1 }
  0x1e   : > { %v300_v19 = vadd.f32 %v292_v7, %v267_v63  ;;  %v315_v20 = vmul.f32 %v1123_v2, %v306_v8  ;;  %v316_v21 = vmul.f32 %v1123_v2, %v307_v9  ;;  %v317_v22 = vmul.f32 %v1123_v2, %v308_v10  ;;  %v1024_v8 = vld [vmem:[%s1193_s20 + $0x50] sm:$0x7]  ;;  %v1127_v9 = vld [vmem:[%s1384_s1 + $0x8] ss:$0 sm:$0xff] }
  0x1f   : > { %v301_v24 = vadd.f32 %v293_v13, %v268_v3  ;;  %v318_v25 = vmul.f32 %v1123_v2, %v309_v16  ;;  %v340_v26 = vunpack.c.l.bf16 %v1007_v11  ;;  %v341_v27 = vunpack.c.l.bf16 %v1008_v12  ;;  %v1022_v2 = vld [vmem:[%s1193_s20 + $0x48] sm:$0x7]  ;;  %v1023_v3 = vld [vmem:[%s1193_s20 + $0x4c] sm:$0x7] }
  0x20   : > { %v323_v30 = vrot.slane %v315_v20, 2  ;;  %v324_v31 = vrot.slane %v316_v21, 2  ;;  %v325_v32 = vrot.slane %v317_v22, 2  ;;  %v342_v33 = vunpack.c.l.bf16 %v1009_v17 }
  0x21   : > { %v326_v35 = vrot.slane %v318_v25, 2  ;;  %v343_v36 = vunpack.c.l.bf16 %v1010_v23  ;;  %v349_v37 = vmul.f32 %v1124_v18, %v340_v26  ;;  %v350_v38 = vmul.f32 %v1124_v18, %v341_v27  ;;  %v1027_v23 = vld [vmem:[%s1193_s20 + $0x30] sm:$0x6] }
  0x22   : > { %v331_v40 = vadd.f32 %v323_v30, %v298_v14  ;;  %v332_v41 = vadd.f32 %v324_v31, %v299_v15  ;;  %v333_v42 = vadd.f32 %v325_v32, %v300_v19  ;;  %v351_v43 = vmul.f32 %v1124_v18, %v342_v33  ;;  %v1025_v14 = vld [vmem:[%s1193_s20 + $0x54] sm:$0x7] }
  0x23   : > { %v334_v46 = vadd.f32 %v326_v35, %v301_v24  ;;  %v352_v47 = vmul.f32 %v1124_v18, %v343_v36  ;;  %v362_v48 = vunpack.c.l.bf16 %v1012_v28  ;;  %v363_v49 = vunpack.c.l.bf16 %v1013_v34  ;;  %v1028_v28 = vld [vmem:[%s1193_s20 + $0x34] sm:$0x6]  ;;  %v1030_v34 = vld [vmem:[%s1193_s20 + $0x3c] sm:$0x6]  ;;  %v1128_v35 = vld [vmem:[%s1384_s1 + $0x9] ss:$0 sm:$0xff] }
  0x24   : > { %v353_v52 = vadd.f32 %v349_v37, %v331_v40  ;;  %v354_v53 = vadd.f32 %v350_v38, %v332_v41  ;;  %v355_v54 = vadd.f32 %v351_v43, %v333_v42  ;;  %v364_v55 = vunpack.c.l.bf16 %v1014_v39  ;;  %v1032_v40 = vld [vmem:[%s1193_s20 + $0x4] sm:$0x3] }
  0x25   : > { %v356_v58 = vadd.f32 %v352_v47, %v334_v46  ;;  %v365_v59 = vunpack.c.l.bf16 %v1015_v44  ;;  %v371_v60 = vmul.f32 %v1125_v29, %v362_v48  ;;  %v372_v61 = vmul.f32 %v1125_v29, %v363_v49  ;;  %v1034_v46 = vld [vmem:[%s1193_s20 + $0xc] sm:$0x3] }
  0x26   : > { %v373_v62 = vmul.f32 %v1125_v29, %v364_v55  ;;  %v383_v63 = vunpack.c.l.bf16 %v1017_v45  ;;  %v384_v0 = vunpack.c.l.bf16 %v1018_v50  ;;  %v385_v1 = vunpack.c.l.bf16 %v1019_v51  ;;  %v1033_v45 = vld [vmem:[%s1193_s20 + $0x8] sm:$0x3]  ;;  %v1129_v51 = vld [vmem:[%s1384_s1 + $0xa] ss:$0 sm:$0xff] }
  0x27   : > { %v374_v4 = vmul.f32 %v1125_v29, %v365_v59  ;;  %v375_v5 = vadd.f32 %v371_v60, %v353_v52  ;;  %v376_v6 = vadd.f32 %v372_v61, %v354_v53  ;;  %v386_v7 = vunpack.c.l.bf16 %v1020_v56  ;;  %v1029_v29 = vld [vmem:[%s1193_s20 + $0x38] sm:$0x6]  ;;  %v1035_v56 = vld [vmem:[%s1193_s20 + $0x10] sm:$0x3]  ;;  %v1037_v61 = vld [vmem:[%s1193_s20 + $0x1c] sm:$0x3] }
  0x28   : > { %v377_v10 = vadd.f32 %v373_v62, %v355_v54  ;;  %v392_v11 = vmul.f32 %v1126_v57, %v383_v63  ;;  %v393_v12 = vmul.f32 %v1126_v57, %v384_v0  ;;  %v394_v13 = vmul.f32 %v1126_v57, %v385_v1 }
  0x29   : > { %v378_v15 = vadd.f32 %v374_v4, %v356_v58  ;;  %v395_v16 = vmul.f32 %v1126_v57, %v386_v7  ;;  %v416_v17 = vunpack.c.l.bf16 %v1022_v2  ;;  %v417_v18 = vunpack.c.l.bf16 %v1023_v3  ;;  %v1038_v2 = vld [vmem:[%s1193_s20 + $0x20] sm:$0x3]  ;;  %v1039_v7 = vld [vmem:[%s1193_s20 + $0x24] sm:$0x3] }
  0x2a   : > { %v400_v19 = vrot.slane %v392_v11, 1  ;;  %v401_v20 = vrot.slane %v393_v12, 1  ;;  %v402_v21 = vrot.slane %v394_v13, 1  ;;  %v418_v22 = vunpack.c.l.bf16 %v1024_v8  ;;  %v1130_v8 = vld [vmem:[%s1384_s1 + $0xb] ss:$0 sm:$0xff] }
  0x2b   : > { %v403_v24 = vrot.slane %v395_v16, 1  ;;  %v419_v25 = vunpack.c.l.bf16 %v1025_v14  ;;  %v425_v26 = vmul.f32 %v1127_v9, %v416_v17  ;;  %v426_v27 = vmul.f32 %v1127_v9, %v417_v18  ;;  %v1040_v13 = vld [vmem:[%s1193_s20 + $0x28] sm:$0x3]  ;;  %v1042_v18 = vld [vmem:[%s1193_s20 + $0x4] sm:$0x7] }
  0x2c   : > { %v408_v30 = vadd.f32 %v400_v19, %v375_v5  ;;  %v409_v31 = vadd.f32 %v401_v20, %v376_v6  ;;  %v410_v32 = vadd.f32 %v402_v21, %v377_v10  ;;  %v427_v33 = vmul.f32 %v1127_v9, %v418_v22  ;;  %v1043_v19 = vld [vmem:[%s1193_s20 + $0x8] sm:$0x7]  ;;  %v1044_v20 = vld [vmem:[%s1193_s20 + $0xc] sm:$0x7] }
  0x2d   : > { %v411_v36 = vadd.f32 %v403_v24, %v378_v15  ;;  %v428_v37 = vmul.f32 %v1127_v9, %v419_v25  ;;  %v433_v38 = vrot.slane %v425_v26, 1  ;;  %v434_v39 = vrot.slane %v426_v27, 1  ;;  %v1045_v25 = vld [vmem:[%s1193_s20 + $0x10] sm:$0x7]  ;;  %v1131_v26 = vld [vmem:[%s1384_s1 + $0xc] ss:$0 sm:$0xff] }
  0x2e   : > { %v435_v41 = vrot.slane %v427_v33, 1  ;;  %v449_v42 = vunpack.c.l.bf16 %v1027_v23  ;;  %v450_v43 = vunpack.c.l.bf16 %v1028_v28  ;;  %v451_v44 = vunpack.c.l.bf16 %v1029_v29 }
  0x2f   : > { %v436_v47 = vrot.slane %v428_v37, 1  ;;  %v441_v48 = vadd.f32 %v433_v38, %v408_v30  ;;  %v442_v49 = vadd.f32 %v434_v39, %v409_v31  ;;  %v452_v50 = vunpack.c.l.bf16 %v1030_v34 }
  0x30   : > { %v443_v52 = vadd.f32 %v435_v41, %v410_v32  ;;  %v458_v53 = vmul.f32 %v1128_v35, %v449_v42  ;;  %v459_v54 = vmul.f32 %v1128_v35, %v450_v43  ;;  %v460_v55 = vmul.f32 %v1128_v35, %v451_v44  ;;  %v1049_v41 = vld [vmem:[%s1193_s20 + $0x24] sm:$0x7]  ;;  %v1132_v42 = vld [vmem:[%s1384_s1 + $0xd] ss:$0 sm:$0xff] }
  0x31   : > { %v444_v57 = vadd.f32 %v436_v47, %v411_v36  ;;  %v461_v58 = vmul.f32 %v1128_v35, %v452_v50  ;;  %v483_v59 = vunpack.c.l.bf16 %v1032_v40  ;;  %v484_v60 = vunpack.c.l.bf16 %v1033_v45  ;;  %v1047_v35 = vld [vmem:[%s1193_s20 + $0x1c] sm:$0x7]  ;;  %v1048_v36 = vld [vmem:[%s1193_s20 + $0x20] sm:$0x7]  ;;  %v1050_v47 = vld [vmem:[%s1193_s20 + $0x28] sm:$0x7] }
  0x32   : > { %v466_v62 = vrot.slane %v458_v53, 2  ;;  %v467_v63 = vrot.slane %v459_v54, 2  ;;  %v468_v0 = vrot.slane %v460_v55, 2  ;;  %v485_v1 = vunpack.c.l.bf16 %v1034_v46  ;;  %v1053_v53 = vld [vmem:[%s1193_s20 + $0x8] sm:$0x6] }
  0x33   : > { %v469_v3 = vrot.slane %v461_v58, 2  ;;  %v486_v4 = vunpack.c.l.bf16 %v1035_v56  ;;  %v492_v5 = vmul.f32 %v1129_v51, %v483_v59  ;;  %v493_v6 = vmul.f32 %v1129_v51, %v484_v60  ;;  %v1054_v58 = vld [vmem:[%s1193_s20 + $0xc] sm:$0x6] }
  0x34   : > { %v474_v9 = vadd.f32 %v466_v62, %v441_v48  ;;  %v475_v10 = vadd.f32 %v467_v63, %v442_v49  ;;  %v476_v11 = vadd.f32 %v468_v0, %v443_v52  ;;  %v494_v12 = vmul.f32 %v1129_v51, %v485_v1  ;;  %v1052_v52 = vld [vmem:[%s1193_s20 + $0x4] sm:$0x6]  ;;  %v1055_v63 = vld [vmem:[%s1193_s20 + $0x10] sm:$0x6] }
  0x35   : > { %v477_v14 = vadd.f32 %v469_v3, %v444_v57  ;;  %v495_v15 = vmul.f32 %v1129_v51, %v486_v4  ;;  %v505_v16 = vunpack.c.l.bf16 %v1037_v61  ;;  %v506_v17 = vunpack.c.l.bf16 %v1038_v2  ;;  %v1133_v4 = vld [vmem:[%s1384_s1 + $0xe] ss:$0 sm:$0xff] }
  0x36   : > { %v496_v21 = vadd.f32 %v492_v5, %v474_v9  ;;  %v497_v22 = vadd.f32 %v493_v6, %v475_v10  ;;  %v498_v23 = vadd.f32 %v494_v12, %v476_v11  ;;  %v507_v24 = vunpack.c.l.bf16 %v1039_v7  ;;  %v1057_v5 = vld [vmem:[%s1193_s20 + $0x34] sm:$0x3]  ;;  %v1058_v6 = vld [vmem:[%s1193_s20 + $0x38] sm:$0x3]  ;;  %v1059_v11 = vld [vmem:[%s1193_s20 + $0x3c] sm:$0x3] }
  0x37   : > { %v499_v27 = vadd.f32 %v495_v15, %v477_v14  ;;  %v508_v28 = vunpack.c.l.bf16 %v1040_v13  ;;  %v514_v29 = vmul.f32 %v1130_v8, %v505_v16  ;;  %v515_v30 = vmul.f32 %v1130_v8, %v506_v17 }
  0x38   : > { %v516_v31 = vmul.f32 %v1130_v8, %v507_v24  ;;  %v526_v32 = vunpack.c.l.bf16 %v1042_v18  ;;  %v527_v33 = vunpack.c.l.bf16 %v1043_v19  ;;  %v528_v34 = vunpack.c.l.bf16 %v1044_v20  ;;  %v1134_v20 = vld [vmem:[%s1384_s1 + $0xf] ss:$0 sm:$0xff] }
  0x39   : > { %v517_v37 = vmul.f32 %v1130_v8, %v508_v28  ;;  %v518_v38 = vadd.f32 %v514_v29, %v496_v21  ;;  %v519_v39 = vadd.f32 %v515_v30, %v497_v22  ;;  %v529_v40 = vunpack.c.l.bf16 %v1045_v25  ;;  %v1060_v25 = vld [vmem:[%s1193_s20 + $0x40] sm:$0x3]  ;;  %v1062_v30 = vld [vmem:[%s1193_s20 + $0x4c] sm:$0x3] }
  0x3a   : > { %v520_v43 = vadd.f32 %v516_v31, %v498_v23  ;;  %v535_v44 = vmul.f32 %v1131_v26, %v526_v32  ;;  %v536_v45 = vmul.f32 %v1131_v26, %v527_v33  ;;  %v537_v46 = vmul.f32 %v1131_v26, %v528_v34 }
  0x3b   : > { %v521_v48 = vadd.f32 %v517_v37, %v499_v27  ;;  %v538_v49 = vmul.f32 %v1131_v26, %v529_v40  ;;  %v559_v50 = vunpack.c.l.bf16 %v1047_v35  ;;  %v560_v51 = vunpack.c.l.bf16 %v1048_v36  ;;  %v1063_v35 = vld [vmem:[%s1193_s20 + $0x50] sm:$0x3]  ;;  %v1064_v40 = vld [vmem:[%s1193_s20 + $0x54] sm:$0x3] }
  0x3c   : > { %v543_v54 = vrot.slane %v535_v44, 1  ;;  %v544_v55 = vrot.slane %v536_v45, 1  ;;  %v545_v56 = vrot.slane %v537_v46, 1  ;;  %v561_v57 = vunpack.c.l.bf16 %v1049_v41  ;;  %v1135_v41 = vld [vmem:[%s1384_s1 + $0x10] ss:$0 sm:$0xff] }
  0x3d   : > { %v546_v59 = vrot.slane %v538_v49, 1  ;;  %v562_v60 = vunpack.c.l.bf16 %v1050_v47  ;;  %v568_v61 = vmul.f32 %v1132_v42, %v559_v50  ;;  %v569_v62 = vmul.f32 %v1132_v42, %v560_v51  ;;  %v1065_v46 = vld [vmem:[%s1193_s20 + $0x58] sm:$0x3]  ;;  %v1067_v51 = vld [vmem:[%s1193_s20 + $0x34] sm:$0x7] }
  0x3e   : > { %v551_v0 = vadd.f32 %v543_v54, %v518_v38  ;;  %v552_v1 = vadd.f32 %v544_v55, %v519_v39  ;;  %v553_v2 = vadd.f32 %v545_v56, %v520_v43  ;;  %v570_v3 = vmul.f32 %v1132_v42, %v561_v57 }
  0x3f   : > { %v554_v7 = vadd.f32 %v546_v59, %v521_v48  ;;  %v571_v8 = vmul.f32 %v1132_v42, %v562_v60  ;;  %v576_v9 = vrot.slane %v568_v61, 1  ;;  %v577_v10 = vrot.slane %v569_v62, 1  ;;  %v1136_v59 = vld [vmem:[%s1384_s1 + $0x11] ss:$0 sm:$0xff] }
  0x40   : > { %v578_v12 = vrot.slane %v570_v3, 1  ;;  %v592_v13 = vunpack.c.l.bf16 %v1052_v52  ;;  %v593_v14 = vunpack.c.l.bf16 %v1053_v53  ;;  %v594_v15 = vunpack.c.l.bf16 %v1054_v58  ;;  %v1068_v52 = vld [vmem:[%s1193_s20 + $0x38] sm:$0x7]  ;;  %v1069_v53 = vld [vmem:[%s1193_s20 + $0x3c] sm:$0x7] }
  0x41   : > { %v579_v16 = vrot.slane %v571_v8, 1  ;;  %v584_v17 = vadd.f32 %v576_v9, %v551_v0  ;;  %v585_v18 = vadd.f32 %v577_v10, %v552_v1  ;;  %v595_v19 = vunpack.c.l.bf16 %v1055_v63  ;;  %v1070_v58 = vld [vmem:[%s1193_s20 + $0x40] sm:$0x7]  ;;  %v1074_v10 = vld [vmem:[%s1193_s20 + $0x54] sm:$0x7] }
  0x42   : > { %v586_v21 = vadd.f32 %v578_v12, %v553_v2  ;;  %v601_v22 = vmul.f32 %v1133_v4, %v592_v13  ;;  %v602_v23 = vmul.f32 %v1133_v4, %v593_v14  ;;  %v603_v24 = vmul.f32 %v1133_v4, %v594_v15 }
  0x43   : > { %v587_v26 = vadd.f32 %v579_v16, %v554_v7  ;;  %v604_v27 = vmul.f32 %v1133_v4, %v595_v19  ;;  %v626_v28 = vunpack.c.l.bf16 %v1057_v5  ;;  %v627_v29 = vunpack.c.l.bf16 %v1058_v6  ;;  %v1072_v4 = vld [vmem:[%s1193_s20 + $0x4c] sm:$0x7]  ;;  %v1073_v5 = vld [vmem:[%s1193_s20 + $0x50] sm:$0x7]  ;;  %v1075_v16 = vld [vmem:[%s1193_s20 + $0x58] sm:$0x7] }
  0x44   : > { %v609_v31 = vrot.slane %v601_v22, 2  ;;  %v610_v32 = vrot.slane %v602_v23, 2  ;;  %v611_v33 = vrot.slane %v603_v24, 2  ;;  %v628_v34 = vunpack.c.l.bf16 %v1059_v11  ;;  %v1137_v11 = vld [vmem:[%s1384_s1 + $0x12] ss:$0 sm:$0xff] }
  0x45   : > { %v612_v36 = vrot.slane %v604_v27, 2  ;;  %v629_v37 = vunpack.c.l.bf16 %v1060_v25  ;;  %v635_v38 = vmul.f32 %v1134_v20, %v626_v28  ;;  %v636_v39 = vmul.f32 %v1134_v20, %v627_v29  ;;  %v1077_v25 = vld [vmem:[%s1193_s20 + $0x34] sm:$0x6] }
  0x46   : > { %v617_v42 = vadd.f32 %v609_v31, %v584_v17  ;;  %v618_v43 = vadd.f32 %v610_v32, %v585_v18  ;;  %v619_v44 = vadd.f32 %v611_v33, %v586_v21  ;;  %v637_v45 = vmul.f32 %v1134_v20, %v628_v34  ;;  %v1079_v31 = vld [vmem:[%s1193_s20 + $0x3c] sm:$0x6] }
  0x47   : > { %v620_v47 = vadd.f32 %v612_v36, %v587_v26  ;;  %v638_v48 = vmul.f32 %v1134_v20, %v629_v37  ;;  %v648_v49 = vunpack.c.l.bf16 %v1062_v30  ;;  %v649_v50 = vunpack.c.l.bf16 %v1063_v35  ;;  %v1078_v30 = vld [vmem:[%s1193_s20 + $0x38] sm:$0x6]  ;;  %v1080_v36 = vld [vmem:[%s1193_s20 + $0x40] sm:$0x6]  ;;  %v1138_v37 = vld [vmem:[%s1384_s1 + $0x13] ss:$0 sm:$0xff] }
  0x48   : > { %v639_v54 = vadd.f32 %v635_v38, %v617_v42  ;;  %v640_v55 = vadd.f32 %v636_v39, %v618_v43  ;;  %v641_v56 = vadd.f32 %v637_v45, %v619_v44  ;;  %v650_v57 = vunpack.c.l.bf16 %v1064_v40 }
  0x49   : > { %v642_v60 = vadd.f32 %v638_v48, %v620_v47  ;;  %v651_v61 = vunpack.c.l.bf16 %v1065_v46  ;;  %v657_v62 = vmul.f32 %v1135_v41, %v648_v49  ;;  %v658_v63 = vmul.f32 %v1135_v41, %v649_v50  ;;  %v1082_v46 = vld [vmem:[%s1193_s20 + $0x8] sm:$0x3]  ;;  %v1083_v47 = vld [vmem:[%s1193_s20 + $0xc] sm:$0x3] }
  0x4a   : > { %v659_v0 = vmul.f32 %v1135_v41, %v650_v57  ;;  %v669_v1 = vunpack.c.l.bf16 %v1067_v51  ;;  %v670_v2 = vunpack.c.l.bf16 %v1068_v52  ;;  %v671_v3 = vunpack.c.l.bf16 %v1069_v53  ;;  %v1084_v52 = vld [vmem:[%s1193_s20 + $0x10] sm:$0x3]  ;;  %v1139_v53 = vld [vmem:[%s1384_s1 + $0x14] ss:$0 sm:$0xff] }
  0x4b   : > { %v660_v6 = vmul.f32 %v1135_v41, %v651_v61  ;;  %v661_v7 = vadd.f32 %v657_v62, %v639_v54  ;;  %v662_v8 = vadd.f32 %v658_v63, %v640_v55  ;;  %v672_v9 = vunpack.c.l.bf16 %v1070_v58  ;;  %v1085_v58 = vld [vmem:[%s1193_s20 + $0x14] sm:$0x3]  ;;  %v1087_v63 = vld [vmem:[%s1193_s20 + $0x20] sm:$0x3] }
  0x4c   : > { %v663_v12 = vadd.f32 %v659_v0, %v641_v56  ;;  %v678_v13 = vmul.f32 %v1136_v59, %v669_v1  ;;  %v679_v14 = vmul.f32 %v1136_v59, %v670_v2  ;;  %v680_v15 = vmul.f32 %v1136_v59, %v671_v3 }
  0x4d   : > { %v664_v17 = vadd.f32 %v660_v6, %v642_v60  ;;  %v681_v18 = vmul.f32 %v1136_v59, %v672_v9  ;;  %v702_v19 = vunpack.c.l.bf16 %v1072_v4  ;;  %v703_v20 = vunpack.c.l.bf16 %v1073_v5  ;;  %v1088_v4 = vld [vmem:[%s1193_s20 + $0x24] sm:$0x3]  ;;  %v1089_v9 = vld [vmem:[%s1193_s20 + $0x28] sm:$0x3] }
  0x4e   : > { %v686_v21 = vrot.slane %v678_v13, 1  ;;  %v687_v22 = vrot.slane %v679_v14, 1  ;;  %v688_v23 = vrot.slane %v680_v15, 1  ;;  %v704_v24 = vunpack.c.l.bf16 %v1074_v10  ;;  %v1140_v10 = vld [vmem:[%s1384_s1 + $0x15] ss:$0 sm:$0xff] }
  0x4f   : > { %v689_v26 = vrot.slane %v681_v18, 1  ;;  %v705_v27 = vunpack.c.l.bf16 %v1075_v16  ;;  %v711_v28 = vmul.f32 %v1137_v11, %v702_v19  ;;  %v712_v29 = vmul.f32 %v1137_v11, %v703_v20  ;;  %v1090_v15 = vld [vmem:[%s1193_s20 + $0x2c] sm:$0x3]  ;;  %v1092_v20 = vld [vmem:[%s1193_s20 + $0x8] sm:$0x7] }
  0x50   : > { %v694_v32 = vadd.f32 %v686_v21, %v661_v7  ;;  %v695_v33 = vadd.f32 %v687_v22, %v662_v8  ;;  %v696_v34 = vadd.f32 %v688_v23, %v663_v12  ;;  %v713_v35 = vmul.f32 %v1137_v11, %v704_v24  ;;  %v1093_v21 = vld [vmem:[%s1193_s20 + $0xc] sm:$0x7]  ;;  %v1094_v22 = vld [vmem:[%s1193_s20 + $0x10] sm:$0x7] }
  0x51   : > { %v697_v38 = vadd.f32 %v689_v26, %v664_v17  ;;  %v714_v39 = vmul.f32 %v1137_v11, %v705_v27  ;;  %v719_v40 = vrot.slane %v711_v28, 1  ;;  %v720_v41 = vrot.slane %v712_v29, 1  ;;  %v1095_v27 = vld [vmem:[%s1193_s20 + $0x14] sm:$0x7] }
  0x52   : > { %v721_v42 = vrot.slane %v713_v35, 1  ;;  %v735_v43 = vunpack.c.l.bf16 %v1077_v25  ;;  %v736_v44 = vunpack.c.l.bf16 %v1078_v30  ;;  %v737_v45 = vunpack.c.l.bf16 %v1079_v31  ;;  %v1141_v28 = vld [vmem:[%s1384_s1 + $0x16] ss:$0 sm:$0xff] }
  0x53   : > { %v722_v48 = vrot.slane %v714_v39, 1  ;;  %v727_v49 = vadd.f32 %v719_v40, %v694_v32  ;;  %v728_v50 = vadd.f32 %v720_v41, %v695_v33  ;;  %v738_v51 = vunpack.c.l.bf16 %v1080_v36 }
  0x54   : > { %v729_v54 = vadd.f32 %v721_v42, %v696_v34  ;;  %v744_v55 = vmul.f32 %v1138_v37, %v735_v43  ;;  %v745_v56 = vmul.f32 %v1138_v37, %v736_v44  ;;  %v746_v57 = vmul.f32 %v1138_v37, %v737_v45  ;;  %v1099_v43 = vld [vmem:[%s1193_s20 + $0x28] sm:$0x7]  ;;  %v1142_v44 = vld [vmem:[%s1384_s1 + $0x17] ss:$0 sm:$0xff] }
  0x55   : > { %v730_v59 = vadd.f32 %v722_v48, %v697_v38  ;;  %v747_v60 = vmul.f32 %v1138_v37, %v738_v51  ;;  %v769_v61 = vunpack.c.l.bf16 %v1082_v46  ;;  %v770_v62 = vunpack.c.l.bf16 %v1083_v47  ;;  %v1097_v37 = vld [vmem:[%s1193_s20 + $0x20] sm:$0x7]  ;;  %v1098_v38 = vld [vmem:[%s1193_s20 + $0x24] sm:$0x7] }
  0x56   : > { %v752_v0 = vrot.slane %v744_v55, 2  ;;  %v753_v1 = vrot.slane %v745_v56, 2  ;;  %v754_v2 = vrot.slane %v746_v57, 2  ;;  %v771_v3 = vunpack.c.l.bf16 %v1084_v52 }
  0x57   : > { %v755_v5 = vrot.slane %v747_v60, 2  ;;  %v772_v6 = vunpack.c.l.bf16 %v1085_v58  ;;  %v778_v7 = vmul.f32 %v1139_v53, %v769_v61  ;;  %v779_v8 = vmul.f32 %v1139_v53, %v770_v62  ;;  %v1102_v58 = vld [vmem:[%s1193_s20 + $0x8] sm:$0x6] }
  0x58   : > { %v760_v11 = vadd.f32 %v752_v0, %v727_v49  ;;  %v761_v12 = vadd.f32 %v753_v1, %v728_v50  ;;  %v762_v13 = vadd.f32 %v754_v2, %v729_v54  ;;  %v780_v14 = vmul.f32 %v1139_v53, %v771_v3  ;;  %v1100_v49 = vld [vmem:[%s1193_s20 + $0x2c] sm:$0x7]  ;;  %v1104_v0 = vld [vmem:[%s1193_s20 + $0x10] sm:$0x6] }
  0x59   : > { %v763_v16 = vadd.f32 %v755_v5, %v730_v59  ;;  %v781_v17 = vmul.f32 %v1139_v53, %v772_v6  ;;  %v791_v18 = vunpack.c.l.bf16 %v1087_v63  ;;  %v792_v19 = vunpack.c.l.bf16 %v1088_v4  ;;  %v1103_v63 = vld [vmem:[%s1193_s20 + $0xc] sm:$0x6]  ;;  %v1105_v5 = vld [vmem:[%s1193_s20 + $0x14] sm:$0x6]  ;;  %v1143_v6 = vld [vmem:[%s1384_s1 + $0x18] ss:$0 sm:$0xff] }
  0x5a   : > { %v782_v23 = vadd.f32 %v778_v7, %v760_v11  ;;  %v783_v24 = vadd.f32 %v779_v8, %v761_v12  ;;  %v784_v25 = vadd.f32 %v780_v14, %v762_v13  ;;  %v793_v26 = vunpack.c.l.bf16 %v1089_v9 }
  0x5b   : > { %v785_v29 = vadd.f32 %v781_v17, %v763_v16  ;;  %v794_v30 = vunpack.c.l.bf16 %v1090_v15  ;;  %v800_v31 = vmul.f32 %v1140_v10, %v791_v18  ;;  %v801_v32 = vmul.f32 %v1140_v10, %v792_v19 }
  0x5c   : > { %v802_v33 = vmul.f32 %v1140_v10, %v793_v26  ;;  %v812_v34 = vunpack.c.l.bf16 %v1092_v20  ;;  %v813_v35 = vunpack.c.l.bf16 %v1093_v21  ;;  %v814_v36 = vunpack.c.l.bf16 %v1094_v22 }
  0x5d   : > { %v803_v39 = vmul.f32 %v1140_v10, %v794_v30  ;;  %v804_v40 = vadd.f32 %v800_v31, %v782_v23  ;;  %v805_v41 = vadd.f32 %v801_v32, %v783_v24  ;;  %v815_v42 = vunpack.c.l.bf16 %v1095_v27 }
  0x5e   : > { %v806_v45 = vadd.f32 %v802_v33, %v784_v25  ;;  %v821_v46 = vmul.f32 %v1141_v28, %v812_v34  ;;  %v822_v47 = vmul.f32 %v1141_v28, %v813_v35  ;;  %v823_v48 = vmul.f32 %v1141_v28, %v814_v36  ;;  %v1145_v33 = vld [vmem:[%s1386_s3] ss:$0 sm:$0xff] }
  0x5f   : > { %v807_v50 = vadd.f32 %v803_v39, %v785_v29  ;;  %v824_v51 = vmul.f32 %v1141_v28, %v815_v42  ;;  %v845_v52 = vunpack.c.l.bf16 %v1097_v37  ;;  %v846_v53 = vunpack.c.l.bf16 %v1098_v38  ;;  %v1144_v28 = vld [vmem:[%s1385_s2] ss:$0 sm:$0xff] }
  0x60   : > { %v829_v54 = vrot.slane %v821_v46, 1  ;;  %v830_v55 = vrot.slane %v822_v47, 1  ;;  %v831_v56 = vrot.slane %v823_v48, 1  ;;  %v847_v57 = vunpack.c.l.bf16 %v1099_v43 }
  0x61   : > { %v832_v59 = vrot.slane %v824_v51, 1  ;;  %v848_v60 = vunpack.c.l.bf16 %v1100_v49  ;;  %v854_v61 = vmul.f32 %v1142_v44, %v845_v52  ;;  %v855_v62 = vmul.f32 %v1142_v44, %v846_v53 }
  0x62   : > { %v837_v1 = vadd.f32 %v829_v54, %v804_v40  ;;  %v838_v2 = vadd.f32 %v830_v55, %v805_v41  ;;  %v839_v3 = vadd.f32 %v831_v56, %v806_v45  ;;  %v856_v4 = vmul.f32 %v1142_v44, %v847_v57 }
  0x63   : > { %v840_v7 = vadd.f32 %v832_v59, %v807_v50  ;;  %v857_v8 = vmul.f32 %v1142_v44, %v848_v60  ;;  %v862_v9 = vrot.slane %v854_v61, 1  ;;  %v863_v10 = vrot.slane %v855_v62, 1 }
  0x64   : > { %v864_v11 = vrot.slane %v856_v4, 1  ;;  %v878_v12 = vunpack.c.l.bf16 %v1102_v58  ;;  %v879_v13 = vunpack.c.l.bf16 %v1103_v63  ;;  %v880_v14 = vunpack.c.l.bf16 %v1104_v0 }
  0x65   : > { %v865_v15 = vrot.slane %v857_v8, 1  ;;  %v870_v16 = vadd.f32 %v862_v9, %v837_v1  ;;  %v871_v17 = vadd.f32 %v863_v10, %v838_v2  ;;  %v881_v18 = vunpack.c.l.bf16 %v1105_v5 }
  0x66   : > { %v872_v19 = vadd.f32 %v864_v11, %v839_v3  ;;  %v887_v20 = vmul.f32 %v1143_v6, %v878_v12  ;;  %v888_v21 = vmul.f32 %v1143_v6, %v879_v13  ;;  %v889_v22 = vmul.f32 %v1143_v6, %v880_v14 }
  0x67   : > { %v873_v23 = vadd.f32 %v865_v15, %v840_v7  ;;  %v890_v24 = vmul.f32 %v1143_v6, %v881_v18 }
  0x68   : > { %v895_v25 = vrot.slane %v887_v20, 2  ;;  %v896_v26 = vrot.slane %v888_v21, 2  ;;  %v897_v27 = vrot.slane %v889_v22, 2 }
  0x69   : > { %v898_v29 = vrot.slane %v890_v24, 2 }
  0x6a   : > { %v903_v30 = vadd.f32 %v895_v25, %v870_v16  ;;  %v904_v31 = vadd.f32 %v896_v26, %v871_v17  ;;  %v905_v32 = vadd.f32 %v897_v27, %v872_v19 }
  0x6b   : > { %v906_v34 = vadd.f32 %v898_v29, %v873_v23 }
  0x6c   : > { %v911_v35 = vmul.f32 %v1144_v28, %v903_v30  ;;  %v912_v36 = vmul.f32 %v1144_v28, %v904_v31  ;;  %v913_v37 = vmul.f32 %v1144_v28, %v905_v32 }
  0x6d   : > { %v914_v38 = vmul.f32 %v1144_v28, %v906_v34 }
  0x6e   : > { %v919_v39 = vadd.f32 %v1145_v33, %v911_v35  ;;  %v920_v40 = vadd.f32 %v1145_v33, %v912_v36  ;;  %v921_v41 = vadd.f32 %v1145_v33, %v913_v37 }
  0x6f   : > { %v922_v42 = vadd.f32 %v1145_v33, %v914_v38 }
  0x70   : > { %v923_v43 = vpack.c.bf16 %v919_v39, %v919_v39  ;;  %v924_v44 = vpack.c.bf16 %v920_v40, %v920_v40  ;;  %v925_v45 = vpack.c.bf16 %v921_v41, %v921_v41 }
  0x71   : > { %v926_v46 = vpack.c.bf16 %v922_v42, %v922_v42 }
  0x72   : > { %928 = vst.msk [vmem:[%s197_s5] sm:$0x3] %vm927_vm0, %v923_v43 }
  0x73   : > { %929 = vst.msk [vmem:[%s197_s5 + $0x2] sm:$0x3] %vm927_vm0, %v924_v44 }
  0x74   : > { %930 = vst.msk [vmem:[%s197_s5 + $0x4] sm:$0x3] %vm927_vm0, %v925_v45 }
  0x75   : > { %931 = vst.msk [vmem:[%s197_s5 + $0x6] sm:$0x3] %vm927_vm0, %v926_v46 }
  0x76 PF: > { %s14_s15 = sadd.s32 1, %s1152_s15  }
  0x77   : > { %p11_p4 = scmp.ge.s32.totalorder %s14_s15, 4  }
  0x79   :  { %13 = sbr.rel (!%p11_p4) target bundleno = 1 (0x1), region = 99 }

// kernel: _lambda_.26
= control target key start
LH: loop header
LB: loop body
LE: loop exit
PB: predicated region body
PF: predicated region fallthrough
CT: control target
= control target key end

     0   :  { %s448_s15 = smov 0   ;;  %s450_s16 = smov 0   ;;  %s499_s0 = inlined_call_operand.vmem [shape: bf16[2,1,64], index: 0, kind: input, shape index: {}]   ;;  %s500_s1 = inlined_call_operand.vmem [shape: bf16[64,64], index: 1, kind: input, shape index: {}]   ;;  %s501_s2 = inlined_call_operand.vmem [shape: f32[1,64], index: 2, kind: input, shape index: {}]   ;;  %s502_s3 = inlined_call_operand.vmem [shape: f32[1,64], index: 3, kind: input, shape index: {}]   ;;  %s503_s4 = inlined_call_operand.vmem [shape: bf16[2,1,64], index: 4, kind: output, shape index: {}]  }
   0x1   :  { %s452_s17 = smov 0  }
   0x2 LB: > { %s26_s18 = sadd.s32 1, %s417_s16  ;;  %p351_p0 = scmp.ge.s32.totalorder %s421_s17, 1  ;;  %s421_s17 = sphi %s452_s17, %s14_s17   ;;  %s417_s16 = sphi %s450_s16, %s505_s16   ;;  %s413_s15 = sphi %s448_s15, %s504_s15  }
   0x3   : > { %p28_p1 = scmp.ge.s32.totalorder %s26_s18, 2  ;;  %p179_p2 = scmp.lt.s32.totalorder %s421_s17, 3 }
   0x5   : > { %s507_s18 = smov (%p28_p1, %s26_s18), 0  ;;  %p180_p3 = pnand %p351_p0, %p179_p2 }
   0x6   : > { %p207_p4 = scmp.lt.s32.totalorder (!%p180_p3), %s413_s15, 1 }
   0x7   : > { %183 = sbr.rel (%p180_p3) target bundleno = 164 (0xa4), region = 36 }
   0xc   : > { %v374_v0 = vld [vmem:[%s500_s1 + $0x18] sm:$0xff]  ;;  %v373_v1 = vld [vmem:[%s500_s1 + $0x10] sm:$0xff]  ;;  %v372_v2 = vld [vmem:[%s500_s1 + $0x8] sm:$0xff]  ;;  %s509_s15 = smov (!%p207_p4, %s413_s15), 1  ;;  %vm253_vm0 = vcmask 523264   ;;  %vm276_vm1 = vcmask 516096  }
   0xd   : > { %261 = vmatpush.bf16.msra.mxu0 %v374_v0  ;;  %v371_v3 = vld [vmem:[%s500_s1] sm:$0xff]  ;;  %s212_s29 = scalar_lea.vmem %s499_s0, %s509_s15  ;;  %s218_s10 = scalar_lea.vmem %s503_s4, %s509_s15  ;;  %vm277_vm2 = vsmask.f32 256 }
   0xe   : > { %v220_v4 = vld [vmem:[%s212_s29] sm:$0x1]  ;;  %vm278_vm3 = vmand %vm276_vm1, %vm277_vm2 }
   0xf   : > { %v270_v5 = vld [vmem:[%s501_s2] sm:$0x1] }
  0x10   : > { %v272_v7 = vld [vmem:[%s502_s3] sm:$0x1] }
  0x11   : > { %262 = vmatpush.bf16.msra.mxu0 %v373_v1  ;;  %v279_v11 = vld [vmem:[%s218_s10] sm:$0x1] }
  0x15   : > { %263 = vmatpush.bf16.msra.mxu0 %v372_v2 }
  0x19   : > { %264 = vmatpush.bf16.msra.mxu0 %v371_v3 }
  0x1c   : > { %368 = vmatmul.msk.bf16.vlgmr.msra.gmra.mxu0 %vm253_vm0, %v220_v4 }
  0x99   : > { %v266_v6 = vpop.f32.mrf.mxu0 }
  0x9a   : > { %v271_v8 = vmul.f32 %v270_v5, %v266_v6 }
  0x9c   : > { %v273_v9 = vadd.f32 %v272_v7, %v271_v8 }
  0x9e   : > { %v274_v10 = vmax.f32 %v273_v9, 0.0 }
  0xa0   : > { %v275_v12 = vpack.c.bf16 %v274_v10, %v274_v10 }
  0xa1   : > { %v268_v13 = vpop.f32.mrf.mxu0 }
  0xa2   : > { %v280_v14 = vsel %vm278_vm3, %v275_v12, %v279_v11 }
  0xa3   : > { %281 = vst [vmem:[%s218_s10] sm:$0x1] %v280_v14 }
  0xa4 PF: > { %s14_s17 = sadd.s32 1, %s421_s17   ;;  %s504_s15 = smov %s417_s16 }
  0xa5   : > { %p11_p5 = scmp.ge.s32.totalorder %s14_s17, 4   ;;  %s505_s16 = smov %s507_s18 }
  0xa7   :  { %13 = sbr.rel (!%p11_p5) target bundleno = 2 (0x2), region = 66 }

// kernel: _lambda_.27
= control target key start
LH: loop header
LB: loop body
LE: loop exit
PB: predicated region body
PF: predicated region fallthrough
CT: control target
= control target key end

     0   :  { %9 = vsyncpa [#allocation3], 0  ;;  %s652_s0 = inlined_call_operand.vmem [shape: bf16[2,1,64], index: 0, kind: input, shape index: {}]   ;;  %s653_s1 = inlined_call_operand.vmem [shape: bf16[64,5], index: 1, kind: input, shape index: {}]   ;;  %s654_s2 = inlined_call_operand.vmem [shape: f32[1,5], index: 2, kind: input, shape index: {}]   ;;  %s655_s3 = inlined_call_operand.vmem [shape: f32[1,5], index: 3, kind: input, shape index: {}]   ;;  %s656_s4 = inlined_call_operand.hbm [shape: f32[2,1,5], index: 4, kind: output, shape index: {}]  }
   0x1   :  { %11 = vsyncpa [#allocation3 + $0x1], 0  ;;  %s537_s15 = smov 0   ;;  %s539_s16 = smov 0  }
   0x2   :  { %s541_s17 = smov 0   ;;  %s543_s18 = smov 0  }
   0x3   :  { %s545_s19 = smov 0   ;;  %s547_s20 = smov 0  }
   0x4 LB: > { %s349_s21 = sadd.s32 4294967295, %s510_s20   ;;  %s350_s22 = sadd.s32 4294967294, %s510_s20   ;;  %s510_s20 = sphi %s547_s20, %s17_s20   ;;  %s506_s19 = sphi %s545_s19, %s663_s19   ;;  %s502_s18 = sphi %s543_s18, %s662_s18   ;;  %s498_s17 = sphi %s541_s17, %s661_s17   ;;  %s494_s16 = sphi %s539_s16, %s660_s16   ;;  %s490_s15 = sphi %s537_s15, %s659_s15  }
   0x5   : > { %s29_s23 = sadd.s32 1, %s506_s19  ;;  %s129_s24 = sadd.s32 1, %s498_s17 }
   0x6   : > { %p31_p0 = scmp.ge.s32.totalorder %s29_s23, 2  ;;  %p139_p1 = scmp.ne.s32.totalorder %s498_s17, %s494_s16 }
   0x7   : > { %p140_p2 = scmp.eq.s32.totalorder %s349_s21, 1  ;;  %p145_p3 = scmp.ne.s32.totalorder %s494_s16, %s490_s15 }
   0x8   : > { %s665_s23 = smov (%p31_p0, %s29_s23), 0  ;;  %p146_p5 = scmp.eq.s32.totalorder %s350_s22, 1 }
   0x9   : > { %p577_p4 = por %p140_p2, %p139_p1  ;;  %s124_s26 = ssub.s32 %s506_s19, %s665_s23 }
   0xa   : > { %p353_p6 = scmp.ge.s32.totalorder %s510_s20, 1  ;;  %p127_p7 = scmp.eq.s32.totalorder %s124_s26, 0 }
   0xb   : > { %p584_p8 = por %p146_p5, %p145_p3  ;;  %p182_p9 = scmp.lt.s32.totalorder %s510_s20, 3 }
   0xc   : > { %s590_s28 = scalar_select %p127_p7, %s498_s17, %s129_s24  }
   0xd   : > { %p183_p10 = pnand %p353_p6, %p182_p9 }
   0xe   : > { %p208_p11 = scmp.lt.s32.totalorder (!%p183_p10), %s502_s18, 1  ;;  %s206_s21 = sand.u32 (!%p183_p10), 1, %s494_s16  }
   0xf   : > { %186 = sbr.rel (%p183_p10) target bundleno = 170 (0xaa), region = 36  ;;  %s281_s26 = scalar_lea.hbm (!%p183_p10), %s656_s4, %s502_s18 }
  0x10   : > { %s207_s7 = scalar_lea.vmem (!%p183_p10), [#allocation2], %s206_s21 }
  0x11   : > { %s283_s8 = sshll.u32 (!%p183_p10), %s207_s7, 4  ;;  %s284_s8 = int_to_ptr.vmem [resolvable:$true] %s283_s8 }
  0x14   : > { %v376_v0 = vld [vmem:[%s653_s1 + $0x18] sm:$0xff]  ;;  %v375_v1 = vld [vmem:[%s653_s1 + $0x10] sm:$0xff]  ;;  %v374_v2 = vld [vmem:[%s653_s1 + $0x8] sm:$0xff]  ;;  %s209_s9 = scalar_select %p208_p11, %s502_s18, 1  ;;  %vm248_vm0 = vcmask 523264   ;;  %vm269_vm1 = vcmask 32768  }
  0x15   : > { %256 = vmatpush.bf16.msra.mxu0 %v376_v0  ;;  %v373_v3 = vld [vmem:[%s653_s1] sm:$0xff]  ;;  %s272_s18 = scalar_lea.sflag [#allocation3], %s206_s21 }
  0x16   : > { %s213_s14 = scalar_lea.vmem %s652_s0, %s209_s9  ;;  %v265_v5 = vld [vmem:[%s654_s2] sm:$0x1]  ;;  %s285_s9 = sshll.u32 %s281_s26, 4  ;;  %s286_s9 = int_to_ptr.hbm [resolvable:$true] %s285_s9 }
  0x17   : > { %v215_v4 = vld [vmem:[%s213_s14] sm:$0x1]  ;;  %s446_s10 = sshra.s32 %s286_s9, 4  ;;  %s452_s14 = scalar_lea.hbm %s656_s4, 2  ;;  %s447_s10 = int_to_ptr.hbm [resolvable:$true] %s446_s10 }
  0x18   : > { %v267_v7 = vld [vmem:[%s655_s3] sm:$0x1]  ;;  %s448_s11 = scalar_lea.hbm %s447_s10, 1  ;;  %p453_p1 = scmp.lt.s32.totalorder %s447_s10, %s656_s4 }
  0x19   : > { %257 = vmatpush.bf16.msra.mxu0 %v375_v1  ;;  %p449_p12 = scmp.ne.s32.totalorder %s447_s10, %s448_s11  ;;  %p454_p2 = scmp.lt.s32.totalorder %s452_s14, %s448_s11 }
  0x1b   : > { %p450_p13 = pnand %p449_p12, %p577_p4  ;;  %p455_p3 = por %p454_p2, %p453_p1 }
  0x1d   : > { %258 = vmatpush.bf16.msra.mxu0 %v374_v2  ;;  %p451_p0 = pneg %p450_p13 }
  0x1f   : > { %p456_p5 = pnand %p455_p3, %p451_p0 }
  0x21   : > { %259 = vmatpush.bf16.msra.mxu0 %v373_v3 }
  0x24   : > { %370 = vmatmul.msk.bf16.vlgmr.msra.gmra.mxu0 %vm248_vm0, %v215_v4 }
  0xa1   : > { %v261_v6 = vpop.f32.mrf.mxu0 }
  0xa2   : > { %v266_v8 = vmul.f32 %v265_v5, %v261_v6 }
  0xa4   : > { %v268_v9 = vadd.f32 %v267_v7, %v266_v8 }
  0xa6   : > { %270 = vst.msk [vmem:[%s207_s7] sm:$0x1] %vm269_vm1, %v268_v9 }
  0xa7   : > { %459 = shalt.err (!%p456_p5)
}
  0xa8   : > { %377 = dma.vmem_to_hbm [thread:$0]  (%p577_p4), %s284_s8, 16, %s286_s9, %s272_s18  }
  0xa9   : > { %v263_v10 = vpop.f32.mrf.mxu0 }
  0xaa PF: > { %p383_p6 = scmp.ge.s32.totalorder %s510_s20, 2  ;;  %s297_s21 = sand.u32 1, %s490_s15  }
  0xab   : > { %s298_s26 = scalar_lea.sflag [#allocation3], %s297_s21 }
  0xac   : > { %p380_p7 = pnand %p383_p6, %p584_p8 }
  0xae   : > { %p381_p9 = pneg %p380_p7 }
  0xb0   : > { %485 = dma.done.wait (%p381_p9), %s298_s26, 16  }
  0xb1   : > { %487 = vsyncadd (%p381_p9), %s298_s26, 4294967280  ;;  %s17_s20 = sadd.s32 1, %s510_s20   ;;  %s659_s15 = smov %s494_s16 }
  0xb2   : > { %p14_p10 = scmp.ge.s32.totalorder %s17_s20, 4   ;;  %s660_s16 = smov %s498_s17 }
  0xb3   : > { %s661_s17 = smov %s590_s28  ;;  %s662_s18 = smov %s506_s19 }
  0xb4   : > { %s663_s19 = smov %s665_s23  ;;  %16 = sbr.rel (!%p14_p10) target bundleno = 4 (0x4), region = 71 }
  0xb9   :  { %303 = vsyncpa [#allocation3], 1 }
  0xba   :  { %305 = vsyncpa [#allocation3 + $0x1], 1 }

</bundles_post_ra>
